<compile_context>
chip_gen: v5e
topology: v5e:2x2
jax: 0.10.0
libtpu: 0.0.40
codegen_flags: <defaults>
</compile_context>

<pallas_src>
import functools

import numpy as np
import jax
import jax.numpy as jnp
from jax.experimental import pallas as pl
from jax.experimental.pallas import tpu as pltpu


# Static conv geometry of TimeConvBlock
K1, P1 = 10, 5      # conv1: kernel (1, 10), padding (0, 5)
K2, P2 = 3, 1       # TemporalConvUnit convs: kernel (1, 3), padding (0, 1)
_FRONT = 2 * P2     # front margin inside each chunk (later stages shift left by P2 each)
_TAIL_MIN = 16      # tail margin inside each chunk (>= total shrink of 13)
_BN_EPS = 1e-5


def _round_up(v, m):
    return (v + m - 1) // m * m


def _fold_bn(w, b, gamma, beta, mean, var, eps=_BN_EPS):
    """Fold eval-mode BatchNorm2d (+ conv bias) into conv weight/bias."""
    g = gamma / jnp.sqrt(var + eps)
    w_eff = w * g[:, None, None, None]
    b_eff = g * (b - mean) + beta
    return w_eff, b_eff


def _stack_taps(w):
    """(Cout, Cin, 1, K) -> (K*Cout, Cin): tap-major stacking along sublanes."""
    c_out, c_in, _, k = w.shape
    return jnp.transpose(w[:, :, 0, :], (2, 0, 1)).reshape(k * c_out, c_in)


def _make_kernel(c_out, hs, c_len, bb, l0, inv_count):
    l1 = l0 - (K1 - 1)          # after conv1
    l2 = l1 - (K2 - 1)          # after unit1 conv
    l3 = l2 - (K2 - 1)          # after unit2 conv

    def kernel(x_ref, mask_ref, seg_ref,
               w1_ref, b1_ref, w2_ref, b2_ref, w3_ref, b3_ref,
               wse1_ref, wse2_ref, o_ref):
        x = x_ref[...]              # (Cin, L0)   flat, lane-dense
        mask = mask_ref[...]        # (1, L0)     0/1 validity mask (shifted slices reused)
        w1 = w1_ref[...]            # (K1*Cout, Cin)
        w2 = w2_ref[...]            # (K2*Cout, Cout)
        w3 = w3_ref[...]            # (K2*Cout, Cout)

        # ---- stage 1: conv1 (1 x K1, pad P1) + bias -------------------------------
        acc = jnp.dot(w1[0:c_out, :], x[:, 0:l1], preferred_element_type=jnp.float32)
        for k in range(1, K1):
            acc = acc + jnp.dot(w1[k * c_out:(k + 1) * c_out, :], x[:, k:k + l1],
                                preferred_element_type=jnp.float32)
        y1 = (acc + b1_ref[...]) * mask[:, 0:l1]                       # (Cout, L1)

        # ---- stage 2: unit1 conv (BN folded) + bias -> ReLU -----------------------
        acc = jnp.dot(w2[0:c_out, :], y1[:, 0:l2], preferred_element_type=jnp.float32)
        for k in range(1, K2):
            acc = acc + jnp.dot(w2[k * c_out:(k + 1) * c_out, :], y1[:, k:k + l2],
                                preferred_element_type=jnp.float32)
        u1 = jnp.maximum(acc + b2_ref[...], 0.0) * mask[:, 1:1 + l2]   # (Cout, L2)

        # ---- stage 3: unit2 conv (BN folded) + bias -> ReLU -----------------------
        acc = jnp.dot(w3[0:c_out, :], u1[:, 0:l3], preferred_element_type=jnp.float32)
        for k in range(1, K2):
            acc = acc + jnp.dot(w3[k * c_out:(k + 1) * c_out, :], u1[:, k:k + l3],
                                preferred_element_type=jnp.float32)
        u2 = jnp.maximum(acc + b3_ref[...], 0.0) * mask[:, 2:2 + l3]   # (Cout, L3)

        # ---- SE: batched over all Bb batch elements at once -----------------------
        pooled = jnp.dot(u2, seg_ref[...],
                         preferred_element_type=jnp.float32) * inv_count    # (Cout, Bb)
        h = jnp.maximum(jnp.dot(wse1_ref[...], pooled,
                                preferred_element_type=jnp.float32), 0.0)   # (Cred, Bb)
        gate = jax.nn.sigmoid(jnp.dot(wse2_ref[...], h,
                                      preferred_element_type=jnp.float32))  # (Cout, Bb)

        # ---- channel-wise rescale + lane-dense stores (one chunk per batch elem) --
        for b in range(bb):
            lo = b * c_len
            o_ref[:, lo:lo + hs] = u2[:, lo:lo + hs] * gate[:, b:b + 1]

    return kernel


@functools.partial(jax.jit, static_argnames=("batch_block",))
def time_conv_block(x, params, batch_block=None):
    """Inference forward pass of TimeConvBlock. x: (B, Cin, H, W) NCHW float32."""
    B, c_in, H, W = x.shape
    w1 = params["conv1_w"]
    c_out = w1.shape[0]

    W1 = W + 2 * P1 - K1 + 1            # = W + 1 (output time width)
    S = W + 2 * P1                      # per-row stride in the flat layout
    HS = H * S
    c_len = _round_up(_FRONT + HS + _TAIL_MIN, 128)   # per-batch chunk (lane aligned)

    bb = B if batch_block is None else int(batch_block)
    assert B % bb == 0, "batch_block must divide the batch size"
    n_blocks = B // bb
    l0 = bb * c_len
    l3 = l0 - (K1 - 1) - 2 * (K2 - 1)

    # ---- fold BN + biases, tap-stack conv weights (tiny XLA-side preprocessing) ---
    w2_eff, b2_eff = _fold_bn(params["u1_conv_w"], params["u1_conv_b"],
                              params["u1_bn_gamma"], params["u1_bn_beta"],
                              params["u1_bn_mean"], params["u1_bn_var"])
    w3_eff, b3_eff = _fold_bn(params["u2_conv_w"], params["u2_conv_b"],
                              params["u2_bn_gamma"], params["u2_bn_beta"],
                              params["u2_bn_mean"], params["u2_bn_var"])
    w1_s = _stack_taps(w1.astype(jnp.float32))          # (K1*Cout, Cin)
    w2_s = _stack_taps(w2_eff.astype(jnp.float32))      # (K2*Cout, Cout)
    w3_s = _stack_taps(w3_eff.astype(jnp.float32))      # (K2*Cout, Cout)
    b1_c = params["conv1_b"].astype(jnp.float32).reshape(c_out, 1)
    b2_c = b2_eff.astype(jnp.float32).reshape(c_out, 1)
    b3_c = b3_eff.astype(jnp.float32).reshape(c_out, 1)
    wse1 = params["se_fc1_w"].astype(jnp.float32)       # (Cred, Cout)  PyTorch (out, in)
    wse2 = params["se_fc2_w"].astype(jnp.float32)       # (Cout, Cred)

    # ---- build the flat, per-batch-chunk input layout -----------------------------
    x_p = jnp.pad(x.astype(jnp.float32), ((0, 0), (0, 0), (0, 0), (P1, P1)))  # (B,Cin,H,S)
    x_f = jnp.transpose(x_p, (1, 0, 2, 3)).reshape(c_in, B, HS)
    x_f = jnp.pad(x_f, ((0, 0), (0, 0), (_FRONT, c_len - _FRONT - HS)))
    x_f = x_f.reshape(c_in, B * c_len)

    # ---- static 0/1 validity mask and pooling segment matrix (per block) ----------
    per_chunk = np.zeros((c_len,), np.float32)
    for r in range(H):
        per_chunk[_FRONT + r * S: _FRONT + r * S + W1] = 1.0
    mask = jnp.asarray(np.tile(per_chunk, bb)[None, :])            # (1, L0)

    seg_np = np.zeros((l3, bb), np.float32)
    for b in range(bb):
        seg_np[b * c_len: min((b + 1) * c_len, l3), b] = 1.0
    seg = jnp.asarray(seg_np)                                      # (L3, Bb)

    kernel = _make_kernel(c_out, HS, c_len, bb, l0, 1.0 / float(H * W1))

    out_flat = pl.pallas_call(
        kernel,
        out_shape=jax.ShapeDtypeStruct((c_out, B * c_len), jnp.float32),
        grid=(n_blocks,),
        in_specs=[
            pl.BlockSpec((c_in, l0), lambda i: (0, i)),      # x (flat, per-batch chunks)
            pl.BlockSpec((1, l0), lambda i: (0, 0)),         # validity mask
            pl.BlockSpec((l3, bb), lambda i: (0, 0)),        # pooling segment matrix
            pl.BlockSpec(w1_s.shape, lambda i: (0, 0)),      # conv1 weights (tap-stacked)
            pl.BlockSpec((c_out, 1), lambda i: (0, 0)),      # conv1 bias
            pl.BlockSpec(w2_s.shape, lambda i: (0, 0)),      # unit1 conv weights (BN folded)
            pl.BlockSpec((c_out, 1), lambda i: (0, 0)),      # unit1 bias (BN folded)
            pl.BlockSpec(w3_s.shape, lambda i: (0, 0)),      # unit2 conv weights (BN folded)
            pl.BlockSpec((c_out, 1), lambda i: (0, 0)),      # unit2 bias (BN folded)
            pl.BlockSpec(wse1.shape, lambda i: (0, 0)),      # SE fc1 weight
            pl.BlockSpec(wse2.shape, lambda i: (0, 0)),      # SE fc2 weight
        ],
        out_specs=pl.BlockSpec((c_out, l0), lambda i: (0, i)),
        compiler_params=pltpu.CompilerParams(
            dimension_semantics=("parallel",),
        ),
    )(x_f, mask, seg, w1_s, b1_c, w2_s, b2_c, w3_s, b3_c, wse1, wse2)

    # ---- un-flatten back to NCHW (B, Cout, H, W+1) --------------------------------
    out = out_flat.reshape(c_out, B, c_len)[:, :, :HS]
    out = out.reshape(c_out, B, H, S)[:, :, :, :W1]
    return jnp.transpose(out, (1, 0, 2, 3)).astype(x.dtype)


# ----------------------------------------------------------------------------------
# pure-JAX reference (eval-mode semantics of the PyTorch module)
# ----------------------------------------------------------------------------------
def _conv_1xk_ref(inp, w, b, pad):
    out = jax.lax.conv_general_dilated(
        inp, w, window_strides=(1, 1), padding=((0, 0), (pad, pad)),
        dimension_numbers=("NCHW", "OIHW", "NCHW"))
    return out + b[None, :, None, None]


def _unit_ref(inp, w, b, gamma, beta, mean, var):
    z = _conv_1xk_ref(inp, w, b, P2)
    z = (z - mean[None, :, None, None]) / jnp.sqrt(var + _BN_EPS)[None, :, None, None]
    z = z * gamma[None, :, None, None] + beta[None, :, None, None]
    return jnp.maximum(z, 0.0)          # Dropout is identity in eval mode


def _ref_forward(x, p):
    y = _conv_1xk_ref(x, p["conv1_w"], p["conv1_b"], P1)
    y = _unit_ref(y, p["u1_conv_w"], p["u1_conv_b"], p["u1_bn_gamma"],
                  p["u1_bn_beta"], p["u1_bn_mean"], p["u1_bn_var"])
    y = _unit_ref(y, p["u2_conv_w"], p["u2_conv_b"], p["u2_bn_gamma"],
                  p["u2_bn_beta"], p["u2_bn_mean"], p["u2_bn_var"])
    pooled = jnp.mean(y, axis=(2, 3))
    h = jnp.maximum(pooled @ p["se_fc1_w"].T, 0.0)
    s = jax.nn.sigmoid(h @ p["se_fc2_w"].T)
    return y * s[:, :, None, None]


if __name__ == "__main__":
    B, Cin, Cout, H, W = 2, 4, 32, 16, 16
    reduction = 16
    Cred = Cout // reduction

    keys = jax.random.split(jax.random.PRNGKey(0), 20)
    x = jax.random.normal(keys[0], (B, Cin, H, W), dtype=jnp.float32)

    def rnd(k, shape, fan_in):
        return jax.random.normal(k, shape, dtype=jnp.float32) / np.sqrt(fan_in)

    params = {
        "conv1_w": rnd(keys[1], (Cout, Cin, 1, K1), Cin * K1),
        "conv1_b": rnd(keys[2], (Cout,), Cin * K1),
        "u1_conv_w": rnd(keys[3], (Cout, Cout, 1, K2), Cout * K2),
        "u1_conv_b": rnd(keys[4], (Cout,), Cout * K2),
        "u1_bn_gamma": 1.0 + 0.1 * jax.random.normal(keys[5], (Cout,), dtype=jnp.float32),
        "u1_bn_beta": 0.1 * jax.random.normal(keys[6], (Cout,), dtype=jnp.float32),
        "u1_bn_mean": 0.1 * jax.random.normal(keys[7], (Cout,), dtype=jnp.float32),
        "u1_bn_var": jax.random.uniform(keys[8], (Cout,), minval=0.5, maxval=1.5,
                                        dtype=jnp.float32),
        "u2_conv_w": rnd(keys[9], (Cout, Cout, 1, K2), Cout * K2),
        "u2_conv_b": rnd(keys[10], (Cout,), Cout * K2),
        "u2_bn_gamma": 1.0 + 0.1 * jax.random.normal(keys[11], (Cout,), dtype=jnp.float32),
        "u2_bn_beta": 0.1 * jax.random.normal(keys[12], (Cout,), dtype=jnp.float32),
        "u2_bn_mean": 0.1 * jax.random.normal(keys[13], (Cout,), dtype=jnp.float32),
        "u2_bn_var": jax.random.uniform(keys[14], (Cout,), minval=0.5, maxval=1.5,
                                        dtype=jnp.float32),
        "se_fc1_w": rnd(keys[15], (Cred, Cout), Cout),   # nn.Linear(C, C//r, bias=False)
        "se_fc2_w": rnd(keys[16], (Cout, Cred), Cred),   # nn.Linear(C//r, C, bias=False)
    }

    out = time_conv_block(x, params)
    out = jax.block_until_ready(out)

    ref = _ref_forward(x, params)
    assert out.shape == (B, Cout, H, W + 1) and out.dtype == x.dtype
    assert jnp.allclose(out, ref, atol=3e-2, rtol=3e-2), \
        float(jnp.max(jnp.abs(out - ref)))

    print("KERNEL_OK")
</pallas_src>

<mosaic_0001>
module attributes {stable_mosaic.version = 11 : i64} {
  func.func @kernel(%arg0: i32, %arg1: memref<4x1024xf32, #tpu.memory_space<vmem>>, %arg2: memref<1x1024xf32, #tpu.memory_space<vmem>>, %arg3: memref<1011x2xf32, #tpu.memory_space<vmem>>, %arg4: memref<320x4xf32, #tpu.memory_space<vmem>>, %arg5: memref<32x1xf32, #tpu.memory_space<vmem>>, %arg6: memref<96x32xf32, #tpu.memory_space<vmem>>, %arg7: memref<32x1xf32, #tpu.memory_space<vmem>>, %arg8: memref<96x32xf32, #tpu.memory_space<vmem>>, %arg9: memref<32x1xf32, #tpu.memory_space<vmem>>, %arg10: memref<2x32xf32, #tpu.memory_space<vmem>>, %arg11: memref<32x2xf32, #tpu.memory_space<vmem>>, %arg12: memref<32x1024xf32, #tpu.memory_space<vmem>>) attributes {dimension_semantics = [#tpu.dimension_semantics<parallel>], iteration_bounds = array<i64: 1>, scalar_prefetch = 0 : i64, scratch_operands = 0 : i64, tpu.core_type = #tpu.core_type<tc>, window_params = [{transform_indices = @transform_0, window_bounds = array<i64: 4, 1024>}, {pipeline_mode = #tpu.pipeline_mode<synchronous>, transform_indices = @transform_1, window_bounds = array<i64: 1, 1024>}, {pipeline_mode = #tpu.pipeline_mode<synchronous>, transform_indices = @transform_2, window_bounds = array<i64: 1011, 2>}, {pipeline_mode = #tpu.pipeline_mode<synchronous>, transform_indices = @transform_3, window_bounds = array<i64: 320, 4>}, {pipeline_mode = #tpu.pipeline_mode<synchronous>, transform_indices = @transform_4, window_bounds = array<i64: 32, 1>}, {pipeline_mode = #tpu.pipeline_mode<synchronous>, transform_indices = @transform_5, window_bounds = array<i64: 96, 32>}, {pipeline_mode = #tpu.pipeline_mode<synchronous>, transform_indices = @transform_6, window_bounds = array<i64: 32, 1>}, {pipeline_mode = #tpu.pipeline_mode<synchronous>, transform_indices = @transform_7, window_bounds = array<i64: 96, 32>}, {pipeline_mode = #tpu.pipeline_mode<synchronous>, transform_indices = @transform_8, window_bounds = array<i64: 32, 1>}, {pipeline_mode = #tpu.pipeline_mode<synchronous>, transform_indices = @transform_9, window_bounds = array<i64: 2, 32>}, {pipeline_mode = #tpu.pipeline_mode<synchronous>, transform_indices = @transform_10, window_bounds = array<i64: 32, 2>}, {transform_indices = @transform_11, window_bounds = array<i64: 32, 1024>}]} {
    %c0 = arith.constant 0 : index
    %c0_0 = arith.constant 0 : index
    %0 = vector.load %arg1[%c0, %c0_0] : memref<4x1024xf32, #tpu.memory_space<vmem>>, vector<4x1024xf32>
    %c0_1 = arith.constant 0 : index
    %c0_2 = arith.constant 0 : index
    %1 = vector.load %arg2[%c0_1, %c0_2] : memref<1x1024xf32, #tpu.memory_space<vmem>>, vector<1x1024xf32>
    %c0_3 = arith.constant 0 : index
    %c0_4 = arith.constant 0 : index
    %2 = vector.load %arg4[%c0_3, %c0_4] : memref<320x4xf32, #tpu.memory_space<vmem>>, vector<320x4xf32>
    %c0_5 = arith.constant 0 : index
    %c0_6 = arith.constant 0 : index
    %3 = vector.load %arg6[%c0_5, %c0_6] : memref<96x32xf32, #tpu.memory_space<vmem>>, vector<96x32xf32>
    %c0_7 = arith.constant 0 : index
    %c0_8 = arith.constant 0 : index
    %4 = vector.load %arg8[%c0_7, %c0_8] : memref<96x32xf32, #tpu.memory_space<vmem>>, vector<96x32xf32>
    %5 = vector.extract_strided_slice %2 {offsets = [0, 0], sizes = [32, 4], strides = [1, 1]} : vector<320x4xf32> to vector<32x4xf32>
    %6 = vector.extract_strided_slice %0 {offsets = [0, 0], sizes = [4, 1015], strides = [1, 1]} : vector<4x1024xf32> to vector<4x1015xf32>
    %cst = arith.constant dense<0.000000e+00> : vector<32x1015xf32>
    %7 = tpu.matmul %5, %6, %cst {dimension_numbers = #tpu.dot_dimension_numbers<[1], [0], [0], [1], [0, 0, 1, 1], [], []>} : vector<32x4xf32>, vector<4x1015xf32>, vector<32x1015xf32> -> vector<32x1015xf32>
    %8 = vector.extract_strided_slice %2 {offsets = [32, 0], sizes = [32, 4], strides = [1, 1]} : vector<320x4xf32> to vector<32x4xf32>
    %9 = vector.extract_strided_slice %0 {offsets = [0, 1], sizes = [4, 1015], strides = [1, 1]} : vector<4x1024xf32> to vector<4x1015xf32>
    %cst_9 = arith.constant dense<0.000000e+00> : vector<32x1015xf32>
    %10 = tpu.matmul %8, %9, %cst_9 {dimension_numbers = #tpu.dot_dimension_numbers<[1], [0], [0], [1], [0, 0, 1, 1], [], []>} : vector<32x4xf32>, vector<4x1015xf32>, vector<32x1015xf32> -> vector<32x1015xf32>
    %11 = arith.addf %7, %10 : vector<32x1015xf32>
    %12 = vector.extract_strided_slice %2 {offsets = [64, 0], sizes = [32, 4], strides = [1, 1]} : vector<320x4xf32> to vector<32x4xf32>
    %13 = vector.extract_strided_slice %0 {offsets = [0, 2], sizes = [4, 1015], strides = [1, 1]} : vector<4x1024xf32> to vector<4x1015xf32>
    %cst_10 = arith.constant dense<0.000000e+00> : vector<32x1015xf32>
    %14 = tpu.matmul %12, %13, %cst_10 {dimension_numbers = #tpu.dot_dimension_numbers<[1], [0], [0], [1], [0, 0, 1, 1], [], []>} : vector<32x4xf32>, vector<4x1015xf32>, vector<32x1015xf32> -> vector<32x1015xf32>
    %15 = arith.addf %11, %14 : vector<32x1015xf32>
    %16 = vector.extract_strided_slice %2 {offsets = [96, 0], sizes = [32, 4], strides = [1, 1]} : vector<320x4xf32> to vector<32x4xf32>
    %17 = vector.extract_strided_slice %0 {offsets = [0, 3], sizes = [4, 1015], strides = [1, 1]} : vector<4x1024xf32> to vector<4x1015xf32>
    %cst_11 = arith.constant dense<0.000000e+00> : vector<32x1015xf32>
    %18 = tpu.matmul %16, %17, %cst_11 {dimension_numbers = #tpu.dot_dimension_numbers<[1], [0], [0], [1], [0, 0, 1, 1], [], []>} : vector<32x4xf32>, vector<4x1015xf32>, vector<32x1015xf32> -> vector<32x1015xf32>
    %19 = arith.addf %15, %18 : vector<32x1015xf32>
    %20 = vector.extract_strided_slice %2 {offsets = [128, 0], sizes = [32, 4], strides = [1, 1]} : vector<320x4xf32> to vector<32x4xf32>
    %21 = vector.extract_strided_slice %0 {offsets = [0, 4], sizes = [4, 1015], strides = [1, 1]} : vector<4x1024xf32> to vector<4x1015xf32>
    %cst_12 = arith.constant dense<0.000000e+00> : vector<32x1015xf32>
    %22 = tpu.matmul %20, %21, %cst_12 {dimension_numbers = #tpu.dot_dimension_numbers<[1], [0], [0], [1], [0, 0, 1, 1], [], []>} : vector<32x4xf32>, vector<4x1015xf32>, vector<32x1015xf32> -> vector<32x1015xf32>
    %23 = arith.addf %19, %22 : vector<32x1015xf32>
    %24 = vector.extract_strided_slice %2 {offsets = [160, 0], sizes = [32, 4], strides = [1, 1]} : vector<320x4xf32> to vector<32x4xf32>
    %25 = vector.extract_strided_slice %0 {offsets = [0, 5], sizes = [4, 1015], strides = [1, 1]} : vector<4x1024xf32> to vector<4x1015xf32>
    %cst_13 = arith.constant dense<0.000000e+00> : vector<32x1015xf32>
    %26 = tpu.matmul %24, %25, %cst_13 {dimension_numbers = #tpu.dot_dimension_numbers<[1], [0], [0], [1], [0, 0, 1, 1], [], []>} : vector<32x4xf32>, vector<4x1015xf32>, vector<32x1015xf32> -> vector<32x1015xf32>
    %27 = arith.addf %23, %26 : vector<32x1015xf32>
    %28 = vector.extract_strided_slice %2 {offsets = [192, 0], sizes = [32, 4], strides = [1, 1]} : vector<320x4xf32> to vector<32x4xf32>
    %29 = vector.extract_strided_slice %0 {offsets = [0, 6], sizes = [4, 1015], strides = [1, 1]} : vector<4x1024xf32> to vector<4x1015xf32>
    %cst_14 = arith.constant dense<0.000000e+00> : vector<32x1015xf32>
    %30 = tpu.matmul %28, %29, %cst_14 {dimension_numbers = #tpu.dot_dimension_numbers<[1], [0], [0], [1], [0, 0, 1, 1], [], []>} : vector<32x4xf32>, vector<4x1015xf32>, vector<32x1015xf32> -> vector<32x1015xf32>
    %31 = arith.addf %27, %30 : vector<32x1015xf32>
    %32 = vector.extract_strided_slice %2 {offsets = [224, 0], sizes = [32, 4], strides = [1, 1]} : vector<320x4xf32> to vector<32x4xf32>
    %33 = vector.extract_strided_slice %0 {offsets = [0, 7], sizes = [4, 1015], strides = [1, 1]} : vector<4x1024xf32> to vector<4x1015xf32>
    %cst_15 = arith.constant dense<0.000000e+00> : vector<32x1015xf32>
    %34 = tpu.matmul %32, %33, %cst_15 {dimension_numbers = #tpu.dot_dimension_numbers<[1], [0], [0], [1], [0, 0, 1, 1], [], []>} : vector<32x4xf32>, vector<4x1015xf32>, vector<32x1015xf32> -> vector<32x1015xf32>
    %35 = arith.addf %31, %34 : vector<32x1015xf32>
    %36 = vector.extract_strided_slice %2 {offsets = [256, 0], sizes = [32, 4], strides = [1, 1]} : vector<320x4xf32> to vector<32x4xf32>
    %37 = vector.extract_strided_slice %0 {offsets = [0, 8], sizes = [4, 1015], strides = [1, 1]} : vector<4x1024xf32> to vector<4x1015xf32>
    %cst_16 = arith.constant dense<0.000000e+00> : vector<32x1015xf32>
    %38 = tpu.matmul %36, %37, %cst_16 {dimension_numbers = #tpu.dot_dimension_numbers<[1], [0], [0], [1], [0, 0, 1, 1], [], []>} : vector<32x4xf32>, vector<4x1015xf32>, vector<32x1015xf32> -> vector<32x1015xf32>
    %39 = arith.addf %35, %38 : vector<32x1015xf32>
    %40 = vector.extract_strided_slice %2 {offsets = [288, 0], sizes = [32, 4], strides = [1, 1]} : vector<320x4xf32> to vector<32x4xf32>
    %41 = vector.extract_strided_slice %0 {offsets = [0, 9], sizes = [4, 1015], strides = [1, 1]} : vector<4x1024xf32> to vector<4x1015xf32>
    %cst_17 = arith.constant dense<0.000000e+00> : vector<32x1015xf32>
    %42 = tpu.matmul %40, %41, %cst_17 {dimension_numbers = #tpu.dot_dimension_numbers<[1], [0], [0], [1], [0, 0, 1, 1], [], []>} : vector<32x4xf32>, vector<4x1015xf32>, vector<32x1015xf32> -> vector<32x1015xf32>
    %43 = arith.addf %39, %42 : vector<32x1015xf32>
    %c0_18 = arith.constant 0 : index
    %c0_19 = arith.constant 0 : index
    %44 = vector.load %arg5[%c0_18, %c0_19] : memref<32x1xf32, #tpu.memory_space<vmem>>, vector<32x1xf32>
    %45 = vector.broadcast %44 : vector<32x1xf32> to vector<32x1015xf32>
    %46 = arith.addf %43, %45 : vector<32x1015xf32>
    %47 = vector.extract_strided_slice %1 {offsets = [0, 0], sizes = [1, 1015], strides = [1, 1]} : vector<1x1024xf32> to vector<1x1015xf32>
    %48 = vector.broadcast %47 : vector<1x1015xf32> to vector<32x1015xf32>
    %49 = arith.mulf %46, %48 : vector<32x1015xf32>
    %50 = vector.extract_strided_slice %3 {offsets = [0, 0], sizes = [32, 32], strides = [1, 1]} : vector<96x32xf32> to vector<32x32xf32>
    %51 = vector.extract_strided_slice %49 {offsets = [0, 0], sizes = [32, 1013], strides = [1, 1]} : vector<32x1015xf32> to vector<32x1013xf32>
    %cst_20 = arith.constant dense<0.000000e+00> : vector<32x1013xf32>
    %52 = tpu.matmul %50, %51, %cst_20 {dimension_numbers = #tpu.dot_dimension_numbers<[1], [0], [0], [1], [0, 0, 1, 1], [], []>} : vector<32x32xf32>, vector<32x1013xf32>, vector<32x1013xf32> -> vector<32x1013xf32>
    %53 = vector.extract_strided_slice %3 {offsets = [32, 0], sizes = [32, 32], strides = [1, 1]} : vector<96x32xf32> to vector<32x32xf32>
    %54 = vector.extract_strided_slice %49 {offsets = [0, 1], sizes = [32, 1013], strides = [1, 1]} : vector<32x1015xf32> to vector<32x1013xf32>
    %cst_21 = arith.constant dense<0.000000e+00> : vector<32x1013xf32>
    %55 = tpu.matmul %53, %54, %cst_21 {dimension_numbers = #tpu.dot_dimension_numbers<[1], [0], [0], [1], [0, 0, 1, 1], [], []>} : vector<32x32xf32>, vector<32x1013xf32>, vector<32x1013xf32> -> vector<32x1013xf32>
    %56 = arith.addf %52, %55 : vector<32x1013xf32>
    %57 = vector.extract_strided_slice %3 {offsets = [64, 0], sizes = [32, 32], strides = [1, 1]} : vector<96x32xf32> to vector<32x32xf32>
    %58 = vector.extract_strided_slice %49 {offsets = [0, 2], sizes = [32, 1013], strides = [1, 1]} : vector<32x1015xf32> to vector<32x1013xf32>
    %cst_22 = arith.constant dense<0.000000e+00> : vector<32x1013xf32>
    %59 = tpu.matmul %57, %58, %cst_22 {dimension_numbers = #tpu.dot_dimension_numbers<[1], [0], [0], [1], [0, 0, 1, 1], [], []>} : vector<32x32xf32>, vector<32x1013xf32>, vector<32x1013xf32> -> vector<32x1013xf32>
    %60 = arith.addf %56, %59 : vector<32x1013xf32>
    %c0_23 = arith.constant 0 : index
    %c0_24 = arith.constant 0 : index
    %61 = vector.load %arg7[%c0_23, %c0_24] : memref<32x1xf32, #tpu.memory_space<vmem>>, vector<32x1xf32>
    %62 = vector.broadcast %61 : vector<32x1xf32> to vector<32x1013xf32>
    %63 = arith.addf %60, %62 : vector<32x1013xf32>
    %cst_25 = arith.constant 0.000000e+00 : f32
    %64 = vector.broadcast %cst_25 : f32 to vector<32x1013xf32>
    %65 = arith.maximumf %63, %64 : vector<32x1013xf32>
    %66 = vector.extract_strided_slice %1 {offsets = [0, 1], sizes = [1, 1013], strides = [1, 1]} : vector<1x1024xf32> to vector<1x1013xf32>
    %67 = vector.broadcast %66 : vector<1x1013xf32> to vector<32x1013xf32>
    %68 = arith.mulf %65, %67 : vector<32x1013xf32>
    %69 = vector.extract_strided_slice %4 {offsets = [0, 0], sizes = [32, 32], strides = [1, 1]} : vector<96x32xf32> to vector<32x32xf32>
    %70 = vector.extract_strided_slice %68 {offsets = [0, 0], sizes = [32, 1011], strides = [1, 1]} : vector<32x1013xf32> to vector<32x1011xf32>
    %cst_26 = arith.constant dense<0.000000e+00> : vector<32x1011xf32>
    %71 = tpu.matmul %69, %70, %cst_26 {dimension_numbers = #tpu.dot_dimension_numbers<[1], [0], [0], [1], [0, 0, 1, 1], [], []>} : vector<32x32xf32>, vector<32x1011xf32>, vector<32x1011xf32> -> vector<32x1011xf32>
    %72 = vector.extract_strided_slice %4 {offsets = [32, 0], sizes = [32, 32], strides = [1, 1]} : vector<96x32xf32> to vector<32x32xf32>
    %73 = vector.extract_strided_slice %68 {offsets = [0, 1], sizes = [32, 1011], strides = [1, 1]} : vector<32x1013xf32> to vector<32x1011xf32>
    %cst_27 = arith.constant dense<0.000000e+00> : vector<32x1011xf32>
    %74 = tpu.matmul %72, %73, %cst_27 {dimension_numbers = #tpu.dot_dimension_numbers<[1], [0], [0], [1], [0, 0, 1, 1], [], []>} : vector<32x32xf32>, vector<32x1011xf32>, vector<32x1011xf32> -> vector<32x1011xf32>
    %75 = arith.addf %71, %74 : vector<32x1011xf32>
    %76 = vector.extract_strided_slice %4 {offsets = [64, 0], sizes = [32, 32], strides = [1, 1]} : vector<96x32xf32> to vector<32x32xf32>
    %77 = vector.extract_strided_slice %68 {offsets = [0, 2], sizes = [32, 1011], strides = [1, 1]} : vector<32x1013xf32> to vector<32x1011xf32>
    %cst_28 = arith.constant dense<0.000000e+00> : vector<32x1011xf32>
    %78 = tpu.matmul %76, %77, %cst_28 {dimension_numbers = #tpu.dot_dimension_numbers<[1], [0], [0], [1], [0, 0, 1, 1], [], []>} : vector<32x32xf32>, vector<32x1011xf32>, vector<32x1011xf32> -> vector<32x1011xf32>
    %79 = arith.addf %75, %78 : vector<32x1011xf32>
    %c0_29 = arith.constant 0 : index
    %c0_30 = arith.constant 0 : index
    %80 = vector.load %arg9[%c0_29, %c0_30] : memref<32x1xf32, #tpu.memory_space<vmem>>, vector<32x1xf32>
    %81 = vector.broadcast %80 : vector<32x1xf32> to vector<32x1011xf32>
    %82 = arith.addf %79, %81 : vector<32x1011xf32>
    %cst_31 = arith.constant 0.000000e+00 : f32
    %83 = vector.broadcast %cst_31 : f32 to vector<32x1011xf32>
    %84 = arith.maximumf %82, %83 : vector<32x1011xf32>
    %85 = vector.extract_strided_slice %1 {offsets = [0, 2], sizes = [1, 1011], strides = [1, 1]} : vector<1x1024xf32> to vector<1x1011xf32>
    %86 = vector.broadcast %85 : vector<1x1011xf32> to vector<32x1011xf32>
    %87 = arith.mulf %84, %86 : vector<32x1011xf32>
    %c0_32 = arith.constant 0 : index
    %c0_33 = arith.constant 0 : index
    %88 = vector.load %arg3[%c0_32, %c0_33] : memref<1011x2xf32, #tpu.memory_space<vmem>>, vector<1011x2xf32>
    %cst_34 = arith.constant dense<0.000000e+00> : vector<32x2xf32>
    %89 = tpu.matmul %87, %88, %cst_34 {dimension_numbers = #tpu.dot_dimension_numbers<[1], [0], [0], [1], [0, 0, 1, 1], [], []>} : vector<32x1011xf32>, vector<1011x2xf32>, vector<32x2xf32> -> vector<32x2xf32>
    %cst_35 = arith.constant 0.0036764706 : f32
    %90 = vector.broadcast %cst_35 : f32 to vector<32x2xf32>
    %91 = arith.mulf %89, %90 : vector<32x2xf32>
    %c0_36 = arith.constant 0 : index
    %c0_37 = arith.constant 0 : index
    %92 = vector.load %arg10[%c0_36, %c0_37] : memref<2x32xf32, #tpu.memory_space<vmem>>, vector<2x32xf32>
    %cst_38 = arith.constant dense<0.000000e+00> : vector<2x2xf32>
    %93 = tpu.matmul %92, %91, %cst_38 {dimension_numbers = #tpu.dot_dimension_numbers<[1], [0], [0], [1], [0, 0, 1, 1], [], []>} : vector<2x32xf32>, vector<32x2xf32>, vector<2x2xf32> -> vector<2x2xf32>
    %cst_39 = arith.constant 0.000000e+00 : f32
    %94 = vector.broadcast %cst_39 : f32 to vector<2x2xf32>
    %95 = arith.maximumf %93, %94 : vector<2x2xf32>
    %c0_40 = arith.constant 0 : index
    %c0_41 = arith.constant 0 : index
    %96 = vector.load %arg11[%c0_40, %c0_41] : memref<32x2xf32, #tpu.memory_space<vmem>>, vector<32x2xf32>
    %cst_42 = arith.constant dense<0.000000e+00> : vector<32x2xf32>
    %97 = tpu.matmul %96, %95, %cst_42 {dimension_numbers = #tpu.dot_dimension_numbers<[1], [0], [0], [1], [0, 0, 1, 1], [], []>} : vector<32x2xf32>, vector<2x2xf32>, vector<32x2xf32> -> vector<32x2xf32>
    %98 = arith.negf %97 : vector<32x2xf32>
    %99 = math.exp %98 : vector<32x2xf32>
    %cst_43 = arith.constant 1.000000e+00 : f32
    %100 = vector.broadcast %cst_43 : f32 to vector<32x2xf32>
    %101 = arith.addf %100, %99 : vector<32x2xf32>
    %102 = arith.divf %100, %101 : vector<32x2xf32>
    %103 = vector.extract_strided_slice %87 {offsets = [0, 0], sizes = [32, 416], strides = [1, 1]} : vector<32x1011xf32> to vector<32x416xf32>
    %104 = vector.extract_strided_slice %102 {offsets = [0, 0], sizes = [32, 1], strides = [1, 1]} : vector<32x2xf32> to vector<32x1xf32>
    %105 = vector.broadcast %104 : vector<32x1xf32> to vector<32x416xf32>
    %106 = arith.mulf %103, %105 : vector<32x416xf32>
    %c0_44 = arith.constant 0 : index
    %c0_45 = arith.constant 0 : index
    %107 = vector.load %arg12[%c0_44, %c0_45] : memref<32x1024xf32, #tpu.memory_space<vmem>>, vector<32x416xf32>
    tpu.vector_store %arg12[%c0_44, %c0_45], %106 {strides = array<i32>} : memref<32x1024xf32, #tpu.memory_space<vmem>>, vector<32x416xf32>,
    %108 = vector.extract_strided_slice %87 {offsets = [0, 512], sizes = [32, 416], strides = [1, 1]} : vector<32x1011xf32> to vector<32x416xf32>
    %109 = vector.extract_strided_slice %102 {offsets = [0, 1], sizes = [32, 1], strides = [1, 1]} : vector<32x2xf32> to vector<32x1xf32>
    %110 = vector.broadcast %109 : vector<32x1xf32> to vector<32x416xf32>
    %111 = arith.mulf %108, %110 : vector<32x416xf32>
    %c0_46 = arith.constant 0 : index
    %c512 = arith.constant 512 : index
    %112 = vector.load %arg12[%c0_46, %c512] : memref<32x1024xf32, #tpu.memory_space<vmem>>, vector<32x416xf32>
    tpu.vector_store %arg12[%c0_46, %c512], %111 {strides = array<i32>} : memref<32x1024xf32, #tpu.memory_space<vmem>>, vector<32x416xf32>,
    return
  }
  func.func @transform_0(%arg0: i32) -> (i32, i32) {
    %c0_i32 = arith.constant 0 : i32
    %c0_i32_0 = arith.constant 0 : i32
    return %c0_i32, %arg0 : i32, i32
  }
  func.func @transform_1(%arg0: i32) -> (i32, i32) {
    %c0_i32 = arith.constant 0 : i32
    %c0_i32_0 = arith.constant 0 : i32
    %c0_i32_1 = arith.constant 0 : i32
    return %c0_i32, %c0_i32_0 : i32, i32
  }
  func.func @transform_2(%arg0: i32) -> (i32, i32) {
    %c0_i32 = arith.constant 0 : i32
    %c0_i32_0 = arith.constant 0 : i32
    %c0_i32_1 = arith.constant 0 : i32
    return %c0_i32, %c0_i32_0 : i32, i32
  }
  func.func @transform_3(%arg0: i32) -> (i32, i32) {
    %c0_i32 = arith.constant 0 : i32
    %c0_i32_0 = arith.constant 0 : i32
    %c0_i32_1 = arith.constant 0 : i32
    return %c0_i32, %c0_i32_0 : i32, i32
  }
  func.func @transform_4(%arg0: i32) -> (i32, i32) {
    %c0_i32 = arith.constant 0 : i32
    %c0_i32_0 = arith.constant 0 : i32
    %c0_i32_1 = arith.constant 0 : i32
    return %c0_i32, %c0_i32_0 : i32, i32
  }
  func.func @transform_5(%arg0: i32) -> (i32, i32) {
    %c0_i32 = arith.constant 0 : i32
    %c0_i32_0 = arith.constant 0 : i32
    %c0_i32_1 = arith.constant 0 : i32
    return %c0_i32, %c0_i32_0 : i32, i32
  }
  func.func @transform_6(%arg0: i32) -> (i32, i32) {
    %c0_i32 = arith.constant 0 : i32
    %c0_i32_0 = arith.constant 0 : i32
    %c0_i32_1 = arith.constant 0 : i32
    return %c0_i32, %c0_i32_0 : i32, i32
  }
  func.func @transform_7(%arg0: i32) -> (i32, i32) {
    %c0_i32 = arith.constant 0 : i32
    %c0_i32_0 = arith.constant 0 : i32
    %c0_i32_1 = arith.constant 0 : i32
    return %c0_i32, %c0_i32_0 : i32, i32
  }
  func.func @transform_8(%arg0: i32) -> (i32, i32) {
    %c0_i32 = arith.constant 0 : i32
    %c0_i32_0 = arith.constant 0 : i32
    %c0_i32_1 = arith.constant 0 : i32
    return %c0_i32, %c0_i32_0 : i32, i32
  }
  func.func @transform_9(%arg0: i32) -> (i32, i32) {
    %c0_i32 = arith.constant 0 : i32
    %c0_i32_0 = arith.constant 0 : i32
    %c0_i32_1 = arith.constant 0 : i32
    return %c0_i32, %c0_i32_0 : i32, i32
  }
  func.func @transform_10(%arg0: i32) -> (i32, i32) {
    %c0_i32 = arith.constant 0 : i32
    %c0_i32_0 = arith.constant 0 : i32
    %c0_i32_1 = arith.constant 0 : i32
    return %c0_i32, %c0_i32_0 : i32, i32
  }
  func.func @transform_11(%arg0: i32) -> (i32, i32) {
    %c0_i32 = arith.constant 0 : i32
    %c0_i32_0 = arith.constant 0 : i32
    return %c0_i32, %arg0 : i32, i32
  }
}

</mosaic_0001>

<bundles_post_ra>
// kernel: time_conv_block.1
= control target key start
LH: loop header
LB: loop body
LE: loop exit
PB: predicated region body
PF: predicated region fallthrough
CT: control target
= control target key end

     0   :  { %s7430_s25 = smov 127   ;;  %vm142_vm0 = vcmask 1039360   ;;  %vm163_vm1 = vcmask 1043456   ;;  %vm150_vm2 = vcmask 31744   ;;  %s7432_s15 = smov 125   ;;  %vm718_vm3 = vcmask 1031168   ;;  %s12005_s0 = inlined_call_operand.vmem [shape: f32[4,1024], index: 0, kind: input, shape index: {}]   ;;  %s12006_s3 = inlined_call_operand.vmem [shape: f32[320,4], index: 3, kind: input, shape index: {}]   ;;  %s12007_s4 = inlined_call_operand.vmem [shape: f32[32,1], index: 4, kind: input, shape index: {}]   ;;  %s12008_s1 = inlined_call_operand.vmem [shape: f32[1,1024], index: 1, kind: input, shape index: {}]   ;;  %s12009_s6 = inlined_call_operand.vmem [shape: f32[32,1], index: 6, kind: input, shape index: {}]   ;;  %s12010_s5 = inlined_call_operand.vmem [shape: f32[96,32], index: 5, kind: input, shape index: {}]   ;;  %s12011_s8 = inlined_call_operand.vmem [shape: f32[32,1], index: 8, kind: input, shape index: {}]   ;;  %s12012_s7 = inlined_call_operand.vmem [shape: f32[96,32], index: 7, kind: input, shape index: {}]   ;;  %s12013_s2 = inlined_call_operand.vmem [shape: f32[1011,2], index: 2, kind: input, shape index: {}]   ;;  %s12014_s9 = inlined_call_operand.vmem [shape: f32[2,32], index: 9, kind: input, shape index: {}]   ;;  %s12015_s10 = inlined_call_operand.vmem [shape: f32[32,2], index: 10, kind: input, shape index: {}]   ;;  %s12016_s11 = inlined_call_operand.vmem [shape: f32[32,1024], index: 11, kind: output, shape index: {}]  }
   0x1   :  { %v7504_v0 = vld [vmem:[%s12005_s0] sm:$0xff]  ;;  %v7509_v1 = vld [vmem:[%s12005_s0 + $0x8] sm:$0xff]  ;;  %v7514_v2 = vld [vmem:[%s12005_s0 + $0x18] sm:$0xff]  ;;  %s7433_s24 = smov 124   ;;  %vm1049_vm4 = vcmask 1022976   ;;  %vm1380_vm5 = vcmask 1014784  }
   0x2   :  { %111 = vst [vmem:[#allocation1] ss:$2 sm:$0xff] %v7504_v0  ;;  %v7520_v3 = vld [vmem:[%s12005_s0 + $0x10] sm:$0xff]  ;;  %s7431_s0 = smov 126   ;;  %v7562_v29 = vld [vmem:[%s12006_s3 + $0x20] sm:$0xff]  ;;  %v7569_v31 = vld [vmem:[%s12006_s3 + $0x28] sm:$0xff] }
   0x3   :  { %113 = vst [vmem:[#allocation1 + $0x10] ss:$2 sm:$0xff] %v7509_v1  ;;  %v7574_v32 = vld [vmem:[%s12006_s3 + $0x38] sm:$0xff]  ;;  %v7604_v43 = vld [vmem:[%s12006_s3 + $0x30] sm:$0xff]  ;;  %v7658_v49 = vld [vmem:[%s12006_s3] sm:$0xff]  ;;  %vm1711_vm6 = vcmask 1006592  }
   0x4   :  { %117 = vst [vmem:[#allocation1 + $0x30] ss:$2 sm:$0xff] %v7514_v2  ;;  %v7676_v52 = vld [vmem:[%s12006_s3 + $0x8] sm:$0xff]  ;;  %v7693_v55 = vld [vmem:[%s12006_s3 + $0x10] sm:$0xff]  ;;  %v7706_v56 = vld [vmem:[%s12006_s3 + $0x18] sm:$0xff]  ;;  %vm2042_vm7 = vcmask 998400  }
   0x5   :  { %115 = vst [vmem:[#allocation1 + $0x20] ss:$2 sm:$0xff] %v7520_v3  ;;  %vm2373_vm8 = vcmask 990208   ;;  %vm2704_vm9 = vcmask 982016   ;;  %vm3035_vm10 = vcmask 973824   ;;  %vm3596_vm11 = vcmask 261120  }
   0x6   :  { %vm5971_vm12 = vcmask 1042432   ;;  %vm5958_vm13 = vcmask 941056   ;;  %vm6253_vm14 = vcmask 1041408   ;;  %vm6240_vm15 = vcmask 15360  }
   0x9   :  { %v118_v4 = vld.sshfl [vmem:[#allocation1] sm:$0xff pattern:$0x75316420]  ;;  %v119_v5 = vld.sshfl [vmem:[#allocation1 + $0x8] sm:$0xff pattern:$0x75316420] }
   0xa   :  { %126 = vrot.lane.b32.xlu0 %v118_v4, %s7430_s25  ;;  %v120_v6 = vld.sshfl [vmem:[#allocation1 + $0x10] sm:$0xff pattern:$0x75316420]  ;;  %412 = vst [vmem:[#allocation1] ss:$2 sm:$0xff] %v7504_v0 }
   0xb   :  { %130 = vrot.lane.b32.xlu1 %v120_v6, %s7430_s25  ;;  %v121_v7 = vld.sshfl [vmem:[#allocation1 + $0x18] sm:$0xff pattern:$0x75316420]  ;;  %v124_v9 = vld.sshfl [vmem:[#allocation1 + $0x30] sm:$0xff pattern:$0x75316420] }
   0xc   :  { %414 = vst [vmem:[#allocation1 + $0x10] ss:$2 sm:$0xff] %v7509_v1  ;;  %v122_v8 = vld.sshfl [vmem:[#allocation1 + $0x20] sm:$0xff pattern:$0x75316420] }
   0xd   :  { %134 = vrot.lane.b32.xlu2 %v122_v8, %s7430_s25  ;;  %v123_v10 = vld.sshfl [vmem:[#allocation1 + $0x28] sm:$0xff pattern:$0x75316420]  ;;  %v125_v11 = vld.sshfl [vmem:[#allocation1 + $0x38] sm:$0xff pattern:$0x75316420] }
   0xe   :  { %416 = vst [vmem:[#allocation1 + $0x20] ss:$2 sm:$0xff] %v7520_v3  ;;  %v7763_v8 = vld [vmem:[%s12006_s3 + $0x40] sm:$0xff] }
   0xf   :  { %418 = vst [vmem:[#allocation1 + $0x30] ss:$2 sm:$0xff] %v7514_v2 }
  0x11   :  { %v7532_v12 = vld.sshfl [vmem:[#allocation1] sm:$0xff pattern:$0x75316420]  ;;  %v7534_v13 = vld.sshfl [vmem:[#allocation1 + $0x8] sm:$0xff pattern:$0x75316420] }
  0x12   :  { %128 = vrot.lane.b32.xlu0 %v119_v5, %s7430_s25  ;;  %687 = vst [vmem:[#allocation1] ss:$2 sm:$0xff] %v7504_v0 }
  0x13   :  { %132 = vrot.lane.b32.xlu1 %v121_v7, %s7430_s25  ;;  %v7539_v14 = vld.sshfl [vmem:[#allocation1 + $0x10] sm:$0xff pattern:$0x75316420]  ;;  %v7541_v15 = vld.sshfl [vmem:[#allocation1 + $0x18] sm:$0xff pattern:$0x75316420] }
  0x14   :  { %689 = vst [vmem:[#allocation1 + $0x10] ss:$2 sm:$0xff] %v7509_v1 }
  0x15   :  { %136 = vrot.lane.b32.xlu2 %v123_v10, %s7430_s25  ;;  %v7549_v18 = vld.sshfl [vmem:[#allocation1 + $0x20] sm:$0xff pattern:$0x75316420]  ;;  %v424_v19 = vld.sshfl [vmem:[#allocation1 + $0x28] sm:$0xff pattern:$0x75316420] }
  0x16   :  { %691 = vst [vmem:[#allocation1 + $0x20] ss:$2 sm:$0xff] %v7520_v3  ;;  %v7594_v38 = vld.sshfl [vmem:[#allocation1 + $0x30] sm:$0xff pattern:$0x75316420] }
  0x17   :  { %v426_v39 = vld.sshfl [vmem:[#allocation1 + $0x38] sm:$0xff pattern:$0x75316420] }
  0x18   :  { %693 = vst [vmem:[#allocation1 + $0x30] ss:$2 sm:$0xff] %v7514_v2 }
  0x19   :  { %v695_v16 = vld.sshfl [vmem:[#allocation1 + $0x8] sm:$0xff pattern:$0x75316420]  ;;  %v694_v25 = vld.sshfl [vmem:[#allocation1] sm:$0xff pattern:$0x75316420] }
  0x1a   :  { %138 = vrot.lane.b32.xlu0 %v124_v9, %s7430_s25  ;;  %1018 = vst [vmem:[#allocation1] ss:$2 sm:$0xff] %v7504_v0 }
  0x1b   :  { %140 = vrot.lane.b32.xlu1 %v125_v11, %s7430_s25  ;;  %v696_v17 = vld.sshfl [vmem:[#allocation1 + $0x10] sm:$0xff pattern:$0x75316420]  ;;  %v697_v37 = vld.sshfl [vmem:[#allocation1 + $0x18] sm:$0xff pattern:$0x75316420] }
  0x1c   :  { %1020 = vst [vmem:[#allocation1 + $0x10] ss:$2 sm:$0xff] %v7509_v1 }
  0x1d   :  { %v699_v20 = vld.sshfl [vmem:[#allocation1 + $0x28] sm:$0xff pattern:$0x75316420]  ;;  %v698_v21 = vld.sshfl [vmem:[#allocation1 + $0x20] sm:$0xff pattern:$0x75316420]  ;;  %702 = vrot.lane.b32.xlu2 %v694_v25, %s7431_s0 }
  0x1e   :  { %1022 = vst [vmem:[#allocation1 + $0x20] ss:$2 sm:$0xff] %v7520_v3 }
  0x1f   :  { %v701_v45 = vld.sshfl [vmem:[#allocation1 + $0x38] sm:$0xff pattern:$0x75316420]  ;;  %v700_v46 = vld.sshfl [vmem:[#allocation1 + $0x30] sm:$0xff pattern:$0x75316420] }
  0x20   :  { %1024 = vst [vmem:[#allocation1 + $0x30] ss:$2 sm:$0xff] %v7514_v2 }
  0x21   :  { %v1025_v48 = vld.sshfl [vmem:[#allocation1] sm:$0xff pattern:$0x75316420]  ;;  %v1026_v50 = vld.sshfl [vmem:[#allocation1 + $0x8] sm:$0xff pattern:$0x75316420] }
  0x22   :  { %704 = vrot.lane.b32.xlu0 %v695_v16, %s7431_s0  ;;  %1349 = vst [vmem:[#allocation1] ss:$2 sm:$0xff] %v7504_v0 }
  0x23   :  { %706 = vrot.lane.b32.xlu1 %v696_v17, %s7431_s0  ;;  %v1027_v47 = vld.sshfl [vmem:[#allocation1 + $0x10] sm:$0xff pattern:$0x75316420]  ;;  %v1028_v51 = vld.sshfl [vmem:[#allocation1 + $0x18] sm:$0xff pattern:$0x75316420] }
  0x24   :  { %1351 = vst [vmem:[#allocation1 + $0x10] ss:$2 sm:$0xff] %v7509_v1  ;;  %v7786_v17 = vld [vmem:[%s12006_s3 + $0x48] sm:$0xff] }
  0x25   :  { %708 = vrot.lane.b32.xlu2 %v697_v37, %s7431_s0  ;;  %v1030_v53 = vld.sshfl [vmem:[#allocation1 + $0x28] sm:$0xff pattern:$0x75316420]  ;;  %v1029_v60 = vld.sshfl [vmem:[#allocation1 + $0x20] sm:$0xff pattern:$0x75316420] }
  0x26   :  { %1353 = vst [vmem:[#allocation1 + $0x20] ss:$2 sm:$0xff] %v7520_v3 }
  0x27   :  { %v1031_v54 = vld.sshfl [vmem:[#allocation1 + $0x30] sm:$0xff pattern:$0x75316420]  ;;  %v1032_v6 = vld.sshfl [vmem:[#allocation1 + $0x38] sm:$0xff pattern:$0x75316420] }
  0x28   :  { %1355 = vst [vmem:[#allocation1 + $0x30] ss:$2 sm:$0xff] %v7514_v2 }
  0x29   :  { %v1357_v61 = vld.sshfl [vmem:[#allocation1 + $0x8] sm:$0xff pattern:$0x75316420]  ;;  %v1356_v7 = vld.sshfl [vmem:[#allocation1] sm:$0xff pattern:$0x75316420] }
  0x2a   :  { %710 = vrot.lane.b32.xlu0 %v698_v21, %s7431_s0  ;;  %1680 = vst [vmem:[#allocation1] ss:$2 sm:$0xff] %v7504_v0 }
  0x2b   :  { %712 = vrot.lane.b32.xlu1 %v699_v20, %s7431_s0  ;;  %v1359_v16 = vld.sshfl [vmem:[#allocation1 + $0x18] sm:$0xff pattern:$0x75316420]  ;;  %v7801_v20 = vld [vmem:[%s12006_s3 + $0x50] sm:$0xff] }
  0x2d   :  { %714 = vrot.lane.b32.xlu2 %v700_v46, %s7431_s0 }
  0x32   :  { %716 = vrot.lane.b32.xlu0 %v701_v45, %s7431_s0 }
  0x33   :  { %1033 = vrot.lane.b32.xlu1 %v1025_v48, %s7432_s15 }
  0x35   :  { %1035 = vrot.lane.b32.xlu2 %v1026_v50, %s7432_s15 }
  0x3a   :  { %1037 = vrot.lane.b32.xlu0 %v1027_v47, %s7432_s15 }
  0x3b   :  { %1039 = vrot.lane.b32.xlu1 %v1028_v51, %s7432_s15 }
  0x3d   :  { %1041 = vrot.lane.b32.xlu2 %v1029_v60, %s7432_s15 }
  0x42   :  { %1043 = vrot.lane.b32.xlu0 %v1030_v53, %s7432_s15 }
  0x43   :  { %1045 = vrot.lane.b32.xlu1 %v1031_v54, %s7432_s15 }
  0x45   :  { %1047 = vrot.lane.b32.xlu2 %v1032_v6, %s7432_s15  ;;  %s7434_s15 = smov 123  }
  0x4a   :  { %1364 = vrot.lane.b32.xlu0 %v1356_v7, %s7433_s24 }
  0x4b   :  { %1366 = vrot.lane.b32.xlu1 %v1357_v61, %s7433_s24 }
  0x52   :  { %1370 = vrot.lane.b32.xlu0 %v1359_v16, %s7433_s24  ;;  %v1687_v16 = vld.sshfl [vmem:[#allocation1] sm:$0xff pattern:$0x75316420] }
  0x67   :  { %v135_v23 = vpop.permute.xlu2 %134 }
  0x6f   :  { %v137_v33 = vpop.permute.xlu2 %136 }
  0x70   :  { %v147_v36 = vsel %vm142_vm0, %v135_v23, %v137_v33 }
  0x77   :  { %v703_v62 = vpop.permute.xlu2 %702 }
  0x7c   :  { %v127_v22 = vpop.permute.xlu0 %126 }
  0x7d   :  { %v131_v24 = vpop.permute.xlu1 %130 }
  0x7f   :  { %v709_v4 = vpop.permute.xlu2 %708 }
  0x84   :  { %v129_v26 = vpop.permute.xlu0 %128 }
  0x85   :  { %v143_v27 = vsel %vm142_vm0, %v127_v22, %v129_v26  ;;  %v144_v28 = vsel %vm142_vm0, %v129_v26, %v131_v24  ;;  %v133_v30 = vpop.permute.xlu1 %132 }
  0x86   :  { %6466 = vmatpush.msk.msra.mxu0 %vm163_vm1, %v143_v27  ;;  %6471 = vmatpush.msk.msra.mxu1 %vm163_vm1, %v144_v28  ;;  %v146_v34 = vsel %vm142_vm0, %v133_v30, %v135_v23  ;;  %v145_v35 = vsel %vm142_vm0, %v131_v24, %v133_v30  ;;  %v7818_v23 = vld [vmem:[%s12006_s3 + $0x58] sm:$0xff] }
  0x87   :  { %7073 = vmatpush.msk.msra.mxu2 %vm163_vm1, %v144_v28  ;;  %7074 = vmatpush.msk.msra.mxu3 %vm163_vm1, %v144_v28 }
  0x88   :  { %6467 = vmatmul.msk.f32.vlgmr.msra.gmra.mxu0 %vm150_vm2, %v7562_v29  ;;  %6472 = vmatmul.msk.f32.vlgmr.msra.gmra.mxu1 %vm150_vm2, %v7562_v29 }
  0x89   :  { %6473 = vmatmul.msk.f32.vlgmr.msra.gmra.mxu2 %vm150_vm2, %v7569_v31  ;;  %6475 = vmatmul.msk.f32.vlgmr.msra.gmra.mxu3 %vm150_vm2, %v7574_v32 }
  0x8a   :  { %6481 = vmatpush.msk.msrb.mxu3 %vm163_vm1, %v146_v34  ;;  %6476 = vmatpush.msk.msrb.mxu2 %vm163_vm1, %v145_v35  ;;  %v1363_v34 = vld.sshfl [vmem:[#allocation1 + $0x38] sm:$0xff pattern:$0x75316420] }
  0x8b   :  { %6486 = vmatpush.msk.msrb.mxu0 %vm163_vm1, %v147_v36 }
  0x8c   :  { %v139_v40 = vpop.permute.xlu0 %138 }
  0x8d   :  { %6506 = vmatpush.msk.msra.mxu0 %vm163_vm1, %v7532_v12  ;;  %v148_v41 = vsel %vm142_vm0, %v137_v33, %v139_v40  ;;  %v141_v42 = vpop.permute.xlu1 %140  ;;  %v715_v12 = vpop.permute.xlu2 %714  ;;  %v1361_v33 = vld.sshfl [vmem:[#allocation1 + $0x28] sm:$0xff pattern:$0x75316420] }
  0x8e   :  { %6491 = vmatpush.msk.msrb.mxu1 %vm163_vm1, %v148_v41  ;;  %v149_v44 = vsel %vm142_vm0, %v139_v40, %v141_v42  ;;  %6501 = vmatpush.msk.msra.mxu3 %vm163_vm1, %v141_v42  ;;  %v1688_v40 = vld.sshfl [vmem:[#allocation1 + $0x8] sm:$0xff pattern:$0x75316420] }
  0x8f   :  { %6496 = vmatpush.msk.msra.mxu2 %vm163_vm1, %v149_v44  ;;  %2011 = vst [vmem:[#allocation1] ss:$2 sm:$0xff] %v7504_v0 }
  0x90   :  { %6511 = vmatpush.msk.msra.mxu1 %vm163_vm1, %v7534_v13  ;;  %6468 = vmatmul.msk.f32.gmra.mxu0 %vm150_vm2, %v7569_v31 }
  0x91   :  { %6492 = vmatmul.msk.f32.vlgmr.msrb.gmra.mxu1 %vm150_vm2, %v7562_v29  ;;  %6474 = vmatmul.msk.f32.gmra.mxu2 %vm150_vm2, %v7604_v43 }
  0x92   :  { %6482 = vmatmul.msk.f32.vlgmr.msrb.gmra.mxu3 %vm150_vm2, %v7562_v29  ;;  %6531 = vmatpush.msk.msrb.mxu1 %vm163_vm1, %v424_v19  ;;  %v1362_v19 = vld.sshfl [vmem:[#allocation1 + $0x30] sm:$0xff pattern:$0x75316420] }
  0x93   :  { %6521 = vmatpush.msk.msrb.mxu3 %vm163_vm1, %v7541_v15  ;;  %v1358_v15 = vld.sshfl [vmem:[#allocation1 + $0x10] sm:$0xff pattern:$0x75316420]  ;;  %1376 = vrot.lane.b32.xlu0 %v1362_v19, %s7433_s24  ;;  %1686 = vst [vmem:[#allocation1 + $0x30] ss:$2 sm:$0xff] %v7514_v2 }
  0x94   :  { %v705_v58 = vpop.permute.xlu0 %704  ;;  %1368 = vrot.lane.b32.xlu2 %v1358_v15, %s7433_s24  ;;  %1682 = vst [vmem:[#allocation1 + $0x10] ss:$2 sm:$0xff] %v7509_v1 }
  0x95   :  { %v707_v57 = vpop.permute.xlu1 %706  ;;  %v719_v63 = vsel %vm718_vm3, %v703_v62, %v705_v58 }
  0x96   :  { %v720_v59 = vsel %vm718_vm3, %v705_v58, %v707_v57  ;;  %v721_v5 = vsel %vm718_vm3, %v707_v57, %v709_v4  ;;  %v7918_v57 = vld [vmem:[%s12006_s3 + $0x60] sm:$0xff] }
  0x98   :  { %6469 = vmatmul.msk.f32.gmra.mxu0 %vm150_vm2, %v7604_v43 }
  0x99   :  { %6493 = vmatmul.msk.f32.gmra.mxu1 %vm150_vm2, %v7569_v31  ;;  %6477 = vmatmul.msk.f32.vlgmr.msrb.gmra.mxu2 %vm150_vm2, %v7562_v29 }
  0x9a   :  { %6483 = vmatmul.msk.f32.gmra.mxu3 %vm150_vm2, %v7569_v31  ;;  %6516 = vmatpush.msk.msrb.mxu2 %vm163_vm1, %v7539_v14 }
  0x9b   :  { %1697 = vrot.lane.b32.xlu0 %v1688_v40, %s7434_s15 }
  0x9c   :  { %v711_v10 = vpop.permute.xlu0 %710  ;;  %1374 = vrot.lane.b32.xlu2 %v1361_v33, %s7433_s24 }
  0x9d   :  { %v713_v9 = vpop.permute.xlu1 %712  ;;  %v722_v11 = vsel %vm718_vm3, %v709_v4, %v711_v10 }
  0x9e   :  { %v723_v13 = vsel %vm718_vm3, %v711_v10, %v713_v9  ;;  %v724_v14 = vsel %vm718_vm3, %v713_v9, %v715_v12  ;;  %v7945_v9 = vld [vmem:[%s12006_s3 + $0x68] sm:$0xff] }
  0xa0   :  { %6470 = vmatmul.msk.f32.gmra.mxu0 %vm150_vm2, %v7574_v32 }
  0xa1   :  { %6494 = vmatmul.msk.f32.gmra.mxu1 %vm150_vm2, %v7604_v43  ;;  %6478 = vmatmul.msk.f32.gmra.mxu2 %vm150_vm2, %v7569_v31 }
  0xa2   :  { %6484 = vmatmul.msk.f32.gmra.mxu3 %vm150_vm2, %v7604_v43 }
  0xa4   :  { %v717_v24 = vpop.permute.xlu0 %716  ;;  %1695 = vrot.lane.b32.xlu2 %v1687_v16, %s7434_s15 }
  0xa5   :  { %v725_v25 = vsel %vm718_vm3, %v715_v12, %v717_v24  ;;  %v1034_v45 = vpop.permute.xlu1 %1033 }
  0xa8   :  { %6487 = vmatmul.msk.f32.vlgmr.msrb.gmra.mxu0 %vm150_vm2, %v7562_v29 }
  0xa9   :  { %6495 = vmatmul.msk.f32.gmra.mxu1 %vm150_vm2, %v7574_v32  ;;  %6479 = vmatmul.msk.f32.gmra.mxu2 %vm150_vm2, %v7604_v43 }
  0xaa   :  { %6485 = vmatmul.msk.f32.gmra.mxu3 %vm150_vm2, %v7574_v32  ;;  %6526 = vmatpush.msk.msrb.mxu0 %vm163_vm1, %v7549_v18  ;;  %v1360_v18 = vld.sshfl [vmem:[#allocation1 + $0x20] sm:$0xff pattern:$0x75316420] }
  0xab   :  { %1372 = vrot.lane.b32.xlu1 %v1360_v18, %s7433_s24  ;;  %1684 = vst [vmem:[#allocation1 + $0x20] ss:$2 sm:$0xff] %v7520_v3 }
  0xac   :  { %v1038_v30 = vpop.permute.xlu0 %1037 }
  0xad   :  { %v1040_v51 = vpop.permute.xlu1 %1039 }
  0xb0   :  { %6488 = vmatmul.msk.f32.gmra.mxu0 %vm150_vm2, %v7569_v31 }
  0xb1   :  { %6512 = vmatmul.msk.f32.vlgmr.msra.gmra.mxu1 %vm150_vm2, %v7658_v49  ;;  %6480 = vmatmul.msk.f32.gmra.mxu2 %vm150_vm2, %v7574_v32 }
  0xb2   :  { %6502 = vmatmul.msk.f32.vlgmr.msra.gmra.mxu3 %vm150_vm2, %v7562_v29  ;;  %6551 = vmatpush.msk.msra.mxu1 %vm163_vm1, %v720_v59  ;;  %v1692_v10 = vld.sshfl [vmem:[#allocation1 + $0x28] sm:$0xff pattern:$0x75316420] }
  0xb3   :  { %6541 = vmatpush.msk.msra.mxu3 %vm163_vm1, %v426_v39  ;;  %1378 = vrot.lane.b32.xlu1 %v1363_v34, %s7433_s24  ;;  %v1689_v39 = vld.sshfl [vmem:[#allocation1 + $0x10] sm:$0xff pattern:$0x75316420]  ;;  %s7435_s24 = smov 122  }
  0xb4   :  { %v1044_v58 = vpop.permute.xlu0 %1043 }
  0xb5   :  { %v1046_v61 = vpop.permute.xlu1 %1045 }
  0xb8   :  { %6489 = vmatmul.msk.f32.gmra.mxu0 %vm150_vm2, %v7604_v43 }
  0xb9   :  { %6513 = vmatmul.msk.f32.gmra.mxu1 %vm150_vm2, %v7676_v52  ;;  %6497 = vmatmul.msk.f32.vlgmr.msra.gmra.mxu2 %vm150_vm2, %v7562_v29 }
  0xba   :  { %6503 = vmatmul.msk.f32.gmra.mxu3 %vm150_vm2, %v7569_v31  ;;  %6536 = vmatpush.msk.msra.mxu2 %vm163_vm1, %v7594_v38 }
  0xbb   :  { %1699 = vrot.lane.b32.xlu1 %v1689_v39, %s7434_s15 }
  0xc0   :  { %6490 = vmatmul.msk.f32.gmra.mxu0 %vm150_vm2, %v7574_v32 }
  0xc1   :  { %6514 = vmatmul.msk.f32.gmra.mxu1 %vm150_vm2, %v7693_v55  ;;  %6498 = vmatmul.msk.f32.gmra.mxu2 %vm150_vm2, %v7569_v31  ;;  %v1036_v31 = vpop.permute.xlu2 %1035 }
  0xc2   :  { %6504 = vmatmul.msk.f32.gmra.mxu3 %vm150_vm2, %v7604_v43  ;;  %v1050_v46 = vsel %vm1049_vm4, %v1034_v45, %v1036_v31 }
  0xc3   :  { %1705 = vrot.lane.b32.xlu1 %v1692_v10, %s7434_s15 }
  0xc8   :  { %6507 = vmatmul.msk.f32.vlgmr.msra.gmra.mxu0 %vm150_vm2, %v7658_v49 }
  0xc9   :  { %6515 = vmatmul.msk.f32.gmra.mxu1 %vm150_vm2, %v7706_v56  ;;  %6499 = vmatmul.msk.f32.gmra.mxu2 %vm150_vm2, %v7604_v43  ;;  %v1042_v59 = vpop.permute.xlu2 %1041 }
  0xca   :  { %6505 = vmatmul.msk.f32.gmra.mxu3 %vm150_vm2, %v7574_v32  ;;  %6546 = vmatpush.msk.msra.mxu0 %vm163_vm1, %v719_v63  ;;  %v1053_v60 = vsel %vm1049_vm4, %v1040_v51, %v1042_v59  ;;  %v1054_v62 = vsel %vm1049_vm4, %v1042_v59, %v1044_v58  ;;  %v1055_v63 = vsel %vm1049_vm4, %v1044_v58, %v1046_v61 }
  0xd0   :  { %6508 = vmatmul.msk.f32.gmra.mxu0 %vm150_vm2, %v7676_v52 }
  0xd1   :  { %6532 = vmatmul.msk.f32.vlgmr.msrb.gmra.mxu1 %vm150_vm2, %v7658_v49  ;;  %6500 = vmatmul.msk.f32.gmra.mxu2 %vm150_vm2, %v7574_v32  ;;  %v1051_v32 = vsel %vm1049_vm4, %v1036_v31, %v1038_v30 }
  0xd2   :  { %6522 = vmatmul.msk.f32.vlgmr.msrb.gmra.mxu3 %vm150_vm2, %v7658_v49  ;;  %6571 = vmatpush.msk.msrb.mxu1 %vm163_vm1, %v724_v14 }
  0xd3   :  { %6561 = vmatpush.msk.msrb.mxu3 %vm163_vm1, %v722_v11  ;;  %v1691_v11 = vld.sshfl [vmem:[#allocation1 + $0x20] sm:$0xff pattern:$0x75316420] }
  0xd4   :  { %1703 = vrot.lane.b32.xlu0 %v1691_v11, %s7434_s15  ;;  %2015 = vst [vmem:[#allocation1 + $0x20] ss:$2 sm:$0xff] %v7520_v3 }
  0xd8   :  { %6509 = vmatmul.msk.f32.gmra.mxu0 %vm150_vm2, %v7693_v55 }
  0xd9   :  { %6533 = vmatmul.msk.f32.gmra.mxu1 %vm150_vm2, %v7676_v52  ;;  %6517 = vmatmul.msk.f32.vlgmr.msrb.gmra.mxu2 %vm150_vm2, %v7658_v49 }
  0xda   :  { %6523 = vmatmul.msk.f32.gmra.mxu3 %vm150_vm2, %v7676_v52  ;;  %6556 = vmatpush.msk.msrb.mxu2 %vm163_vm1, %v721_v5 }
  0xe0   :  { %6510 = vmatmul.msk.f32.gmra.mxu0 %vm150_vm2, %v7706_v56 }
  0xe1   :  { %6534 = vmatmul.msk.f32.gmra.mxu1 %vm150_vm2, %v7693_v55  ;;  %6518 = vmatmul.msk.f32.gmra.mxu2 %vm150_vm2, %v7676_v52 }
  0xe2   :  { %6524 = vmatmul.msk.f32.gmra.mxu3 %vm150_vm2, %v7693_v55 }
  0xe8   :  { %6527 = vmatmul.msk.f32.vlgmr.msrb.gmra.mxu0 %vm150_vm2, %v7658_v49 }
  0xe9   :  { %6535 = vmatmul.msk.f32.gmra.mxu1 %vm150_vm2, %v7706_v56  ;;  %6519 = vmatmul.msk.f32.gmra.mxu2 %vm150_vm2, %v7693_v55 }
  0xea   :  { %6525 = vmatmul.msk.f32.gmra.mxu3 %vm150_vm2, %v7706_v56  ;;  %6566 = vmatpush.msk.msrb.mxu0 %vm163_vm1, %v723_v13 }
  0xf0   :  { %6528 = vmatmul.msk.f32.gmra.mxu0 %vm150_vm2, %v7676_v52 }
  0xf1   :  { %6552 = vmatmul.msk.f32.vlgmr.msra.gmra.mxu1 %vm150_vm2, %v7763_v8  ;;  %6520 = vmatmul.msk.f32.gmra.mxu2 %vm150_vm2, %v7706_v56 }
  0xf2   :  { %6542 = vmatmul.msk.f32.vlgmr.msra.gmra.mxu3 %vm150_vm2, %v7658_v49  ;;  %6591 = vmatpush.msk.msra.mxu1 %vm163_vm1, %v1051_v32  ;;  %v1690_v32 = vld.sshfl [vmem:[#allocation1 + $0x18] sm:$0xff pattern:$0x75316420] }
  0xf3   :  { %6581 = vmatpush.msk.msra.mxu3 %vm163_vm1, %v717_v24  ;;  %1701 = vrot.lane.b32.xlu2 %v1690_v32, %s7434_s15  ;;  %2013 = vst [vmem:[#allocation1 + $0x10] ss:$2 sm:$0xff] %v7509_v1 }
  0xf8   :  { %6529 = vmatmul.msk.f32.gmra.mxu0 %vm150_vm2, %v7693_v55 }
  0xf9   :  { %6553 = vmatmul.msk.f32.gmra.mxu1 %vm150_vm2, %v7786_v17  ;;  %6537 = vmatmul.msk.f32.vlgmr.msra.gmra.mxu2 %vm150_vm2, %v7658_v49 }
  0xfa   :  { %6543 = vmatmul.msk.f32.gmra.mxu3 %vm150_vm2, %v7676_v52  ;;  %6576 = vmatpush.msk.msra.mxu2 %vm163_vm1, %v725_v25 }
 0x100   :  { %6530 = vmatmul.msk.f32.gmra.mxu0 %vm150_vm2, %v7706_v56 }
 0x101   :  { %6554 = vmatmul.msk.f32.gmra.mxu1 %vm150_vm2, %v7801_v20  ;;  %6538 = vmatmul.msk.f32.gmra.mxu2 %vm150_vm2, %v7676_v52  ;;  %v1052_v52 = vsel %vm1049_vm4, %v1038_v30, %v1040_v51  ;;  %v1048_v30 = vpop.permute.xlu2 %1047  ;;  %v1694_v51 = vld.sshfl [vmem:[#allocation1 + $0x38] sm:$0xff pattern:$0x75316420] }
 0x102   :  { %6544 = vmatmul.msk.f32.gmra.mxu3 %vm150_vm2, %v7693_v55  ;;  %v1056_v31 = vsel %vm1049_vm4, %v1046_v61, %v1048_v30  ;;  %1709 = vrot.lane.b32.xlu0 %v1694_v51, %s7434_s15 }
 0x105   :  { %v7811_v21 = vpop.f32.mrf.mxu0  ;;  %v7813_v22 = vpop.f32.mrf.mxu1 }
 0x106   :  { %12048 = vst [vmem:[#allocation2_spill] sm:$0xff] %v7811_v21  ;;  %v12017_v21 = vmov 0  }
 0x107   :  { %12049 = vst [vmem:[#allocation3_spill] sm:$0xff] %v7813_v22  ;;  %7087 = vset.pattern.permute.xlu1 %v12017_v21  ;;  %7086 = vset.pattern.permute.xlu0 %v12017_v21 }
 0x108   :  { %6547 = vmatmul.msk.f32.vlgmr.msra.gmra.mxu0 %vm150_vm2, %v7763_v8  ;;  %7088 = vset.pattern.permute.xlu2 %v12017_v21  ;;  %v3335_v21 = vld [vmem:[%s12007_s4] sm:$0xff] }
 0x109   :  { %6555 = vmatmul.msk.f32.gmra.mxu1 %vm150_vm2, %v7818_v23  ;;  %6539 = vmatmul.msk.f32.gmra.mxu2 %vm150_vm2, %v7693_v55  ;;  %v1369_v45 = vpop.permute.xlu2 %1368 }
 0x10a   :  { %6545 = vmatmul.msk.f32.gmra.mxu3 %vm150_vm2, %v7706_v56  ;;  %6586 = vmatpush.msk.msra.mxu0 %vm163_vm1, %v1050_v46 }
 0x10c   :  { %v7831_v26 = vpop.f32.mrf.mxu2  ;;  %v7833_v27 = vpop.f32.mrf.mxu3 }
 0x10d   :  { %v7835_v28 = vpop.f32.mrf.mxu0 }
 0x10e   :  { %v7837_v29 = vpop.f32.mrf.mxu1 }
 0x10f   :  { %12050 = vst [vmem:[#allocation4_spill] sm:$0xff] %v7837_v29 }
 0x110   :  { %6548 = vmatmul.msk.f32.gmra.mxu0 %vm150_vm2, %v7786_v17 }
 0x111   :  { %6572 = vmatmul.msk.f32.vlgmr.msrb.gmra.mxu1 %vm150_vm2, %v7763_v8  ;;  %6540 = vmatmul.msk.f32.gmra.mxu2 %vm150_vm2, %v7706_v56 }
 0x112   :  { %6562 = vmatmul.msk.f32.vlgmr.msrb.gmra.mxu3 %vm150_vm2, %v7763_v8  ;;  %6611 = vmatpush.msk.msrb.mxu1 %vm163_vm1, %v1055_v63 }
 0x113   :  { %6601 = vmatpush.msk.msrb.mxu3 %vm163_vm1, %v1053_v60 }
 0x114   :  { %v7849_v35 = vpop.f32.mrf.mxu2 }
 0x115   :  { %v7851_v36 = vpop.f32.mrf.mxu3  ;;  %v7856_v37 = vpop.f32.mrf.mxu0 }
 0x116   :  { %v7858_v38 = vpop.f32.mrf.mxu1 }
 0x117   :  { %12051 = vst [vmem:[#allocation5_spill] sm:$0xff] %v7858_v38 }
 0x118   :  { %6549 = vmatmul.msk.f32.gmra.mxu0 %vm150_vm2, %v7801_v20 }
 0x119   :  { %6573 = vmatmul.msk.f32.gmra.mxu1 %vm150_vm2, %v7786_v17  ;;  %6557 = vmatmul.msk.f32.vlgmr.msrb.gmra.mxu2 %vm150_vm2, %v7763_v8 }
 0x11a   :  { %6563 = vmatmul.msk.f32.gmra.mxu3 %vm150_vm2, %v7786_v17  ;;  %6596 = vmatpush.msk.msrb.mxu2 %vm163_vm1, %v1052_v52  ;;  %v1693_v52 = vld.sshfl [vmem:[#allocation1 + $0x30] sm:$0xff pattern:$0x75316420] }
 0x11b   :  { %1707 = vrot.lane.b32.xlu2 %v1693_v52, %s7434_s15  ;;  %2017 = vst [vmem:[#allocation1 + $0x30] ss:$2 sm:$0xff] %v7514_v2  ;;  %s7436_s15 = smov 121  }
 0x11c   :  { %v7869_v41 = vpop.f32.mrf.mxu2 }
 0x11d   :  { %v7871_v42 = vpop.f32.mrf.mxu3  ;;  %v7875_v43 = vpop.f32.mrf.mxu0 }
 0x11e   :  { %v7877_v44 = vpop.f32.mrf.mxu1 }
 0x11f   :  { %12052 = vst [vmem:[#allocation6_spill] sm:$0xff] %v7877_v44 }
 0x120   :  { %6550 = vmatmul.msk.f32.gmra.mxu0 %vm150_vm2, %v7818_v23 }
 0x121   :  { %6574 = vmatmul.msk.f32.gmra.mxu1 %vm150_vm2, %v7801_v20  ;;  %6558 = vmatmul.msk.f32.gmra.mxu2 %vm150_vm2, %v7786_v17 }
 0x122   :  { %6564 = vmatmul.msk.f32.gmra.mxu3 %vm150_vm2, %v7801_v20 }
 0x124   :  { %v7889_v47 = vpop.f32.mrf.mxu2 }
 0x125   :  { %v7891_v48 = vpop.f32.mrf.mxu3  ;;  %v7893_v49 = vpop.f32.mrf.mxu0 }
 0x126   :  { %12053 = vst [vmem:[#allocation7_spill] sm:$0xff] %v7893_v49  ;;  %v7895_v50 = vpop.f32.mrf.mxu1 }
 0x127   :  { %12054 = vst [vmem:[#allocation8_spill] sm:$0xff] %v7895_v50 }
 0x128   :  { %6567 = vmatmul.msk.f32.vlgmr.msrb.gmra.mxu0 %vm150_vm2, %v7763_v8 }
 0x129   :  { %6575 = vmatmul.msk.f32.gmra.mxu1 %vm150_vm2, %v7818_v23  ;;  %6559 = vmatmul.msk.f32.gmra.mxu2 %vm150_vm2, %v7801_v20 }
 0x12a   :  { %6565 = vmatmul.msk.f32.gmra.mxu3 %vm150_vm2, %v7818_v23  ;;  %6606 = vmatpush.msk.msrb.mxu0 %vm163_vm1, %v1054_v62  ;;  %v2020_v62 = vld.sshfl [vmem:[#allocation1 + $0x10] sm:$0xff pattern:$0x75316420] }
 0x12b   :  { %2030 = vrot.lane.b32.xlu0 %v2020_v62, %s7435_s24 }
 0x12c   :  { %v7907_v53 = vpop.f32.mrf.mxu2 }
 0x12d   :  { %v7909_v54 = vpop.f32.mrf.mxu3  ;;  %v7911_v55 = vpop.f32.mrf.mxu0 }
 0x12e   :  { %12055 = vst [vmem:[#allocation9_spill] sm:$0xff] %v7911_v55  ;;  %v7913_v56 = vpop.f32.mrf.mxu1 }
 0x12f   :  { %12056 = vst [vmem:[#allocation10_spill] sm:$0xff] %v7913_v56 }
 0x130   :  { %6568 = vmatmul.msk.f32.gmra.mxu0 %vm150_vm2, %v7786_v17 }
 0x131   :  { %6592 = vmatmul.msk.f32.vlgmr.msra.gmra.mxu1 %vm150_vm2, %v7918_v57  ;;  %6560 = vmatmul.msk.f32.gmra.mxu2 %vm150_vm2, %v7818_v23 }
 0x132   :  { %6582 = vmatmul.msk.f32.vlgmr.msra.gmra.mxu3 %vm150_vm2, %v7763_v8 }
 0x133   :  { %6621 = vmatpush.msk.msra.mxu3 %vm163_vm1, %v1048_v30 }
 0x134   :  { %v7934_v4 = vpop.f32.mrf.mxu2 }
 0x135   :  { %v7936_v5 = vpop.f32.mrf.mxu3  ;;  %v7938_v6 = vpop.f32.mrf.mxu0 }
 0x136   :  { %12057 = vst [vmem:[#allocation11_spill] sm:$0xff] %v7938_v6  ;;  %v7940_v7 = vpop.f32.mrf.mxu1 }
 0x138   :  { %6569 = vmatmul.msk.f32.gmra.mxu0 %vm150_vm2, %v7801_v20 }
 0x139   :  { %6593 = vmatmul.msk.f32.gmra.mxu1 %vm150_vm2, %v7945_v9  ;;  %6577 = vmatmul.msk.f32.vlgmr.msra.gmra.mxu2 %vm150_vm2, %v7763_v8  ;;  %v7969_v8 = vld [vmem:[%s12006_s3 + $0x70] sm:$0xff] }
 0x13a   :  { %6583 = vmatmul.msk.f32.gmra.mxu3 %vm150_vm2, %v7786_v17  ;;  %6616 = vmatpush.msk.msra.mxu2 %vm163_vm1, %v1056_v31  ;;  %v1365_v31 = vpop.permute.xlu0 %1364 }
 0x13c   :  { %v7955_v12 = vpop.f32.mrf.mxu2 }
 0x13d   :  { %v7957_v13 = vpop.f32.mrf.mxu3  ;;  %v7962_v14 = vpop.f32.mrf.mxu0 }
 0x13e   :  { %12058 = vst [vmem:[#allocation12_spill] sm:$0xff] %v7962_v14  ;;  %v7964_v15 = vpop.f32.mrf.mxu1 }
 0x140   :  { %6570 = vmatmul.msk.f32.gmra.mxu0 %vm150_vm2, %v7818_v23 }
 0x141   :  { %6594 = vmatmul.msk.f32.gmra.mxu1 %vm150_vm2, %v7969_v8  ;;  %6578 = vmatmul.msk.f32.gmra.mxu2 %vm150_vm2, %v7786_v17  ;;  %v7992_v17 = vld [vmem:[%s12006_s3 + $0x78] sm:$0xff] }
 0x142   :  { %6584 = vmatmul.msk.f32.gmra.mxu3 %vm150_vm2, %v7801_v20 }
 0x144   :  { %v7979_v18 = vpop.f32.mrf.mxu2 }
 0x145   :  { %v7981_v19 = vpop.f32.mrf.mxu3  ;;  %v7987_v25 = vpop.f32.mrf.mxu0 }
 0x146   :  { %v7985_v24 = vpop.f32.mrf.mxu1  ;;  %12059 = vst [vmem:[#allocation13_spill] sm:$0xff] %v7987_v25 }
 0x148   :  { %6587 = vmatmul.msk.f32.vlgmr.msra.gmra.mxu0 %vm150_vm2, %v7918_v57 }
 0x149   :  { %6595 = vmatmul.msk.f32.gmra.mxu1 %vm150_vm2, %v7992_v17  ;;  %6579 = vmatmul.msk.f32.gmra.mxu2 %vm150_vm2, %v7801_v20  ;;  %v1367_v20 = vpop.permute.xlu1 %1366 }
 0x14a   :  { %6585 = vmatmul.msk.f32.gmra.mxu3 %vm150_vm2, %v7818_v23  ;;  %v1382_v46 = vsel %vm1380_vm5, %v1367_v20, %v1369_v45  ;;  %v1381_v32 = vsel %vm1380_vm5, %v1365_v31, %v1367_v20 }
 0x14b   :  { %6631 = vmatpush.msk.msra.mxu1 %vm163_vm1, %v1382_v46  ;;  %6626 = vmatpush.msk.msra.mxu0 %vm163_vm1, %v1381_v32 }
 0x14c   :  { %v8005_v33 = vpop.f32.mrf.mxu2 }
 0x14d   :  { %v8007_v34 = vpop.f32.mrf.mxu3  ;;  %v8013_v40 = vpop.f32.mrf.mxu0 }
 0x14e   :  { %v8011_v39 = vpop.f32.mrf.mxu1 }
 0x14f   :  { %12060 = vst [vmem:[#allocation14_spill] sm:$0xff] %v8011_v39 }
 0x150   :  { %6588 = vmatmul.msk.f32.gmra.mxu0 %vm150_vm2, %v7945_v9 }
 0x151   :  { %6612 = vmatmul.msk.f32.vlgmr.msrb.gmra.mxu1 %vm150_vm2, %v7918_v57  ;;  %6580 = vmatmul.msk.f32.gmra.mxu2 %vm150_vm2, %v7818_v23 }
 0x152   :  { %6602 = vmatmul.msk.f32.vlgmr.msrb.gmra.mxu3 %vm150_vm2, %v7918_v57 }
 0x154   :  { %v8025_v58 = vpop.f32.mrf.mxu2 }
 0x155   :  { %v559_v59 = vpop.f32.mrf.mxu3  ;;  %v8033_v23 = vpop.f32.mrf.mxu0 }
 0x156   :  { %v8031_v60 = vadd.f32 %v559_v59, %v7851_v36  ;;  %v8035_v61 = vpop.f32.mrf.mxu1  ;;  %v1371_v59 = vpop.permute.xlu0 %1370 }
 0x157   :  { %12061 = vst [vmem:[#allocation15_spill] sm:$0xff] %v8035_v61  ;;  %v1383_v62 = vsel %vm1380_vm5, %v1369_v45, %v1371_v59  ;;  %v8349_v61 = vld [vmem:[%s12006_s3 + $0xb0] sm:$0xff] }
 0x158   :  { %6589 = vmatmul.msk.f32.gmra.mxu0 %vm150_vm2, %v7969_v8 }
 0x159   :  { %6613 = vmatmul.msk.f32.gmra.mxu1 %vm150_vm2, %v7945_v9  ;;  %6597 = vmatmul.msk.f32.vlgmr.msrb.gmra.mxu2 %vm150_vm2, %v7918_v57 }
 0x15a   :  { %6603 = vmatmul.msk.f32.gmra.mxu3 %vm150_vm2, %v7945_v9  ;;  %6636 = vmatpush.msk.msrb.mxu2 %vm163_vm1, %v1383_v62  ;;  %v1373_v62 = vpop.permute.xlu1 %1372 }
 0x15b   :  { %v1384_v14 = vsel %vm1380_vm5, %v1371_v59, %v1373_v62  ;;  %v2019_v59 = vld.sshfl [vmem:[#allocation1 + $0x8] sm:$0xff pattern:$0x75316420] }
 0x15c   :  { %v530_v63 = vpop.f32.mrf.mxu2  ;;  %6641 = vmatpush.msk.msrb.mxu3 %vm163_vm1, %v1384_v14  ;;  %2028 = vrot.lane.b32.xlu2 %v2019_v59, %s7435_s24 }
 0x15d   :  { %v562_v36 = vpop.f32.mrf.mxu3  ;;  %v8047_v10 = vadd.f32 %v530_v63, %v7869_v41  ;;  %v8052_v16 = vpop.f32.mrf.mxu0 }
 0x15e   :  { %v8050_v11 = vadd.f32 %v562_v36, %v7871_v42  ;;  %v8054_v30 = vpop.f32.mrf.mxu1 }
 0x15f   :  { %12062 = vst [vmem:[#allocation16_spill] sm:$0xff] %v8054_v30 }
 0x160   :  { %6590 = vmatmul.msk.f32.gmra.mxu0 %vm150_vm2, %v7992_v17 }
 0x161   :  { %6614 = vmatmul.msk.f32.gmra.mxu1 %vm150_vm2, %v7969_v8  ;;  %6598 = vmatmul.msk.f32.gmra.mxu2 %vm150_vm2, %v7945_v9 }
 0x162   :  { %6604 = vmatmul.msk.f32.gmra.mxu3 %vm150_vm2, %v7969_v8 }
 0x164   :  { %v533_v41 = vpop.f32.mrf.mxu2 }
 0x165   :  { %v565_v42 = vpop.f32.mrf.mxu3  ;;  %v8067_v46 = vadd.f32 %v533_v41, %v7889_v47  ;;  %v8074_v52 = vpop.f32.mrf.mxu0  ;;  %v2018_v47 = vld.sshfl [vmem:[#allocation1] sm:$0xff pattern:$0x75316420] }
 0x166   :  { %v8070_v20 = vadd.f32 %v565_v42, %v7891_v48  ;;  %v8072_v51 = vpop.f32.mrf.mxu1  ;;  %12064 = vst [vmem:[#allocation18_spill] sm:$0xff] %v8074_v52  ;;  %2026 = vrot.lane.b32.xlu1 %v2018_v47, %s7435_s24  ;;  %v8100_v41 = vld [vmem:[%s12006_s3 + $0x80] sm:$0xff]  ;;  %v1375_v42 = vpop.permute.xlu2 %1374 }
 0x167   :  { %12063 = vst [vmem:[#allocation17_spill] sm:$0xff] %v8072_v51  ;;  %v1377_v47 = vpop.permute.xlu0 %1376 }
 0x168   :  { %6607 = vmatmul.msk.f32.vlgmr.msrb.gmra.mxu0 %vm150_vm2, %v7918_v57  ;;  %2342 = vst [vmem:[#allocation1] ss:$2 sm:$0xff] %v7504_v0 }
 0x169   :  { %6615 = vmatmul.msk.f32.gmra.mxu1 %vm150_vm2, %v7992_v17  ;;  %6599 = vmatmul.msk.f32.gmra.mxu2 %vm150_vm2, %v7969_v8 }
 0x16a   :  { %6605 = vmatmul.msk.f32.gmra.mxu3 %vm150_vm2, %v7992_v17 }
 0x16c   :  { %v536_v48 = vpop.f32.mrf.mxu2 }
 0x16d   :  { %v568_v63 = vpop.f32.mrf.mxu3  ;;  %v8088_v45 = vadd.f32 %v536_v48, %v7907_v53  ;;  %v8095_v32 = vpop.f32.mrf.mxu0  ;;  %v1385_v53 = vsel %vm1380_vm5, %v1373_v62, %v1375_v42  ;;  %v2021_v48 = vld.sshfl [vmem:[#allocation1 + $0x18] sm:$0xff pattern:$0x75316420] }
 0x16e   :  { %v8091_v36 = vadd.f32 %v568_v63, %v7909_v54  ;;  %v8093_v31 = vpop.f32.mrf.mxu1  ;;  %12066 = vst [vmem:[#allocation20_spill] sm:$0xff] %v8095_v32  ;;  %v1386_v54 = vsel %vm1380_vm5, %v1375_v42, %v1377_v47  ;;  %6646 = vmatpush.msk.msrb.mxu0 %vm163_vm1, %v1385_v53  ;;  %2032 = vrot.lane.b32.xlu1 %v2021_v48, %s7435_s24  ;;  %v8132_v53 = vld [vmem:[%s12006_s3 + $0x88] sm:$0xff]  ;;  %v1696_v51 = vpop.permute.xlu2 %1695 }
 0x16f   :  { %12065 = vst [vmem:[#allocation19_spill] sm:$0xff] %v8093_v31  ;;  %6651 = vmatpush.msk.msrb.mxu1 %vm163_vm1, %v1386_v54 }
 0x170   :  { %6608 = vmatmul.msk.f32.gmra.mxu0 %vm150_vm2, %v7945_v9  ;;  %2344 = vst [vmem:[#allocation1 + $0x10] ss:$2 sm:$0xff] %v7509_v1 }
 0x171   :  { %6632 = vmatmul.msk.f32.vlgmr.msra.gmra.mxu1 %vm150_vm2, %v8100_v41  ;;  %6600 = vmatmul.msk.f32.gmra.mxu2 %vm150_vm2, %v7992_v17 }
 0x172   :  { %6622 = vmatmul.msk.f32.vlgmr.msra.gmra.mxu3 %vm150_vm2, %v7918_v57 }
 0x174   :  { %v539_v63 = vpop.f32.mrf.mxu2 }
 0x175   :  { %v675_v32 = vpop.f32.mrf.mxu3  ;;  %v8120_v42 = vadd.f32 %v539_v63, %v7934_v4  ;;  %v8125_v14 = vpop.f32.mrf.mxu0  ;;  %v2023_v4 = vld.sshfl [vmem:[#allocation1 + $0x28] sm:$0xff pattern:$0x75316420] }
 0x176   :  { %v8123_v62 = vadd.f32 %v675_v32, %v7936_v5  ;;  %12067 = vst [vmem:[#allocation21_spill] sm:$0xff] %v8125_v14  ;;  %v8127_v54 = vpop.f32.mrf.mxu1  ;;  %v2024_v5 = vld.sshfl [vmem:[#allocation1 + $0x30] sm:$0xff pattern:$0x75316420]  ;;  %2036 = vrot.lane.b32.xlu0 %v2023_v4, %s7435_s24 }
 0x177   :  { %2038 = vrot.lane.b32.xlu1 %v2024_v5, %s7435_s24  ;;  %v8158_v14 = vld [vmem:[%s12006_s3 + $0x90] sm:$0xff] }
 0x178   :  { %6609 = vmatmul.msk.f32.gmra.mxu0 %vm150_vm2, %v7969_v8 }
 0x179   :  { %6633 = vmatmul.msk.f32.gmra.mxu1 %vm150_vm2, %v8132_v53  ;;  %6617 = vmatmul.msk.f32.vlgmr.msra.gmra.mxu2 %vm150_vm2, %v7918_v57 }
 0x17a   :  { %6623 = vmatmul.msk.f32.gmra.mxu3 %vm150_vm2, %v7945_v9 }
 0x17c   :  { %v646_v32 = vpop.f32.mrf.mxu2 }
 0x17d   :  { %v678_v59 = vpop.f32.mrf.mxu3  ;;  %v8146_v48 = vadd.f32 %v646_v32, %v7955_v12  ;;  %v8153_v57 = vpop.f32.mrf.mxu0 }
 0x17e   :  { %v8149_v63 = vadd.f32 %v678_v59, %v7957_v13  ;;  %v8151_v55 = vpop.f32.mrf.mxu1  ;;  %12068 = vst [vmem:[#allocation22_spill] sm:$0xff] %v8153_v57  ;;  %v8181_v57 = vld [vmem:[%s12006_s3 + $0x98] sm:$0xff] }
 0x180   :  { %6610 = vmatmul.msk.f32.gmra.mxu0 %vm150_vm2, %v7992_v17 }
 0x181   :  { %6634 = vmatmul.msk.f32.gmra.mxu1 %vm150_vm2, %v8158_v14  ;;  %6618 = vmatmul.msk.f32.gmra.mxu2 %vm150_vm2, %v7945_v9  ;;  %v1379_v9 = vpop.permute.xlu1 %1378 }
 0x182   :  { %6624 = vmatmul.msk.f32.gmra.mxu3 %vm150_vm2, %v7969_v8  ;;  %v1387_v6 = vsel %vm1380_vm5, %v1377_v47, %v1379_v9 }
 0x183   :  { %6661 = vmatpush.msk.msra.mxu3 %vm163_vm1, %v1379_v9  ;;  %6656 = vmatpush.msk.msra.mxu2 %vm163_vm1, %v1387_v6  ;;  %v2022_v6 = vld.sshfl [vmem:[#allocation1 + $0x20] sm:$0xff pattern:$0x75316420] }
 0x184   :  { %v649_v12 = vpop.f32.mrf.mxu2  ;;  %2034 = vrot.lane.b32.xlu2 %v2022_v6, %s7435_s24  ;;  %2346 = vst [vmem:[#allocation1 + $0x20] ss:$2 sm:$0xff] %v7520_v3 }
 0x185   :  { %v681_v13 = vpop.f32.mrf.mxu3  ;;  %v8169_v4 = vadd.f32 %v649_v12, %v7979_v18  ;;  %v8176_v59 = vpop.f32.mrf.mxu0 }
 0x186   :  { %v8172_v5 = vadd.f32 %v681_v13, %v7981_v19  ;;  %v8174_v32 = vpop.f32.mrf.mxu1  ;;  %12069 = vst [vmem:[#allocation23_spill] sm:$0xff] %v8176_v59 }
 0x188   :  { %6627 = vmatmul.msk.f32.vlgmr.msra.gmra.mxu0 %vm150_vm2, %v8100_v41 }
 0x189   :  { %6635 = vmatmul.msk.f32.gmra.mxu1 %vm150_vm2, %v8181_v57  ;;  %6619 = vmatmul.msk.f32.gmra.mxu2 %vm150_vm2, %v7969_v8  ;;  %v1700_v52 = vpop.permute.xlu1 %1699  ;;  %v1698_v8 = vpop.permute.xlu0 %1697 }
 0x18a   :  { %6625 = vmatmul.msk.f32.gmra.mxu3 %vm150_vm2, %v7992_v17  ;;  %v1713_v49 = vsel %vm1711_vm6, %v1698_v8, %v1700_v52  ;;  %v1712_v50 = vsel %vm1711_vm6, %v1696_v51, %v1698_v8 }
 0x18b   :  { %6671 = vmatpush.msk.msra.mxu1 %vm163_vm1, %v1713_v49  ;;  %v2350_v49 = vld.sshfl [vmem:[#allocation1 + $0x8] sm:$0xff pattern:$0x75316420]  ;;  %6666 = vmatpush.msk.msra.mxu0 %vm163_vm1, %v1712_v50  ;;  %v2025_v50 = vld.sshfl [vmem:[#allocation1 + $0x38] sm:$0xff pattern:$0x75316420] }
 0x18c   :  { %v652_v18 = vpop.f32.mrf.mxu2  ;;  %2359 = vrot.lane.b32.xlu1 %v2350_v49, %s7436_s15  ;;  %2040 = vrot.lane.b32.xlu2 %v2025_v50, %s7435_s24  ;;  %2348 = vst [vmem:[#allocation1 + $0x30] ss:$2 sm:$0xff] %v7514_v2  ;;  %s7437_s24 = smov 120  }
 0x18d   :  { %v684_v19 = vpop.f32.mrf.mxu3  ;;  %v8195_v47 = vadd.f32 %v652_v18, %v8005_v33  ;;  %v8202_v9 = vpop.f32.mrf.mxu0 }
 0x18e   :  { %v8198_v12 = vadd.f32 %v684_v19, %v8007_v34  ;;  %v8200_v13 = vpop.f32.mrf.mxu1 }
 0x18f   :  { %12070 = vst [vmem:[#allocation24_spill] sm:$0xff] %v8200_v13 }
 0x190   :  { %6628 = vmatmul.msk.f32.gmra.mxu0 %vm150_vm2, %v8132_v53 }
 0x191   :  { %6652 = vmatmul.msk.f32.vlgmr.msrb.gmra.mxu1 %vm150_vm2, %v8100_v41  ;;  %6620 = vmatmul.msk.f32.gmra.mxu2 %vm150_vm2, %v7992_v17  ;;  %v1706_v50 = vpop.permute.xlu1 %1705  ;;  %v1704_v30 = vpop.permute.xlu0 %1703 }
 0x192   :  { %6642 = vmatmul.msk.f32.vlgmr.msrb.gmra.mxu3 %vm150_vm2, %v8100_v41 }
 0x194   :  { %v655_v33 = vpop.f32.mrf.mxu2 }
 0x195   :  { %v858_v34 = vpop.f32.mrf.mxu3  ;;  %v8217_v18 = vadd.f32 %v655_v33, %v8025_v58  ;;  %v8222_v13 = vpop.f32.mrf.mxu0 }
 0x196   :  { %v8220_v19 = vadd.f32 %v858_v34, %v8031_v60  ;;  %v8224_v17 = vpop.f32.mrf.mxu1 }
 0x197   :  { %12071 = vst [vmem:[#allocation25_spill] sm:$0xff] %v8224_v17 }
 0x198   :  { %6629 = vmatmul.msk.f32.gmra.mxu0 %vm150_vm2, %v8158_v14 }
 0x199   :  { %6653 = vmatmul.msk.f32.gmra.mxu1 %vm150_vm2, %v8132_v53  ;;  %6637 = vmatmul.msk.f32.vlgmr.msrb.gmra.mxu2 %vm150_vm2, %v8100_v41 }
 0x19a   :  { %6643 = vmatmul.msk.f32.gmra.mxu3 %vm150_vm2, %v8132_v53 }
 0x19c   :  { %v829_v58 = vpop.f32.mrf.mxu2 }
 0x19d   :  { %v861_v60 = vpop.f32.mrf.mxu3  ;;  %v8236_v6 = vadd.f32 %v829_v58, %v8047_v10  ;;  %v8241_v34 = vpop.f32.mrf.mxu0 }
 0x19e   :  { %v8239_v33 = vadd.f32 %v861_v60, %v8050_v11  ;;  %12072 = vst [vmem:[#allocation26_spill] sm:$0xff] %v8241_v34  ;;  %v8243_v17 = vpop.f32.mrf.mxu1  ;;  %v1702_v60 = vpop.permute.xlu2 %1701 }
 0x19f   :  { %12073 = vst [vmem:[#allocation27_spill] sm:$0xff] %v8243_v17  ;;  %v1714_v17 = vsel %vm1711_vm6, %v1700_v52, %v1702_v60 }
 0x1a0   :  { %6630 = vmatmul.msk.f32.gmra.mxu0 %vm150_vm2, %v8181_v57  ;;  %6676 = vmatpush.msk.msrb.mxu2 %vm163_vm1, %v1714_v17  ;;  %v8291_v17 = vld [vmem:[%s12006_s3 + $0xa0] sm:$0xff] }
 0x1a1   :  { %6654 = vmatmul.msk.f32.gmra.mxu1 %vm150_vm2, %v8158_v14  ;;  %6638 = vmatmul.msk.f32.gmra.mxu2 %vm150_vm2, %v8132_v53 }
 0x1a2   :  { %6644 = vmatmul.msk.f32.gmra.mxu3 %vm150_vm2, %v8158_v14 }
 0x1a4   :  { %v832_v10 = vpop.f32.mrf.mxu2 }
 0x1a5   :  { %v864_v11 = vpop.f32.mrf.mxu3  ;;  %v8256_v49 = vadd.f32 %v832_v10, %v8067_v46  ;;  %v8263_v58 = vpop.f32.mrf.mxu0  ;;  %v2349_v46 = vld.sshfl [vmem:[#allocation1] sm:$0xff pattern:$0x75316420] }
 0x1a6   :  { %v8259_v51 = vadd.f32 %v864_v11, %v8070_v20  ;;  %v8261_v8 = vpop.f32.mrf.mxu1  ;;  %12075 = vst [vmem:[#allocation29_spill] sm:$0xff] %v8263_v58  ;;  %2357 = vrot.lane.b32.xlu0 %v2349_v46, %s7436_s15  ;;  %v1715_v46 = vsel %vm1711_vm6, %v1702_v60, %v1704_v30  ;;  %v2351_v60 = vld.sshfl [vmem:[#allocation1 + $0x10] sm:$0xff pattern:$0x75316420] }
 0x1a7   :  { %12074 = vst [vmem:[#allocation28_spill] sm:$0xff] %v8261_v8  ;;  %6681 = vmatpush.msk.msrb.mxu3 %vm163_vm1, %v1715_v46  ;;  %2361 = vrot.lane.b32.xlu2 %v2351_v60, %s7436_s15 }
 0x1a8   :  { %6647 = vmatmul.msk.f32.vlgmr.msrb.gmra.mxu0 %vm150_vm2, %v8100_v41  ;;  %2673 = vst [vmem:[#allocation1] ss:$2 sm:$0xff] %v7504_v0 }
 0x1a9   :  { %6655 = vmatmul.msk.f32.gmra.mxu1 %vm150_vm2, %v8181_v57  ;;  %6639 = vmatmul.msk.f32.gmra.mxu2 %vm150_vm2, %v8158_v14 }
 0x1aa   :  { %6645 = vmatmul.msk.f32.gmra.mxu3 %vm150_vm2, %v8181_v57 }
 0x1ac   :  { %v835_v20 = vpop.f32.mrf.mxu2 }
 0x1ad   :  { %v867_v10 = vpop.f32.mrf.mxu3  ;;  %v8279_v52 = vadd.f32 %v835_v20, %v8088_v45  ;;  %v8286_v8 = vpop.f32.mrf.mxu0 }
 0x1ae   :  { %v8282_v11 = vadd.f32 %v867_v10, %v8091_v36  ;;  %v8284_v58 = vpop.f32.mrf.mxu1  ;;  %12077 = vst [vmem:[#allocation31_spill] sm:$0xff] %v8286_v8  ;;  %v1708_v45 = vpop.permute.xlu2 %1707  ;;  %v1716_v36 = vsel %vm1711_vm6, %v1704_v30, %v1706_v50  ;;  %v2352_v10 = vld.sshfl [vmem:[#allocation1 + $0x18] sm:$0xff pattern:$0x75316420] }
 0x1af   :  { %12076 = vst [vmem:[#allocation30_spill] sm:$0xff] %v8284_v58  ;;  %v1717_v20 = vsel %vm1711_vm6, %v1706_v50, %v1708_v45  ;;  %6686 = vmatpush.msk.msrb.mxu0 %vm163_vm1, %v1716_v36  ;;  %2363 = vrot.lane.b32.xlu0 %v2352_v10, %s7436_s15  ;;  %v8324_v36 = vld [vmem:[%s12006_s3 + $0xa8] sm:$0xff] }
 0x1b0   :  { %6648 = vmatmul.msk.f32.gmra.mxu0 %vm150_vm2, %v8132_v53  ;;  %6691 = vmatpush.msk.msrb.mxu1 %vm163_vm1, %v1717_v20  ;;  %2675 = vst [vmem:[#allocation1 + $0x10] ss:$2 sm:$0xff] %v7509_v1 }
 0x1b1   :  { %6672 = vmatmul.msk.f32.vlgmr.msra.gmra.mxu1 %vm150_vm2, %v8291_v17  ;;  %6640 = vmatmul.msk.f32.gmra.mxu2 %vm150_vm2, %v8181_v57 }
 0x1b2   :  { %6662 = vmatmul.msk.f32.vlgmr.msra.gmra.mxu3 %vm150_vm2, %v8100_v41 }
 0x1b4   :  { %v838_v8 = vpop.f32.mrf.mxu2 }
 0x1b5   :  { %v974_v44 = vpop.f32.mrf.mxu3  ;;  %v8312_v30 = vadd.f32 %v838_v8, %v8120_v42  ;;  %v8317_v46 = vpop.f32.mrf.mxu0  ;;  %v2355_v42 = vld.sshfl [vmem:[#allocation1 + $0x30] sm:$0xff pattern:$0x75316420] }
 0x1b6   :  { %v8315_v50 = vadd.f32 %v974_v44, %v8123_v62  ;;  %12078 = vst [vmem:[#allocation32_spill] sm:$0xff] %v8317_v46  ;;  %v8319_v20 = vpop.f32.mrf.mxu1  ;;  %v2353_v44 = vld.sshfl [vmem:[#allocation1 + $0x20] sm:$0xff pattern:$0x75316420] }
 0x1b7   :  { %2365 = vrot.lane.b32.xlu1 %v2353_v44, %s7436_s15  ;;  %2369 = vrot.lane.b32.xlu0 %v2355_v42, %s7436_s15 }
 0x1b8   :  { %6649 = vmatmul.msk.f32.gmra.mxu0 %vm150_vm2, %v8158_v14 }
 0x1b9   :  { %6673 = vmatmul.msk.f32.gmra.mxu1 %vm150_vm2, %v8324_v36  ;;  %6657 = vmatmul.msk.f32.vlgmr.msra.gmra.mxu2 %vm150_vm2, %v8100_v41 }
 0x1ba   :  { %6663 = vmatmul.msk.f32.gmra.mxu3 %vm150_vm2, %v8132_v53 }
 0x1bc   :  { %v945_v62 = vpop.f32.mrf.mxu2 }
 0x1bd   :  { %v977_v8 = vpop.f32.mrf.mxu3  ;;  %v8337_v60 = vadd.f32 %v945_v62, %v8146_v48  ;;  %v8344_v41 = vpop.f32.mrf.mxu0 }
 0x1be   :  { %v8340_v10 = vadd.f32 %v977_v8, %v8149_v63  ;;  %v8342_v46 = vpop.f32.mrf.mxu1  ;;  %12079 = vst [vmem:[#allocation33_spill] sm:$0xff] %v8344_v41  ;;  %v8372_v41 = vld [vmem:[%s12006_s3 + $0xb8] sm:$0xff] }
 0x1c0   :  { %6650 = vmatmul.msk.f32.gmra.mxu0 %vm150_vm2, %v8181_v57 }
 0x1c1   :  { %6674 = vmatmul.msk.f32.gmra.mxu1 %vm150_vm2, %v8349_v61  ;;  %6658 = vmatmul.msk.f32.gmra.mxu2 %vm150_vm2, %v8132_v53  ;;  %v1710_v53 = vpop.permute.xlu0 %1709 }
 0x1c2   :  { %6664 = vmatmul.msk.f32.gmra.mxu3 %vm150_vm2, %v8158_v14  ;;  %v1718_v38 = vsel %vm1711_vm6, %v1708_v45, %v1710_v53 }
 0x1c3   :  { %6701 = vmatpush.msk.msra.mxu3 %vm163_vm1, %v1710_v53  ;;  %6696 = vmatpush.msk.msra.mxu2 %vm163_vm1, %v1718_v38  ;;  %v2354_v38 = vld.sshfl [vmem:[#allocation1 + $0x28] sm:$0xff pattern:$0x75316420] }
 0x1c4   :  { %v948_v48 = vpop.f32.mrf.mxu2  ;;  %2367 = vrot.lane.b32.xlu2 %v2354_v38, %s7436_s15  ;;  %2677 = vst [vmem:[#allocation1 + $0x20] ss:$2 sm:$0xff] %v7520_v3 }
 0x1c5   :  { %v980_v63 = vpop.f32.mrf.mxu3  ;;  %v8360_v44 = vadd.f32 %v948_v48, %v8169_v4  ;;  %v8367_v8 = vpop.f32.mrf.mxu0 }
 0x1c6   :  { %v8363_v42 = vadd.f32 %v980_v63, %v8172_v5  ;;  %v8365_v62 = vpop.f32.mrf.mxu1  ;;  %12080 = vst [vmem:[#allocation34_spill] sm:$0xff] %v8367_v8 }
 0x1c8   :  { %6667 = vmatmul.msk.f32.vlgmr.msra.gmra.mxu0 %vm150_vm2, %v8291_v17 }
 0x1c9   :  { %6675 = vmatmul.msk.f32.gmra.mxu1 %vm150_vm2, %v8372_v41  ;;  %6659 = vmatmul.msk.f32.gmra.mxu2 %vm150_vm2, %v8158_v14  ;;  %v2031_v39 = vpop.permute.xlu0 %2030  ;;  %v2029_v14 = vpop.permute.xlu2 %2028 }
 0x1ca   :  { %6665 = vmatmul.msk.f32.gmra.mxu3 %vm150_vm2, %v8181_v57  ;;  %v2044_v29 = vsel %vm2042_vm7, %v2029_v14, %v2031_v39 }
 0x1cb   :  { %6711 = vmatpush.msk.msra.mxu1 %vm163_vm1, %v2044_v29  ;;  %v2682_v29 = vld.sshfl [vmem:[#allocation1 + $0x10] sm:$0xff pattern:$0x75316420] }
 0x1cc   :  { %v951_v4 = vpop.f32.mrf.mxu2 }
 0x1cd   :  { %v983_v5 = vpop.f32.mrf.mxu3  ;;  %v8386_v45 = vadd.f32 %v951_v4, %v8195_v47  ;;  %v8393_v53 = vpop.f32.mrf.mxu0  ;;  %v2356_v47 = vld.sshfl [vmem:[#allocation1 + $0x38] sm:$0xff pattern:$0x75316420] }
 0x1ce   :  { %v8389_v48 = vadd.f32 %v983_v5, %v8198_v12  ;;  %v8391_v63 = vpop.f32.mrf.mxu1  ;;  %2371 = vrot.lane.b32.xlu1 %v2356_v47, %s7436_s15  ;;  %2679 = vst [vmem:[#allocation1 + $0x30] ss:$2 sm:$0xff] %v7514_v2  ;;  %s7438_s15 = smov 119  }
 0x1cf   :  { %12081 = vst [vmem:[#allocation35_spill] sm:$0xff] %v8391_v63 }
 0x1d0   :  { %6668 = vmatmul.msk.f32.gmra.mxu0 %vm150_vm2, %v8324_v36 }
 0x1d1   :  { %6692 = vmatmul.msk.f32.vlgmr.msrb.gmra.mxu1 %vm150_vm2, %v8291_v17  ;;  %6660 = vmatmul.msk.f32.gmra.mxu2 %vm150_vm2, %v8181_v57 }
 0x1d2   :  { %6682 = vmatmul.msk.f32.vlgmr.msrb.gmra.mxu3 %vm150_vm2, %v8291_v17 }
 0x1d4   :  { %v954_v12 = vpop.f32.mrf.mxu2 }
 0x1d5   :  { %v1189_v4 = vpop.f32.mrf.mxu3  ;;  %v8409_v5 = vadd.f32 %v954_v12, %v8217_v18  ;;  %v8414_v63 = vpop.f32.mrf.mxu0  ;;  %v2681_v18 = vld.sshfl [vmem:[#allocation1 + $0x8] sm:$0xff pattern:$0x75316420] }
 0x1d6   :  { %v8412_v57 = vadd.f32 %v1189_v4, %v8220_v19  ;;  %v8416_v58 = vpop.f32.mrf.mxu1  ;;  %2692 = vrot.lane.b32.xlu1 %v2682_v29, %s7437_s24  ;;  %2690 = vrot.lane.b32.xlu0 %v2681_v18, %s7437_s24 }
 0x1d7   :  { %12082 = vst [vmem:[#allocation36_spill] sm:$0xff] %v8416_v58 }
 0x1d8   :  { %6669 = vmatmul.msk.f32.gmra.mxu0 %vm150_vm2, %v8349_v61  ;;  %v2027_v8 = vpop.permute.xlu1 %2026 }
 0x1d9   :  { %6693 = vmatmul.msk.f32.gmra.mxu1 %vm150_vm2, %v8324_v36  ;;  %6677 = vmatmul.msk.f32.vlgmr.msrb.gmra.mxu2 %vm150_vm2, %v8291_v17  ;;  %v2043_v31 = vsel %vm2042_vm7, %v2027_v8, %v2029_v14 }
 0x1da   :  { %6683 = vmatmul.msk.f32.gmra.mxu3 %vm150_vm2, %v8324_v36  ;;  %6706 = vmatpush.msk.msra.mxu0 %vm163_vm1, %v2043_v31 }
 0x1dc   :  { %v1160_v19 = vpop.f32.mrf.mxu2 }
 0x1dd   :  { %v1192_v38 = vpop.f32.mrf.mxu3  ;;  %v8430_v47 = vadd.f32 %v1160_v19, %v8236_v6  ;;  %v8435_v4 = vpop.f32.mrf.mxu0 }
 0x1de   :  { %v8433_v12 = vadd.f32 %v1192_v38, %v8239_v33  ;;  %12083 = vst [vmem:[#allocation37_spill] sm:$0xff] %v8435_v4  ;;  %v8437_v58 = vpop.f32.mrf.mxu1 }
 0x1df   :  { %12084 = vst [vmem:[#allocation38_spill] sm:$0xff] %v8437_v58 }
 0x1e0   :  { %6670 = vmatmul.msk.f32.gmra.mxu0 %vm150_vm2, %v8372_v41  ;;  %v2033_v19 = vpop.permute.xlu1 %2032 }
 0x1e1   :  { %6694 = vmatmul.msk.f32.gmra.mxu1 %vm150_vm2, %v8349_v61  ;;  %6678 = vmatmul.msk.f32.gmra.mxu2 %vm150_vm2, %v8324_v36  ;;  %v2045_v38 = vsel %vm2042_vm7, %v2031_v39, %v2033_v19 }
 0x1e2   :  { %6684 = vmatmul.msk.f32.gmra.mxu3 %vm150_vm2, %v8349_v61  ;;  %6716 = vmatpush.msk.msrb.mxu2 %vm163_vm1, %v2045_v38 }
 0x1e4   :  { %v1163_v6 = vpop.f32.mrf.mxu2 }
 0x1e5   :  { %v1195_v33 = vpop.f32.mrf.mxu3  ;;  %v8450_v29 = vadd.f32 %v1163_v6, %v8256_v49  ;;  %v8457_v18 = vpop.f32.mrf.mxu0 }
 0x1e6   :  { %v8453_v8 = vadd.f32 %v1195_v33, %v8259_v51  ;;  %v8455_v14 = vpop.f32.mrf.mxu1  ;;  %12086 = vst [vmem:[#allocation40_spill] sm:$0xff] %v8457_v18  ;;  %v8482_v18 = vld [vmem:[%s12006_s3 + $0xc0] sm:$0xff] }
 0x1e7   :  { %12085 = vst [vmem:[#allocation39_spill] sm:$0xff] %v8455_v14  ;;  %v2035_v14 = vpop.permute.xlu2 %2034 }
 0x1e8   :  { %6687 = vmatmul.msk.f32.vlgmr.msrb.gmra.mxu0 %vm150_vm2, %v8291_v17  ;;  %v2037_v58 = vpop.permute.xlu0 %2036  ;;  %v2046_v38 = vsel %vm2042_vm7, %v2033_v19, %v2035_v14 }
 0x1e9   :  { %6695 = vmatmul.msk.f32.gmra.mxu1 %vm150_vm2, %v8372_v41  ;;  %6679 = vmatmul.msk.f32.gmra.mxu2 %vm150_vm2, %v8349_v61  ;;  %v2039_v4 = vpop.permute.xlu1 %2038 }
 0x1ea   :  { %6685 = vmatmul.msk.f32.gmra.mxu3 %vm150_vm2, %v8372_v41 }
 0x1eb   :  { %6721 = vmatpush.msk.msrb.mxu3 %vm163_vm1, %v2046_v38  ;;  %v8511_v38 = vld [vmem:[%s12006_s3 + $0xc8] sm:$0xff] }
 0x1ec   :  { %v1166_v31 = vpop.f32.mrf.mxu2 }
 0x1ed   :  { %v1198_v49 = vpop.f32.mrf.mxu3  ;;  %v8470_v51 = vadd.f32 %v1166_v31, %v8279_v52  ;;  %v8477_v33 = vpop.f32.mrf.mxu0  ;;  %v2047_v52 = vsel %vm2042_vm7, %v2035_v14, %v2037_v58 }
 0x1ee   :  { %v8473_v39 = vadd.f32 %v1198_v49, %v8282_v11  ;;  %v8475_v6 = vpop.f32.mrf.mxu1  ;;  %12088 = vst [vmem:[#allocation42_spill] sm:$0xff] %v8477_v33  ;;  %v2048_v11 = vsel %vm2042_vm7, %v2037_v58, %v2039_v4  ;;  %6726 = vmatpush.msk.msrb.mxu0 %vm163_vm1, %v2047_v52 }
 0x1ef   :  { %12087 = vst [vmem:[#allocation41_spill] sm:$0xff] %v8475_v6  ;;  %6731 = vmatpush.msk.msrb.mxu1 %vm163_vm1, %v2048_v11  ;;  %v8537_v6 = vld [vmem:[%s12006_s3 + $0xd0] sm:$0xff] }
 0x1f0   :  { %6688 = vmatmul.msk.f32.gmra.mxu0 %vm150_vm2, %v8324_v36 }
 0x1f1   :  { %6712 = vmatmul.msk.f32.vlgmr.msra.gmra.mxu1 %vm150_vm2, %v8482_v18  ;;  %6680 = vmatmul.msk.f32.gmra.mxu2 %vm150_vm2, %v8372_v41 }
 0x1f2   :  { %6702 = vmatmul.msk.f32.vlgmr.msra.gmra.mxu3 %vm150_vm2, %v8291_v17 }
 0x1f4   :  { %v1169_v19 = vpop.f32.mrf.mxu2 }
 0x1f5   :  { %v1305_v31 = vpop.f32.mrf.mxu3  ;;  %v8499_v49 = vadd.f32 %v1169_v19, %v8312_v30  ;;  %v8504_v58 = vpop.f32.mrf.mxu0  ;;  %v2685_v30 = vld.sshfl [vmem:[#allocation1 + $0x28] sm:$0xff pattern:$0x75316420] }
 0x1f6   :  { %v8502_v14 = vadd.f32 %v1305_v31, %v8315_v50  ;;  %12089 = vst [vmem:[#allocation43_spill] sm:$0xff] %v8504_v58  ;;  %v8506_v33 = vpop.f32.mrf.mxu1  ;;  %v2684_v50 = vld.sshfl [vmem:[#allocation1 + $0x20] sm:$0xff pattern:$0x75316420]  ;;  %2698 = vrot.lane.b32.xlu1 %v2685_v30, %s7437_s24 }
 0x1f7   :  { %2696 = vrot.lane.b32.xlu0 %v2684_v50, %s7437_s24  ;;  %3008 = vst [vmem:[#allocation1 + $0x20] ss:$2 sm:$0xff] %v7520_v3  ;;  %v2680_v3 = vld.sshfl [vmem:[#allocation1] sm:$0xff pattern:$0x75316420] }
 0x1f8   :  { %6689 = vmatmul.msk.f32.gmra.mxu0 %vm150_vm2, %v8349_v61  ;;  %2688 = vrot.lane.b32.xlu2 %v2680_v3, %s7437_s24  ;;  %3004 = vst [vmem:[#allocation1] ss:$2 sm:$0xff] %v7504_v0  ;;  %v2683_v0 = vld.sshfl [vmem:[#allocation1 + $0x18] sm:$0xff pattern:$0x75316420] }
 0x1f9   :  { %6713 = vmatmul.msk.f32.gmra.mxu1 %vm150_vm2, %v8511_v38  ;;  %6697 = vmatmul.msk.f32.vlgmr.msra.gmra.mxu2 %vm150_vm2, %v8291_v17  ;;  %3006 = vst [vmem:[#allocation1 + $0x10] ss:$2 sm:$0xff] %v7509_v1  ;;  %v2687_v1 = vld.sshfl [vmem:[#allocation1 + $0x38] sm:$0xff pattern:$0x75316420] }
 0x1fa   :  { %6703 = vmatmul.msk.f32.gmra.mxu3 %vm150_vm2, %v8324_v36 }
 0x1fc   :  { %v1276_v52 = vpop.f32.mrf.mxu2 }
 0x1fd   :  { %v1308_v11 = vpop.f32.mrf.mxu3  ;;  %v8525_v19 = vadd.f32 %v1276_v52, %v8337_v60  ;;  %v8532_v58 = vpop.f32.mrf.mxu0 }
 0x1fe   :  { %v8528_v31 = vadd.f32 %v1308_v11, %v8340_v10  ;;  %v8530_v17 = vpop.f32.mrf.mxu1  ;;  %12090 = vst [vmem:[#allocation44_spill] sm:$0xff] %v8532_v58  ;;  %v2041_v58 = vpop.permute.xlu2 %2040 }
 0x1ff   :  { %v2049_v3 = vsel %vm2042_vm7, %v2039_v4, %v2041_v58  ;;  %6741 = vmatpush.msk.msra.mxu3 %vm163_vm1, %v2041_v58  ;;  %2702 = vrot.lane.b32.xlu0 %v2687_v1, %s7437_s24 }
 0x200   :  { %6690 = vmatmul.msk.f32.gmra.mxu0 %vm150_vm2, %v8372_v41  ;;  %6736 = vmatpush.msk.msra.mxu2 %vm163_vm1, %v2049_v3  ;;  %v2360_v3 = vpop.permute.xlu1 %2359 }
 0x201   :  { %6714 = vmatmul.msk.f32.gmra.mxu1 %vm150_vm2, %v8537_v6  ;;  %6698 = vmatmul.msk.f32.gmra.mxu2 %vm150_vm2, %v8324_v36  ;;  %v8562_v36 = vld [vmem:[%s12006_s3 + $0xd8] sm:$0xff] }
 0x202   :  { %6704 = vmatmul.msk.f32.gmra.mxu3 %vm150_vm2, %v8349_v61  ;;  %2694 = vrot.lane.b32.xlu2 %v2683_v0, %s7437_s24 }
 0x204   :  { %v1279_v60 = vpop.f32.mrf.mxu2 }
 0x205   :  { %v1311_v10 = vpop.f32.mrf.mxu3  ;;  %v8550_v30 = vadd.f32 %v1279_v60, %v8360_v44  ;;  %v8557_v11 = vpop.f32.mrf.mxu0 }
 0x206   :  { %v8553_v50 = vadd.f32 %v1311_v10, %v8363_v42  ;;  %v8555_v52 = vpop.f32.mrf.mxu1  ;;  %12092 = vst [vmem:[#allocation46_spill] sm:$0xff] %v8557_v11  ;;  %v2362_v10 = vpop.permute.xlu2 %2361 }
 0x207   :  { %12091 = vst [vmem:[#allocation45_spill] sm:$0xff] %v8555_v52  ;;  %v2375_v11 = vsel %vm2373_vm8, %v2360_v3, %v2362_v10 }
 0x208   :  { %6707 = vmatmul.msk.f32.vlgmr.msra.gmra.mxu0 %vm150_vm2, %v8482_v18  ;;  %6751 = vmatpush.msk.msra.mxu1 %vm163_vm1, %v2375_v11 }
 0x209   :  { %6715 = vmatmul.msk.f32.gmra.mxu1 %vm150_vm2, %v8562_v36  ;;  %6699 = vmatmul.msk.f32.gmra.mxu2 %vm150_vm2, %v8349_v61 }
 0x20a   :  { %6705 = vmatmul.msk.f32.gmra.mxu3 %vm150_vm2, %v8372_v41 }
 0x20c   :  { %v1282_v44 = vpop.f32.mrf.mxu2 }
 0x20d   :  { %v1314_v42 = vpop.f32.mrf.mxu3  ;;  %v8578_v4 = vadd.f32 %v1282_v44, %v8386_v45  ;;  %v8585_v61 = vpop.f32.mrf.mxu0  ;;  %v2686_v45 = vld.sshfl [vmem:[#allocation1 + $0x30] sm:$0xff pattern:$0x75316420] }
 0x20e   :  { %v8581_v58 = vadd.f32 %v1314_v42, %v8389_v48  ;;  %v8583_v60 = vpop.f32.mrf.mxu1  ;;  %2700 = vrot.lane.b32.xlu2 %v2686_v45, %s7437_s24  ;;  %3010 = vst [vmem:[#allocation1 + $0x30] ss:$2 sm:$0xff] %v7514_v2  ;;  %v3013_v2 = vld.sshfl [vmem:[#allocation1 + $0x10] sm:$0xff pattern:$0x75316420] }
 0x20f   :  { %12093 = vst [vmem:[#allocation47_spill] sm:$0xff] %v8583_v60  ;;  %3023 = vrot.lane.b32.xlu0 %v3013_v2, %s7438_s15 }
 0x210   :  { %6708 = vmatmul.msk.f32.gmra.mxu0 %vm150_vm2, %v8511_v38 }
 0x211   :  { %6732 = vmatmul.msk.f32.vlgmr.msrb.gmra.mxu1 %vm150_vm2, %v8482_v18  ;;  %6700 = vmatmul.msk.f32.gmra.mxu2 %vm150_vm2, %v8372_v41 }
 0x212   :  { %6722 = vmatmul.msk.f32.vlgmr.msrb.gmra.mxu3 %vm150_vm2, %v8482_v18 }
 0x214   :  { %v1285_v48 = vpop.f32.mrf.mxu2 }
 0x215   :  { %v1520_v0 = vpop.f32.mrf.mxu3  ;;  %v8601_v44 = vadd.f32 %v1285_v48, %v8409_v5  ;;  %v8606_v42 = vpop.f32.mrf.mxu0 }
 0x216   :  { %v8604_v41 = vadd.f32 %v1520_v0, %v8412_v57  ;;  %v8608_v60 = vpop.f32.mrf.mxu1 }
 0x217   :  { %12094 = vst [vmem:[#allocation48_spill] sm:$0xff] %v8608_v60 }
 0x218   :  { %6709 = vmatmul.msk.f32.gmra.mxu0 %vm150_vm2, %v8537_v6  ;;  %v2358_v0 = vpop.permute.xlu0 %2357 }
 0x219   :  { %6733 = vmatmul.msk.f32.gmra.mxu1 %vm150_vm2, %v8511_v38  ;;  %6717 = vmatmul.msk.f32.vlgmr.msrb.gmra.mxu2 %vm150_vm2, %v8482_v18  ;;  %v2374_v60 = vsel %vm2373_vm8, %v2358_v0, %v2360_v3 }
 0x21a   :  { %6723 = vmatmul.msk.f32.gmra.mxu3 %vm150_vm2, %v8511_v38  ;;  %6746 = vmatpush.msk.msra.mxu0 %vm163_vm1, %v2374_v60 }
 0x21c   :  { %v1491_v5 = vpop.f32.mrf.mxu2 }
 0x21d   :  { %v1523_v57 = vpop.f32.mrf.mxu3  ;;  %v8620_v11 = vadd.f32 %v1491_v5, %v8430_v47  ;;  %v8625_v45 = vpop.f32.mrf.mxu0 }
 0x21e   :  { %v8623_v1 = vadd.f32 %v1523_v57, %v8433_v12  ;;  %12095 = vst [vmem:[#allocation49_spill] sm:$0xff] %v8625_v45  ;;  %v8627_v48 = vpop.f32.mrf.mxu1 }
 0x21f   :  { %12096 = vst [vmem:[#allocation50_spill] sm:$0xff] %v8627_v48 }
 0x220   :  { %6710 = vmatmul.msk.f32.gmra.mxu0 %vm150_vm2, %v8562_v36 }
 0x221   :  { %6734 = vmatmul.msk.f32.gmra.mxu1 %vm150_vm2, %v8537_v6  ;;  %6718 = vmatmul.msk.f32.gmra.mxu2 %vm150_vm2, %v8511_v38  ;;  %v2364_v0 = vpop.permute.xlu0 %2363 }
 0x222   :  { %6724 = vmatmul.msk.f32.gmra.mxu3 %vm150_vm2, %v8537_v6  ;;  %v2376_v48 = vsel %vm2373_vm8, %v2362_v10, %v2364_v0 }
 0x223   :  { %6756 = vmatpush.msk.msrb.mxu2 %vm163_vm1, %v2376_v48  ;;  %v2368_v48 = vpop.permute.xlu2 %2367 }
 0x224   :  { %v1494_v47 = vpop.f32.mrf.mxu2 }
 0x225   :  { %v1526_v12 = vpop.f32.mrf.mxu3  ;;  %v8640_v2 = vadd.f32 %v1494_v47, %v8450_v29  ;;  %v8647_v57 = vpop.f32.mrf.mxu0  ;;  %v3011_v29 = vld.sshfl [vmem:[#allocation1] sm:$0xff pattern:$0x75316420] }
 0x226   :  { %v8643_v3 = vadd.f32 %v1526_v12, %v8453_v8  ;;  %v8645_v5 = vpop.f32.mrf.mxu1  ;;  %12098 = vst [vmem:[#allocation52_spill] sm:$0xff] %v8647_v57  ;;  %3019 = vrot.lane.b32.xlu1 %v3011_v29, %s7438_s15 }
 0x227   :  { %12097 = vst [vmem:[#allocation51_spill] sm:$0xff] %v8645_v5  ;;  %v8673_v5 = vld [vmem:[%s12006_s3 + $0xe0] sm:$0xff] }
 0x228   :  { %6727 = vmatmul.msk.f32.vlgmr.msrb.gmra.mxu0 %vm150_vm2, %v8482_v18 }
 0x229   :  { %6735 = vmatmul.msk.f32.gmra.mxu1 %vm150_vm2, %v8562_v36  ;;  %6719 = vmatmul.msk.f32.gmra.mxu2 %vm150_vm2, %v8537_v6  ;;  %v2366_v45 = vpop.permute.xlu1 %2365  ;;  %v2370_v29 = vpop.permute.xlu0 %2369 }
 0x22a   :  { %6725 = vmatmul.msk.f32.gmra.mxu3 %vm150_vm2, %v8562_v36  ;;  %v2377_v59 = vsel %vm2373_vm8, %v2364_v0, %v2366_v45  ;;  %v3012_v0 = vld.sshfl [vmem:[#allocation1 + $0x8] sm:$0xff pattern:$0x75316420] }
 0x22b   :  { %6761 = vmatpush.msk.msrb.mxu3 %vm163_vm1, %v2377_v59  ;;  %3021 = vrot.lane.b32.xlu2 %v3012_v0, %s7438_s15 }
 0x22c   :  { %v1497_v8 = vpop.f32.mrf.mxu2 }
 0x22d   :  { %v1529_v60 = vpop.f32.mrf.mxu3  ;;  %v8661_v10 = vadd.f32 %v1497_v8, %v8470_v51  ;;  %v8668_v57 = vpop.f32.mrf.mxu0  ;;  %v2378_v51 = vsel %vm2373_vm8, %v2366_v45, %v2368_v48  ;;  %v3014_v8 = vld.sshfl [vmem:[#allocation1 + $0x18] sm:$0xff pattern:$0x75316420] }
 0x22e   :  { %v8664_v47 = vadd.f32 %v1529_v60, %v8473_v39  ;;  %v8666_v12 = vpop.f32.mrf.mxu1  ;;  %12100 = vst [vmem:[#allocation54_spill] sm:$0xff] %v8668_v57  ;;  %v2379_v39 = vsel %vm2373_vm8, %v2368_v48, %v2370_v29  ;;  %6766 = vmatpush.msk.msrb.mxu0 %vm163_vm1, %v2378_v51  ;;  %3025 = vrot.lane.b32.xlu1 %v3014_v8, %s7438_s15  ;;  %v8704_v51 = vld [vmem:[%s12006_s3 + $0xe8] sm:$0xff] }
 0x22f   :  { %12099 = vst [vmem:[#allocation53_spill] sm:$0xff] %v8666_v12  ;;  %6771 = vmatpush.msk.msrb.mxu1 %vm163_vm1, %v2379_v39 }
 0x230   :  { %6728 = vmatmul.msk.f32.gmra.mxu0 %vm150_vm2, %v8511_v38 }
 0x231   :  { %6752 = vmatmul.msk.f32.vlgmr.msra.gmra.mxu1 %vm150_vm2, %v8673_v5  ;;  %6720 = vmatmul.msk.f32.gmra.mxu2 %vm150_vm2, %v8562_v36 }
 0x232   :  { %6742 = vmatmul.msk.f32.vlgmr.msra.gmra.mxu3 %vm150_vm2, %v8482_v18 }
 0x234   :  { %v1500_v60 = vpop.f32.mrf.mxu2 }
 0x235   :  { %v1636_v57 = vpop.f32.mrf.mxu3  ;;  %v8692_v45 = vadd.f32 %v1500_v60, %v8499_v49  ;;  %v8697_v12 = vpop.f32.mrf.mxu0  ;;  %v3016_v49 = vld.sshfl [vmem:[#allocation1 + $0x28] sm:$0xff pattern:$0x75316420] }
 0x236   :  { %v8695_v48 = vadd.f32 %v1636_v57, %v8502_v14  ;;  %12101 = vst [vmem:[#allocation55_spill] sm:$0xff] %v8697_v12  ;;  %v8699_v59 = vpop.f32.mrf.mxu1  ;;  %v3017_v14 = vld.sshfl [vmem:[#allocation1 + $0x30] sm:$0xff pattern:$0x75316420]  ;;  %3029 = vrot.lane.b32.xlu0 %v3016_v49, %s7438_s15 }
 0x237   :  { %3031 = vrot.lane.b32.xlu1 %v3017_v14, %s7438_s15  ;;  %v8729_v12 = vld [vmem:[%s12006_s3 + $0xf0] sm:$0xff] }
 0x238   :  { %6729 = vmatmul.msk.f32.gmra.mxu0 %vm150_vm2, %v8537_v6 }
 0x239   :  { %6753 = vmatmul.msk.f32.gmra.mxu1 %vm150_vm2, %v8704_v51  ;;  %6737 = vmatmul.msk.f32.vlgmr.msra.gmra.mxu2 %vm150_vm2, %v8482_v18 }
 0x23a   :  { %6743 = vmatmul.msk.f32.gmra.mxu3 %vm150_vm2, %v8511_v38 }
 0x23c   :  { %v1607_v57 = vpop.f32.mrf.mxu2 }
 0x23d   :  { %v1639_v39 = vpop.f32.mrf.mxu3  ;;  %v8717_v0 = vadd.f32 %v1607_v57, %v8525_v19  ;;  %v8724_v18 = vpop.f32.mrf.mxu0 }
 0x23e   :  { %v8720_v8 = vadd.f32 %v1639_v39, %v8528_v31  ;;  %v8722_v60 = vpop.f32.mrf.mxu1  ;;  %12102 = vst [vmem:[#allocation56_spill] sm:$0xff] %v8724_v18  ;;  %v8752_v18 = vld [vmem:[%s12006_s3 + $0xf8] sm:$0xff] }
 0x240   :  { %6730 = vmatmul.msk.f32.gmra.mxu0 %vm150_vm2, %v8562_v36 }
 0x241   :  { %6754 = vmatmul.msk.f32.gmra.mxu1 %vm150_vm2, %v8729_v12  ;;  %6738 = vmatmul.msk.f32.gmra.mxu2 %vm150_vm2, %v8511_v38  ;;  %v2372_v38 = vpop.permute.xlu1 %2371 }
 0x242   :  { %6744 = vmatmul.msk.f32.gmra.mxu3 %vm150_vm2, %v8537_v6  ;;  %v2380_v56 = vsel %vm2373_vm8, %v2370_v29, %v2372_v38 }
 0x243   :  { %6781 = vmatpush.msk.msra.mxu3 %vm163_vm1, %v2372_v38  ;;  %6776 = vmatpush.msk.msra.mxu2 %vm163_vm1, %v2380_v56  ;;  %v3015_v56 = vld.sshfl [vmem:[#allocation1 + $0x20] sm:$0xff pattern:$0x75316420] }
 0x244   :  { %v1610_v19 = vpop.f32.mrf.mxu2  ;;  %3027 = vrot.lane.b32.xlu2 %v3015_v56, %s7438_s15 }
 0x245   :  { %v1642_v31 = vpop.f32.mrf.mxu3  ;;  %v8740_v49 = vadd.f32 %v1610_v19, %v8550_v30  ;;  %v8747_v39 = vpop.f32.mrf.mxu0 }
 0x246   :  { %v8743_v14 = vadd.f32 %v1642_v31, %v8553_v50  ;;  %v8745_v57 = vpop.f32.mrf.mxu1  ;;  %12104 = vst [vmem:[#allocation58_spill] sm:$0xff] %v8747_v39 }
 0x247   :  { %12103 = vst [vmem:[#allocation57_spill] sm:$0xff] %v8745_v57 }
 0x248   :  { %6747 = vmatmul.msk.f32.vlgmr.msra.gmra.mxu0 %vm150_vm2, %v8673_v5 }
 0x249   :  { %6755 = vmatmul.msk.f32.gmra.mxu1 %vm150_vm2, %v8752_v18  ;;  %6739 = vmatmul.msk.f32.gmra.mxu2 %vm150_vm2, %v8537_v6  ;;  %v2693_v39 = vpop.permute.xlu1 %2692  ;;  %v2691_v6 = vpop.permute.xlu0 %2690 }
 0x24a   :  { %6745 = vmatmul.msk.f32.gmra.mxu3 %vm150_vm2, %v8562_v36  ;;  %v2706_v57 = vsel %vm2704_vm9, %v2691_v6, %v2693_v39 }
 0x24b   :  { %6791 = vmatpush.msk.msra.mxu1 %vm163_vm1, %v2706_v57 }
 0x24c   :  { %v1613_v30 = vpop.f32.mrf.mxu2 }
 0x24d   :  { %v1645_v50 = vpop.f32.mrf.mxu3  ;;  %v8766_v29 = vadd.f32 %v1613_v30, %v8578_v4  ;;  %v8773_v38 = vpop.f32.mrf.mxu0 }
 0x24e   :  { %v8769_v19 = vadd.f32 %v1645_v50, %v8581_v58  ;;  %v8771_v31 = vpop.f32.mrf.mxu1 }
 0x24f   :  { %12105 = vst [vmem:[#allocation59_spill] sm:$0xff] %v8771_v31 }
 0x250   :  { %6748 = vmatmul.msk.f32.gmra.mxu0 %vm150_vm2, %v8704_v51 }
 0x251   :  { %6772 = vmatmul.msk.f32.vlgmr.msrb.gmra.mxu1 %vm150_vm2, %v8673_v5  ;;  %6740 = vmatmul.msk.f32.gmra.mxu2 %vm150_vm2, %v8562_v36 }
 0x252   :  { %6762 = vmatmul.msk.f32.vlgmr.msrb.gmra.mxu3 %vm150_vm2, %v8673_v5 }
 0x254   :  { %v1616_v4 = vpop.f32.mrf.mxu2 }
 0x255   :  { %v1851_v58 = vpop.f32.mrf.mxu3  ;;  %v8787_v30 = vadd.f32 %v1616_v4, %v8601_v44  ;;  %v8792_v31 = vpop.f32.mrf.mxu0 }
 0x256   :  { %v8790_v50 = vadd.f32 %v1851_v58, %v8604_v41  ;;  %v8794_v22 = vpop.f32.mrf.mxu1  ;;  %v2689_v58 = vpop.permute.xlu2 %2688 }
 0x257   :  { %12106 = vst [vmem:[#allocation60_spill] sm:$0xff] %v8794_v22  ;;  %v2705_v22 = vsel %vm2704_vm9, %v2689_v58, %v2691_v6 }
 0x258   :  { %6749 = vmatmul.msk.f32.gmra.mxu0 %vm150_vm2, %v8729_v12 }
 0x259   :  { %6773 = vmatmul.msk.f32.gmra.mxu1 %vm150_vm2, %v8704_v51  ;;  %6757 = vmatmul.msk.f32.vlgmr.msrb.gmra.mxu2 %vm150_vm2, %v8673_v5 }
 0x25a   :  { %6763 = vmatmul.msk.f32.gmra.mxu3 %vm150_vm2, %v8704_v51  ;;  %6786 = vmatpush.msk.msra.mxu0 %vm163_vm1, %v2705_v22 }
 0x25c   :  { %v1822_v36 = vpop.f32.mrf.mxu2 }
 0x25d   :  { %v1854_v44 = vpop.f32.mrf.mxu3  ;;  %v8805_v41 = vadd.f32 %v1822_v36, %v8620_v11  ;;  %v8810_v56 = vpop.f32.mrf.mxu0 }
 0x25e   :  { %v8808_v57 = vadd.f32 %v1854_v44, %v8623_v1  ;;  %12107 = vst [vmem:[#allocation61_spill] sm:$0xff] %v8810_v56  ;;  %v8812_v4 = vpop.f32.mrf.mxu1 }
 0x25f   :  { %12108 = vst [vmem:[#allocation62_spill] sm:$0xff] %v8812_v4  ;;  %v2695_v4 = vpop.permute.xlu2 %2694 }
 0x260   :  { %6750 = vmatmul.msk.f32.gmra.mxu0 %vm150_vm2, %v8752_v18  ;;  %v2707_v56 = vsel %vm2704_vm9, %v2693_v39, %v2695_v4 }
 0x261   :  { %6774 = vmatmul.msk.f32.gmra.mxu1 %vm150_vm2, %v8729_v12  ;;  %6758 = vmatmul.msk.f32.gmra.mxu2 %vm150_vm2, %v8704_v51 }
 0x262   :  { %6764 = vmatmul.msk.f32.gmra.mxu3 %vm150_vm2, %v8729_v12  ;;  %6796 = vmatpush.msk.msrb.mxu2 %vm163_vm1, %v2707_v56 }
 0x264   :  { %v1825_v11 = vpop.f32.mrf.mxu2 }
 0x265   :  { %v1857_v1 = vpop.f32.mrf.mxu3  ;;  %v8825_v36 = vadd.f32 %v1825_v11, %v8640_v2  ;;  %v8832_v58 = vpop.f32.mrf.mxu0 }
 0x266   :  { %v8828_v6 = vadd.f32 %v1857_v1, %v8643_v3  ;;  %v8830_v44 = vpop.f32.mrf.mxu1  ;;  %12110 = vst [vmem:[#allocation64_spill] sm:$0xff] %v8832_v58  ;;  %v8857_v58 = vld [vmem:[%s12006_s3 + $0x100] sm:$0xff] }
 0x267   :  { %12109 = vst [vmem:[#allocation63_spill] sm:$0xff] %v8830_v44 }
 0x268   :  { %6767 = vmatmul.msk.f32.vlgmr.msrb.gmra.mxu0 %vm150_vm2, %v8673_v5  ;;  %v2699_v44 = vpop.permute.xlu1 %2698  ;;  %v2701_v34 = vpop.permute.xlu2 %2700 }
 0x269   :  { %6775 = vmatmul.msk.f32.gmra.mxu1 %vm150_vm2, %v8752_v18  ;;  %6759 = vmatmul.msk.f32.gmra.mxu2 %vm150_vm2, %v8729_v12  ;;  %v2697_v52 = vpop.permute.xlu0 %2696 }
 0x26a   :  { %6765 = vmatmul.msk.f32.gmra.mxu3 %vm150_vm2, %v8752_v18  ;;  %v2708_v56 = vsel %vm2704_vm9, %v2695_v4, %v2697_v52 }
 0x26b   :  { %6801 = vmatpush.msk.msrb.mxu3 %vm163_vm1, %v2708_v56  ;;  %v8886_v56 = vld [vmem:[%s12006_s3 + $0x108] sm:$0xff] }
 0x26c   :  { %v1828_v22 = vpop.f32.mrf.mxu2 }
 0x26d   :  { %v1860_v2 = vpop.f32.mrf.mxu3  ;;  %v8845_v3 = vadd.f32 %v1828_v22, %v8661_v10  ;;  %v8852_v1 = vpop.f32.mrf.mxu0  ;;  %v2709_v10 = vsel %vm2704_vm9, %v2697_v52, %v2699_v44 }
 0x26e   :  { %v8848_v39 = vadd.f32 %v1860_v2, %v8664_v47  ;;  %v8850_v11 = vpop.f32.mrf.mxu1  ;;  %12112 = vst [vmem:[#allocation66_spill] sm:$0xff] %v8852_v1  ;;  %v2710_v47 = vsel %vm2704_vm9, %v2699_v44, %v2701_v34  ;;  %6806 = vmatpush.msk.msrb.mxu0 %vm163_vm1, %v2709_v10  ;;  %v3018_v2 = vld.sshfl [vmem:[#allocation1 + $0x38] sm:$0xff pattern:$0x75316420] }
 0x26f   :  { %12111 = vst [vmem:[#allocation65_spill] sm:$0xff] %v8850_v11  ;;  %6811 = vmatpush.msk.msrb.mxu1 %vm163_vm1, %v2710_v47  ;;  %3033 = vrot.lane.b32.xlu2 %v3018_v2, %s7438_s15  ;;  %v8910_v2 = vld [vmem:[%s12006_s3 + $0x110] sm:$0xff] }
 0x270   :  { %6768 = vmatmul.msk.f32.gmra.mxu0 %vm150_vm2, %v8704_v51 }
 0x271   :  { %6792 = vmatmul.msk.f32.vlgmr.msra.gmra.mxu1 %vm150_vm2, %v8857_v58  ;;  %6760 = vmatmul.msk.f32.gmra.mxu2 %vm150_vm2, %v8752_v18 }
 0x272   :  { %6782 = vmatmul.msk.f32.vlgmr.msra.gmra.mxu3 %vm150_vm2, %v8673_v5 }
 0x274   :  { %v1831_v4 = vpop.f32.mrf.mxu2 }
 0x275   :  { %v1967_v22 = vpop.f32.mrf.mxu3  ;;  %v8874_v1 = vadd.f32 %v1831_v4, %v8692_v45  ;;  %v8879_v44 = vpop.f32.mrf.mxu0 }
 0x276   :  { %v8877_v52 = vadd.f32 %v1967_v22, %v8695_v48  ;;  %12113 = vst [vmem:[#allocation67_spill] sm:$0xff] %v8879_v44  ;;  %v8881_v11 = vpop.f32.mrf.mxu1  ;;  %v8933_v44 = vld [vmem:[%s12006_s3 + $0x118] sm:$0xff] }
 0x278   :  { %6769 = vmatmul.msk.f32.gmra.mxu0 %vm150_vm2, %v8729_v12 }
 0x279   :  { %6793 = vmatmul.msk.f32.gmra.mxu1 %vm150_vm2, %v8886_v56  ;;  %6777 = vmatmul.msk.f32.vlgmr.msra.gmra.mxu2 %vm150_vm2, %v8673_v5 }
 0x27a   :  { %6783 = vmatmul.msk.f32.gmra.mxu3 %vm150_vm2, %v8704_v51 }
 0x27c   :  { %v1938_v45 = vpop.f32.mrf.mxu2 }
 0x27d   :  { %v1970_v48 = vpop.f32.mrf.mxu3  ;;  %v8898_v10 = vadd.f32 %v1938_v45, %v8717_v0  ;;  %v8905_v22 = vpop.f32.mrf.mxu0 }
 0x27e   :  { %v8901_v47 = vadd.f32 %v1970_v48, %v8720_v8  ;;  %v8903_v4 = vpop.f32.mrf.mxu1  ;;  %12114 = vst [vmem:[#allocation68_spill] sm:$0xff] %v8905_v22 }
 0x280   :  { %6770 = vmatmul.msk.f32.gmra.mxu0 %vm150_vm2, %v8752_v18 }
 0x281   :  { %6794 = vmatmul.msk.f32.gmra.mxu1 %vm150_vm2, %v8910_v2  ;;  %6778 = vmatmul.msk.f32.gmra.mxu2 %vm150_vm2, %v8704_v51  ;;  %v2703_v51 = vpop.permute.xlu0 %2702 }
 0x282   :  { %6784 = vmatmul.msk.f32.gmra.mxu3 %vm150_vm2, %v8729_v12  ;;  %v2711_v25 = vsel %vm2704_vm9, %v2701_v34, %v2703_v51 }
 0x283   :  { %6821 = vmatpush.msk.msra.mxu3 %vm163_vm1, %v2703_v51  ;;  %6816 = vmatpush.msk.msra.mxu2 %vm163_vm1, %v2711_v25 }
 0x284   :  { %v1941_v5 = vpop.f32.mrf.mxu2 }
 0x285   :  { %v1973_v0 = vpop.f32.mrf.mxu3  ;;  %v8921_v8 = vadd.f32 %v1941_v5, %v8740_v49  ;;  %v8928_v22 = vpop.f32.mrf.mxu0 }
 0x286   :  { %v8924_v45 = vadd.f32 %v1973_v0, %v8743_v14  ;;  %v8926_v48 = vpop.f32.mrf.mxu1  ;;  %12116 = vst [vmem:[#allocation70_spill] sm:$0xff] %v8928_v22 }
 0x287   :  { %12115 = vst [vmem:[#allocation69_spill] sm:$0xff] %v8926_v48 }
 0x288   :  { %6787 = vmatmul.msk.f32.vlgmr.msra.gmra.mxu0 %vm150_vm2, %v8857_v58 }
 0x289   :  { %6795 = vmatmul.msk.f32.gmra.mxu1 %vm150_vm2, %v8933_v44  ;;  %6779 = vmatmul.msk.f32.gmra.mxu2 %vm150_vm2, %v8729_v12  ;;  %v3024_v22 = vpop.permute.xlu0 %3023  ;;  %v3022_v12 = vpop.permute.xlu2 %3021 }
 0x28a   :  { %6785 = vmatmul.msk.f32.gmra.mxu3 %vm150_vm2, %v8752_v18  ;;  %v3037_v48 = vsel %vm3035_vm10, %v3022_v12, %v3024_v22 }
 0x28b   :  { %6831 = vmatpush.msk.msra.mxu1 %vm163_vm1, %v3037_v48 }
 0x28c   :  { %v1944_v49 = vpop.f32.mrf.mxu2 }
 0x28d   :  { %v1976_v14 = vpop.f32.mrf.mxu3  ;;  %v8947_v34 = vadd.f32 %v1944_v49, %v8766_v29  ;;  %v8954_v51 = vpop.f32.mrf.mxu0 }
 0x28e   :  { %v8950_v5 = vadd.f32 %v1976_v14, %v8769_v19  ;;  %v8952_v0 = vpop.f32.mrf.mxu1 }
 0x28f   :  { %12117 = vst [vmem:[#allocation71_spill] sm:$0xff] %v8952_v0 }
 0x290   :  { %6788 = vmatmul.msk.f32.gmra.mxu0 %vm150_vm2, %v8886_v56 }
 0x291   :  { %6812 = vmatmul.msk.f32.vlgmr.msrb.gmra.mxu1 %vm150_vm2, %v8857_v58  ;;  %6780 = vmatmul.msk.f32.gmra.mxu2 %vm150_vm2, %v8752_v18  ;;  %v3337_v18 = vld [vmem:[%s12007_s4 + $0x10] sm:$0xff] }
 0x292   :  { %6802 = vmatmul.msk.f32.vlgmr.msrb.gmra.mxu3 %vm150_vm2, %v8857_v58  ;;  %3351 = vperm.xlu1 %7087, %v3337_v18  }
 0x294   :  { %v1947_v25 = vpop.f32.mrf.mxu2 }
 0x295   :  { %v2182_v29 = vpop.f32.mrf.mxu3  ;;  %v8967_v19 = vadd.f32 %v1947_v25, %v8787_v30  ;;  %v8972_v14 = vpop.f32.mrf.mxu0 }
 0x296   :  { %v8970_v49 = vadd.f32 %v2182_v29, %v8790_v50  ;;  %v8974_v0 = vpop.f32.mrf.mxu1 }
 0x297   :  { %12119 = vst [vmem:[#allocation73_spill] sm:$0xff] %v8974_v0 }
 0x298   :  { %12118 = vst [vmem:[#allocation72_spill] sm:$0xff] %v8970_v49  ;;  %6789 = vmatmul.msk.f32.gmra.mxu0 %vm150_vm2, %v8910_v2  ;;  %v3020_v0 = vpop.permute.xlu1 %3019 }
 0x299   :  { %6813 = vmatmul.msk.f32.gmra.mxu1 %vm150_vm2, %v8886_v56  ;;  %6797 = vmatmul.msk.f32.vlgmr.msrb.gmra.mxu2 %vm150_vm2, %v8857_v58  ;;  %v3036_v49 = vsel %vm3035_vm10, %v3020_v0, %v3022_v12 }
 0x29a   :  { %6803 = vmatmul.msk.f32.gmra.mxu3 %vm150_vm2, %v8886_v56  ;;  %3341 = vperm.xlu1 %7087, %v3335_v21  }
 0x29b   :  { %6826 = vmatpush.msk.msra.mxu0 %vm163_vm1, %v3036_v49 }
 0x29c   :  { %v2153_v30 = vpop.f32.mrf.mxu2 }
 0x29d   :  { %v2185_v50 = vpop.f32.mrf.mxu3  ;;  %v8991_v48 = vadd.f32 %v2153_v30, %v8805_v41  ;;  %v8996_v29 = vpop.f32.mrf.mxu0 }
 0x29e   :  { %v8994_v25 = vadd.f32 %v2185_v50, %v8808_v57  ;;  %v8998_v18 = vpop.f32.mrf.mxu1 }
 0x29f   :  { %12120 = vst [vmem:[#allocation74_spill] sm:$0xff] %v8991_v48 }
 0x2a0   :  { %12121 = vst [vmem:[#allocation75_spill] sm:$0xff] %v8998_v18  ;;  %6790 = vmatmul.msk.f32.gmra.mxu0 %vm150_vm2, %v8933_v44  ;;  %v3026_v50 = vpop.permute.xlu1 %3025  ;;  %v9046_v18 = vld [vmem:[%s12006_s3 + $0x120] sm:$0xff] }
 0x2a1   :  { %6814 = vmatmul.msk.f32.gmra.mxu1 %vm150_vm2, %v8910_v2  ;;  %6798 = vmatmul.msk.f32.gmra.mxu2 %vm150_vm2, %v8886_v56  ;;  %v3038_v48 = vsel %vm3035_vm10, %v3024_v22, %v3026_v50 }
 0x2a2   :  { %6804 = vmatmul.msk.f32.gmra.mxu3 %vm150_vm2, %v8910_v2  ;;  %6836 = vmatpush.msk.msrb.mxu2 %vm163_vm1, %v3038_v48 }
 0x2a4   :  { %v2156_v41 = vpop.f32.mrf.mxu2 }
 0x2a5   :  { %v2188_v57 = vpop.f32.mrf.mxu3  ;;  %v9014_v21 = vadd.f32 %v2156_v41, %v8825_v36  ;;  %v9021_v30 = vpop.f32.mrf.mxu0 }
 0x2a6   :  { %v9017_v0 = vadd.f32 %v2188_v57, %v8828_v6  ;;  %v9019_v12 = vpop.f32.mrf.mxu1  ;;  %12125 = vst [vmem:[#allocation79_spill] sm:$0xff] %v9021_v30 }
 0x2a7   :  { %12122 = vst [vmem:[#allocation76_spill] sm:$0xff] %v9014_v21 }
 0x2a8   :  { %12123 = vst [vmem:[#allocation77_spill] sm:$0xff] %v9017_v0  ;;  %6807 = vmatmul.msk.f32.vlgmr.msrb.gmra.mxu0 %vm150_vm2, %v8857_v58  ;;  %v3030_v30 = vpop.permute.xlu0 %3029 }
 0x2a9   :  { %12124 = vst [vmem:[#allocation78_spill] sm:$0xff] %v9019_v12  ;;  %6815 = vmatmul.msk.f32.gmra.mxu1 %vm150_vm2, %v8933_v44  ;;  %6799 = vmatmul.msk.f32.gmra.mxu2 %vm150_vm2, %v8910_v2  ;;  %v3028_v12 = vpop.permute.xlu2 %3027  ;;  %v3032_v0 = vpop.permute.xlu1 %3031 }
 0x2aa   :  { %6805 = vmatmul.msk.f32.gmra.mxu3 %vm150_vm2, %v8933_v44  ;;  %v3039_v48 = vsel %vm3035_vm10, %v3026_v50, %v3028_v12 }
 0x2ab   :  { %6841 = vmatpush.msk.msrb.mxu3 %vm163_vm1, %v3039_v48  ;;  %v9075_v48 = vld [vmem:[%s12006_s3 + $0x128] sm:$0xff] }
 0x2ac   :  { %v2159_v36 = vpop.f32.mrf.mxu2 }
 0x2ad   :  { %v2191_v6 = vpop.f32.mrf.mxu3  ;;  %v9034_v49 = vadd.f32 %v2159_v36, %v8845_v3  ;;  %v9041_v57 = vpop.f32.mrf.mxu0  ;;  %v3040_v3 = vsel %vm3035_vm10, %v3028_v12, %v3030_v30 }
 0x2ae   :  { %v9037_v22 = vadd.f32 %v2191_v6, %v8848_v39  ;;  %v9039_v41 = vpop.f32.mrf.mxu1  ;;  %12128 = vst [vmem:[#allocation82_spill] sm:$0xff] %v9041_v57  ;;  %v3041_v39 = vsel %vm3035_vm10, %v3030_v30, %v3032_v0  ;;  %6846 = vmatpush.msk.msrb.mxu0 %vm163_vm1, %v3040_v3  ;;  %v3338_v3 = vld [vmem:[%s12007_s4 + $0x18] sm:$0xff] }
 0x2af   :  { %12126 = vst [vmem:[#allocation80_spill] sm:$0xff] %v9034_v49  ;;  %6851 = vmatpush.msk.msrb.mxu1 %vm163_vm1, %v3041_v39  ;;  %3356 = vperm.xlu0 %7086, %v3338_v3  }
 0x2b0   :  { %12127 = vst [vmem:[#allocation81_spill] sm:$0xff] %v9037_v22  ;;  %6808 = vmatmul.msk.f32.gmra.mxu0 %vm150_vm2, %v8886_v56 }
 0x2b1   :  { %6832 = vmatmul.msk.f32.vlgmr.msra.gmra.mxu1 %vm150_vm2, %v9046_v18  ;;  %6800 = vmatmul.msk.f32.gmra.mxu2 %vm150_vm2, %v8933_v44 }
 0x2b2   :  { %6822 = vmatmul.msk.f32.vlgmr.msra.gmra.mxu3 %vm150_vm2, %v8857_v58 }
 0x2b4   :  { %v2162_v50 = vpop.f32.mrf.mxu2 }
 0x2b5   :  { %v2298_v36 = vpop.f32.mrf.mxu3  ;;  %v9063_v6 = vadd.f32 %v2162_v50, %v8874_v1  ;;  %v9070_v49 = vpop.f32.mrf.mxu0 }
 0x2b6   :  { %v9066_v12 = vadd.f32 %v2298_v36, %v8877_v52  ;;  %v9068_v30 = vpop.f32.mrf.mxu1  ;;  %12131 = vst [vmem:[#allocation85_spill] sm:$0xff] %v9070_v49 }
 0x2b7   :  { %12129 = vst [vmem:[#allocation83_spill] sm:$0xff] %v9063_v6 }
 0x2b8   :  { %12130 = vst [vmem:[#allocation84_spill] sm:$0xff] %v9066_v12  ;;  %6809 = vmatmul.msk.f32.gmra.mxu0 %vm150_vm2, %v8910_v2  ;;  %v9101_v12 = vld [vmem:[%s12006_s3 + $0x130] sm:$0xff] }
 0x2b9   :  { %6833 = vmatmul.msk.f32.gmra.mxu1 %vm150_vm2, %v9075_v48  ;;  %6817 = vmatmul.msk.f32.vlgmr.msra.gmra.mxu2 %vm150_vm2, %v8857_v58  ;;  %v3336_v58 = vld [vmem:[%s12007_s4 + $0x8] sm:$0xff] }
 0x2ba   :  { %6823 = vmatmul.msk.f32.gmra.mxu3 %vm150_vm2, %v8886_v56  ;;  %3346 = vperm.xlu2 %7088, %v3336_v58  }
 0x2bc   :  { %v2269_v1 = vpop.f32.mrf.mxu2 }
 0x2bd   :  { %v2301_v52 = vpop.f32.mrf.mxu3  ;;  %v9089_v39 = vadd.f32 %v2269_v1, %v8898_v10  ;;  %v9096_v3 = vpop.f32.mrf.mxu0 }
 0x2be   :  { %v9092_v50 = vadd.f32 %v2301_v52, %v8901_v47  ;;  %v9094_v36 = vpop.f32.mrf.mxu1  ;;  %12134 = vst [vmem:[#allocation88_spill] sm:$0xff] %v9096_v3 }
 0x2bf   :  { %12132 = vst [vmem:[#allocation86_spill] sm:$0xff] %v9089_v39 }
 0x2c0   :  { %12133 = vst [vmem:[#allocation87_spill] sm:$0xff] %v9092_v50  ;;  %6810 = vmatmul.msk.f32.gmra.mxu0 %vm150_vm2, %v8933_v44  ;;  %v9127_v50 = vld [vmem:[%s12006_s3 + $0x138] sm:$0xff] }
 0x2c1   :  { %6834 = vmatmul.msk.f32.gmra.mxu1 %vm150_vm2, %v9101_v12  ;;  %6818 = vmatmul.msk.f32.gmra.mxu2 %vm150_vm2, %v8886_v56 }
 0x2c2   :  { %6824 = vmatmul.msk.f32.gmra.mxu3 %vm150_vm2, %v8910_v2 }
 0x2c4   :  { %v2272_v10 = vpop.f32.mrf.mxu2 }
 0x2c5   :  { %v2304_v47 = vpop.f32.mrf.mxu3  ;;  %v9115_v1 = vadd.f32 %v2272_v10, %v8921_v8  ;;  %v9122_v39 = vpop.f32.mrf.mxu0 }
 0x2c6   :  { %v9118_v52 = vadd.f32 %v2304_v47, %v8924_v45  ;;  %v9120_v58 = vpop.f32.mrf.mxu1 }
 0x2c7   :  { %12135 = vst [vmem:[#allocation89_spill] sm:$0xff] %v9115_v1 }
 0x2c8   :  { %12136 = vst [vmem:[#allocation90_spill] sm:$0xff] %v9118_v52  ;;  %6827 = vmatmul.msk.f32.vlgmr.msra.gmra.mxu0 %vm150_vm2, %v9046_v18 }
 0x2c9   :  { %6835 = vmatmul.msk.f32.gmra.mxu1 %vm150_vm2, %v9127_v50  ;;  %6819 = vmatmul.msk.f32.gmra.mxu2 %vm150_vm2, %v8910_v2  ;;  %v3034_v52 = vpop.permute.xlu2 %3033 }
 0x2ca   :  { %6825 = vmatmul.msk.f32.gmra.mxu3 %vm150_vm2, %v8933_v44  ;;  %v3042_v2 = vsel %vm3035_vm10, %v3032_v0, %v3034_v52 }
 0x2cb   :  { %6861 = vmatpush.msk.msra.mxu3 %vm163_vm1, %v3034_v52  ;;  %6856 = vmatpush.msk.msra.mxu2 %vm163_vm1, %v3042_v2 }
 0x2cc   :  { %v2275_v56 = vpop.f32.mrf.mxu2 }
 0x2cd   :  { %v2307_v8 = vpop.f32.mrf.mxu3  ;;  %v9138_v45 = vadd.f32 %v2275_v56, %v8947_v34  ;;  %v9145_v1 = vpop.f32.mrf.mxu0 }
 0x2ce   :  { %v9141_v10 = vadd.f32 %v2307_v8, %v8950_v5  ;;  %v9143_v47 = vpop.f32.mrf.mxu1 }
 0x2cf   :  { %12137 = vst [vmem:[#allocation91_spill] sm:$0xff] %v9138_v45 }
 0x2d0   :  { %12138 = vst [vmem:[#allocation92_spill] sm:$0xff] %v9141_v10  ;;  %6828 = vmatmul.msk.f32.gmra.mxu0 %vm150_vm2, %v9075_v48 }
 0x2d1   :  { %12139 = vst [vmem:[#allocation93_spill] sm:$0xff] %v9143_v47  ;;  %6852 = vmatmul.msk.f32.vlgmr.msrb.gmra.mxu1 %vm150_vm2, %v9046_v18  ;;  %6820 = vmatmul.msk.f32.gmra.mxu2 %vm150_vm2, %v8933_v44 }
 0x2d2   :  { %6842 = vmatmul.msk.f32.vlgmr.msrb.gmra.mxu3 %vm150_vm2, %v9046_v18 }
 0x2d4   :  { %v2278_v34 = vpop.f32.mrf.mxu2 }
 0x2d5   :  { %v9158_v5 = vpop.f32.mrf.mxu3  ;;  %v9161_v56 = vadd.f32 %v2278_v34, %v8967_v19  ;;  %v9165_v10 = vpop.f32.mrf.mxu0 }
 0x2d6   :  { %12140 = vst [vmem:[#allocation94_spill] sm:$0xff] %v9158_v5  ;;  %v9163_v8 = vpop.f32.mrf.mxu1 }
 0x2d7   :  { %12141 = vst [vmem:[#allocation95_spill] sm:$0xff] %v9161_v56 }
 0x2d8   :  { %12142 = vst [vmem:[#allocation96_spill] sm:$0xff] %v9163_v8  ;;  %6829 = vmatmul.msk.f32.gmra.mxu0 %vm150_vm2, %v9101_v12 }
 0x2d9   :  { %6853 = vmatmul.msk.f32.gmra.mxu1 %vm150_vm2, %v9075_v48  ;;  %6837 = vmatmul.msk.f32.vlgmr.msrb.gmra.mxu2 %vm150_vm2, %v9046_v18 }
 0x2da   :  { %6843 = vmatmul.msk.f32.gmra.mxu3 %vm150_vm2, %v9075_v48 }
 0x2dc   :  { %v9175_v44 = vpop.f32.mrf.mxu2 }
 0x2dd   :  { %12143 = vst [vmem:[#allocation97_spill] sm:$0xff] %v9175_v44  ;;  %v9177_v19 = vpop.f32.mrf.mxu3  ;;  %v9181_v52 = vpop.f32.mrf.mxu0 }
 0x2de   :  { %v9179_v0 = vpop.f32.mrf.mxu1 }
 0x2df   :  { %12144 = vst [vmem:[#allocation98_spill] sm:$0xff] %v9179_v0 }
 0x2e0   :  { %6830 = vmatmul.msk.f32.gmra.mxu0 %vm150_vm2, %v9127_v50 }
 0x2e1   :  { %6854 = vmatmul.msk.f32.gmra.mxu1 %vm150_vm2, %v9101_v12  ;;  %6838 = vmatmul.msk.f32.gmra.mxu2 %vm150_vm2, %v9075_v48 }
 0x2e2   :  { %6844 = vmatmul.msk.f32.gmra.mxu3 %vm150_vm2, %v9101_v12 }
 0x2e4   :  { %v9191_v2 = vpop.f32.mrf.mxu2 }
 0x2e5   :  { %12145 = vst [vmem:[#allocation99_spill] sm:$0xff] %v9191_v2  ;;  %v9193_v34 = vpop.f32.mrf.mxu3  ;;  %v9195_v56 = vpop.f32.mrf.mxu0 }
 0x2e6   :  { %12146 = vst [vmem:[#allocation100_spill] sm:$0xff] %v9193_v34  ;;  %v9197_v45 = vpop.f32.mrf.mxu1 }
 0x2e7   :  { %12147 = vst [vmem:[#allocation101_spill] sm:$0xff] %v9195_v56 }
 0x2e8   :  { %12148 = vst [vmem:[#allocation102_spill] sm:$0xff] %v9197_v45  ;;  %6847 = vmatmul.msk.f32.vlgmr.msrb.gmra.mxu0 %vm150_vm2, %v9046_v18 }
 0x2e9   :  { %6855 = vmatmul.msk.f32.gmra.mxu1 %vm150_vm2, %v9127_v50  ;;  %6839 = vmatmul.msk.f32.gmra.mxu2 %vm150_vm2, %v9101_v12 }
 0x2ea   :  { %6845 = vmatmul.msk.f32.gmra.mxu3 %vm150_vm2, %v9127_v50 }
 0x2ec   :  { %v9207_v47 = vpop.f32.mrf.mxu2 }
 0x2ed   :  { %12149 = vst [vmem:[#allocation103_spill] sm:$0xff] %v9207_v47  ;;  %v9209_v8 = vpop.f32.mrf.mxu3  ;;  %v9211_v44 = vpop.f32.mrf.mxu0 }
 0x2ee   :  { %12150 = vst [vmem:[#allocation104_spill] sm:$0xff] %v9209_v8  ;;  %v9213_v0 = vpop.f32.mrf.mxu1 }
 0x2ef   :  { %12151 = vst [vmem:[#allocation105_spill] sm:$0xff] %v9211_v44 }
 0x2f0   :  { %12152 = vst [vmem:[#allocation106_spill] sm:$0xff] %v9213_v0  ;;  %6848 = vmatmul.msk.f32.gmra.mxu0 %vm150_vm2, %v9075_v48 }
 0x2f1   :  { %6840 = vmatmul.msk.f32.gmra.mxu2 %vm150_vm2, %v9127_v50 }
 0x2f2   :  { %6862 = vmatmul.msk.f32.vlgmr.msra.gmra.mxu3 %vm150_vm2, %v9046_v18 }
 0x2f4   :  { %v9221_v56 = vpop.f32.mrf.mxu2 }
 0x2f5   :  { %12153 = vst [vmem:[#allocation107_spill] sm:$0xff] %v9221_v56  ;;  %v9223_v5 = vpop.f32.mrf.mxu3  ;;  %v9225_v47 = vpop.f32.mrf.mxu0 }
 0x2f6   :  { %12154 = vst [vmem:[#allocation108_spill] sm:$0xff] %v9223_v5  ;;  %v9227_v3 = vpop.f32.mrf.mxu1 }
 0x2f7   :  { %12155 = vst [vmem:[#allocation109_spill] sm:$0xff] %v9225_v47 }
 0x2f8   :  { %6849 = vmatmul.msk.f32.gmra.mxu0 %vm150_vm2, %v9101_v12 }
 0x2f9   :  { %6857 = vmatmul.msk.f32.vlgmr.msra.gmra.mxu2 %vm150_vm2, %v9046_v18 }
 0x2fa   :  { %6863 = vmatmul.msk.f32.gmra.mxu3 %vm150_vm2, %v9075_v48 }
 0x2fc   :  { %v9235_v44 = vpop.f32.mrf.mxu2 }
 0x2fd   :  { %12156 = vst [vmem:[#allocation110_spill] sm:$0xff] %v9235_v44  ;;  %v9237_v45 = vpop.f32.mrf.mxu3  ;;  %v9239_v57 = vpop.f32.mrf.mxu0 }
 0x2fe   :  { %12157 = vst [vmem:[#allocation111_spill] sm:$0xff] %v9237_v45  ;;  %v9241_v5 = vpop.f32.mrf.mxu1 }
 0x2ff   :  { %12158 = vst [vmem:[#allocation112_spill] sm:$0xff] %v9239_v57 }
 0x300   :  { %6850 = vmatmul.msk.f32.gmra.mxu0 %vm150_vm2, %v9127_v50 }
 0x301   :  { %6858 = vmatmul.msk.f32.gmra.mxu2 %vm150_vm2, %v9075_v48 }
 0x302   :  { %6864 = vmatmul.msk.f32.gmra.mxu3 %vm150_vm2, %v9101_v12 }
 0x304   :  { %v9249_v18 = vpop.f32.mrf.mxu2 }
 0x305   :  { %12159 = vst [vmem:[#allocation113_spill] sm:$0xff] %v9249_v18  ;;  %v9251_v47 = vpop.f32.mrf.mxu3  ;;  %v9253_v44 = vpop.f32.mrf.mxu0 }
 0x306   :  { %12160 = vst [vmem:[#allocation114_spill] sm:$0xff] %v9251_v47  ;;  %v9255_v45 = vpop.f32.mrf.mxu1 }
 0x309   :  { %6859 = vmatmul.msk.f32.gmra.mxu2 %vm150_vm2, %v9101_v12 }
 0x30a   :  { %6865 = vmatmul.msk.f32.gmra.mxu3 %vm150_vm2, %v9127_v50 }
 0x30c   :  { %v9261_v57 = vpop.f32.mrf.mxu2 }
 0x30d   :  { %12161 = vst [vmem:[#allocation115_spill] sm:$0xff] %v9261_v57  ;;  %v9263_v48 = vpop.f32.mrf.mxu3  ;;  %v2760_v56 = vpop.f32.mrf.mxu0 }
 0x30e   :  { %12162 = vst [vmem:[#allocation116_spill] sm:$0xff] %v9263_v48  ;;  %v9265_v6 = vpop.f32.mrf.mxu1 }
 0x30f   :  { %12163 = vst [vmem:[#allocation117_spill] sm:$0xff] %v9265_v6 }
 0x311   :  { %6860 = vmatmul.msk.f32.gmra.mxu2 %vm150_vm2, %v9127_v50 }
 0x314   :  { %v9269_v18 = vpop.f32.mrf.mxu2 }
 0x315   :  { %12164 = vst [vmem:[#allocation118_spill] sm:$0xff] %v9269_v18  ;;  %v9271_v47 = vpop.f32.mrf.mxu3  ;;  %v9273_v49 = vpop.f32.mrf.mxu0 }
 0x316   :  { %12165 = vst [vmem:[#allocation119_spill] sm:$0xff] %v9271_v47  ;;  %v9275_v12 = vpop.f32.mrf.mxu1 }
 0x317   :  { %12166 = vst [vmem:[#allocation120_spill] sm:$0xff] %v9275_v12 }
 0x31c   :  { %v9277_v34 = vpop.f32.mrf.mxu2 }
 0x31d   :  { %12167 = vst [vmem:[#allocation121_spill] sm:$0xff] %v9277_v34  ;;  %v9279_v8 = vpop.f32.mrf.mxu3  ;;  %v9281_v57 = vpop.f32.mrf.mxu0 }
 0x31e   :  { %v9283_v48 = vpop.f32.mrf.mxu1 }
 0x31f   :  { %12168 = vst [vmem:[#allocation122_spill] sm:$0xff] %v9283_v48 }
 0x324   :  { %v9285_v6 = vpop.f32.mrf.mxu2 }
 0x325   :  { %12169 = vst [vmem:[#allocation123_spill] sm:$0xff] %v9285_v6  ;;  %v9287_v22 = vpop.f32.mrf.mxu3  ;;  %v9289_v50 = vpop.f32.mrf.mxu0 }
 0x326   :  { %12170 = vst [vmem:[#allocation124_spill] sm:$0xff] %v9287_v22  ;;  %v9291_v18 = vpop.f32.mrf.mxu1 }
 0x327   :  { %12171 = vst [vmem:[#allocation125_spill] sm:$0xff] %v9289_v50  ;;  %v505_v50 = vadd.f32 %v7940_v7, %v7831_v26  ;;  %v508_v26 = vadd.f32 %v7964_v15, %v7849_v35 }
 0x328   :  { %12172 = vst [vmem:[#allocation126_spill] sm:$0xff] %v9291_v18 }
 0x329   :  { %v995_v18 = vadd.f32 %v8127_v54, %v505_v50  ;;  %v1003_v50 = vadd.f32 %v8151_v55, %v508_v26 }
 0x32b   :  { %v1334_v35 = vadd.f32 %v8342_v46, %v1003_v50  ;;  %v12187_v50 = vld [vmem:[#allocation3_spill] sm:$0xff] }
 0x32c   :  { %v9293_v47 = vpop.f32.mrf.mxu2 }
 0x32d   :  { %12173 = vst [vmem:[#allocation127_spill] sm:$0xff] %v9293_v47  ;;  %v9295_v2 = vpop.f32.mrf.mxu3  ;;  %v9297_v12 = vpop.f32.mrf.mxu0 }
 0x32e   :  { %12174 = vst [vmem:[#allocation128_spill] sm:$0xff] %v9295_v2  ;;  %v9299_v34 = vpop.f32.mrf.mxu1 }
 0x32f   :  { %12175 = vst [vmem:[#allocation129_spill] sm:$0xff] %v9297_v12  ;;  %v476_v12 = vadd.f32 %v8013_v40, %v7835_v28 }
 0x330   :  { %12176 = vst [vmem:[#allocation130_spill] sm:$0xff] %v9299_v34 }
 0x334   :  { %v9301_v21 = vpop.f32.mrf.mxu2 }
 0x335   :  { %12177 = vst [vmem:[#allocation131_spill] sm:$0xff] %v9301_v21  ;;  %v9303_v0 = vpop.f32.mrf.mxu3  ;;  %v9305_v48 = vpop.f32.mrf.mxu0  ;;  %v1326_v21 = vadd.f32 %v8319_v20, %v995_v18  ;;  %v12182_v18 = vld [vmem:[#allocation13_spill] sm:$0xff] }
 0x336   :  { %12178 = vst [vmem:[#allocation132_spill] sm:$0xff] %v9303_v0  ;;  %v3120_v6 = vpop.f32.mrf.mxu1  ;;  %v994_v0 = vadd.f32 %v8202_v9, %v476_v12  ;;  %v479_v9 = vadd.f32 %v8033_v23, %v7856_v37  ;;  %v12183_v12 = vld [vmem:[#allocation26_spill] sm:$0xff] }
 0x337   :  { %12179 = vst [vmem:[#allocation133_spill] sm:$0xff] %v9305_v48  ;;  %v1657_v48 = vadd.f32 %v8506_v33, %v1326_v21  ;;  %v511_v21 = vadd.f32 %v7985_v24, %v7833_v27  ;;  %v482_v24 = vadd.f32 %v8052_v16, %v7875_v43  ;;  %v12184_v16 = vld [vmem:[#allocation45_spill] sm:$0xff] }
 0x338   :  { %v1325_v7 = vadd.f32 %v8393_v53, %v994_v0  ;;  %v1002_v55 = vadd.f32 %v8222_v13, %v479_v9 }
 0x339   :  { %v1988_v54 = vadd.f32 %v8699_v59, %v1657_v48  ;;  %v1010_v43 = vadd.f32 %v12183_v12, %v482_v24 }
 0x33a   :  { %v1333_v37 = vadd.f32 %v8414_v63, %v1002_v55 }
 0x33b   :  { %v2319_v28 = vadd.f32 %v8881_v11, %v1988_v54 }
 0x33c   :  { %v9310_v22 = vpop.f32.mrf.mxu2  ;;  %v1664_v13 = vadd.f32 %v8606_v42, %v1333_v37  ;;  %v12194_v37 = vld [vmem:[#allocation19_spill] sm:$0xff] }
 0x33d   :  { %12180 = vst [vmem:[#allocation134_spill] sm:$0xff] %v9310_v22  ;;  %v9312_v47 = vpop.f32.mrf.mxu3  ;;  %v9314_v2 = vpop.f32.mrf.mxu0  ;;  %v1656_v22 = vadd.f32 %v8585_v61, %v1325_v7  ;;  %v2650_v53 = vadd.f32 %v9068_v30, %v2319_v28  ;;  %v1665_v61 = vadd.f32 %v8530_v17, %v1334_v35  ;;  %v12188_v28 = vld [vmem:[#allocation10_spill] sm:$0xff]  ;;  %v12189_v35 = vld [vmem:[#allocation23_spill] sm:$0xff] }
 0x33e   :  { %v3123_v34 = vpop.f32.mrf.mxu1  ;;  %v9350_v30 = vpop.permute.xlu2 %3346  ;;  %v502_v9 = vadd.f32 %v12188_v28, %v12187_v50 }
 0x33f   :  { %v1987_v15 = vadd.f32 %v8773_v38, %v1656_v22  ;;  %v2981_v11 = vadd.f32 %v9227_v3, %v2650_v53  ;;  %v1996_v23 = vadd.f32 %v8722_v60, %v1665_v61  ;;  %v1011_v22 = vadd.f32 %v8174_v32, %v511_v21  ;;  %v9364_v32 = vld [vmem:[%s12008_s1] sm:$0xff] }
 0x340   :  { %v1995_v60 = vadd.f32 %v8792_v31, %v1664_v13  ;;  %v9375_v7 = vperm.slane %v9364_v32, 1  ;;  %v9378_v54 = vperm.slane %v9364_v32, 0  ;;  %v12190_v53 = vld [vmem:[#allocation37_spill] sm:$0xff] }
 0x341   :  { %v2318_v59 = vadd.f32 %v8954_v51, %v1987_v15  ;;  %v3312_v38 = vadd.f32 %v3120_v6, %v2981_v11  ;;  %v2327_v51 = vadd.f32 %v8903_v4, %v1996_v23  ;;  %v1342_v63 = vadd.f32 %v8365_v62, %v1011_v22  ;;  %v12191_v61 = vld [vmem:[#allocation57_spill] sm:$0xff]  ;;  %v9395_v22 = vpop.permute.xlu1 %3351 }
 0x342   :  { %v2326_v31 = vadd.f32 %v8972_v14, %v1995_v60  ;;  %12186 = vst [vmem:[#allocation13_spill] sm:$0xff] %v9378_v54  ;;  %v1341_v55 = vadd.f32 %v12190_v53, %v1010_v43  ;;  %v987_v23 = vadd.f32 %v12194_v37, %v502_v9  ;;  %v12196_v13 = vld [vmem:[#allocation49_spill] sm:$0xff]  ;;  %v12204_v53 = vld [vmem:[#allocation70_spill] sm:$0xff] }
 0x343   :  { %v2649_v46 = vadd.f32 %v9145_v1, %v2318_v59  ;;  %v2658_v4 = vadd.f32 %v9094_v36, %v2327_v51  ;;  %v3368_v1 = vadd.f32 %v9350_v30, %v3312_v38  ;;  %v1673_v62 = vadd.f32 %v12184_v16, %v1342_v63 }
 0x344   :  { %v9328_v40 = vpop.f32.mrf.mxu2  ;;  %v2657_v14 = vadd.f32 %v9165_v10, %v2326_v31  ;;  %v1672_v51 = vadd.f32 %v12196_v13, %v1341_v55 }
 0x345   :  { %v9330_v20 = vpop.f32.mrf.mxu3  ;;  %v9334_v33 = vpop.f32.mrf.mxu0  ;;  %v2980_v3 = vadd.f32 %v2760_v56, %v2649_v46  ;;  %v12181_v56 = vld [vmem:[#allocation2_spill] sm:$0xff]  ;;  %v2989_v26 = vadd.f32 %v9241_v5, %v2658_v4  ;;  %v2004_v59 = vadd.f32 %v12191_v61, %v1673_v62  ;;  %v9391_v21 = vmul.f32 %v9375_v7, %v3368_v1  ;;  %v12201_v62 = vld [vmem:[#allocation41_spill] sm:$0xff] }
 0x346   :  { %v3126_v17 = vpop.f32.mrf.mxu1  ;;  %v473_v48 = vadd.f32 %v12182_v18, %v12181_v56  ;;  %12185 = vst [vmem:[#allocation2_spill] sm:$0xff] %v9375_v7  ;;  %v12195_v46 = vld [vmem:[#allocation34_spill] sm:$0xff]  ;;  %v2988_v63 = vadd.f32 %v9273_v49, %v2657_v14 }
 0x347   :  { %v3320_v5 = vadd.f32 %v3123_v34, %v2989_v26  ;;  %12193 = vst [vmem:[#allocation45_spill] sm:$0xff] %v9391_v21  ;;  %v12202_v26 = vld [vmem:[#allocation58_spill] sm:$0xff] }
 0x348   :  { %v986_v15 = vadd.f32 %v12189_v35, %v473_v48  ;;  %v12200_v48 = vld [vmem:[#allocation61_spill] sm:$0xff] }
 0x349   :  { %v2003_v12 = vadd.f32 %v12200_v48, %v1672_v51  ;;  %v3376_v49 = vadd.f32 %v9395_v22, %v3320_v5  ;;  %v12203_v35 = vld [vmem:[#allocation53_spill] sm:$0xff]  ;;  %v9431_v5 = vpop.permute.xlu0 %3356 }
 0x34a   :  { %v1317_v38 = vadd.f32 %v12195_v46, %v986_v15 }
 0x34b   :  { %v2334_v50 = vadd.f32 %v8996_v29, %v2003_v12  ;;  %v9426_v61 = vmul.f32 %v9375_v7, %v3376_v49  ;;  %v12207_v29 = vld [vmem:[#allocation65_spill] sm:$0xff] }
 0x34c   :  { %v9353_v0 = vpop.f32.mrf.mxu2 }
 0x34d   :  { %v9355_v27 = vpop.f32.mrf.mxu3  ;;  %v3091_v42 = vpop.f32.mrf.mxu0  ;;  %v2665_v55 = vadd.f32 %v9181_v52, %v2334_v50  ;;  %12205 = vst [vmem:[#allocation3_spill] sm:$0xff] %v9426_v61 }
 0x34e   :  { %v3311_v6 = vadd.f32 %v3091_v42, %v2980_v3  ;;  %v12197_v3 = vld [vmem:[#allocation69_spill] sm:$0xff]  ;;  %v12198_v42 = vld [vmem:[#allocation30_spill] sm:$0xff]  ;;  %v9410_v56 = vpop.f32.mrf.mxu1 }
 0x34f   :  { %v2335_v24 = vadd.f32 %v12197_v3, %v2004_v59  ;;  %v1318_v4 = vadd.f32 %v12198_v42, %v987_v23  ;;  %v2996_v23 = vadd.f32 %v9281_v57, %v2665_v55  ;;  %v12208_v42 = vld [vmem:[#allocation106_spill] sm:$0xff] }
 0x350   :  { %v3367_v36 = vadd.f32 %v9350_v30, %v3311_v6  ;;  %v12199_v6 = vld [vmem:[#allocation46_spill] sm:$0xff] }
 0x351   :  { %v1648_v1 = vadd.f32 %v12199_v6, %v1317_v38  ;;  %v2666_v43 = vadd.f32 %v9120_v58, %v2335_v24  ;;  %v1649_v31 = vadd.f32 %v12201_v62, %v1318_v4  ;;  %v12214_v62 = vld [vmem:[#allocation4_spill] sm:$0xff] }
 0x352   :  { %v9388_v11 = vmul.f32 %v9378_v54, %v3367_v36 }
 0x353   :  { %v1979_v36 = vadd.f32 %v12202_v26, %v1648_v1  ;;  %v2997_v28 = vadd.f32 %v9255_v45, %v2666_v43  ;;  %v1980_v15 = vadd.f32 %v12203_v35, %v1649_v31  ;;  %v12217_v35 = vld [vmem:[#allocation15_spill] sm:$0xff] }
 0x354   :  { %12192 = vst [vmem:[#allocation26_spill] sm:$0xff] %v9388_v11  ;;  %v9400_v10 = vpop.f32.mrf.mxu2  ;;  %v9406_v60 = vpack.i.bf16 %v9391_v21, %v9388_v11  ;;  %v12269_v11 = vld [vmem:[#allocation83_spill] sm:$0xff] }
 0x355   :  { %v9402_v34 = vpop.f32.mrf.mxu3  ;;  %v3094_v18 = vpop.f32.mrf.mxu0  ;;  %v2310_v58 = vadd.f32 %v12204_v53, %v1979_v36  ;;  %v3328_v59 = vadd.f32 %v3126_v17, %v2997_v28  ;;  %v2311_v37 = vadd.f32 %v12207_v29, %v1980_v15  ;;  %v2652_v17 = vadd.f32 %v9177_v19, %v8994_v25  ;;  %v12209_v19 = vld [vmem:[#allocation76_spill] sm:$0xff]  ;;  %v12218_v53 = vld [vmem:[#allocation6_spill] sm:$0xff] }
 0x356   :  { %v3319_v16 = vadd.f32 %v3094_v18, %v2988_v63  ;;  %7095 = vrot.lane.b32.xlu1 %v9406_v60, %s7430_s25  ;;  %v9450_v63 = vpop.f32.mrf.mxu1  ;;  %v12211_v18 = vld [vmem:[#allocation130_spill] sm:$0xff] }
 0x357   :  { %v2641_v45 = vadd.f32 %v9122_v39, %v2310_v58  ;;  %v2642_v51 = vadd.f32 %v9039_v41, %v2311_v37  ;;  %v3384_v57 = vadd.f32 %v9431_v5, %v3328_v59  ;;  %v2983_v39 = vadd.f32 %v9279_v8, %v2652_v17  ;;  %v12210_v41 = vld [vmem:[#allocation99_spill] sm:$0xff]  ;;  %v12219_v58 = vld [vmem:[#allocation16_spill] sm:$0xff] }
 0x358   :  { %v3375_v9 = vadd.f32 %v9395_v22, %v3319_v16  ;;  %v2651_v1 = vadd.f32 %v12210_v41, %v12209_v19  ;;  %v12213_v8 = vld [vmem:[#allocation123_spill] sm:$0xff]  ;;  %v9465_v16 = vpop.permute.xlu1 %3341  ;;  %v624_v55 = vadd.f32 %v12219_v58, %v12218_v53  ;;  %v9498_v19 = vperm.slane %v9364_v32, 2 }
 0x359   :  { %v2972_v3 = vadd.f32 %v9253_v44, %v2641_v45  ;;  %v2973_v4 = vadd.f32 %v12208_v42, %v2642_v51  ;;  %v9462_v43 = vmul.f32 %v9375_v7, %v3384_v57  ;;  %v12220_v45 = vld [vmem:[#allocation8_spill] sm:$0xff]  ;;  %v12222_v17 = vld [vmem:[#allocation7_spill] sm:$0xff]  ;;  %v12226_v42 = vld [vmem:[#allocation9_spill] sm:$0xff] }
 0x35a   :  { %v9429_v14 = vmul.f32 %v9378_v54, %v3375_v9  ;;  %v2982_v49 = vadd.f32 %v12213_v8, %v2651_v1  ;;  %v12216_v9 = vld [vmem:[#allocation5_spill] sm:$0xff]  ;;  %12229 = vst [vmem:[#allocation57_spill] sm:$0xff] %v9498_v19  ;;  %v12230_v1 = vld [vmem:[#allocation12_spill] sm:$0xff] }
 0x35b   :  { %v3303_v6 = vadd.f32 %v9334_v33, %v2972_v3  ;;  %v3304_v48 = vadd.f32 %v12211_v18, %v2973_v4  ;;  %12212 = vst [vmem:[#allocation23_spill] sm:$0xff] %v9462_v43  ;;  %v12215_v33 = vld [vmem:[#allocation14_spill] sm:$0xff]  ;;  %v621_v15 = vadd.f32 %v12217_v35, %v12216_v9  ;;  %v12224_v3 = vld [vmem:[#allocation11_spill] sm:$0xff]  ;;  %v12227_v4 = vld [vmem:[#allocation20_spill] sm:$0xff] }
 0x35c   :  { %12206 = vst [vmem:[#allocation10_spill] sm:$0xff] %v9429_v14  ;;  %v9436_v46 = vpop.f32.mrf.mxu2  ;;  %v9440_v52 = vpack.i.bf16 %v9426_v61, %v9429_v14  ;;  %v618_v31 = vadd.f32 %v12215_v33, %v12214_v62  ;;  %v12232_v8 = vld [vmem:[#allocation24_spill] sm:$0xff] }
 0x35d   :  { %v3178_v38 = vpop.f32.mrf.mxu3  ;;  %v3097_v13 = vpop.f32.mrf.mxu0  ;;  %v3359_v26 = vadd.f32 %v9465_v16, %v3303_v6  ;;  %v592_v6 = vadd.f32 %v12227_v4, %v12226_v42  ;;  %v12233_v62 = vld [vmem:[#allocation32_spill] sm:$0xff] }
 0x35e   :  { %v3327_v24 = vadd.f32 %v3097_v13, %v2996_v23  ;;  %7090 = vrot.lane.b32.xlu0 %v9440_v52, %s7430_s25  ;;  %v3314_v44 = vadd.f32 %v3178_v38, %v2983_v39  ;;  %v12221_v23 = vld [vmem:[#allocation17_spill] sm:$0xff]  ;;  %v12223_v13 = vld [vmem:[#allocation18_spill] sm:$0xff]  ;;  %v3360_v39 = vadd.f32 %v9465_v16, %v3304_v48  ;;  %v12236_v35 = vld [vmem:[#allocation28_spill] sm:$0xff] }
 0x35f   :  { %v627_v38 = vadd.f32 %v12221_v23, %v12220_v45  ;;  %v589_v51 = vadd.f32 %v12223_v13, %v12222_v17  ;;  %v9508_v48 = vmul.f32 %v9378_v54, %v3359_v26  ;;  %v12240_v17 = vld [vmem:[#allocation29_spill] sm:$0xff] }
 0x360   :  { %v3383_v25 = vadd.f32 %v9431_v5, %v3327_v24  ;;  %v3370_v59 = vadd.f32 %v9350_v30, %v3314_v44  ;;  %v12225_v24 = vld [vmem:[#allocation21_spill] sm:$0xff]  ;;  %v12231_v44 = vld [vmem:[#allocation22_spill] sm:$0xff] }
 0x361   :  { %v595_v57 = vadd.f32 %v12225_v24, %v12224_v3  ;;  %v598_v18 = vadd.f32 %v12231_v44, %v12230_v1  ;;  %12234 = vst [vmem:[#allocation19_spill] sm:$0xff] %v9508_v48  ;;  %v1015_v53 = vadd.f32 %v12236_v35, %v627_v38  ;;  %v990_v13 = vadd.f32 %v12240_v17, %v589_v51  ;;  %v12241_v3 = vld [vmem:[#allocation43_spill] sm:$0xff]  ;;  %v12244_v38 = vld [vmem:[#allocation33_spill] sm:$0xff]  ;;  %v12250_v35 = vld [vmem:[#allocation44_spill] sm:$0xff] }
 0x362   :  { %v9459_v12 = vmul.f32 %v9378_v54, %v3383_v25  ;;  %v9495_v25 = vperm.slane %v9364_v32, 3  ;;  %v9526_v24 = vmul.f32 %v9375_v7, %v3360_v39  ;;  %v12248_v51 = vld [vmem:[#allocation55_spill] sm:$0xff] }
 0x363   :  { %v1006_v33 = vadd.f32 %v12233_v62, %v595_v57  ;;  %v1014_v42 = vadd.f32 %v12244_v38, %v598_v18  ;;  %v12249_v18 = vld [vmem:[#allocation42_spill] sm:$0xff] }
 0x364   :  { %v3149_v36 = vpop.f32.mrf.mxu2  ;;  %v9474_v28 = vpack.i.bf16 %v9462_v43, %v9459_v12  ;;  %12228 = vst [vmem:[#allocation37_spill] sm:$0xff] %v9495_v25  ;;  %v9515_v58 = vmul.f32 %v9495_v25, %v3370_v59  ;;  %v12245_v59 = vld [vmem:[#allocation39_spill] sm:$0xff]  ;;  %v12268_v43 = vld [vmem:[#allocation78_spill] sm:$0xff] }
 0x365   :  { %v9470_v50 = vpop.f32.mrf.mxu3  ;;  %v3313_v29 = vadd.f32 %v3149_v36, %v2982_v49  ;;  %v9481_v37 = vpop.f32.mrf.mxu0  ;;  %v9504_v49 = vadd.f32 %v12232_v8, %v618_v31  ;;  %v12235_v36 = vld [vmem:[#allocation25_spill] sm:$0xff]  ;;  %v12239_v31 = vld [vmem:[#allocation27_spill] sm:$0xff]  ;;  %v1337_v26 = vadd.f32 %v12241_v3, %v1006_v33  ;;  %12242 = vst [vmem:[#allocation69_spill] sm:$0xff] %v9526_v24  ;;  %v1346_v4 = vadd.f32 %v12245_v59, %v1015_v53  ;;  %v12255_v59 = vld [vmem:[#allocation52_spill] sm:$0xff] }
 0x366   :  { %7100 = vrot.lane.b32.xlu2 %v9474_v28, %s7430_s25  ;;  %v9511_v9 = vadd.f32 %v12235_v36, %v621_v15  ;;  %12237 = vst [vmem:[#allocation34_spill] sm:$0xff] %v9515_v58  ;;  %v1007_v23 = vadd.f32 %v12239_v31, %v624_v55  ;;  %v12243_v15 = vld [vmem:[#allocation31_spill] sm:$0xff]  ;;  %v12247_v55 = vld [vmem:[#allocation40_spill] sm:$0xff]  ;;  %v1345_v53 = vadd.f32 %v12250_v35, %v1014_v42  ;;  %v12252_v3 = vld [vmem:[#allocation81_spill] sm:$0xff] }
 0x367   :  { %v3369_v41 = vadd.f32 %v9350_v30, %v3313_v29  ;;  %v9517_v29 = vpop.f32.mrf.mxu1  ;;  %v998_v57 = vadd.f32 %v12243_v15, %v592_v6  ;;  %v1321_v8 = vadd.f32 %v12247_v55, %v990_v13  ;;  %v1668_v62 = vadd.f32 %v12248_v51, %v1337_v26  ;;  %v12251_v31 = vld [vmem:[#allocation51_spill] sm:$0xff]  ;;  %v12253_v15 = vld [vmem:[#allocation104_spill] sm:$0xff]  ;;  %v12254_v26 = vld [vmem:[#allocation50_spill] sm:$0xff] }
 0x368   :  { %v9542_v6 = vpack.i.bf16 %v9526_v24, %v9508_v48  ;;  %v1677_v17 = vadd.f32 %v12251_v31, %v1346_v4  ;;  %v12256_v55 = vld [vmem:[#allocation67_spill] sm:$0xff]  ;;  %v12257_v24 = vld [vmem:[#allocation77_spill] sm:$0xff]  ;;  %v12259_v42 = vld [vmem:[#allocation54_spill] sm:$0xff] }
 0x369   :  { %v9520_v45 = vmul.f32 %v9498_v19, %v3369_v41  ;;  %v12246_v41 = vld [vmem:[#allocation38_spill] sm:$0xff]  ;;  %v1329_v36 = vadd.f32 %v12249_v18, %v998_v57  ;;  %v1999_v51 = vadd.f32 %v12256_v55, %v1668_v62  ;;  %v12258_v57 = vld [vmem:[#allocation100_spill] sm:$0xff] }
 0x36a   :  { %v1338_v44 = vadd.f32 %v12246_v41, %v1007_v23  ;;  %v2668_v23 = vadd.f32 %v12253_v15, %v12252_v3  ;;  %v1652_v41 = vadd.f32 %v12255_v59, %v1321_v8  ;;  %v2660_v18 = vadd.f32 %v12258_v57, %v12257_v24  ;;  %v12260_v35 = vld [vmem:[#allocation56_spill] sm:$0xff]  ;;  %v12261_v3 = vld [vmem:[#allocation63_spill] sm:$0xff]  ;;  %v12265_v59 = vld [vmem:[#allocation85_spill] sm:$0xff] }
 0x36b   :  { %12238 = vst [vmem:[#allocation49_spill] sm:$0xff] %v9520_v45  ;;  %v9533_v1 = vpack.i.bf16 %v9515_v58, %v9520_v45  ;;  %v1660_v4 = vadd.f32 %v12259_v42, %v1329_v36  ;;  %v1676_v31 = vadd.f32 %v12260_v35, %v1345_v53  ;;  %v2008_v15 = vadd.f32 %v12261_v3, %v1677_v17  ;;  %v12262_v45 = vld [vmem:[#allocation128_spill] sm:$0xff]  ;;  %v12263_v58 = vld [vmem:[#allocation62_spill] sm:$0xff]  ;;  %v12270_v36 = vld [vmem:[#allocation107_spill] sm:$0xff] }
 0x36c   :  { %v9538_v33 = vpop.f32.mrf.mxu2  ;;  %v1669_v38 = vadd.f32 %v12254_v26, %v1338_v44  ;;  %v2999_v21 = vadd.f32 %v12262_v45, %v2668_v23  ;;  %v12264_v26 = vld [vmem:[#allocation64_spill] sm:$0xff]  ;;  %v2330_v62 = vadd.f32 %v12265_v59, %v1999_v51  ;;  %v12267_v24 = vld [vmem:[#allocation66_spill] sm:$0xff]  ;;  %v2667_v42 = vadd.f32 %v12270_v36, %v12269_v11  ;;  %v12272_v3 = vld [vmem:[#allocation79_spill] sm:$0xff] }
 0x36d   :  { %v3184_v39 = vpop.f32.mrf.mxu3  ;;  %7110 = vrot.lane.b32.xlu0 %v9533_v1, %s7430_s25  ;;  %v9551_v13 = vpop.f32.mrf.mxu0  ;;  %v1983_v8 = vadd.f32 %v12264_v26, %v1652_v41  ;;  %v12266_v55 = vld [vmem:[#allocation124_spill] sm:$0xff]  ;;  %v1991_v57 = vadd.f32 %v12267_v24, %v1660_v4  ;;  %v2339_v48 = vadd.f32 %v12268_v43, %v2008_v15  ;;  %v12273_v23 = vld [vmem:[#allocation109_spill] sm:$0xff]  ;;  %v12274_v41 = vld [vmem:[#allocation75_spill] sm:$0xff] }
 0x36e   :  { %7105 = vrot.lane.b32.xlu2 %v9542_v6, %s7430_s25  ;;  %v2000_v44 = vadd.f32 %v12263_v58, %v1669_v38  ;;  %v2991_v61 = vadd.f32 %v12266_v55, %v2660_v18  ;;  %v3330_v53 = vadd.f32 %v3184_v39, %v2999_v21  ;;  %v12271_v35 = vld [vmem:[#allocation68_spill] sm:$0xff]  ;;  %v2661_v58 = vadd.f32 %v12273_v23, %v2330_v62  ;;  %v12275_v26 = vld [vmem:[#allocation82_spill] sm:$0xff]  ;;  %v12277_v55 = vld [vmem:[#allocation131_spill] sm:$0xff] }
 0x36f   :  { %v2007_v17 = vadd.f32 %v12271_v35, %v1676_v31  ;;  %v2314_v45 = vadd.f32 %v12272_v3, %v1983_v8  ;;  %v2322_v18 = vadd.f32 %v12275_v26, %v1991_v57  ;;  %v12276_v59 = vld [vmem:[#allocation102_spill] sm:$0xff]  ;;  %v2998_v43 = vadd.f32 %v12277_v55, %v2667_v42  ;;  %v3242_v15 = vpop.f32.mrf.mxu1  ;;  %v12278_v24 = vld [vmem:[#allocation88_spill] sm:$0xff]  ;;  %v12281_v36 = vld [vmem:[#allocation101_spill] sm:$0xff] }
 0x370   :  { %v3322_v38 = vadd.f32 %v9470_v50, %v2991_v61  ;;  %v2331_v51 = vadd.f32 %v12274_v41, %v2000_v44  ;;  %v2670_v4 = vadd.f32 %v12276_v59, %v2339_v48  ;;  %v12279_v21 = vld [vmem:[#allocation72_spill] sm:$0xff]  ;;  %v12280_v39 = vld [vmem:[#allocation94_spill] sm:$0xff]  ;;  %v12282_v35 = vld [vmem:[#allocation133_spill] sm:$0xff]  ;;  %v3386_v48 = vadd.f32 %v9431_v5, %v3330_v53 }
 0x371   :  { %v2338_v11 = vadd.f32 %v12278_v24, %v2007_v17  ;;  %v2644_v31 = vadd.f32 %v12280_v39, %v12279_v21  ;;  %v2645_v8 = vadd.f32 %v12281_v36, %v2314_v45  ;;  %v2992_v62 = vadd.f32 %v12282_v35, %v2661_v58  ;;  %v12283_v50 = vld [vmem:[#allocation98_spill] sm:$0xff]  ;;  %v12285_v26 = vld [vmem:[#allocation80_spill] sm:$0xff]  ;;  %v12286_v17 = vld [vmem:[#allocation103_spill] sm:$0xff] }
 0x372   :  { %v2662_v44 = vadd.f32 %v12283_v50, %v2331_v51  ;;  %v12284_v57 = vld [vmem:[#allocation126_spill] sm:$0xff]  ;;  %v2659_v59 = vadd.f32 %v12286_v17, %v12285_v26  ;;  %v12287_v55 = vld [vmem:[#allocation125_spill] sm:$0xff]  ;;  %v3378_v45 = vadd.f32 %v9395_v22, %v3322_v38  ;;  %v12288_v58 = vld [vmem:[#allocation119_spill] sm:$0xff] }
 0x373   :  { %v3001_v23 = vadd.f32 %v12284_v57, %v2670_v4  ;;  %v2976_v24 = vadd.f32 %v12287_v55, %v2645_v8  ;;  %v2975_v39 = vadd.f32 %v12288_v58, %v2644_v31  ;;  %v12289_v36 = vld [vmem:[#allocation122_spill] sm:$0xff]  ;;  %v12290_v4 = vld [vmem:[#allocation127_spill] sm:$0xff]  ;;  %v12292_v8 = vld [vmem:[#allocation112_spill] sm:$0xff]  ;;  %v9606_v31 = vmul.f32 %v9495_v25, %v3386_v48 }
 0x374   :  { %v3155_v3 = vpop.f32.mrf.mxu2  ;;  %v2993_v35 = vadd.f32 %v12289_v36, %v2662_v44  ;;  %v2990_v50 = vadd.f32 %v12290_v4, %v2659_v59  ;;  %v2669_v57 = vadd.f32 %v12292_v8, %v2338_v11  ;;  %v9613_v44 = vmul.f32 %v9495_v25, %v3378_v45  ;;  %v12293_v11 = vld [vmem:[#allocation35_spill] sm:$0xff]  ;;  %v12297_v45 = vld [vmem:[#allocation74_spill] sm:$0xff]  ;;  %v12300_v36 = vld [vmem:[#allocation129_spill] sm:$0xff] }
 0x375   :  { %v9585_v61 = vpop.f32.mrf.mxu3  ;;  %v3329_v42 = vadd.f32 %v3155_v3, %v2998_v43  ;;  %v3210_v41 = vpop.f32.mrf.mxu0  ;;  %v3332_v14 = vadd.f32 %v3242_v15, %v3001_v23  ;;  %v3307_v53 = vadd.f32 %v9481_v37, %v2976_v24  ;;  %v9600_v43 = vperm.slane %v9364_v32, 4  ;;  %v12302_v8 = vld [vmem:[#allocation60_spill] sm:$0xff] }
 0x376   :  { %v3323_v21 = vadd.f32 %v3210_v41, %v2992_v62  ;;  %v3324_v38 = vadd.f32 %v9517_v29, %v2993_v35  ;;  %v3306_v62 = vadd.f32 %v9402_v34, %v2975_v39  ;;  %v3321_v37 = vadd.f32 %v9538_v33, %v2990_v50  ;;  %v12294_v29 = vld [vmem:[#allocation36_spill] sm:$0xff]  ;;  %v12295_v34 = vld [vmem:[#allocation105_spill] sm:$0xff] }
 0x377   :  { %v3385_v51 = vadd.f32 %v9431_v5, %v3329_v42  ;;  %12291 = vst [vmem:[#allocation30_spill] sm:$0xff] %v9600_v43  ;;  %v1322_v42 = vadd.f32 %v12293_v11, %v9504_v49  ;;  %v1330_v48 = vadd.f32 %v12294_v29, %v9511_v9  ;;  %v3388_v41 = vadd.f32 %v9431_v5, %v3332_v14  ;;  %v12296_v9 = vld [vmem:[#allocation48_spill] sm:$0xff]  ;;  %v12303_v11 = vld [vmem:[#allocation121_spill] sm:$0xff] }
 0x378   :  { %v3379_v3 = vadd.f32 %v9395_v22, %v3323_v21  ;;  %v2653_v17 = vadd.f32 %v12295_v34, %v2322_v18  ;;  %v3000_v59 = vadd.f32 %v9314_v2, %v2669_v57  ;;  %v3363_v33 = vadd.f32 %v9465_v16, %v3307_v53  ;;  %v12298_v21 = vld [vmem:[#allocation97_spill] sm:$0xff]  ;;  %v12301_v53 = vld [vmem:[#allocation47_spill] sm:$0xff] }
 0x379   :  { %v9609_v15 = vmul.f32 %v9498_v19, %v3385_v51  ;;  %v1661_v14 = vadd.f32 %v12296_v9, %v1330_v48  ;;  %v2643_v58 = vadd.f32 %v12298_v21, %v12297_v45  ;;  %v9643_v39 = vperm.slane %v9364_v32, 5  ;;  %v12304_v34 = vld [vmem:[#allocation59_spill] sm:$0xff] }
 0x37a   :  { %v9617_v23 = vmul.f32 %v9600_v43, %v3379_v3  ;;  %v3380_v2 = vadd.f32 %v9395_v22, %v3324_v38  ;;  %v2984_v35 = vadd.f32 %v12300_v36, %v2653_v17  ;;  %v3362_v51 = vadd.f32 %v9465_v16, %v3306_v62 }
 0x37b   :  { %v9626_v26 = vpack.i.bf16 %v9606_v31, %v9609_v15  ;;  %12299 = vst [vmem:[#allocation46_spill] sm:$0xff] %v9643_v39  ;;  %v3377_v4 = vadd.f32 %v9395_v22, %v3321_v37  ;;  %v1653_v3 = vadd.f32 %v12301_v53, %v1322_v42  ;;  %v1992_v57 = vadd.f32 %v12302_v8, %v1661_v14  ;;  %v12309_v53 = vld [vmem:[#allocation114_spill] sm:$0xff]  ;;  %v12310_v8 = vld [vmem:[#allocation93_spill] sm:$0xff] }
 0x37c   :  { %v9631_v55 = vpop.f32.mrf.mxu2  ;;  %v9637_v49 = vpack.i.bf16 %v9617_v23, %v9613_v44  ;;  %v9656_v38 = vmul.f32 %v9643_v39, %v3388_v41  ;;  %v2974_v29 = vadd.f32 %v12303_v11, %v2643_v58  ;;  %v9660_v48 = vmul.f32 %v9600_v43, %v3363_v33  ;;  %v12311_v11 = vld [vmem:[#allocation120_spill] sm:$0xff] }
 0x37d   :  { %v9633_v24 = vpop.f32.mrf.mxu3  ;;  %7115 = vrot.lane.b32.xlu0 %v9626_v26, %s7430_s25  ;;  %v3213_v18 = vpop.f32.mrf.mxu0  ;;  %v3315_v62 = vadd.f32 %v9551_v13, %v2984_v35  ;;  %v1984_v17 = vadd.f32 %v12304_v34, %v1653_v3  ;;  %v9667_v42 = vmul.f32 %v9643_v39, %v3380_v2  ;;  %v9670_v14 = vmul.f32 %v9495_v25, %v3362_v51  ;;  %v12306_v13 = vld [vmem:[#allocation71_spill] sm:$0xff]  ;;  %v12312_v34 = vld [vmem:[#allocation117_spill] sm:$0xff] }
 0x37e   :  { %v3331_v50 = vadd.f32 %v3213_v18, %v3000_v59  ;;  %7120 = vrot.lane.b32.xlu2 %v9637_v49, %s7430_s25  ;;  %v12305_v59 = vld [vmem:[#allocation73_spill] sm:$0xff]  ;;  %v3305_v41 = vadd.f32 %v9436_v46, %v2974_v29  ;;  %v9674_v45 = vmul.f32 %v9498_v19, %v3377_v4  ;;  %v12307_v18 = vld [vmem:[#allocation96_spill] sm:$0xff] }
 0x37f   :  { %v2323_v9 = vadd.f32 %v12305_v59, %v1992_v57  ;;  %v2315_v21 = vadd.f32 %v12306_v13, %v1984_v17  ;;  %v9682_v58 = vpack.i.bf16 %v9667_v42, %v9656_v38  ;;  %v3371_v36 = vadd.f32 %v9350_v30, %v3315_v62  ;;  %v12313_v13 = vld [vmem:[#allocation91_spill] sm:$0xff] }
 0x380   :  { %v3387_v37 = vadd.f32 %v9431_v5, %v3331_v50  ;;  %v9692_v4 = vpack.i.bf16 %v9660_v48, %v9670_v14  ;;  %v12308_v50 = vld [vmem:[#allocation90_spill] sm:$0xff]  ;;  %v3361_v62 = vadd.f32 %v9465_v16, %v3305_v41 }
 0x381   :  { %v2654_v2 = vadd.f32 %v12307_v18, %v2323_v9  ;;  %v2664_v3 = vadd.f32 %v12309_v53, %v12308_v50  ;;  %v2646_v57 = vadd.f32 %v12310_v8, %v2315_v21  ;;  %v9709_v9 = vmul.f32 %v9600_v43, %v3371_v36  ;;  %v12314_v21 = vld [vmem:[#allocation115_spill] sm:$0xff]  ;;  %v12315_v8 = vld [vmem:[#allocation89_spill] sm:$0xff] }
 0x382   :  { %v9677_v33 = vmul.f32 %v9600_v43, %v3387_v37  ;;  %v2663_v18 = vadd.f32 %v12314_v21, %v12313_v13  ;;  %v9715_v50 = vmul.f32 %v9498_v19, %v3361_v62  ;;  %v12320_v62 = vld [vmem:[#allocation111_spill] sm:$0xff] }
 0x383   :  { %v2985_v29 = vadd.f32 %v12311_v11, %v2654_v2  ;;  %v2995_v37 = vadd.f32 %v9330_v20, %v2664_v3  ;;  %v2977_v17 = vadd.f32 %v12312_v34, %v2646_v57  ;;  %v12316_v20 = vld [vmem:[#allocation113_spill] sm:$0xff]  ;;  %v12317_v11 = vld [vmem:[#allocation92_spill] sm:$0xff] }
 0x384   :  { %v3265_v35 = vpop.f32.mrf.mxu2  ;;  %v9688_v46 = vpack.i.bf16 %v9674_v45, %v9677_v33  ;;  %v2994_v53 = vadd.f32 %v9353_v0, %v2663_v18  ;;  %v2655_v3 = vadd.f32 %v12316_v20, %v12315_v8  ;;  %v7129_v36 = vpack.i.bf16 %v9715_v50, %v9709_v9 }
 0x385   :  { %v3297_v51 = vpop.f32.mrf.mxu3  ;;  %7140 = vrot.lane.b32.xlu0 %v9682_v58, %s7430_s25  ;;  %v3316_v59 = vadd.f32 %v9450_v63, %v2985_v29  ;;  %v3308_v41 = vadd.f32 %v9410_v56, %v2977_v17  ;;  %v12318_v29 = vld [vmem:[#allocation116_spill] sm:$0xff]  ;;  %v9733_v18 = vperm.slane %v9364_v32, 7  ;;  %v9736_v8 = vperm.slane %v9364_v32, 6 }
 0x386   :  { %7125 = vrot.lane.b32.xlu1 %v9688_v46, %s7430_s25  ;;  %7135 = vrot.lane.b32.xlu2 %v9692_v4, %s7430_s25  ;;  %v3326_v2 = vadd.f32 %v3297_v51, %v2995_v37  ;;  %v2672_v34 = vadd.f32 %v12318_v29, %v12317_v11  ;;  %v12319_v37 = vld [vmem:[#allocation87_spill] sm:$0xff]  ;;  %v2986_v0 = vadd.f32 %v9328_v40, %v2655_v3  ;;  %v12324_v3 = vld [vmem:[#allocation118_spill] sm:$0xff] }
 0x387   :  { %v3372_v57 = vadd.f32 %v9350_v30, %v3316_v59  ;;  %v2656_v17 = vadd.f32 %v12320_v62, %v12319_v37  ;;  %v3364_v13 = vadd.f32 %v9465_v16, %v3308_v41  ;;  %12321 = vst [vmem:[#allocation61_spill] sm:$0xff] %v9733_v18  ;;  %v12323_v41 = vld [vmem:[#allocation95_spill] sm:$0xff] }
 0x388   :  { %v3382_v51 = vadd.f32 %v9395_v22, %v3326_v2  ;;  %v3003_v59 = vadd.f32 %v9355_v27, %v2672_v34  ;;  %12322 = vst [vmem:[#allocation41_spill] sm:$0xff] %v9736_v8  ;;  %v3317_v40 = vadd.f32 %v3265_v35, %v2986_v0  ;;  %v12326_v34 = vld [vmem:[#allocation110_spill] sm:$0xff]  ;;  %v12328_v0 = vld [vmem:[#allocation108_spill] sm:$0xff] }
 0x389   :  { %v9741_v20 = vmul.f32 %v9643_v39, %v3372_v57  ;;  %v9752_v32 = vmul.f32 %v9643_v39, %v3364_v13 }
 0x38a   :  { %v9746_v11 = vmul.f32 %v9733_v18, %v3382_v51  ;;  %v3373_v51 = vadd.f32 %v9350_v30, %v3317_v40 }
 0x38b   :  { %v7144_v62 = vpack.i.bf16 %v9752_v32, %v9741_v20 }
 0x38c   :  { %v3268_v63 = vpop.f32.mrf.mxu2 }
 0x38d   :  { %v3325_v56 = vadd.f32 %v3268_v63, %v2994_v53  ;;  %v3300_v21 = vpop.f32.mrf.mxu3  ;;  %v2987_v53 = vadd.f32 %v9312_v47, %v2656_v17  ;;  %v2671_v63 = vadd.f32 %v12324_v3, %v12323_v41  ;;  %v12325_v47 = vld [vmem:[#allocation86_spill] sm:$0xff]  ;;  %v12327_v17 = vld [vmem:[#allocation84_spill] sm:$0xff] }
 0x38e   :  { %7130 = vrot.lane.b32.xlu1 %v7129_v36, %s7430_s25  ;;  %v3334_v29 = vadd.f32 %v3300_v21, %v3003_v59  ;;  %v2647_v57 = vadd.f32 %v12326_v34, %v12325_v47  ;;  %v2648_v13 = vadd.f32 %v12328_v0, %v12327_v17  ;;  %v12329_v21 = vld [vmem:[#allocation134_spill] sm:$0xff] }
 0x38f   :  { %v3381_v2 = vadd.f32 %v9395_v22, %v3325_v56  ;;  %v3318_v22 = vadd.f32 %v9633_v24, %v2987_v53  ;;  %v3002_v35 = vadd.f32 %v9400_v10, %v2671_v63  ;;  %v12330_v53 = vld [vmem:[#allocation132_spill] sm:$0xff]  ;;  %v9774_v63 = vmul.f32 %v9736_v8, %v3373_v51 }
 0x390   :  { %v2978_v59 = vadd.f32 %v12329_v21, %v2647_v57  ;;  %v3390_v24 = vadd.f32 %v9431_v5, %v3334_v29  ;;  %v2979_v40 = vadd.f32 %v12330_v53, %v2648_v13  ;;  %v9856_v21 = vld [vmem:[%s12010_s5 + $0x20] sm:$0xff] }
 0x391   :  { %v9749_v27 = vmul.f32 %v9736_v8, %v3381_v2  ;;  %v3374_v10 = vadd.f32 %v9350_v30, %v3318_v22 }
 0x392   :  { %v3309_v41 = vadd.f32 %v9631_v55, %v2978_v59  ;;  %v3310_v47 = vadd.f32 %v9585_v61, %v2979_v40  ;;  %v9778_v29 = vmul.f32 %v9733_v18, %v3390_v24  ;;  %v9872_v24 = vld [vmem:[%s12010_s5 + $0x28] sm:$0xff] }
 0x393   :  { %v7149_v56 = vpack.i.bf16 %v9746_v11, %v9749_v27  ;;  %v9784_v30 = vmul.f32 %v9733_v18, %v3374_v10  ;;  %v9886_v10 = vld [vmem:[%s12010_s5 + $0x30] sm:$0xff] }
 0x394   :  { %v3271_v37 = vpop.f32.mrf.mxu2  ;;  %v3365_v22 = vadd.f32 %v9465_v16, %v3309_v41  ;;  %v3366_v57 = vadd.f32 %v9465_v16, %v3310_v47  ;;  %v9897_v41 = vld [vmem:[%s12010_s5 + $0x38] sm:$0xff] }
 0x395   :  { %v3333_v2 = vadd.f32 %v3271_v37, %v3002_v35  ;;  %7150 = vrot.lane.b32.xlu0 %v7149_v56, %s7430_s25  ;;  %v4487_v37 = vld [vmem:[%s12009_s6 + $0x10] sm:$0xff] }
 0x396   :  { %7145 = vrot.lane.b32.xlu1 %v7144_v62, %s7430_s25  ;;  %v9797_v61 = vmul.f32 %v9736_v8, %v3365_v22  ;;  %v9800_v35 = vmul.f32 %v9733_v18, %v3366_v57 }
 0x397   :  { %v3389_v3 = vadd.f32 %v9431_v5, %v3333_v2  ;;  %v7154_v5 = vpack.i.bf16 %v9784_v30, %v9774_v63  ;;  %v4485_v2 = vld [vmem:[%s12009_s6] sm:$0xff] }
 0x398   :  { %v7164_v51 = vpack.i.bf16 %v9800_v35, %v9797_v61 }
 0x399   :  { %v9781_v34 = vmul.f32 %v9736_v8, %v3389_v3 }
 0x39b   :  { %v7159_v55 = vpack.i.bf16 %v9778_v29, %v9781_v34 }
 0x39d   :  { %7170 = vrot.lane.b32.xlu0 %v9474_v28, %s7431_s0  ;;  %7160 = vrot.lane.b32.xlu2 %v7159_v55, %s7430_s25 }
 0x39e   :  { %7155 = vrot.lane.b32.xlu1 %v7154_v5, %s7430_s25 }
 0x3a5   :  { %7185 = vrot.lane.b32.xlu0 %v9542_v6, %s7431_s0  ;;  %7165 = vrot.lane.b32.xlu2 %v7164_v51, %s7430_s25 }
 0x3a6   :  { %7175 = vrot.lane.b32.xlu1 %v9440_v52, %s7431_s0 }
 0x3ad   :  { %7200 = vrot.lane.b32.xlu0 %v9637_v49, %s7431_s0  ;;  %7180 = vrot.lane.b32.xlu2 %v9406_v60, %s7431_s0 }
 0x3ae   :  { %7190 = vrot.lane.b32.xlu1 %v9626_v26, %s7431_s0 }
 0x3b5   :  { %7215 = vrot.lane.b32.xlu0 %v9692_v4, %s7431_s0  ;;  %7195 = vrot.lane.b32.xlu2 %v9688_v46, %s7431_s0 }
 0x3b6   :  { %7205 = vrot.lane.b32.xlu1 %v9533_v1, %s7431_s0  ;;  %v4488_v1 = vld [vmem:[%s12009_s6 + $0x18] sm:$0xff] }
 0x3bd   :  { %7240 = vrot.lane.b32.xlu0 %v7159_v55, %s7431_s0  ;;  %7210 = vrot.lane.b32.xlu2 %v7129_v36, %s7431_s0 }
 0x3be   :  { %7220 = vrot.lane.b32.xlu1 %v9682_v58, %s7431_s0 }
 0x3c0   :  { %v7101_v60 = vpop.permute.xlu2 %7100 }
 0x3c1   :  { %v7103_v52 = vunpack.i.h.bf16 %v7101_v60  ;;  %v7102_v16 = vunpack.i.l.bf16 %v7101_v60 }
 0x3c3   :  { %v3557_v28 = vsel %vm142_vm0, %v7102_v16, %v7103_v52 }
 0x3c4   :  { %3621 = vmatpush.msra.mxu0 %v3557_v28 }
 0x3c5   :  { %7245 = vrot.lane.b32.xlu0 %v7164_v51, %s7431_s0  ;;  %7225 = vrot.lane.b32.xlu2 %v7144_v62, %s7431_s0 }
 0x3c6   :  { %7230 = vrot.lane.b32.xlu1 %v7149_v56, %s7431_s0  ;;  %v4486_v56 = vld [vmem:[%s12009_s6 + $0x8] sm:$0xff] }
 0x3c8   :  { %v9835_v6 = vpop.permute.xlu1 %7095  ;;  %v9837_v26 = vpop.permute.xlu2 %7105 }
 0x3c9   :  { %v7098_v58 = vunpack.i.h.bf16 %v9835_v6  ;;  %v7097_v46 = vunpack.i.l.bf16 %v9835_v6  ;;  %v7108_v62 = vunpack.i.h.bf16 %v9837_v26  ;;  %v7107_v17 = vunpack.i.l.bf16 %v9837_v26 }
 0x3cb   :  { %v3543_v13 = vsel %vm142_vm0, %v7097_v46, %v7098_v58  ;;  %v3536_v59 = vsel %vm142_vm0, %v7107_v17, %v7108_v62 }
 0x3cd   :  { %4577 = vrot.lane.b32.xlu0 %v9498_v19, %s7430_s25  ;;  %7235 = vrot.lane.b32.xlu2 %v7154_v5, %s7431_s0 }
 0x3ce   :  { %4506 = vperm.xlu1 %7087, %v4488_v1  }
 0x3d0   :  { %v7091_v49 = vpop.permute.xlu0 %7090 }
 0x3d1   :  { %v7093_v4 = vunpack.i.h.bf16 %v7091_v49  ;;  %v7092_v36 = vunpack.i.l.bf16 %v7091_v49 }
 0x3d3   :  { %v3550_v0 = vsel %vm142_vm0, %v7092_v36, %v7093_v4 }
 0x3d4   :  { %3622 = vmatpush.msra.mxu0 %v3550_v0 }
 0x3d5   :  { %4496 = vperm.xlu0 %7086, %v4486_v56   ;;  %4501 = vperm.xlu2 %7088, %v4487_v37  }
 0x3d6   :  { %3623 = vmatpush.msra.mxu0 %v3543_v13  ;;  %4579 = vrot.lane.b32.xlu1 %v9495_v25, %s7430_s25 }
 0x3d8   :  { %3624 = vmatpush.msra.mxu0 %v3536_v59  ;;  %v7121_v40 = vpop.permute.xlu2 %7120 }
 0x3d9   :  { %6866 = vmatmul.msk.f32.vlgmr.msra.gmra.mxu0 %vm3596_vm11, %v9856_v21  ;;  %v7122_v60 = vunpack.i.l.bf16 %v7121_v40  ;;  %v7123_v56 = vunpack.i.h.bf16 %v7121_v40 }
 0x3dd   :  { %4581 = vrot.lane.b32.xlu2 %v9600_v43, %s7430_s25  ;;  %4573 = vrot.lane.b32.xlu0 %v9378_v54, %s7430_s25 }
 0x3de   :  { %4583 = vrot.lane.b32.xlu1 %v9643_v39, %s7430_s25 }
 0x3df   :  { %v7111_v53 = vpop.permute.xlu0 %7110 }
 0x3e0   :  { %v9903_v57 = vpop.permute.xlu2 %7135  ;;  %v7113_v16 = vunpack.i.h.bf16 %v7111_v53  ;;  %v7112_v1 = vunpack.i.l.bf16 %v7111_v53 }
 0x3e1   :  { %6867 = vmatmul.msk.f32.gmra.mxu0 %vm3596_vm11, %v9872_v24  ;;  %v7138_v6 = vunpack.i.h.bf16 %v9903_v57 }
 0x3e2   :  { %v3544_v59 = vsel %vm142_vm0, %v7098_v58, %v7112_v1 }
 0x3e5   :  { %4491 = vperm.xlu2 %7088, %v4485_v2   ;;  %4587 = vrot.lane.b32.xlu0 %v9733_v18, %s7430_s25  ;;  %v3545_v2 = vsel %vm142_vm0, %v7112_v1, %v7113_v16 }
 0x3e6   :  { %4575 = vrot.lane.b32.xlu1 %v9375_v7, %s7430_s25 }
 0x3e9   :  { %6868 = vmatmul.msk.f32.gmra.mxu0 %vm3596_vm11, %v9886_v10 }
 0x3ed   :  { %4585 = vrot.lane.b32.xlu2 %v9736_v8, %s7430_s25 }
 0x3ef   :  { %v7116_v3 = vpop.permute.xlu0 %7115 }
 0x3f0   :  { %v7118_v47 = vunpack.i.h.bf16 %v7116_v3  ;;  %v7117_v22 = vunpack.i.l.bf16 %v7116_v3 }
 0x3f1   :  { %6869 = vmatmul.msk.f32.gmra.mxu0 %vm3596_vm11, %v9897_v41 }
 0x3f2   :  { %v3558_v55 = vsel %vm142_vm0, %v7103_v52, %v7117_v22  ;;  %v3559_v5 = vsel %vm142_vm0, %v7117_v22, %v7118_v47 }
 0x3f3   :  { %3650 = vmatpush.msra.mxu1 %v3558_v55  ;;  %3679 = vmatpush.msrb.mxu2 %v3559_v5 }
 0x3f7   :  { %v7141_v51 = vpop.permute.xlu0 %7140  ;;  %v7161_v53 = vpop.permute.xlu2 %7160 }
 0x3f8   :  { %v7126_v28 = vpop.permute.xlu1 %7125  ;;  %v7142_v49 = vunpack.i.l.bf16 %v7141_v51  ;;  %v7143_v37 = vunpack.i.h.bf16 %v7141_v51  ;;  %v7162_v22 = vunpack.i.l.bf16 %v7161_v53  ;;  %v7163_v58 = vunpack.i.h.bf16 %v7161_v53 }
 0x3f9   :  { %v7128_v46 = vunpack.i.h.bf16 %v7126_v28  ;;  %v7127_v36 = vunpack.i.l.bf16 %v7126_v28 }
 0x3fa   :  { %v3554_v40 = vsel %vm142_vm0, %v7123_v56, %v7143_v37  ;;  %v3562_v1 = vsel %vm142_vm0, %v7142_v49, %v7162_v22  ;;  %v3563_v26 = vsel %vm142_vm0, %v7162_v22, %v7163_v58 }
 0x3fb   :  { %v3551_v17 = vsel %vm142_vm0, %v7093_v4, %v7128_v46  ;;  %v3552_v52 = vsel %vm142_vm0, %v7128_v46, %v7122_v60  ;;  %v3560_v0 = vsel %vm142_vm0, %v7118_v47, %v7127_v36  ;;  %v3561_v13 = vsel %vm142_vm0, %v7127_v36, %v7142_v49 }
 0x3fc   :  { %3651 = vmatpush.msra.mxu1 %v3551_v17  ;;  %3680 = vmatpush.msrb.mxu2 %v3552_v52  ;;  %v3553_v4 = vsel %vm142_vm0, %v7122_v60, %v7123_v56  ;;  %v7137_v47 = vunpack.i.l.bf16 %v9903_v57 }
 0x3fd   :  { %3708 = vmatpush.msrb.mxu3 %v3560_v0  ;;  %3737 = vmatpush.msrb.mxu0 %v3561_v13 }
 0x3fe   :  { %3652 = vmatpush.msra.mxu1 %v3544_v59  ;;  %3681 = vmatpush.msrb.mxu2 %v3545_v2 }
 0x3ff   :  { %3709 = vmatpush.msrb.mxu3 %v3553_v4  ;;  %3738 = vmatpush.msrb.mxu0 %v3554_v40  ;;  %v12331_v4 = vld [vmem:[#allocation10_spill] sm:$0xff] }
 0x400   :  { %v7131_v3 = vpop.permute.xlu1 %7130 }
 0x401   :  { %v7133_v55 = vunpack.i.h.bf16 %v7131_v3  ;;  %v7132_v5 = vunpack.i.l.bf16 %v7131_v3 }
 0x403   :  { %v3537_v51 = vsel %vm142_vm0, %v7108_v62, %v7133_v55  ;;  %v3538_v28 = vsel %vm142_vm0, %v7133_v55, %v7137_v47  ;;  %v3546_v60 = vsel %vm142_vm0, %v7113_v16, %v7132_v5  ;;  %v3539_v62 = vsel %vm142_vm0, %v7137_v47, %v7138_v6  ;;  %v12332_v55 = vld [vmem:[#allocation26_spill] sm:$0xff] }
 0x404   :  { %3653 = vmatpush.msra.mxu1 %v3537_v51  ;;  %3682 = vmatpush.msrb.mxu2 %v3538_v28  ;;  %v12335_v51 = vld [vmem:[#allocation3_spill] sm:$0xff]  ;;  %v12338_v28 = vld [vmem:[#allocation49_spill] sm:$0xff] }
 0x405   :  { %3710 = vmatpush.msrb.mxu3 %v3546_v60  ;;  %6870 = vmatmul.msk.f32.vlgmr.msra.gmra.mxu1 %vm3596_vm11, %v9856_v21  ;;  %v10054_v60 = vld [vmem:[%s12010_s5 + $0x10] sm:$0xff] }
 0x406   :  { %6874 = vmatmul.msk.f32.vlgmr.msrb.gmra.mxu2 %vm3596_vm11, %v9856_v21  ;;  %3766 = vmatpush.msrb.mxu1 %v3562_v1 }
 0x407   :  { %3795 = vmatpush.msra.mxu2 %v3563_v26  ;;  %v7151_v57 = vpop.permute.xlu0 %7150  ;;  %3711 = vmatpush.msrb.mxu3 %v3539_v62 }
 0x408   :  { %v7153_v16 = vunpack.i.h.bf16 %v7151_v57  ;;  %v7152_v46 = vunpack.i.l.bf16 %v7151_v57  ;;  %6878 = vmatmul.msk.f32.vlgmr.msrb.gmra.mxu3 %vm3596_vm11, %v9856_v21  ;;  %v7146_v36 = vpop.permute.xlu1 %7145 }
 0x409   :  { %3824 = vmatpush.msra.mxu3 %v7163_v58  ;;  %v7148_v56 = vunpack.i.h.bf16 %v7146_v36  ;;  %v7147_v49 = vunpack.i.l.bf16 %v7146_v36  ;;  %v12334_v58 = vld [vmem:[#allocation23_spill] sm:$0xff]  ;;  %v10068_v36 = vld [vmem:[%s12010_s5 + $0x18] sm:$0xff] }
 0x40a   :  { %v3555_v17 = vsel %vm142_vm0, %v7143_v37, %v7152_v46  ;;  %v3556_v52 = vsel %vm142_vm0, %v7152_v46, %v7153_v16  ;;  %v7166_v37 = vpop.permute.xlu2 %7165 }
 0x40b   :  { %3825 = vmatpush.msra.mxu3 %v7153_v16  ;;  %3767 = vmatpush.msrb.mxu1 %v3555_v17  ;;  %v3547_v0 = vsel %vm142_vm0, %v7132_v5, %v7147_v49  ;;  %v3540_v13 = vsel %vm142_vm0, %v7138_v6, %v7148_v56  ;;  %v7168_v40 = vunpack.i.h.bf16 %v7166_v37  ;;  %v7167_v3 = vunpack.i.l.bf16 %v7166_v37  ;;  %v12333_v5 = vld [vmem:[#allocation19_spill] sm:$0xff] }
 0x40c   :  { %3796 = vmatpush.msra.mxu2 %v3556_v52  ;;  %3739 = vmatpush.msrb.mxu0 %v3547_v0 }
 0x40d   :  { %6871 = vmatmul.msk.f32.gmra.mxu1 %vm3596_vm11, %v9872_v24  ;;  %v3542_v6 = vsel %vm142_vm0, %v7167_v3, %v7168_v40 }
 0x40e   :  { %6875 = vmatmul.msk.f32.gmra.mxu2 %vm3596_vm11, %v9872_v24  ;;  %3740 = vmatpush.msrb.mxu0 %v3540_v13 }
 0x40f   :  { %6882 = vmatmul.msk.f32.vlgmr.msrb.gmra.mxu0 %vm3596_vm11, %v9856_v21 }
 0x410   :  { %6879 = vmatmul.msk.f32.gmra.mxu3 %vm3596_vm11, %v9872_v24  ;;  %3865 = vmatpush.msra.mxu0 %v9459_v12  ;;  %v7156_v59 = vpop.permute.xlu1 %7155  ;;  %v3541_v12 = vsel %vm142_vm0, %v7148_v56, %v7167_v3 }
 0x411   :  { %v7158_v2 = vunpack.i.h.bf16 %v7156_v59  ;;  %v7157_v53 = vunpack.i.l.bf16 %v7156_v59 }
 0x412   :  { %3866 = vmatpush.msra.mxu0 %v12331_v4 }
 0x413   :  { %3826 = vmatpush.msra.mxu3 %v7158_v2  ;;  %v3548_v47 = vsel %vm142_vm0, %v7147_v49, %v7157_v53  ;;  %v3549_v22 = vsel %vm142_vm0, %v7157_v53, %v7158_v2 }
 0x414   :  { %3867 = vmatpush.msra.mxu0 %v12332_v55  ;;  %3768 = vmatpush.msrb.mxu1 %v3548_v47 }
 0x415   :  { %3797 = vmatpush.msra.mxu2 %v3549_v22  ;;  %6872 = vmatmul.msk.f32.gmra.mxu1 %vm3596_vm11, %v9886_v10 }
 0x416   :  { %6876 = vmatmul.msk.f32.gmra.mxu2 %vm3596_vm11, %v9886_v10  ;;  %3827 = vmatpush.msra.mxu3 %v7168_v40 }
 0x417   :  { %3868 = vmatpush.msra.mxu0 %v12333_v5  ;;  %3769 = vmatpush.msrb.mxu1 %v3541_v12 }
 0x418   :  { %3798 = vmatpush.msra.mxu2 %v3542_v6  ;;  %3952 = vmatpush.msrb.mxu3 %v9606_v31  ;;  %v12336_v31 = vld [vmem:[#allocation34_spill] sm:$0xff] }
 0x419   :  { %3981 = vmatpush.msrb.mxu0 %v9677_v33  ;;  %6880 = vmatmul.msk.f32.gmra.mxu3 %vm3596_vm11, %v9886_v10  ;;  %v12337_v33 = vld [vmem:[#allocation45_spill] sm:$0xff] }
 0x41a   :  { %6883 = vmatmul.msk.f32.gmra.mxu0 %vm3596_vm11, %v9872_v24  ;;  %3894 = vmatpush.msra.mxu1 %v12334_v58 }
 0x41b   :  { %3923 = vmatpush.msrb.mxu2 %v9609_v15  ;;  %3953 = vmatpush.msrb.mxu3 %v9613_v44  ;;  %v12339_v15 = vld [vmem:[#allocation69_spill] sm:$0xff]  ;;  %v9983_v44 = vpop.permute.xlu0 %7170 }
 0x41c   :  { %3982 = vmatpush.msrb.mxu0 %v9617_v23  ;;  %3895 = vmatpush.msra.mxu1 %v12335_v51  ;;  %v9999_v23 = vpop.permute.xlu1 %7175 }
 0x41d   :  { %3924 = vmatpush.msrb.mxu2 %v9674_v45  ;;  %3954 = vmatpush.msrb.mxu3 %v12336_v31  ;;  %v7178_v45 = vunpack.i.h.bf16 %v9999_v23 }
 0x41e   :  { %3983 = vmatpush.msrb.mxu0 %v9709_v9  ;;  %3896 = vmatpush.msra.mxu1 %v12337_v33  ;;  %v7177_v9 = vunpack.i.l.bf16 %v9999_v23 }
 0x41f   :  { %3925 = vmatpush.msrb.mxu2 %v12338_v28  ;;  %3955 = vmatpush.msrb.mxu3 %v9670_v14  ;;  %v10006_v14 = vpop.permute.xlu2 %7180 }
 0x420   :  { %3984 = vmatpush.msrb.mxu0 %v9660_v48  ;;  %6873 = vmatmul.msk.f32.gmra.mxu1 %vm3596_vm11, %v9897_v41  ;;  %v7172_v48 = vunpack.i.l.bf16 %v9983_v44 }
 0x421   :  { %6877 = vmatmul.msk.f32.gmra.mxu2 %vm3596_vm11, %v9897_v41  ;;  %3897 = vmatpush.msra.mxu1 %v12339_v15 }
 0x422   :  { %3926 = vmatpush.msrb.mxu2 %v9715_v50  ;;  %6881 = vmatmul.msk.f32.gmra.mxu3 %vm3596_vm11, %v9897_v41 }
 0x423   :  { %6884 = vmatmul.msk.f32.gmra.mxu0 %vm3596_vm11, %v9886_v10  ;;  %v10021_v50 = vpop.permute.xlu0 %7185 }
 0x428   :  { %6886 = vmatmul.msk.f32.vlgmr.msrb.gmra.mxu1 %vm3596_vm11, %v9856_v21 }
 0x429   :  { %6890 = vmatmul.msk.f32.vlgmr.msra.gmra.mxu2 %vm3596_vm11, %v9856_v21  ;;  %4010 = vmatpush.msrb.mxu1 %v9656_v38  ;;  %v7173_v38 = vunpack.i.h.bf16 %v9983_v44 }
 0x42a   :  { %4039 = vmatpush.msra.mxu2 %v9781_v34  ;;  %6894 = vmatmul.msk.f32.vlgmr.msra.gmra.mxu3 %vm3596_vm11, %v9856_v21  ;;  %v7196_v21 = vpop.permute.xlu2 %7195 }
 0x42b   :  { %6885 = vmatmul.msk.f32.gmra.mxu0 %vm3596_vm11, %v9897_v41  ;;  %4011 = vmatpush.msrb.mxu1 %v9667_v42  ;;  %v10013_v42 = vld [vmem:[%s12010_s5] sm:$0xff]  ;;  %v7198_v16 = vunpack.i.h.bf16 %v7196_v21  ;;  %v7197_v52 = vunpack.i.l.bf16 %v7196_v21 }
 0x42c   :  { %4040 = vmatpush.msra.mxu2 %v9749_v27  ;;  %4068 = vmatpush.msra.mxu3 %v9778_v29  ;;  %v4170_v27 = vsel %vm718_vm3, %v7172_v48, %v7173_v38  ;;  %v4163_v29 = vsel %vm718_vm3, %v7177_v9, %v7178_v45 }
 0x42d   :  { %4012 = vmatpush.msrb.mxu1 %v9741_v20  ;;  %v7183_v20 = vunpack.i.h.bf16 %v10006_v14  ;;  %v4164_v59 = vsel %vm718_vm3, %v7178_v45, %v7198_v16 }
 0x42e   :  { %4041 = vmatpush.msra.mxu2 %v9774_v63  ;;  %4069 = vmatpush.msra.mxu3 %v9746_v11  ;;  %v7182_v11 = vunpack.i.l.bf16 %v10006_v14  ;;  %v7187_v63 = vunpack.i.l.bf16 %v10021_v50 }
 0x42f   :  { %4013 = vmatpush.msrb.mxu1 %v9752_v32  ;;  %v7188_v32 = vunpack.i.h.bf16 %v10021_v50 }
 0x430   :  { %4042 = vmatpush.msra.mxu2 %v9797_v61  ;;  %4070 = vmatpush.msra.mxu3 %v9784_v30  ;;  %v4156_v34 = vsel %vm718_vm3, %v7182_v11, %v7183_v20  ;;  %v7191_v30 = vpop.permute.xlu1 %7190  ;;  %v10038_v61 = vld [vmem:[%s12010_s5 + $0x8] sm:$0xff] }
 0x431   :  { %6887 = vmatmul.msk.f32.gmra.mxu1 %vm3596_vm11, %v9872_v24  ;;  %6891 = vmatmul.msk.f32.gmra.mxu2 %vm3596_vm11, %v9872_v24  ;;  %v7192_v26 = vunpack.i.l.bf16 %v7191_v30 }
 0x432   :  { %4071 = vmatpush.msra.mxu3 %v9800_v35  ;;  %v4149_v35 = vsel %vm718_vm3, %v7187_v63, %v7188_v32  ;;  %v7211_v62 = vpop.permute.xlu2 %7210 }
 0x433   :  { %6895 = vmatmul.msk.f32.gmra.mxu3 %vm3596_vm11, %v9872_v24  ;;  %6898 = vmatmul.msk.f32.vlgmr.msra.gmra.mxu0 %vm3596_vm11, %v10013_v42  ;;  %v10049_v24 = vpop.permute.xlu0 %7200  ;;  %v7213_v13 = vunpack.i.h.bf16 %v7211_v62  ;;  %v7212_v47 = vunpack.i.l.bf16 %v7211_v62 }
 0x434   :  { %4233 = vmatpush.msra.mxu0 %v4170_v27  ;;  %v7202_v57 = vunpack.i.l.bf16 %v10049_v24  ;;  %v7203_v0 = vunpack.i.h.bf16 %v10049_v24 }
 0x435   :  { %v4150_v5 = vsel %vm718_vm3, %v7188_v32, %v7213_v13 }
 0x436   :  { %4234 = vmatpush.msra.mxu0 %v4163_v29  ;;  %v4165_v2 = vsel %vm718_vm3, %v7198_v16, %v7202_v57  ;;  %v4166_v55 = vsel %vm718_vm3, %v7202_v57, %v7203_v0 }
 0x438   :  { %4235 = vmatpush.msra.mxu0 %v4156_v34  ;;  %v7206_v1 = vpop.permute.xlu1 %7205 }
 0x439   :  { %6888 = vmatmul.msk.f32.gmra.mxu1 %vm3596_vm11, %v9886_v10  ;;  %6892 = vmatmul.msk.f32.gmra.mxu2 %vm3596_vm11, %v9886_v10  ;;  %v7208_v56 = vunpack.i.h.bf16 %v7206_v1  ;;  %v7207_v49 = vunpack.i.l.bf16 %v7206_v1 }
 0x43a   :  { %4236 = vmatpush.msra.mxu0 %v4149_v35  ;;  %v10092_v58 = vpop.permute.xlu2 %7225 }
 0x43b   :  { %6896 = vmatmul.msk.f32.gmra.mxu3 %vm3596_vm11, %v9886_v10  ;;  %6899 = vmatmul.msk.f32.gmra.mxu0 %vm3596_vm11, %v10038_v61  ;;  %v7193_v10 = vunpack.i.h.bf16 %v7191_v30  ;;  %v7216_v46 = vpop.permute.xlu0 %7215  ;;  %v4157_v40 = vsel %vm718_vm3, %v7183_v20, %v7207_v49  ;;  %v4158_v3 = vsel %vm718_vm3, %v7207_v49, %v7208_v56  ;;  %v4159_v51 = vsel %vm718_vm3, %v7208_v56, %v7212_v47  ;;  %v92_v56 = vld [vmem:[%s12010_s5 + $0x48] sm:$0xff] }
 0x43c   :  { %v7217_v37 = vunpack.i.l.bf16 %v7216_v46  ;;  %v7218_v22 = vunpack.i.h.bf16 %v7216_v46  ;;  %v7227_v28 = vunpack.i.l.bf16 %v10092_v58  ;;  %v7228_v23 = vunpack.i.h.bf16 %v10092_v58 }
 0x43d   :  { %v4172_v17 = vsel %vm718_vm3, %v7192_v26, %v7193_v10  ;;  %v4173_v4 = vsel %vm718_vm3, %v7193_v10, %v7197_v52 }
 0x43e   :  { %v4151_v6 = vsel %vm718_vm3, %v7213_v13, %v7217_v37  ;;  %v4152_v33 = vsel %vm718_vm3, %v7217_v37, %v7218_v22  ;;  %v4153_v48 = vsel %vm718_vm3, %v7218_v22, %v7228_v23 }
 0x440   :  { %v10083_v53 = vpop.permute.xlu1 %7220 }
 0x441   :  { %6889 = vmatmul.msk.f32.gmra.mxu1 %vm3596_vm11, %v9897_v41  ;;  %6893 = vmatmul.msk.f32.gmra.mxu2 %vm3596_vm11, %v9897_v41  ;;  %v7222_v12 = vunpack.i.l.bf16 %v10083_v53  ;;  %v7223_v31 = vunpack.i.h.bf16 %v10083_v53 }
 0x442   :  { %v7236_v50 = vpop.permute.xlu2 %7235 }
 0x443   :  { %6897 = vmatmul.msk.f32.gmra.mxu3 %vm3596_vm11, %v9897_v41  ;;  %6900 = vmatmul.msk.f32.gmra.mxu0 %vm3596_vm11, %v10054_v60  ;;  %v4171_v41 = vsel %vm718_vm3, %v7173_v38, %v7192_v26  ;;  %v4174_v15 = vsel %vm718_vm3, %v7197_v52, %v7222_v12  ;;  %v4167_v44 = vsel %vm718_vm3, %v7203_v0, %v7223_v31  ;;  %v7241_v14 = vpop.permute.xlu0 %7240  ;;  %v7237_v29 = vunpack.i.l.bf16 %v7236_v50 }
 0x444   :  { %v4160_v38 = vsel %vm718_vm3, %v7212_v47, %v7227_v28  ;;  %v7243_v20 = vunpack.i.h.bf16 %v7241_v14  ;;  %v7242_v11 = vunpack.i.l.bf16 %v7241_v14  ;;  %v7238_v30 = vunpack.i.h.bf16 %v7236_v50 }
 0x445   :  { %v4161_v26 = vsel %vm718_vm3, %v7227_v28, %v7237_v29 }
 0x446   :  { %v4175_v34 = vsel %vm718_vm3, %v7222_v12, %v7242_v11  ;;  %v4176_v35 = vsel %vm718_vm3, %v7242_v11, %v7243_v20  ;;  %v4162_v62 = vsel %vm718_vm3, %v7237_v29, %v7238_v30 }
 0x448   :  { %v7231_v45 = vpop.permute.xlu1 %7230 }
 0x449   :  { %6902 = vmatmul.msk.f32.vlgmr.msra.gmra.mxu1 %vm3596_vm11, %v10013_v42  ;;  %6906 = vmatmul.msk.f32.vlgmr.msrb.gmra.mxu2 %vm3596_vm11, %v10013_v42  ;;  %v7232_v27 = vunpack.i.l.bf16 %v7231_v45  ;;  %v7233_v63 = vunpack.i.h.bf16 %v7231_v45 }
 0x44a   :  { %4262 = vmatpush.msra.mxu1 %v4171_v41  ;;  %4291 = vmatpush.msrb.mxu2 %v4172_v17  ;;  %v10313_v7 = vpop.permute.xlu2 %4501 }
 0x44b   :  { %6901 = vmatmul.msk.f32.gmra.mxu0 %vm3596_vm11, %v10068_v36  ;;  %6910 = vmatmul.msk.f32.vlgmr.msrb.gmra.mxu3 %vm3596_vm11, %v10013_v42  ;;  %v7246_v32 = vpop.permute.xlu0 %7245  ;;  %v4168_v24 = vsel %vm718_vm3, %v7223_v31, %v7232_v27  ;;  %v4169_v10 = vsel %vm718_vm3, %v7232_v27, %v7233_v63 }
 0x44c   :  { %4263 = vmatpush.msra.mxu1 %v4164_v59  ;;  %4292 = vmatpush.msrb.mxu2 %v4165_v2  ;;  %v7247_v21 = vunpack.i.l.bf16 %v7246_v32  ;;  %v7248_v1 = vunpack.i.h.bf16 %v7246_v32 }
 0x44d   :  { %4320 = vmatpush.msrb.mxu3 %v4173_v4 }
 0x44e   :  { %4264 = vmatpush.msra.mxu1 %v4157_v40  ;;  %4293 = vmatpush.msrb.mxu2 %v4158_v3  ;;  %v4154_v57 = vsel %vm718_vm3, %v7228_v23, %v7247_v21  ;;  %v4155_v46 = vsel %vm718_vm3, %v7247_v21, %v7248_v1 }
 0x44f   :  { %4321 = vmatpush.msrb.mxu3 %v4166_v55 }
 0x450   :  { %4265 = vmatpush.msra.mxu1 %v4150_v5  ;;  %4294 = vmatpush.msrb.mxu2 %v4151_v6 }
 0x451   :  { %4322 = vmatpush.msrb.mxu3 %v4159_v51  ;;  %6903 = vmatmul.msk.f32.gmra.mxu1 %vm3596_vm11, %v10038_v61 }
 0x452   :  { %6907 = vmatmul.msk.f32.gmra.mxu2 %vm3596_vm11, %v10038_v61 }
 0x453   :  { %4323 = vmatpush.msrb.mxu3 %v4152_v33  ;;  %6914 = vmatmul.msk.f32.vlgmr.msrb.gmra.mxu0 %vm3596_vm11, %v10013_v42 }
 0x454   :  { %6911 = vmatmul.msk.f32.gmra.mxu3 %vm3596_vm11, %v10038_v61  ;;  %4349 = vmatpush.msrb.mxu0 %v4174_v15 }
 0x456   :  { %4350 = vmatpush.msrb.mxu0 %v4167_v44  ;;  %v10127_v9 = vpop.f32.mrf.mxu0 }
 0x458   :  { %4351 = vmatpush.msrb.mxu0 %v4160_v38 }
 0x459   :  { %6904 = vmatmul.msk.f32.gmra.mxu1 %vm3596_vm11, %v10054_v60 }
 0x45a   :  { %6908 = vmatmul.msk.f32.gmra.mxu2 %vm3596_vm11, %v10054_v60  ;;  %4352 = vmatpush.msrb.mxu0 %v4153_v48 }
 0x45b   :  { %6915 = vmatmul.msk.f32.gmra.mxu0 %vm3596_vm11, %v10038_v61 }
 0x45c   :  { %6912 = vmatmul.msk.f32.gmra.mxu3 %vm3596_vm11, %v10054_v60 }
 0x45e   :  { %v10144_v16 = vpop.f32.mrf.mxu0 }
 0x461   :  { %6905 = vmatmul.msk.f32.gmra.mxu1 %vm3596_vm11, %v10068_v36 }
 0x462   :  { %6909 = vmatmul.msk.f32.gmra.mxu2 %vm3596_vm11, %v10068_v36 }
 0x463   :  { %6916 = vmatmul.msk.f32.gmra.mxu0 %vm3596_vm11, %v10054_v60 }
 0x464   :  { %6913 = vmatmul.msk.f32.gmra.mxu3 %vm3596_vm11, %v10068_v36 }
 0x466   :  { %v10160_v49 = vpop.f32.mrf.mxu0 }
 0x469   :  { %6918 = vmatmul.msk.f32.vlgmr.msrb.gmra.mxu1 %vm3596_vm11, %v10013_v42 }
 0x46a   :  { %6922 = vmatmul.msk.f32.vlgmr.msra.gmra.mxu2 %vm3596_vm11, %v10013_v42  ;;  %4378 = vmatpush.msrb.mxu1 %v4175_v34 }
 0x46b   :  { %4407 = vmatpush.msra.mxu2 %v4176_v35  ;;  %6917 = vmatmul.msk.f32.gmra.mxu0 %vm3596_vm11, %v10068_v36 }
 0x46c   :  { %6926 = vmatmul.msk.f32.vlgmr.msra.gmra.mxu3 %vm3596_vm11, %v10013_v42  ;;  %4379 = vmatpush.msrb.mxu1 %v4168_v24  ;;  %v91_v42 = vld [vmem:[%s12010_s5 + $0x40] sm:$0xff] }
 0x46d   :  { %4408 = vmatpush.msra.mxu2 %v4169_v10  ;;  %4436 = vmatpush.msra.mxu3 %v7243_v20 }
 0x46e   :  { %4380 = vmatpush.msrb.mxu1 %v4161_v26  ;;  %v10179_v17 = vpop.f32.mrf.mxu0 }
 0x46f   :  { %4409 = vmatpush.msra.mxu2 %v4162_v62  ;;  %4437 = vmatpush.msra.mxu3 %v7233_v63 }
 0x470   :  { %4381 = vmatpush.msrb.mxu1 %v4154_v57 }
 0x471   :  { %4410 = vmatpush.msra.mxu2 %v4155_v46  ;;  %4438 = vmatpush.msra.mxu3 %v7238_v30 }
 0x472   :  { %6919 = vmatmul.msk.f32.gmra.mxu1 %vm3596_vm11, %v10038_v61  ;;  %6923 = vmatmul.msk.f32.gmra.mxu2 %vm3596_vm11, %v10038_v61 }
 0x473   :  { %4439 = vmatpush.msra.mxu3 %v7248_v1  ;;  %6930 = vmatmul.msk.f32.vlgmr.msra.gmra.mxu0 %vm3596_vm11, %v91_v42 }
 0x474   :  { %6927 = vmatmul.msk.f32.gmra.mxu3 %vm3596_vm11, %v10038_v61  ;;  %v93_v61 = vld [vmem:[%s12010_s5 + $0x50] sm:$0xff] }
 0x47a   :  { %6920 = vmatmul.msk.f32.gmra.mxu1 %vm3596_vm11, %v10054_v60  ;;  %6924 = vmatmul.msk.f32.gmra.mxu2 %vm3596_vm11, %v10054_v60 }
 0x47b   :  { %6931 = vmatmul.msk.f32.gmra.mxu0 %vm3596_vm11, %v92_v56 }
 0x47c   :  { %6928 = vmatmul.msk.f32.gmra.mxu3 %vm3596_vm11, %v10054_v60  ;;  %v94_v60 = vld [vmem:[%s12010_s5 + $0x58] sm:$0xff] }
 0x482   :  { %6921 = vmatmul.msk.f32.gmra.mxu1 %vm3596_vm11, %v10068_v36  ;;  %6925 = vmatmul.msk.f32.gmra.mxu2 %vm3596_vm11, %v10068_v36  ;;  %v10176_v41 = vpop.f32.mrf.mxu1 }
 0x483   :  { %6932 = vmatmul.msk.f32.gmra.mxu0 %vm3596_vm11, %v93_v61 }
 0x484   :  { %6929 = vmatmul.msk.f32.gmra.mxu3 %vm3596_vm11, %v10068_v36 }
 0x489   :  { %v10186_v52 = vpop.f32.mrf.mxu2 }
 0x48a   :  { %6934 = vmatmul.msk.f32.vlgmr.msra.gmra.mxu1 %vm3596_vm11, %v91_v42  ;;  %6938 = vmatmul.msk.f32.vlgmr.msrb.gmra.mxu2 %vm3596_vm11, %v91_v42  ;;  %v10190_v0 = vpop.f32.mrf.mxu1 }
 0x48b   :  { %6933 = vmatmul.msk.f32.gmra.mxu0 %vm3596_vm11, %v94_v60  ;;  %v10193_v13 = vpop.f32.mrf.mxu3 }
 0x48c   :  { %6942 = vmatmul.msk.f32.vlgmr.msrb.gmra.mxu3 %vm3596_vm11, %v91_v42  ;;  %v10196_v37 = vpop.f32.mrf.mxu0 }
 0x491   :  { %v10198_v36 = vpop.f32.mrf.mxu2 }
 0x492   :  { %6935 = vmatmul.msk.f32.gmra.mxu1 %vm3596_vm11, %v92_v56  ;;  %6939 = vmatmul.msk.f32.gmra.mxu2 %vm3596_vm11, %v92_v56  ;;  %v10203_v59 = vpop.f32.mrf.mxu1 }
 0x493   :  { %6946 = vmatmul.msk.f32.vlgmr.msrb.gmra.mxu0 %vm3596_vm11, %v91_v42  ;;  %v10205_v2 = vpop.f32.mrf.mxu3 }
 0x494   :  { %6943 = vmatmul.msk.f32.gmra.mxu3 %vm3596_vm11, %v92_v56 }
 0x497   :  { %v10208_v53 = vpop.f32.mrf.mxu0 }
 0x499   :  { %v10212_v4 = vpop.f32.mrf.mxu2 }
 0x49a   :  { %6936 = vmatmul.msk.f32.gmra.mxu1 %vm3596_vm11, %v93_v61  ;;  %6940 = vmatmul.msk.f32.gmra.mxu2 %vm3596_vm11, %v93_v61 }
 0x49b   :  { %6947 = vmatmul.msk.f32.gmra.mxu0 %vm3596_vm11, %v92_v56 }
 0x49c   :  { %6944 = vmatmul.msk.f32.gmra.mxu3 %vm3596_vm11, %v93_v61  ;;  %v10216_v40 = vpop.f32.mrf.mxu3 }
 0x49d   :  { %v10218_v3 = vpop.f32.mrf.mxu1 }
 0x4a0   :  { %v10220_v47 = vpop.f32.mrf.mxu0 }
 0x4a2   :  { %6937 = vmatmul.msk.f32.gmra.mxu1 %vm3596_vm11, %v94_v60  ;;  %6941 = vmatmul.msk.f32.gmra.mxu2 %vm3596_vm11, %v94_v60 }
 0x4a3   :  { %6948 = vmatmul.msk.f32.gmra.mxu0 %vm3596_vm11, %v93_v61 }
 0x4a4   :  { %6945 = vmatmul.msk.f32.gmra.mxu3 %vm3596_vm11, %v94_v60  ;;  %v10226_v22 = vpop.f32.mrf.mxu2 }
 0x4a5   :  { %v10228_v55 = vpop.f32.mrf.mxu3  ;;  %v10230_v12 = vpop.f32.mrf.mxu1 }
 0x4a6   :  { %12340 = vst [vmem:[#allocation58_spill] sm:$0xff] %v10230_v12 }
 0x4a8   :  { %v10232_v5 = vpop.f32.mrf.mxu0 }
 0x4aa   :  { %6950 = vmatmul.msk.f32.vlgmr.msrb.gmra.mxu1 %vm3596_vm11, %v91_v42  ;;  %6954 = vmatmul.msk.f32.vlgmr.msra.gmra.mxu2 %vm3596_vm11, %v91_v42 }
 0x4ab   :  { %6949 = vmatmul.msk.f32.gmra.mxu0 %vm3596_vm11, %v94_v60 }
 0x4ac   :  { %6958 = vmatmul.msk.f32.vlgmr.msra.gmra.mxu3 %vm3596_vm11, %v91_v42  ;;  %v10238_v6 = vpop.f32.mrf.mxu2 }
 0x4ad   :  { %12341 = vst [vmem:[#allocation53_spill] sm:$0xff] %v10238_v6  ;;  %v10240_v58 = vpop.f32.mrf.mxu3 }
 0x4ae   :  { %12342 = vst [vmem:[#allocation70_spill] sm:$0xff] %v10240_v58  ;;  %v10242_v51 = vpop.f32.mrf.mxu1 }
 0x4af   :  { %12343 = vst [vmem:[#allocation65_spill] sm:$0xff] %v10242_v51 }
 0x4b0   :  { %v10244_v31 = vpop.f32.mrf.mxu0 }
 0x4b2   :  { %6951 = vmatmul.msk.f32.gmra.mxu1 %vm3596_vm11, %v92_v56  ;;  %6955 = vmatmul.msk.f32.gmra.mxu2 %vm3596_vm11, %v92_v56 }
 0x4b4   :  { %6959 = vmatmul.msk.f32.gmra.mxu3 %vm3596_vm11, %v92_v56  ;;  %v10249_v33 = vpop.f32.mrf.mxu2 }
 0x4b5   :  { %12344 = vst [vmem:[#allocation106_spill] sm:$0xff] %v10249_v33 }
 0x4b6   :  { %v10251_v28 = vpop.f32.mrf.mxu1  ;;  %v10253_v15 = vpop.f32.mrf.mxu3 }
 0x4b7   :  { %12345 = vst [vmem:[#allocation76_spill] sm:$0xff] %v10251_v28  ;;  %v10329_v28 = vpop.permute.xlu1 %4506 }
 0x4b8   :  { %12346 = vst [vmem:[#allocation99_spill] sm:$0xff] %v10253_v15  ;;  %v10255_v44 = vpop.f32.mrf.mxu0 }
 0x4ba   :  { %6952 = vmatmul.msk.f32.gmra.mxu1 %vm3596_vm11, %v93_v61  ;;  %6956 = vmatmul.msk.f32.gmra.mxu2 %vm3596_vm11, %v93_v61 }
 0x4bc   :  { %6960 = vmatmul.msk.f32.gmra.mxu3 %vm3596_vm11, %v93_v61  ;;  %v10260_v23 = vpop.f32.mrf.mxu2 }
 0x4bd   :  { %12347 = vst [vmem:[#allocation130_spill] sm:$0xff] %v10260_v23 }
 0x4be   :  { %v10262_v38 = vpop.f32.mrf.mxu1  ;;  %v10264_v48 = vpop.f32.mrf.mxu3 }
 0x4bf   :  { %12348 = vst [vmem:[#allocation123_spill] sm:$0xff] %v10262_v38  ;;  %v4580_v23 = vpop.permute.xlu1 %4579 }
 0x4c0   :  { %12349 = vst [vmem:[#allocation4_spill] sm:$0xff] %v10264_v48  ;;  %v10266_v14 = vpop.f32.mrf.mxu0 }
 0x4c2   :  { %6953 = vmatmul.msk.f32.gmra.mxu1 %vm3596_vm11, %v94_v60  ;;  %6957 = vmatmul.msk.f32.gmra.mxu2 %vm3596_vm11, %v94_v60 }
 0x4c4   :  { %6961 = vmatmul.msk.f32.gmra.mxu3 %vm3596_vm11, %v94_v60  ;;  %v10271_v45 = vpop.f32.mrf.mxu2 }
 0x4c5   :  { %12350 = vst [vmem:[#allocation14_spill] sm:$0xff] %v10271_v45 }
 0x4c6   :  { %v10273_v50 = vpop.f32.mrf.mxu3  ;;  %v10275_v20 = vpop.f32.mrf.mxu1 }
 0x4c7   :  { %12351 = vst [vmem:[#allocation5_spill] sm:$0xff] %v10273_v50  ;;  %v4582_v50 = vpop.permute.xlu2 %4581 }
 0x4c8   :  { %v10277_v11 = vpop.f32.mrf.mxu0 }
 0x4cc   :  { %v3928_v27 = vpop.f32.mrf.mxu2 }
 0x4cd   :  { %v3929_v38 = vadd.f32 %v3928_v27, %v10186_v52 }
 0x4ce   :  { %v10279_v32 = vpop.f32.mrf.mxu1  ;;  %v3957_v63 = vpop.f32.mrf.mxu3 }
 0x4cf   :  { %v10332_v51 = vpop.permute.xlu2 %4491 }
 0x4d0   :  { %v10281_v29 = vpop.f32.mrf.mxu0 }
 0x4d5   :  { %v10283_v34 = vpop.f32.mrf.mxu2 }
 0x4d6   :  { %v3905_v30 = vpop.f32.mrf.mxu1 }
 0x4d7   :  { %v3960_v35 = vpop.f32.mrf.mxu3 }
 0x4d8   :  { %v10285_v21 = vpop.f32.mrf.mxu0  ;;  %v3961_v33 = vadd.f32 %v3960_v35, %v10205_v2 }
 0x4dd   :  { %v3934_v24 = vpop.f32.mrf.mxu2 }
 0x4de   :  { %v10287_v1 = vpop.f32.mrf.mxu1 }
 0x4df   :  { %v3963_v10 = vpop.f32.mrf.mxu3 }
 0x4e0   :  { %v3992_v26 = vpop.f32.mrf.mxu0  ;;  %v3964_v15 = vadd.f32 %v3963_v10, %v10216_v40 }
 0x4e5   :  { %v10289_v62 = vpop.f32.mrf.mxu2 }
 0x4e6   :  { %v10291_v57 = vpop.f32.mrf.mxu1 }
 0x4e7   :  { %12352 = vst [vmem:[#allocation15_spill] sm:$0xff] %v10291_v57  ;;  %v10293_v46 = vpop.f32.mrf.mxu3 }
 0x4e8   :  { %v10295_v42 = vpop.f32.mrf.mxu0 }
 0x4ed   :  { %v10297_v56 = vpop.f32.mrf.mxu2 }
 0x4ee   :  { %12353 = vst [vmem:[#allocation6_spill] sm:$0xff] %v10297_v56 }
 0x4ef   :  { %v10299_v61 = vpop.f32.mrf.mxu1  ;;  %v10301_v60 = vpop.f32.mrf.mxu3 }
 0x4f0   :  { %12354 = vst [vmem:[#allocation16_spill] sm:$0xff] %v10299_v61  ;;  %v10303_v39 = vpop.f32.mrf.mxu0 }
 0x4f1   :  { %12355 = vst [vmem:[#allocation8_spill] sm:$0xff] %v10301_v60 }
 0x4f2   :  { %12356 = vst [vmem:[#allocation17_spill] sm:$0xff] %v10303_v39 }
 0x4f5   :  { %v10305_v18 = vpop.f32.mrf.mxu2 }
 0x4f6   :  { %12357 = vst [vmem:[#allocation7_spill] sm:$0xff] %v10305_v18 }
 0x4f7   :  { %v10307_v8 = vpop.f32.mrf.mxu1  ;;  %v10309_v43 = vpop.f32.mrf.mxu3 }
 0x4f8   :  { %12358 = vst [vmem:[#allocation18_spill] sm:$0xff] %v10307_v8  ;;  %v10311_v25 = vpop.f32.mrf.mxu0 }
 0x4f9   :  { %12359 = vst [vmem:[#allocation11_spill] sm:$0xff] %v10309_v43 }
 0x4fa   :  { %12360 = vst [vmem:[#allocation21_spill] sm:$0xff] %v10311_v25  ;;  %v10368_v25 = vpop.permute.xlu1 %4583 }
 0x4fd   :  { %v10315_v54 = vpop.f32.mrf.mxu2 }
 0x4fe   :  { %12361 = vst [vmem:[#allocation9_spill] sm:$0xff] %v10315_v54  ;;  %v10340_v54 = vpop.permute.xlu0 %4577 }
 0x4ff   :  { %v10317_v19 = vpop.f32.mrf.mxu1  ;;  %v10319_v56 = vpop.f32.mrf.mxu3  ;;  %v10345_v27 = vsel %vm142_vm0, %v10340_v54, %v4580_v23 }
 0x500   :  { %12362 = vst [vmem:[#allocation20_spill] sm:$0xff] %v10317_v19  ;;  %v4244_v6 = vpop.f32.mrf.mxu0  ;;  %v3958_v19 = vadd.f32 %v3957_v63, %v10193_v13  ;;  %v10348_v13 = vsel %vm142_vm0, %v4580_v23, %v4582_v50 }
 0x501   :  { %12363 = vst [vmem:[#allocation12_spill] sm:$0xff] %v10319_v56 }
 0x505   :  { %v10321_v60 = vpop.f32.mrf.mxu2 }
 0x506   :  { %12364 = vst [vmem:[#allocation22_spill] sm:$0xff] %v10321_v60  ;;  %v10364_v43 = vpop.permute.xlu0 %4496 }
 0x507   :  { %v10323_v58 = vpop.f32.mrf.mxu3  ;;  %v10325_v45 = vpop.f32.mrf.mxu1 }
 0x508   :  { %12365 = vst [vmem:[#allocation24_spill] sm:$0xff] %v10323_v58  ;;  %v10327_v8 = vpop.f32.mrf.mxu0 }
 0x50d   :  { %v4296_v61 = vpop.f32.mrf.mxu2 }
 0x50e   :  { %v4455_v56 = vadd.f32 %v4296_v61, %v3929_v38 }
 0x50f   :  { %v10335_v48 = vpop.f32.mrf.mxu1  ;;  %v4325_v57 = vpop.f32.mrf.mxu3 }
 0x510   :  { %v4511_v60 = vadd.f32 %v10332_v51, %v4455_v56  ;;  %v4456_v58 = vadd.f32 %v4325_v57, %v3958_v19  ;;  %v10338_v12 = vpop.f32.mrf.mxu0 }
 0x512   :  { %v4543_v18 = vmax.f32 %v4511_v60, 0.0  ;;  %v4512_v52 = vadd.f32 %v10332_v51, %v4456_v58 }
 0x514   :  { %v4544_v38 = vmax.f32 %v4512_v52, 0.0  ;;  %v10351_v56 = vmul.f32 %v10345_v27, %v4543_v18  ;;  %v3935_v52 = vadd.f32 %v3934_v24, %v10212_v4 }
 0x515   :  { %v4299_v63 = vpop.f32.mrf.mxu2 }
 0x516   :  { %12366 = vst [vmem:[#allocation32_spill] sm:$0xff] %v10351_v56  ;;  %v10354_v19 = vmul.f32 %v10348_v13, %v4544_v38  ;;  %v3906_v38 = vadd.f32 %v3905_v30, %v10203_v59  ;;  %v3932_v59 = vadd.f32 %v10283_v34, %v10198_v36  ;;  %v3880_v30 = vadd.f32 %v10277_v11, %v10179_v17 }
 0x517   :  { %v4273_v57 = vpop.f32.mrf.mxu1  ;;  %v4328_v61 = vpop.f32.mrf.mxu3  ;;  %v3938_v36 = vadd.f32 %v10289_v62, %v10226_v22  ;;  %v3990_v11 = vadd.f32 %v10285_v21, %v10208_v53  ;;  %v3967_v34 = vadd.f32 %v10293_v46, %v10228_v55  ;;  %v3996_v53 = vadd.f32 %v10295_v42, %v10232_v5 }
 0x518   :  { %12367 = vst [vmem:[#allocation25_spill] sm:$0xff] %v10354_v19  ;;  %v4357_v60 = vpop.f32.mrf.mxu0  ;;  %v10358_v58 = vpack.i.bf16 %v10354_v19, %v10351_v56  ;;  %v4464_v23 = vadd.f32 %v4328_v61, %v3961_v33  ;;  %v3993_v56 = vadd.f32 %v3992_v26, %v10220_v47  ;;  %v3877_v33 = vadd.f32 %v10266_v14, %v10160_v49  ;;  %v4576_v5 = vpop.permute.xlu1 %4575 }
 0x519   :  { %v4470_v4 = vadd.f32 %v4273_v57, %v3906_v38  ;;  %v4463_v49 = vadd.f32 %v4299_v63, %v3932_v59  ;;  %v4465_v42 = vadd.f32 %v4357_v60, %v3990_v11  ;;  %v4477_v59 = vadd.f32 %v10327_v8, %v3880_v30 }
 0x51a   :  { %12368 = vst [vmem:[#allocation28_spill] sm:$0xff] %v10358_v58  ;;  %7250 = vrot.lane.b32.xlu2 %v10358_v58, %s7430_s25  ;;  %v4520_v2 = vadd.f32 %v10364_v43, %v4464_v23  ;;  %v4469_v47 = vadd.f32 %v4244_v6, %v3877_v33  ;;  %v10382_v23 = vsel %vm142_vm0, %v4582_v50, %v10368_v25 }
 0x51b   :  { %v4526_v17 = vadd.f32 %v10313_v7, %v4470_v4  ;;  %v3909_v50 = vadd.f32 %v10287_v1, %v10218_v3  ;;  %v4519_v21 = vadd.f32 %v10364_v43, %v4463_v49  ;;  %v10425_v4 = vsel %vm142_vm0, %v4576_v5, %v10340_v54 }
 0x51c   :  { %v4552_v14 = vmax.f32 %v4520_v2, 0.0  ;;  %v3871_v54 = vadd.f32 %v10244_v31, %v10127_v9  ;;  %v3900_v8 = vadd.f32 %v10275_v20, %v10176_v41  ;;  %v3903_v9 = vadd.f32 %v10279_v32, %v10190_v0 }
 0x51d   :  { %v4302_v18 = vpop.f32.mrf.mxu2  ;;  %v4558_v46 = vmax.f32 %v4526_v17, 0.0  ;;  %v4533_v41 = vadd.f32 %v10329_v28, %v4477_v59 }
 0x51e   :  { %v4471_v39 = vadd.f32 %v4302_v18, %v3935_v52  ;;  %v10407_v3 = vmul.f32 %v10348_v13, %v4552_v14 }
 0x51f   :  { %v4276_v35 = vpop.f32.mrf.mxu1  ;;  %v4331_v19 = vpop.f32.mrf.mxu3  ;;  %v10440_v30 = vmul.f32 %v10425_v4, %v4558_v46 }
 0x520   :  { %v4527_v24 = vadd.f32 %v10313_v7, %v4471_v39  ;;  %v4472_v61 = vadd.f32 %v4331_v19, %v3964_v15  ;;  %v4360_v58 = vpop.f32.mrf.mxu0  ;;  %v3987_v15 = vadd.f32 %v10281_v29, %v10196_v37  ;;  %v4525_v19 = vadd.f32 %v10313_v7, %v4469_v47 }
 0x521   :  { %v4473_v40 = vadd.f32 %v4360_v58, %v3993_v56  ;;  %v4478_v38 = vadd.f32 %v4276_v35, %v3909_v50  ;;  %v4551_v35 = vmax.f32 %v4519_v21, 0.0  ;;  %v3874_v50 = vadd.f32 %v10255_v44, %v10144_v16  ;;  %v12370_v44 = vld [vmem:[#allocation21_spill] sm:$0xff] }
 0x522   :  { %v4559_v10 = vmax.f32 %v4527_v24, 0.0  ;;  %v4528_v26 = vadd.f32 %v10313_v7, %v4472_v61  ;;  %v4574_v24 = vpop.permute.xlu0 %4573  ;;  %v4557_v61 = vmax.f32 %v4525_v19, 0.0  ;;  %v4457_v60 = vadd.f32 %v10338_v12, %v3987_v15 }
 0x523   :  { %v4529_v39 = vadd.f32 %v10313_v7, %v4473_v40  ;;  %v10443_v49 = vsel %vm142_vm0, %v4574_v24, %v4576_v5  ;;  %v4521_v12 = vadd.f32 %v10364_v43, %v4465_v42  ;;  %v4534_v14 = vadd.f32 %v10329_v28, %v4478_v38  ;;  %v12371_v42 = vld [vmem:[#allocation99_spill] sm:$0xff] }
 0x524   :  { %v4560_v6 = vmax.f32 %v4528_v26, 0.0  ;;  %v10398_v37 = vmul.f32 %v10345_v27, %v4559_v10  ;;  %v10452_v31 = vmul.f32 %v10443_v49, %v4557_v61  ;;  %v10460_v17 = vmul.f32 %v10345_v27, %v4551_v35  ;;  %v12372_v38 = vld [vmem:[#allocation11_spill] sm:$0xff]  ;;  %v12373_v35 = vld [vmem:[#allocation106_spill] sm:$0xff] }
 0x525   :  { %v4561_v63 = vmax.f32 %v4529_v39, 0.0  ;;  %v4305_v56 = vpop.f32.mrf.mxu2 }
 0x526   :  { %v10401_v22 = vmul.f32 %v10348_v13, %v4560_v6  ;;  %v4479_v29 = vadd.f32 %v4305_v56, %v3938_v36  ;;  %v4513_v36 = vadd.f32 %v10332_v51, %v4457_v60  ;;  %v4553_v56 = vmax.f32 %v4521_v12, 0.0 }
 0x527   :  { %v10410_v55 = vmul.f32 %v10382_v23, %v4561_v63  ;;  %v4334_v1 = vpop.f32.mrf.mxu3  ;;  %v10412_v62 = vpop.f32.mrf.mxu1  ;;  %v10476_v63 = vpack.i.bf16 %v10440_v30, %v10452_v31 }
 0x528   :  { %v4535_v57 = vadd.f32 %v10329_v28, %v4479_v29  ;;  %v4480_v58 = vadd.f32 %v4334_v1, %v3967_v34  ;;  %v4363_v52 = vpop.f32.mrf.mxu0  ;;  %v10417_v18 = vpack.i.bf16 %v10401_v22, %v10398_v37  ;;  %v4462_v34 = vadd.f32 %v10335_v48, %v3903_v9 }
 0x529   :  { %v4481_v2 = vadd.f32 %v4363_v52, %v3996_v53  ;;  %v10421_v33 = vpack.i.bf16 %v10410_v55, %v10407_v3  ;;  %v12369_v53 = vld [vmem:[#allocation17_spill] sm:$0xff]  ;;  %v4461_v48 = vadd.f32 %v12370_v44, %v3874_v50  ;;  %v4545_v21 = vmax.f32 %v4513_v36, 0.0 }
 0x52a   :  { %v4536_v40 = vadd.f32 %v10329_v28, %v4480_v58  ;;  %7260 = vrot.lane.b32.xlu2 %v10417_v18, %s7430_s25  ;;  %v4567_v47 = vmax.f32 %v4535_v57, 0.0  ;;  %v4453_v16 = vadd.f32 %v12369_v53, %v3871_v54  ;;  %v4518_v46 = vadd.f32 %v10364_v43, %v4462_v34  ;;  %v12376_v36 = vld [vmem:[#allocation9_spill] sm:$0xff]  ;;  %v12377_v53 = vld [vmem:[#allocation58_spill] sm:$0xff] }
 0x52b   :  { %v4537_v10 = vadd.f32 %v10329_v28, %v4481_v2  ;;  %7255 = vrot.lane.b32.xlu1 %v10421_v33, %s7430_s25  ;;  %v10497_v57 = vmul.f32 %v10382_v23, %v4553_v56  ;;  %v4077_v2 = vadd.f32 %v12372_v38, %v12371_v42  ;;  %v4517_v24 = vadd.f32 %v10364_v43, %v4461_v48 }
 0x52c   :  { %v4568_v26 = vmax.f32 %v4536_v40, 0.0  ;;  %v10463_v6 = vmul.f32 %v10345_v27, %v4567_v47  ;;  %v4566_v27 = vmax.f32 %v4534_v14, 0.0  ;;  %v4509_v5 = vadd.f32 %v10332_v51, %v4453_v16  ;;  %v12374_v47 = vld [vmem:[#allocation7_spill] sm:$0xff] }
 0x52d   :  { %v4569_v39 = vmax.f32 %v4537_v10, 0.0  ;;  %v10447_v15 = vpop.f32.mrf.mxu2  ;;  %v10510_v59 = vmul.f32 %v10382_v23, %v4545_v21  ;;  %v4048_v10 = vadd.f32 %v12374_v47, %v12373_v35  ;;  %v4549_v9 = vmax.f32 %v4517_v24, 0.0  ;;  %v12378_v16 = vld [vmem:[#allocation15_spill] sm:$0xff]  ;;  %v12380_v21 = vld [vmem:[#allocation12_spill] sm:$0xff] }
 0x52e   :  { %v10456_v20 = vmul.f32 %v10348_v13, %v4568_v26  ;;  %v4454_v13 = vadd.f32 %v10325_v45, %v3900_v8  ;;  %v4565_v45 = vmax.f32 %v4533_v41, 0.0  ;;  %v10500_v58 = vmul.f32 %v10425_v4, %v4566_v27  ;;  %v12375_v41 = vld [vmem:[#allocation130_spill] sm:$0xff] }
 0x52f   :  { %v10466_v11 = vmul.f32 %v10382_v23, %v4569_v39  ;;  %v4386_v0 = vpop.f32.mrf.mxu1  ;;  %v10468_v32 = vpop.f32.mrf.mxu3  ;;  %v4550_v8 = vmax.f32 %v4518_v46, 0.0  ;;  %v10516_v12 = vpack.i.bf16 %v10510_v59, %v10497_v57  ;;  %v4541_v39 = vmax.f32 %v4509_v5, 0.0  ;;  %v12382_v5 = vld [vmem:[#allocation16_spill] sm:$0xff] }
 0x530   :  { %v10484_v29 = vpack.i.bf16 %v10456_v20, %v10463_v6  ;;  %v4510_v1 = vadd.f32 %v10332_v51, %v4454_v13  ;;  %v10507_v61 = vmul.f32 %v10443_v49, %v4565_v45  ;;  %v4051_v50 = vadd.f32 %v12376_v36, %v12375_v41  ;;  %v12379_v45 = vld [vmem:[#allocation4_spill] sm:$0xff] }
 0x531   :  { %v10480_v19 = vpack.i.bf16 %v10460_v17, %v10466_v11  ;;  %v10532_v34 = vmul.f32 %v10425_v4, %v4550_v8  ;;  %v4016_v44 = vadd.f32 %v12378_v16, %v12377_v53  ;;  %v10538_v48 = vmul.f32 %v10443_v49, %v4541_v39  ;;  %v4588_v53 = vpop.permute.xlu0 %4587 }
 0x532   :  { %7285 = vrot.lane.b32.xlu2 %v10476_v63, %s7430_s25  ;;  %v4542_v54 = vmax.f32 %v4510_v1, 0.0  ;;  %v10520_v14 = vpack.i.bf16 %v10500_v58, %v10507_v61  ;;  %v4080_v1 = vadd.f32 %v12380_v21, %v12379_v45  ;;  %v10545_v38 = vmul.f32 %v10443_v49, %v4549_v9 }
 0x533   :  { %7265 = vrot.lane.b32.xlu0 %v10480_v19, %s7430_s25  ;;  %7275 = vrot.lane.b32.xlu1 %v10484_v29, %s7430_s25 }
 0x534   :  { %v10529_v13 = vmul.f32 %v10425_v4, %v4542_v54  ;;  %v12383_v4 = vld [vmem:[#allocation123_spill] sm:$0xff]  ;;  %v12386_v54 = vld [vmem:[#allocation18_spill] sm:$0xff] }
 0x535   :  { %v4415_v52 = vpop.f32.mrf.mxu2 }
 0x536   :  { %v4467_v23 = vadd.f32 %v4415_v52, %v4048_v10  ;;  %v12381_v52 = vld [vmem:[#allocation65_spill] sm:$0xff]  ;;  %v12385_v10 = vld [vmem:[#allocation76_spill] sm:$0xff]  ;;  %v10555_v41 = vpack.i.bf16 %v10529_v13, %v10538_v48 }
 0x537   :  { %v4389_v40 = vpop.f32.mrf.mxu1  ;;  %v4444_v60 = vpop.f32.mrf.mxu3  ;;  %v4019_v42 = vadd.f32 %v12382_v5, %v12381_v52  ;;  %v4022_v8 = vadd.f32 %v12386_v54, %v12385_v10  ;;  %v12389_v52 = vld [vmem:[#allocation70_spill] sm:$0xff]  ;;  %v12390_v5 = vld [vmem:[#allocation8_spill] sm:$0xff] }
 0x538   :  { %v4468_v26 = vadd.f32 %v4444_v60, %v4077_v2  ;;  %v12384_v2 = vld [vmem:[#allocation20_spill] sm:$0xff]  ;;  %v4523_v60 = vadd.f32 %v10364_v43, %v4467_v23 }
 0x539   :  { %v4025_v24 = vadd.f32 %v12384_v2, %v12383_v4  ;;  %v4466_v36 = vadd.f32 %v4386_v0, %v4019_v42  ;;  %v4474_v45 = vadd.f32 %v4389_v40, %v4022_v8  ;;  %v12387_v0 = vld [vmem:[#allocation14_spill] sm:$0xff]  ;;  %v4074_v42 = vadd.f32 %v12390_v5, %v12389_v52  ;;  %v4586_v4 = vpop.permute.xlu2 %4585 }
 0x53a   :  { %v4524_v56 = vadd.f32 %v10364_v43, %v4468_v26  ;;  %v4555_v16 = vmax.f32 %v4523_v60, 0.0  ;;  %v12392_v60 = vld [vmem:[#allocation24_spill] sm:$0xff] }
 0x53b   :  { %7270 = vrot.lane.b32.xlu0 %v10516_v12, %s7430_s25  ;;  %7280 = vrot.lane.b32.xlu1 %v10520_v14, %s7430_s25 }
 0x53c   :  { %v4556_v49 = vmax.f32 %v4524_v56, 0.0  ;;  %v12388_v56 = vld [vmem:[#allocation22_spill] sm:$0xff] }
 0x53d   :  { %v4418_v27 = vpop.f32.mrf.mxu2 }
 0x53e   :  { %v4475_v46 = vadd.f32 %v4418_v27, %v4051_v50  ;;  %v10559_v50 = vpack.i.bf16 %v10532_v34, %v10545_v38  ;;  %v4458_v27 = vadd.f32 %v10412_v62, %v4016_v44  ;;  %v4522_v62 = vadd.f32 %v10364_v43, %v4466_v36 }
 0x53f   :  { %v4392_v35 = vpop.f32.mrf.mxu1  ;;  %v4447_v47 = vpop.f32.mrf.mxu3  ;;  %v10572_v44 = vmul.f32 %v4588_v53, %v4556_v49  ;;  %v12393_v49 = vld [vmem:[#allocation53_spill] sm:$0xff] }
 0x540   :  { %v4531_v26 = vadd.f32 %v10313_v7, %v4475_v46  ;;  %v4476_v39 = vadd.f32 %v4447_v47, %v4080_v1  ;;  %v4482_v9 = vadd.f32 %v4392_v35, %v4025_v24  ;;  %v4054_v1 = vadd.f32 %v12388_v56, %v12387_v0  ;;  %v12391_v24 = vld [vmem:[#allocation5_spill] sm:$0xff] }
 0x541   :  { %v4083_v35 = vadd.f32 %v12392_v60, %v12391_v24  ;;  %v4595_v47 = vsel %vm142_vm0, %v4586_v4, %v4588_v53  ;;  %v4514_v8 = vadd.f32 %v10332_v51, %v4458_v27  ;;  %v4460_v0 = vadd.f32 %v10468_v32, %v4074_v42 }
 0x542   :  { %v4532_v23 = vadd.f32 %v10313_v7, %v4476_v39  ;;  %v4563_v21 = vmax.f32 %v4531_v26, 0.0  ;;  %v4538_v40 = vadd.f32 %v10329_v28, %v4482_v9  ;;  %v10581_v26 = vmul.f32 %v4595_v47, %v4555_v16  ;;  %v12394_v9 = vld [vmem:[#allocation6_spill] sm:$0xff] }
 0x543   :  { %7290 = vrot.lane.b32.xlu0 %v10559_v50, %s7430_s25  ;;  %7295 = vrot.lane.b32.xlu1 %v10555_v41, %s7430_s25  ;;  %v4530_v39 = vadd.f32 %v10313_v7, %v4474_v45  ;;  %v4594_v32 = vsel %vm142_vm0, %v10368_v25, %v4586_v4  ;;  %v4516_v42 = vadd.f32 %v10332_v51, %v4460_v0  ;;  %v12402_v0 = vld [vmem:[#allocation61_spill] sm:$0xff] }
 0x544   :  { %v4564_v46 = vmax.f32 %v4532_v23, 0.0  ;;  %v10584_v43 = vmul.f32 %v4595_v47, %v4563_v21  ;;  %v4045_v23 = vadd.f32 %v12394_v9, %v12393_v49  ;;  %v4570_v5 = vmax.f32 %v4538_v40, 0.0 }
 0x545   :  { %v4421_v2 = vpop.f32.mrf.mxu2  ;;  %v7299_v16 = vpack.i.bf16 %v10572_v44, %v10581_v26 }
 0x546   :  { %v10578_v10 = vmul.f32 %v4588_v53, %v4564_v46  ;;  %v4483_v54 = vadd.f32 %v4421_v2, %v4054_v1  ;;  %v4554_v46 = vmax.f32 %v4522_v62, 0.0  ;;  %v4459_v7 = vadd.f32 %v10447_v15, %v4045_v23  ;;  %v12395_v23 = vld [vmem:[#allocation28_spill] sm:$0xff] }
 0x547   :  { %v4450_v36 = vpop.f32.mrf.mxu3  ;;  %v4546_v1 = vmax.f32 %v4514_v8, 0.0  ;;  %v4562_v2 = vmax.f32 %v4530_v39, 0.0  ;;  %v10603_v24 = vmul.f32 %v4594_v32, %v4570_v5  ;;  %v4548_v8 = vmax.f32 %v4516_v42, 0.0 }
 0x548   :  { %v4539_v56 = vadd.f32 %v10329_v28, %v4483_v54  ;;  %v4484_v52 = vadd.f32 %v4450_v36, %v4083_v35  ;;  %v7304_v27 = vpack.i.bf16 %v10578_v10, %v10584_v43  ;;  %v10601_v40 = vmul.f32 %v4594_v32, %v4554_v46 }
 0x549   :  { %v4515_v15 = vadd.f32 %v10332_v51, %v4459_v7  ;;  %v10610_v35 = vmul.f32 %v4594_v32, %v4546_v1  ;;  %v10612_v54 = vmul.f32 %v4594_v32, %v4562_v2  ;;  %v10623_v51 = vmul.f32 %v4588_v53, %v4548_v8 }
 0x54a   :  { %v4571_v45 = vmax.f32 %v4539_v56, 0.0  ;;  %v4540_v21 = vadd.f32 %v10329_v28, %v4484_v52  ;;  %v5683_v52 = vld [vmem:[%s12011_s8 + $0x18] sm:$0xff] }
 0x54b   :  { %7305 = vrot.lane.b32.xlu0 %v7304_v27, %s7430_s25  ;;  %7300 = vrot.lane.b32.xlu1 %v7299_v16, %s7430_s25  ;;  %v7319_v4 = vpack.i.bf16 %v10612_v54, %v10603_v24  ;;  %v7324_v39 = vpack.i.bf16 %v10610_v35, %v10601_v40  ;;  %v4547_v36 = vmax.f32 %v4515_v15, 0.0 }
 0x54c   :  { %v4572_v62 = vmax.f32 %v4540_v21, 0.0  ;;  %v10606_v60 = vmul.f32 %v4595_v47, %v4571_v45 }
 0x54d   :  { %v10625_v49 = vmul.f32 %v4595_v47, %v4547_v36  ;;  %v12401_v47 = vld [vmem:[#allocation41_spill] sm:$0xff]  ;;  %v12403_v36 = vld [vmem:[#allocation46_spill] sm:$0xff] }
 0x54e   :  { %v10608_v28 = vmul.f32 %v4588_v53, %v4572_v62  ;;  %v12400_v53 = vld [vmem:[#allocation30_spill] sm:$0xff] }
 0x54f   :  { %v7314_v9 = vpack.i.bf16 %v10623_v51, %v10625_v49 }
 0x550   :  { %v7309_v25 = vpack.i.bf16 %v10608_v28, %v10606_v60 }
 0x552   :  { %7310 = vrot.lane.b32.xlu2 %v7309_v25, %s7430_s25 }
 0x553   :  { %7320 = vrot.lane.b32.xlu0 %v7319_v4, %s7430_s25  ;;  %7325 = vrot.lane.b32.xlu1 %v7324_v39, %s7430_s25 }
 0x55a   :  { %7315 = vrot.lane.b32.xlu2 %v7314_v9, %s7430_s25 }
 0x55b   :  { %7335 = vrot.lane.b32.xlu0 %v10417_v18, %s7431_s0  ;;  %7340 = vrot.lane.b32.xlu1 %v10480_v19, %s7431_s0  ;;  %v5680_v18 = vld [vmem:[%s12011_s8] sm:$0xff]  ;;  %v12398_v19 = vld [vmem:[#allocation2_spill] sm:$0xff] }
 0x562   :  { %7330 = vrot.lane.b32.xlu2 %v10484_v29, %s7431_s0  ;;  %v5681_v29 = vld [vmem:[%s12011_s8 + $0x8] sm:$0xff] }
 0x563   :  { %7350 = vrot.lane.b32.xlu0 %v12395_v23, %s7431_s0  ;;  %7355 = vrot.lane.b32.xlu1 %v10516_v12, %s7431_s0  ;;  %v5682_v12 = vld [vmem:[%s12011_s8 + $0x10] sm:$0xff] }
 0x56a   :  { %7345 = vrot.lane.b32.xlu2 %v10421_v33, %s7431_s0  ;;  %v12396_v33 = vld [vmem:[#allocation57_spill] sm:$0xff] }
 0x56b   :  { %7365 = vrot.lane.b32.xlu0 %v10476_v63, %s7431_s0  ;;  %7370 = vrot.lane.b32.xlu1 %v10559_v50, %s7431_s0  ;;  %v12397_v63 = vld [vmem:[#allocation13_spill] sm:$0xff] }
 0x572   :  { %7360 = vrot.lane.b32.xlu2 %v10520_v14, %s7431_s0 }
 0x573   :  { %7390 = vrot.lane.b32.xlu0 %v7309_v25, %s7431_s0  ;;  %7380 = vrot.lane.b32.xlu1 %v7304_v27, %s7431_s0 }
 0x574   :  { %v10671_v14 = vpop.permute.xlu2 %7250 }
 0x575   :  { %v7253_v15 = vunpack.i.h.bf16 %v10671_v14  ;;  %v7252_v8 = vunpack.i.l.bf16 %v10671_v14  ;;  %v10715_v14 = vld [vmem:[%s12012_s7 + $0x20] sm:$0xff] }
 0x57a   :  { %7375 = vrot.lane.b32.xlu2 %v10555_v41, %s7431_s0  ;;  %v12399_v41 = vld [vmem:[#allocation37_spill] sm:$0xff] }
 0x57b   :  { %7395 = vrot.lane.b32.xlu0 %v7314_v9, %s7431_s0  ;;  %7400 = vrot.lane.b32.xlu1 %v7319_v4, %s7431_s0 }
 0x582   :  { %7385 = vrot.lane.b32.xlu2 %v7299_v16, %s7431_s0 }
 0x583   :  { %5686 = vperm.xlu0 %7086, %v5680_v18   ;;  %5772 = vrot.lane.b32.xlu1 %v12396_v33, %s7431_s0 }
 0x584   :  { %v7261_v50 = vpop.permute.xlu2 %7260 }
 0x585   :  { %v7263_v5 = vunpack.i.h.bf16 %v7261_v50  ;;  %v7262_v27 = vunpack.i.l.bf16 %v7261_v50 }
 0x587   :  { %v4748_v4 = vsel %vm142_vm0, %v7262_v27, %v7263_v5 }
 0x58a   :  { %7405 = vrot.lane.b32.xlu2 %v7324_v39, %s7431_s0 }
 0x58b   :  { %5768 = vrot.lane.b32.xlu0 %v12397_v63, %s7431_s0  ;;  %5770 = vrot.lane.b32.xlu1 %v12398_v19, %s7431_s0 }
 0x58c   :  { %v7286_v46 = vpop.permute.xlu2 %7285 }
 0x58d   :  { %v7288_v18 = vunpack.i.h.bf16 %v7286_v46 }
 0x592   :  { %5774 = vrot.lane.b32.xlu2 %v12399_v41, %s7431_s0  ;;  %v7287_v41 = vunpack.i.l.bf16 %v7286_v46 }
 0x593   :  { %5691 = vperm.xlu0 %7086, %v5681_v29   ;;  %5696 = vperm.xlu1 %7087, %v5682_v12   ;;  %v4734_v12 = vsel %vm142_vm0, %v7252_v8, %v7253_v15 }
 0x59a   :  { %5776 = vrot.lane.b32.xlu2 %v12400_v53, %s7431_s0 }
 0x59b   :  { %5780 = vrot.lane.b32.xlu0 %v12401_v47, %s7431_s0  ;;  %5782 = vrot.lane.b32.xlu1 %v12402_v0, %s7431_s0 }
 0x59d   :  { %v10681_v56 = vpop.permute.xlu1 %7255 }
 0x59e   :  { %v7258_v45 = vunpack.i.h.bf16 %v10681_v56  ;;  %v7257_v25 = vunpack.i.l.bf16 %v10681_v56 }
 0x5a0   :  { %v4749_v39 = vsel %vm142_vm0, %v7263_v5, %v7258_v45 }
 0x5a2   :  { %5701 = vperm.xlu2 %7088, %v5683_v52  }
 0x5a5   :  { %v10686_v16 = vpop.permute.xlu0 %7265  ;;  %v7276_v7 = vpop.permute.xlu1 %7275 }
 0x5a6   :  { %v7267_v21 = vunpack.i.l.bf16 %v10686_v16  ;;  %v7278_v1 = vunpack.i.h.bf16 %v7276_v7  ;;  %v7277_v2 = vunpack.i.l.bf16 %v7276_v7  ;;  %v7268_v32 = vunpack.i.h.bf16 %v10686_v16 }
 0x5a8   :  { %v4755_v42 = vsel %vm142_vm0, %v7277_v2, %v7278_v1  ;;  %v4756_v62 = vsel %vm142_vm0, %v7278_v1, %v7267_v21  ;;  %v4741_v23 = vsel %vm142_vm0, %v7268_v32, %v7257_v25  ;;  %v4746_v1 = vsel %vm142_vm0, %v7287_v41, %v7288_v18 }
 0x5a9   :  { %4874 = vmatpush.msrb.mxu2 %v4755_v42  ;;  %4903 = vmatpush.msrb.mxu3 %v4756_v62  ;;  %v4747_v62 = vsel %vm142_vm0, %v7288_v18, %v7262_v27 }
 0x5aa   :  { %5778 = vrot.lane.b32.xlu2 %v12403_v36, %s7431_s0 }
 0x5ab   :  { %4875 = vmatpush.msrb.mxu2 %v4748_v4  ;;  %4904 = vmatpush.msrb.mxu3 %v4749_v39  ;;  %v10739_v4 = vld [vmem:[%s12012_s7 + $0x28] sm:$0xff] }
 0x5ac   :  { %v10704_v9 = vpop.permute.xlu2 %7310 }
 0x5ad   :  { %v7313_v33 = vunpack.i.h.bf16 %v10704_v9  ;;  %v7312_v63 = vunpack.i.l.bf16 %v10704_v9  ;;  %4876 = vmatpush.msrb.mxu2 %v4741_v23  ;;  %v10709_v19 = vpop.permute.xlu0 %7270  ;;  %v7281_v29 = vpop.permute.xlu1 %7280  ;;  %v12404_v9 = vld [vmem:[#allocation25_spill] sm:$0xff] }
 0x5ae   :  { %v7272_v50 = vunpack.i.l.bf16 %v10709_v19  ;;  %v7283_v53 = vunpack.i.h.bf16 %v7281_v29  ;;  %v7282_v47 = vunpack.i.l.bf16 %v7281_v29  ;;  %v7273_v0 = vunpack.i.h.bf16 %v10709_v19 }
 0x5af   :  { %4877 = vmatpush.msrb.mxu2 %v4734_v12  ;;  %v4759_v52 = vsel %vm142_vm0, %v7312_v63, %v7313_v33 }
 0x5b0   :  { %6970 = vmatmul.msk.f32.vlgmr.msrb.gmra.mxu2 %vm3596_vm11, %v10715_v14  ;;  %v4753_v5 = vsel %vm142_vm0, %v7282_v47, %v7283_v53  ;;  %v4754_v7 = vsel %vm142_vm0, %v7283_v53, %v7277_v2  ;;  %v4742_v46 = vsel %vm142_vm0, %v7257_v25, %v7272_v50  ;;  %v4735_v42 = vsel %vm142_vm0, %v7253_v15, %v7273_v0  ;;  %v10756_v53 = vld [vmem:[%s12012_s7 + $0x30] sm:$0xff] }
 0x5b1   :  { %4990 = vmatpush.msra.mxu2 %v4759_v52  ;;  %4816 = vmatpush.msra.mxu0 %v4753_v5 }
 0x5b2   :  { %4845 = vmatpush.msra.mxu1 %v4754_v7  ;;  %4905 = vmatpush.msrb.mxu3 %v4742_v46 }
 0x5b3   :  { %4817 = vmatpush.msra.mxu0 %v4746_v1 }
 0x5b4   :  { %4906 = vmatpush.msrb.mxu3 %v4735_v42  ;;  %4846 = vmatpush.msra.mxu1 %v4747_v62 }
 0x5b5   :  { %6974 = vmatmul.msk.f32.vlgmr.msrb.gmra.mxu3 %vm3596_vm11, %v10715_v14  ;;  %v7291_v2 = vpop.permute.xlu0 %7290  ;;  %v7296_v25 = vpop.permute.xlu1 %7295 }
 0x5b6   :  { %5019 = vmatpush.msra.mxu3 %v7313_v33  ;;  %v7293_v39 = vunpack.i.h.bf16 %v7291_v2  ;;  %v7292_v36 = vunpack.i.l.bf16 %v7291_v2  ;;  %v7298_v23 = vunpack.i.h.bf16 %v7296_v25  ;;  %v7297_v15 = vunpack.i.l.bf16 %v7296_v25  ;;  %v7316_v33 = vpop.permute.xlu2 %7315  ;;  %v10772_v25 = vld [vmem:[%s12012_s7 + $0x38] sm:$0xff] }
 0x5b7   :  { %v7318_v7 = vunpack.i.h.bf16 %v7316_v33  ;;  %v7317_v46 = vunpack.i.l.bf16 %v7316_v33 }
 0x5b8   :  { %6971 = vmatmul.msk.f32.gmra.mxu2 %vm3596_vm11, %v10739_v4  ;;  %v4739_v27 = vsel %vm142_vm0, %v7292_v36, %v7293_v39  ;;  %v4740_v18 = vsel %vm142_vm0, %v7293_v39, %v7268_v32  ;;  %v4732_v29 = vsel %vm142_vm0, %v7297_v15, %v7298_v23  ;;  %v4733_v12 = vsel %vm142_vm0, %v7298_v23, %v7252_v8 }
 0x5b9   :  { %4818 = vmatpush.msra.mxu0 %v4739_v27  ;;  %4847 = vmatpush.msra.mxu1 %v4740_v18  ;;  %v4738_v62 = vsel %vm142_vm0, %v7317_v46, %v7318_v7 }
 0x5bb   :  { %4819 = vmatpush.msra.mxu0 %v4732_v29  ;;  %4848 = vmatpush.msra.mxu1 %v4733_v12 }
 0x5bc   :  { %6962 = vmatmul.msk.f32.vlgmr.msra.gmra.mxu0 %vm3596_vm11, %v10715_v14  ;;  %6966 = vmatmul.msk.f32.vlgmr.msra.gmra.mxu1 %vm3596_vm11, %v10715_v14 }
 0x5bd   :  { %6975 = vmatmul.msk.f32.gmra.mxu3 %vm3596_vm11, %v10739_v4  ;;  %v7306_v41 = vpop.permute.xlu0 %7305  ;;  %v7301_v32 = vpop.permute.xlu1 %7300 }
 0x5be   :  { %v7308_v8 = vunpack.i.h.bf16 %v7306_v41  ;;  %v7307_v47 = vunpack.i.l.bf16 %v7306_v41  ;;  %v7303_v52 = vunpack.i.h.bf16 %v7301_v32  ;;  %v7302_v5 = vunpack.i.l.bf16 %v7301_v32 }
 0x5c0   :  { %6972 = vmatmul.msk.f32.gmra.mxu2 %vm3596_vm11, %v10756_v53  ;;  %5020 = vmatpush.msra.mxu3 %v7308_v8  ;;  %v4752_v1 = vsel %vm142_vm0, %v7307_v47, %v7308_v8  ;;  %v4745_v42 = vsel %vm142_vm0, %v7302_v5, %v7303_v52 }
 0x5c1   :  { %4991 = vmatpush.msra.mxu2 %v4752_v1 }
 0x5c2   :  { %5021 = vmatpush.msra.mxu3 %v7303_v52  ;;  %v10935_v52 = vld [vmem:[%s12012_s7 + $0x10] sm:$0xff] }
 0x5c3   :  { %4992 = vmatpush.msra.mxu2 %v4745_v42 }
 0x5c4   :  { %6963 = vmatmul.msk.f32.gmra.mxu0 %vm3596_vm11, %v10739_v4  ;;  %6967 = vmatmul.msk.f32.gmra.mxu1 %vm3596_vm11, %v10739_v4 }
 0x5c5   :  { %6976 = vmatmul.msk.f32.gmra.mxu3 %vm3596_vm11, %v10756_v53  ;;  %v7321_v2 = vpop.permute.xlu0 %7320  ;;  %4993 = vmatpush.msra.mxu2 %v4738_v62  ;;  %v7326_v23 = vpop.permute.xlu1 %7325 }
 0x5c6   :  { %5022 = vmatpush.msra.mxu3 %v7318_v7  ;;  %v7322_v39 = vunpack.i.l.bf16 %v7321_v2  ;;  %v7323_v36 = vunpack.i.h.bf16 %v7321_v2 }
 0x5c7   :  { %5118 = vmatpush.msrb.mxu2 %v10463_v6  ;;  %v7327_v6 = vunpack.i.l.bf16 %v7326_v23 }
 0x5c8   :  { %5147 = vmatpush.msrb.mxu3 %v10456_v20  ;;  %6973 = vmatmul.msk.f32.gmra.mxu2 %vm3596_vm11, %v10772_v25  ;;  %v4757_v15 = vsel %vm142_vm0, %v7267_v21, %v7322_v39  ;;  %v4758_v27 = vsel %vm142_vm0, %v7322_v39, %v7312_v63  ;;  %v4750_v20 = vsel %vm142_vm0, %v7258_v45, %v7323_v36  ;;  %v7328_v21 = vunpack.i.h.bf16 %v7326_v23 }
 0x5c9   :  { %5119 = vmatpush.msrb.mxu2 %v10398_v37  ;;  %4932 = vmatpush.msrb.mxu0 %v4757_v15  ;;  %v4751_v16 = vsel %vm142_vm0, %v7323_v36, %v7307_v47  ;;  %v4743_v37 = vsel %vm142_vm0, %v7272_v50, %v7327_v6  ;;  %v10954_v36 = vld [vmem:[%s12012_s7 + $0x18] sm:$0xff] }
 0x5ca   :  { %5148 = vmatpush.msrb.mxu3 %v10401_v22  ;;  %4961 = vmatpush.msrb.mxu1 %v4758_v27  ;;  %v12405_v22 = vld [vmem:[#allocation32_spill] sm:$0xff]  ;;  %v4737_v56 = vsel %vm142_vm0, %v7328_v21, %v7317_v46 }
 0x5cb   :  { %5120 = vmatpush.msrb.mxu2 %v10460_v17  ;;  %4933 = vmatpush.msrb.mxu0 %v4750_v20  ;;  %v4736_v17 = vsel %vm142_vm0, %v7273_v0, %v7328_v21 }
 0x5cc   :  { %5149 = vmatpush.msrb.mxu3 %v10407_v3  ;;  %4962 = vmatpush.msrb.mxu1 %v4751_v16  ;;  %v4744_v3 = vsel %vm142_vm0, %v7327_v6, %v7302_v5 }
 0x5cd   :  { %6964 = vmatmul.msk.f32.gmra.mxu0 %vm3596_vm11, %v10756_v53  ;;  %6968 = vmatmul.msk.f32.gmra.mxu1 %vm3596_vm11, %v10756_v53 }
 0x5ce   :  { %5150 = vmatpush.msrb.mxu3 %v12404_v9  ;;  %5121 = vmatpush.msrb.mxu2 %v12405_v22 }
 0x5cf   :  { %6977 = vmatmul.msk.f32.gmra.mxu3 %vm3596_vm11, %v10772_v25  ;;  %4934 = vmatpush.msrb.mxu0 %v4743_v37 }
 0x5d0   :  { %4963 = vmatpush.msrb.mxu1 %v4744_v3  ;;  %6986 = vmatmul.msk.f32.vlgmr.msra.gmra.mxu2 %vm3596_vm11, %v10715_v14 }
 0x5d1   :  { %4935 = vmatpush.msrb.mxu0 %v4736_v17  ;;  %5234 = vmatpush.msra.mxu2 %v10606_v60 }
 0x5d2   :  { %4964 = vmatpush.msrb.mxu1 %v4737_v56 }
 0x5d3   :  { %5060 = vmatpush.msra.mxu0 %v10507_v61  ;;  %5235 = vmatpush.msra.mxu2 %v10584_v43 }
 0x5d4   :  { %5089 = vmatpush.msra.mxu1 %v10500_v58 }
 0x5d5   :  { %5061 = vmatpush.msra.mxu0 %v10452_v31  ;;  %6969 = vmatmul.msk.f32.gmra.mxu1 %vm3596_vm11, %v10772_v25  ;;  %v10851_v31 = vpop.permute.xlu0 %7335 }
 0x5d6   :  { %5090 = vmatpush.msra.mxu1 %v10440_v30  ;;  %6965 = vmatmul.msk.f32.gmra.mxu0 %vm3596_vm11, %v10772_v25  ;;  %v10841_v30 = vpop.permute.xlu2 %7330 }
 0x5d7   :  { %6990 = vmatmul.msk.f32.vlgmr.msra.gmra.mxu3 %vm3596_vm11, %v10715_v14  ;;  %5062 = vmatpush.msra.mxu0 %v10545_v38  ;;  %v7332_v58 = vunpack.i.l.bf16 %v10841_v30 }
 0x5d8   :  { %5091 = vmatpush.msra.mxu1 %v10532_v34  ;;  %5236 = vmatpush.msra.mxu2 %v10581_v26  ;;  %v7337_v34 = vunpack.i.l.bf16 %v10851_v31 }
 0x5d9   :  { %5263 = vmatpush.msra.mxu3 %v10608_v28  ;;  %5063 = vmatpush.msra.mxu0 %v10538_v48 }
 0x5da   :  { %5092 = vmatpush.msra.mxu1 %v10529_v13  ;;  %5237 = vmatpush.msra.mxu2 %v10625_v49  ;;  %v7338_v13 = vunpack.i.h.bf16 %v10851_v31  ;;  %v10909_v49 = vld [vmem:[%s12012_s7 + $0x8] sm:$0xff] }
 0x5db   :  { %5264 = vmatpush.msra.mxu3 %v10578_v10  ;;  %6987 = vmatmul.msk.f32.gmra.mxu2 %vm3596_vm11, %v10739_v4 }
 0x5dc   :  { %v5360_v60 = vsel %vm718_vm3, %v7337_v34, %v7338_v13 }
 0x5dd   :  { %5265 = vmatpush.msra.mxu3 %v10572_v44  ;;  %6982 = vmatmul.msk.f32.vlgmr.msrb.gmra.mxu1 %vm3596_vm11, %v10715_v14  ;;  %v10874_v61 = vpop.permute.xlu0 %7350 }
 0x5de   :  { %6978 = vmatmul.msk.f32.vlgmr.msrb.gmra.mxu0 %vm3596_vm11, %v10715_v14  ;;  %5205 = vmatpush.msrb.mxu1 %v10603_v24  ;;  %v7352_v24 = vunpack.i.l.bf16 %v10874_v61 }
 0x5df   :  { %5266 = vmatpush.msra.mxu3 %v10623_v51  ;;  %5176 = vmatpush.msrb.mxu0 %v10466_v11  ;;  %v10862_v11 = vpop.permute.xlu2 %7345 }
 0x5e0   :  { %6991 = vmatmul.msk.f32.gmra.mxu3 %vm3596_vm11, %v10739_v4  ;;  %5206 = vmatpush.msrb.mxu1 %v10612_v54  ;;  %v7347_v43 = vunpack.i.l.bf16 %v10862_v11  ;;  %v7348_v28 = vunpack.i.h.bf16 %v10862_v11 }
 0x5e1   :  { %5177 = vmatpush.msrb.mxu0 %v10410_v55  ;;  %v10860_v55 = vpop.permute.xlu1 %7340 }
 0x5e2   :  { %5207 = vmatpush.msrb.mxu1 %v10601_v40  ;;  %v7343_v38 = vunpack.i.h.bf16 %v10860_v55  ;;  %v7342_v44 = vunpack.i.l.bf16 %v10860_v55  ;;  %v7353_v40 = vunpack.i.h.bf16 %v10874_v61  ;;  %v5361_v19 = vsel %vm718_vm3, %v7338_v13, %v7348_v28 }
 0x5e3   :  { %6988 = vmatmul.msk.f32.gmra.mxu2 %vm3596_vm11, %v10756_v53  ;;  %5178 = vmatpush.msrb.mxu0 %v10497_v57  ;;  %v7333_v57 = vunpack.i.h.bf16 %v10841_v30 }
 0x5e4   :  { %5208 = vmatpush.msrb.mxu1 %v10610_v35  ;;  %v5353_v54 = vsel %vm718_vm3, %v7343_v38, %v7347_v43  ;;  %v5346_v63 = vsel %vm718_vm3, %v7352_v24, %v7353_v40 }
 0x5e5   :  { %5179 = vmatpush.msrb.mxu0 %v10510_v59  ;;  %6983 = vmatmul.msk.f32.gmra.mxu1 %vm3596_vm11, %v10739_v4  ;;  %v10879_v59 = vld [vmem:[%s12012_s7] sm:$0xff]  ;;  %v5367_v10 = vsel %vm718_vm3, %v7332_v58, %v7333_v57  ;;  %v5368_v51 = vsel %vm718_vm3, %v7333_v57, %v7342_v44  ;;  %v7366_v14 = vpop.permute.xlu0 %7365 }
 0x5e6   :  { %6979 = vmatmul.msk.f32.gmra.mxu0 %vm3596_vm11, %v10739_v4  ;;  %v7368_v29 = vunpack.i.h.bf16 %v7366_v14  ;;  %v7367_v12 = vunpack.i.l.bf16 %v7366_v14 }
 0x5e7   :  { %v7361_v26 = vpop.permute.xlu2 %7360 }
 0x5e8   :  { %6992 = vmatmul.msk.f32.gmra.mxu3 %vm3596_vm11, %v10756_v53  ;;  %v7363_v50 = vunpack.i.h.bf16 %v7361_v26  ;;  %v7362_v0 = vunpack.i.l.bf16 %v7361_v26  ;;  %v5358_v46 = vsel %vm718_vm3, %v7367_v12, %v7368_v29  ;;  %v5359_v1 = vsel %vm718_vm3, %v7368_v29, %v7337_v34 }
 0x5e9   :  { %v10883_v48 = vpop.permute.xlu1 %7355 }
 0x5ea   :  { %v7357_v35 = vunpack.i.l.bf16 %v10883_v48  ;;  %v7358_v45 = vunpack.i.h.bf16 %v10883_v48  ;;  %v5365_v8 = vsel %vm718_vm3, %v7362_v0, %v7363_v50  ;;  %v5366_v47 = vsel %vm718_vm3, %v7363_v50, %v7332_v58  ;;  %v103_v48 = vld [vmem:[%s12012_s7 + $0x40] sm:$0xff]  ;;  %v106_v0 = vld [vmem:[%s12012_s7 + $0x58] sm:$0xff] }
 0x5eb   :  { %6989 = vmatmul.msk.f32.gmra.mxu2 %vm3596_vm11, %v10772_v25 }
 0x5ec   :  { %v5354_v4 = vsel %vm718_vm3, %v7347_v43, %v7357_v35  ;;  %v5347_v33 = vsel %vm718_vm3, %v7353_v40, %v7358_v45 }
 0x5ed   :  { %6984 = vmatmul.msk.f32.gmra.mxu1 %vm3596_vm11, %v10756_v53  ;;  %v7391_v39 = vpop.permute.xlu0 %7390 }
 0x5ee   :  { %6980 = vmatmul.msk.f32.gmra.mxu0 %vm3596_vm11, %v10756_v53  ;;  %v7393_v15 = vunpack.i.h.bf16 %v7391_v39  ;;  %v7392_v27 = vunpack.i.l.bf16 %v7391_v39 }
 0x5ef   :  { %v7376_v41 = vpop.permute.xlu2 %7375 }
 0x5f0   :  { %6993 = vmatmul.msk.f32.gmra.mxu3 %vm3596_vm11, %v10772_v25  ;;  %v7378_v5 = vunpack.i.h.bf16 %v7376_v41  ;;  %v7377_v7 = vunpack.i.l.bf16 %v7376_v41  ;;  %v5371_v22 = vsel %vm718_vm3, %v7392_v27, %v7393_v15 }
 0x5f1   :  { %v7371_v18 = vpop.permute.xlu1 %7370 }
 0x5f2   :  { %v7373_v32 = vunpack.i.h.bf16 %v7371_v18  ;;  %v7372_v53 = vunpack.i.l.bf16 %v7371_v18  ;;  %v5344_v2 = vsel %vm718_vm3, %v7377_v7, %v7378_v5 }
 0x5f3   :  { %7002 = vmatmul.msk.f32.vlgmr.msrb.gmra.mxu2 %vm3596_vm11, %v10879_v59 }
 0x5f4   :  { %5486 = vmatpush.msrb.mxu2 %v5367_v10  ;;  %v5351_v42 = vsel %vm718_vm3, %v7372_v53, %v7373_v32  ;;  %v5352_v62 = vsel %vm718_vm3, %v7373_v32, %v7343_v38 }
 0x5f5   :  { %6985 = vmatmul.msk.f32.gmra.mxu1 %vm3596_vm11, %v10772_v25  ;;  %v7396_v21 = vpop.permute.xlu0 %7395 }
 0x5f6   :  { %5487 = vmatpush.msrb.mxu2 %v5360_v60  ;;  %6981 = vmatmul.msk.f32.gmra.mxu0 %vm3596_vm11, %v10772_v25  ;;  %v5345_v25 = vsel %vm718_vm3, %v7378_v5, %v7352_v24  ;;  %v7398_v3 = vunpack.i.h.bf16 %v7396_v21  ;;  %v7397_v17 = vunpack.i.l.bf16 %v7396_v21  ;;  %v5878_v21 = vld [vmem:[%s12013_s2 + $0x178] sm:$0xff] }
 0x5f7   :  { %v7386_v6 = vpop.permute.xlu2 %7385 }
 0x5f8   :  { %7006 = vmatmul.msk.f32.vlgmr.msrb.gmra.mxu3 %vm3596_vm11, %v10879_v59  ;;  %5488 = vmatpush.msrb.mxu2 %v5353_v54  ;;  %v7388_v9 = vunpack.i.h.bf16 %v7386_v6  ;;  %v7387_v37 = vunpack.i.l.bf16 %v7386_v6  ;;  %v5350_v57 = vsel %vm718_vm3, %v7397_v17, %v7398_v3 }
 0x5f9   :  { %5515 = vmatpush.msrb.mxu3 %v5368_v51  ;;  %v7381_v23 = vpop.permute.xlu1 %7380 }
 0x5fa   :  { %5489 = vmatpush.msrb.mxu2 %v5346_v63  ;;  %v7383_v20 = vunpack.i.h.bf16 %v7381_v23  ;;  %v7382_v16 = vunpack.i.l.bf16 %v7381_v23  ;;  %v5357_v30 = vsel %vm718_vm3, %v7387_v37, %v7388_v9 }
 0x5fb   :  { %5516 = vmatpush.msrb.mxu3 %v5361_v19  ;;  %7003 = vmatmul.msk.f32.gmra.mxu2 %vm3596_vm11, %v10909_v49 }
 0x5fc   :  { %v5364_v56 = vsel %vm718_vm3, %v7382_v16, %v7383_v20 }
 0x5fd   :  { %5517 = vmatpush.msrb.mxu3 %v5354_v4  ;;  %6998 = vmatmul.msk.f32.vlgmr.msra.gmra.mxu1 %vm3596_vm11, %v10879_v59 }
 0x5fe   :  { %6994 = vmatmul.msk.f32.vlgmr.msra.gmra.mxu0 %vm3596_vm11, %v10879_v59  ;;  %5457 = vmatpush.msra.mxu1 %v5366_v47 }
 0x5ff   :  { %5518 = vmatpush.msrb.mxu3 %v5347_v33  ;;  %5428 = vmatpush.msra.mxu0 %v5365_v8  ;;  %v7406_v61 = vpop.permute.xlu2 %7405 }
 0x600   :  { %7007 = vmatmul.msk.f32.gmra.mxu3 %vm3596_vm11, %v10909_v49  ;;  %5458 = vmatpush.msra.mxu1 %v5359_v1  ;;  %v7407_v34 = vunpack.i.l.bf16 %v7406_v61  ;;  %v7408_v26 = vunpack.i.h.bf16 %v7406_v61  ;;  %v5893_v61 = vld [vmem:[%s12013_s2 + $0x1f0] sm:$0xff] }
 0x601   :  { %5429 = vmatpush.msra.mxu0 %v5358_v46  ;;  %v7401_v31 = vpop.permute.xlu1 %7400 }
 0x602   :  { %5459 = vmatpush.msra.mxu1 %v5352_v62  ;;  %v7402_v58 = vunpack.i.l.bf16 %v7401_v31  ;;  %v7403_v13 = vunpack.i.h.bf16 %v7401_v31  ;;  %v5355_v55 = vsel %vm718_vm3, %v7357_v35, %v7407_v34  ;;  %v5348_v11 = vsel %vm718_vm3, %v7358_v45, %v7408_v26  ;;  %v105_v45 = vld [vmem:[%s12012_s7 + $0x50] sm:$0xff]  ;;  %v5846_v31 = vld [vmem:[%s12013_s2 + $0x78] sm:$0xff] }
 0x603   :  { %7004 = vmatmul.msk.f32.gmra.mxu2 %vm3596_vm11, %v10935_v52  ;;  %5430 = vmatpush.msra.mxu0 %v5351_v42 }
 0x604   :  { %5460 = vmatpush.msra.mxu1 %v5345_v25  ;;  %v5369_v38 = vsel %vm718_vm3, %v7342_v44, %v7402_v58  ;;  %v5370_v10 = vsel %vm718_vm3, %v7402_v58, %v7392_v27  ;;  %v5362_v43 = vsel %vm718_vm3, %v7348_v28, %v7403_v13  ;;  %v5363_v40 = vsel %vm718_vm3, %v7403_v13, %v7382_v16  ;;  %v104_v28 = vld [vmem:[%s12012_s7 + $0x48] sm:$0xff]  ;;  %v5875_v58 = vld [vmem:[%s12013_s2 + $0x160] sm:$0xff]  ;;  %v5845_v13 = vld [vmem:[%s12013_s2 + $0x70] sm:$0xff] }
 0x605   :  { %5431 = vmatpush.msra.mxu0 %v5344_v2  ;;  %6999 = vmatmul.msk.f32.gmra.mxu1 %vm3596_vm11, %v10909_v49  ;;  %v5349_v44 = vsel %vm718_vm3, %v7408_v26, %v7397_v17  ;;  %v5876_v17 = vld [vmem:[%s12013_s2 + $0x168] sm:$0xff] }
 0x606   :  { %6995 = vmatmul.msk.f32.gmra.mxu0 %vm3596_vm11, %v10909_v49 }
 0x608   :  { %7008 = vmatmul.msk.f32.gmra.mxu3 %vm3596_vm11, %v10935_v52 }
 0x60b   :  { %7005 = vmatmul.msk.f32.gmra.mxu2 %vm3596_vm11, %v10954_v36 }
 0x60d   :  { %7000 = vmatmul.msk.f32.gmra.mxu1 %vm3596_vm11, %v10935_v52 }
 0x60e   :  { %6996 = vmatmul.msk.f32.gmra.mxu0 %vm3596_vm11, %v10935_v52 }
 0x610   :  { %7009 = vmatmul.msk.f32.gmra.mxu3 %vm3596_vm11, %v10954_v36 }
 0x613   :  { %7018 = vmatmul.msk.f32.vlgmr.msra.gmra.mxu2 %vm3596_vm11, %v10879_v59 }
 0x614   :  { %5602 = vmatpush.msra.mxu2 %v5371_v22 }
 0x615   :  { %7001 = vmatmul.msk.f32.gmra.mxu1 %vm3596_vm11, %v10954_v36 }
 0x616   :  { %5603 = vmatpush.msra.mxu2 %v5364_v56  ;;  %6997 = vmatmul.msk.f32.gmra.mxu0 %vm3596_vm11, %v10954_v36  ;;  %v5894_v56 = vld [vmem:[%s12013_s2 + $0x1f8] sm:$0xff] }
 0x618   :  { %7022 = vmatmul.msk.f32.vlgmr.msra.gmra.mxu3 %vm3596_vm11, %v10879_v59  ;;  %5604 = vmatpush.msra.mxu2 %v5357_v30 }
 0x619   :  { %5631 = vmatpush.msra.mxu3 %v7393_v15 }
 0x61a   :  { %5605 = vmatpush.msra.mxu2 %v5350_v57  ;;  %v5862_v57 = vld [vmem:[%s12013_s2 + $0xf8] sm:$0xff] }
 0x61b   :  { %5632 = vmatpush.msra.mxu3 %v7383_v20  ;;  %7019 = vmatmul.msk.f32.gmra.mxu2 %vm3596_vm11, %v10909_v49 }
 0x61d   :  { %5633 = vmatpush.msra.mxu3 %v7388_v9  ;;  %7014 = vmatmul.msk.f32.vlgmr.msrb.gmra.mxu1 %vm3596_vm11, %v10879_v59 }
 0x61e   :  { %7010 = vmatmul.msk.f32.vlgmr.msrb.gmra.mxu0 %vm3596_vm11, %v10879_v59  ;;  %5573 = vmatpush.msrb.mxu1 %v5370_v10  ;;  %v5356_v59 = vsel %vm718_vm3, %v7407_v34, %v7387_v37  ;;  %v5877_v37 = vld [vmem:[%s12013_s2 + $0x170] sm:$0xff]  ;;  %v5892_v10 = vld [vmem:[%s12013_s2 + $0x1e8] sm:$0xff] }
 0x61f   :  { %5634 = vmatpush.msra.mxu3 %v7398_v3  ;;  %5544 = vmatpush.msrb.mxu0 %v5369_v38  ;;  %v5861_v34 = vld [vmem:[%s12013_s2 + $0xf0] sm:$0xff]  ;;  %v5874_v38 = vld [vmem:[%s12013_s2 + $0x158] sm:$0xff] }
 0x620   :  { %7023 = vmatmul.msk.f32.gmra.mxu3 %vm3596_vm11, %v10909_v49  ;;  %5574 = vmatpush.msrb.mxu1 %v5363_v40  ;;  %v5860_v40 = vld [vmem:[%s12013_s2 + $0xe8] sm:$0xff] }
 0x621   :  { %5545 = vmatpush.msrb.mxu0 %v5362_v43  ;;  %v5844_v43 = vld [vmem:[%s12013_s2 + $0x68] sm:$0xff] }
 0x622   :  { %5575 = vmatpush.msrb.mxu1 %v5356_v59 }
 0x623   :  { %7020 = vmatmul.msk.f32.gmra.mxu2 %vm3596_vm11, %v10935_v52  ;;  %5546 = vmatpush.msrb.mxu0 %v5355_v55  ;;  %v5873_v55 = vld [vmem:[%s12013_s2 + $0x150] sm:$0xff] }
 0x624   :  { %5576 = vmatpush.msrb.mxu1 %v5349_v44  ;;  %v5891_v44 = vld [vmem:[%s12013_s2 + $0x1e0] sm:$0xff] }
 0x625   :  { %5547 = vmatpush.msrb.mxu0 %v5348_v11  ;;  %7015 = vmatmul.msk.f32.gmra.mxu1 %vm3596_vm11, %v10909_v49 }
 0x626   :  { %7011 = vmatmul.msk.f32.gmra.mxu0 %vm3596_vm11, %v10909_v49 }
 0x628   :  { %7024 = vmatmul.msk.f32.gmra.mxu3 %vm3596_vm11, %v10935_v52 }
 0x62b   :  { %7021 = vmatmul.msk.f32.gmra.mxu2 %vm3596_vm11, %v10954_v36 }
 0x62d   :  { %7016 = vmatmul.msk.f32.gmra.mxu1 %vm3596_vm11, %v10935_v52 }
 0x62e   :  { %7012 = vmatmul.msk.f32.gmra.mxu0 %vm3596_vm11, %v10935_v52 }
 0x630   :  { %7025 = vmatmul.msk.f32.gmra.mxu3 %vm3596_vm11, %v10954_v36 }
 0x633   :  { %v11019_v24 = vpop.f32.mrf.mxu2  ;;  %7034 = vmatmul.msk.f32.vlgmr.msrb.gmra.mxu2 %vm3596_vm11, %v103_v48 }
 0x634   :  { %6033 = vmatpush.msrb.mxu2 %v5878_v21  ;;  %v5890_v21 = vld [vmem:[%s12013_s2 + $0x1d8] sm:$0xff] }
 0x635   :  { %7017 = vmatmul.msk.f32.gmra.mxu1 %vm3596_vm11, %v10954_v36 }
 0x636   :  { %7013 = vmatmul.msk.f32.gmra.mxu0 %vm3596_vm11, %v10954_v36  ;;  %6034 = vmatpush.msrb.mxu2 %v5877_v37  ;;  %v5842_v37 = vld [vmem:[%s12013_s2 + $0x58] sm:$0xff] }
 0x638   :  { %v11026_v60 = vpop.f32.mrf.mxu3  ;;  %7038 = vmatmul.msk.f32.vlgmr.msrb.gmra.mxu3 %vm3596_vm11, %v103_v48  ;;  %6035 = vmatpush.msrb.mxu2 %v5876_v17  ;;  %v5858_v17 = vld [vmem:[%s12013_s2 + $0xd8] sm:$0xff] }
 0x639   :  { %v11032_v35 = vpop.f32.mrf.mxu0  ;;  %v11034_v54 = vpop.f32.mrf.mxu1  ;;  %6062 = vmatpush.msrb.mxu3 %v5894_v56  ;;  %v5871_v56 = vld [vmem:[%s12013_s2 + $0x140] sm:$0xff] }
 0x63a   :  { %6036 = vmatpush.msrb.mxu2 %v5875_v58  ;;  %v5857_v58 = vld [vmem:[%s12013_s2 + $0xd0] sm:$0xff] }
 0x63b   :  { %v11036_v51 = vpop.f32.mrf.mxu2  ;;  %7035 = vmatmul.msk.f32.gmra.mxu2 %vm3596_vm11, %v104_v28  ;;  %6063 = vmatpush.msrb.mxu3 %v5893_v61  ;;  %v5870_v61 = vld [vmem:[%s12013_s2 + $0x138] sm:$0xff] }
 0x63c   :  { %6037 = vmatpush.msrb.mxu2 %v5874_v38  ;;  %v5840_v38 = vld [vmem:[%s12013_s2 + $0x48] sm:$0xff] }
 0x63d   :  { %7030 = vmatmul.msk.f32.vlgmr.msra.gmra.mxu1 %vm3596_vm11, %v103_v48  ;;  %6064 = vmatpush.msrb.mxu3 %v5892_v10  ;;  %v5856_v10 = vld [vmem:[%s12013_s2 + $0xc8] sm:$0xff] }
 0x63e   :  { %7026 = vmatmul.msk.f32.vlgmr.msra.gmra.mxu0 %vm3596_vm11, %v103_v48  ;;  %6004 = vmatpush.msra.mxu1 %v5862_v57  ;;  %v5841_v57 = vld [vmem:[%s12013_s2 + $0x50] sm:$0xff] }
 0x63f   :  { %5975 = vmatpush.msra.mxu0 %v5846_v31  ;;  %6038 = vmatpush.msrb.mxu2 %v5873_v55  ;;  %v5889_v31 = vld [vmem:[%s12013_s2 + $0x1d0] sm:$0xff] }
 0x640   :  { %v11041_v49 = vpop.f32.mrf.mxu3  ;;  %7039 = vmatmul.msk.f32.gmra.mxu3 %vm3596_vm11, %v104_v28  ;;  %6005 = vmatpush.msra.mxu1 %v5861_v34 }
 0x641   :  { %v11047_v63 = vpop.f32.mrf.mxu0  ;;  %v11049_v19 = vpop.f32.mrf.mxu1  ;;  %5976 = vmatpush.msra.mxu0 %v5845_v13  ;;  %6065 = vmatpush.msrb.mxu3 %v5891_v44  ;;  %v5888_v13 = vld [vmem:[%s12013_s2 + $0x1c8] sm:$0xff]  ;;  %v5887_v44 = vld [vmem:[%s12013_s2 + $0x1c0] sm:$0xff] }
 0x642   :  { %6006 = vmatpush.msra.mxu1 %v5860_v40 }
 0x643   :  { %v11051_v14 = vpop.f32.mrf.mxu2  ;;  %7036 = vmatmul.msk.f32.gmra.mxu2 %vm3596_vm11, %v105_v45  ;;  %5977 = vmatpush.msra.mxu0 %v5844_v43  ;;  %v5869_v43 = vld [vmem:[%s12013_s2 + $0x130] sm:$0xff] }
 0x644   :  { %6066 = vmatpush.msrb.mxu3 %v5890_v21 }
 0x645   :  { %7031 = vmatmul.msk.f32.gmra.mxu1 %vm3596_vm11, %v104_v28 }
 0x646   :  { %7027 = vmatmul.msk.f32.gmra.mxu0 %vm3596_vm11, %v104_v28  ;;  %6067 = vmatpush.msrb.mxu3 %v5889_v31  ;;  %v5867_v31 = vld [vmem:[%s12013_s2 + $0x120] sm:$0xff] }
 0x648   :  { %v11056_v50 = vpop.f32.mrf.mxu3  ;;  %7040 = vmatmul.msk.f32.gmra.mxu3 %vm3596_vm11, %v105_v45 }
 0x649   :  { %6068 = vmatpush.msrb.mxu3 %v5888_v13  ;;  %v5866_v13 = vld [vmem:[%s12013_s2 + $0x118] sm:$0xff] }
 0x64a   :  { %v11062_v4 = vpop.f32.mrf.mxu0  ;;  %v11064_v18 = vpop.f32.mrf.mxu1 }
 0x64b   :  { %v11066_v29 = vpop.f32.mrf.mxu2  ;;  %7037 = vmatmul.msk.f32.gmra.mxu2 %vm3596_vm11, %v106_v0  ;;  %6069 = vmatpush.msrb.mxu3 %v5887_v44  ;;  %v5852_v44 = vld [vmem:[%s12013_s2 + $0xa8] sm:$0xff] }
 0x64d   :  { %7032 = vmatmul.msk.f32.gmra.mxu1 %vm3596_vm11, %v105_v45 }
 0x64e   :  { %7028 = vmatmul.msk.f32.gmra.mxu0 %vm3596_vm11, %v105_v45 }
 0x650   :  { %7041 = vmatmul.msk.f32.gmra.mxu3 %vm3596_vm11, %v106_v0 }
 0x652   :  { %v11072_v12 = vpop.f32.mrf.mxu3  ;;  %v11076_v41 = vpop.f32.mrf.mxu1 }
 0x653   :  { %v11074_v33 = vpop.f32.mrf.mxu0  ;;  %7050 = vmatmul.msk.f32.vlgmr.msra.gmra.mxu2 %vm3596_vm11, %v103_v48  ;;  %v11079_v32 = vpop.f32.mrf.mxu2 }
 0x655   :  { %7033 = vmatmul.msk.f32.gmra.mxu1 %vm3596_vm11, %v106_v0 }
 0x656   :  { %7029 = vmatmul.msk.f32.gmra.mxu0 %vm3596_vm11, %v106_v0 }
 0x658   :  { %7054 = vmatmul.msk.f32.vlgmr.msra.gmra.mxu3 %vm3596_vm11, %v103_v48 }
 0x65a   :  { %v11084_v53 = vpop.f32.mrf.mxu3  ;;  %v11088_v47 = vpop.f32.mrf.mxu1 }
 0x65b   :  { %v11086_v8 = vpop.f32.mrf.mxu0  ;;  %7051 = vmatmul.msk.f32.gmra.mxu2 %vm3596_vm11, %v104_v28 }
 0x65d   :  { %7046 = vmatmul.msk.f32.vlgmr.msrb.gmra.mxu1 %vm3596_vm11, %v103_v48 }
 0x65e   :  { %v11091_v52 = vpop.f32.mrf.mxu2  ;;  %7042 = vmatmul.msk.f32.vlgmr.msrb.gmra.mxu0 %vm3596_vm11, %v103_v48  ;;  %v5843_v48 = vld [vmem:[%s12013_s2 + $0x60] sm:$0xff] }
 0x65f   :  { %5978 = vmatpush.msra.mxu0 %v5843_v48  ;;  %v5839_v48 = vld [vmem:[%s12013_s2 + $0x40] sm:$0xff] }
 0x660   :  { %7055 = vmatmul.msk.f32.gmra.mxu3 %vm3596_vm11, %v104_v28 }
 0x661   :  { %5979 = vmatpush.msra.mxu0 %v5842_v37  ;;  %v5886_v37 = vld [vmem:[%s12013_s2 + $0x1b8] sm:$0xff] }
 0x662   :  { %v11101_v46 = vpop.f32.mrf.mxu1  ;;  %6070 = vmatpush.msrb.mxu3 %v5886_v37 }
 0x663   :  { %v11096_v5 = vpop.f32.mrf.mxu3  ;;  %v11098_v7 = vpop.f32.mrf.mxu0  ;;  %7052 = vmatmul.msk.f32.gmra.mxu2 %vm3596_vm11, %v105_v45  ;;  %5980 = vmatpush.msra.mxu0 %v5841_v57  ;;  %v5885_v57 = vld [vmem:[%s12013_s2 + $0x1b0] sm:$0xff] }
 0x664   :  { %6071 = vmatpush.msrb.mxu3 %v5885_v57 }
 0x665   :  { %7047 = vmatmul.msk.f32.gmra.mxu1 %vm3596_vm11, %v104_v28  ;;  %5981 = vmatpush.msra.mxu0 %v5840_v38  ;;  %v5884_v38 = vld [vmem:[%s12013_s2 + $0x1a8] sm:$0xff] }
 0x666   :  { %v11103_v1 = vpop.f32.mrf.mxu2  ;;  %7043 = vmatmul.msk.f32.gmra.mxu0 %vm3596_vm11, %v104_v28  ;;  %v5859_v28 = vld [vmem:[%s12013_s2 + $0xe0] sm:$0xff]  ;;  %6072 = vmatpush.msrb.mxu3 %v5884_v38 }
 0x667   :  { %6007 = vmatpush.msra.mxu1 %v5859_v28  ;;  %v5855_v28 = vld [vmem:[%s12013_s2 + $0xc0] sm:$0xff]  ;;  %5982 = vmatpush.msra.mxu0 %v5839_v48  ;;  %v5865_v48 = vld [vmem:[%s12013_s2 + $0x110] sm:$0xff] }
 0x668   :  { %7056 = vmatmul.msk.f32.gmra.mxu3 %vm3596_vm11, %v105_v45  ;;  %v5863_v38 = vld [vmem:[%s12013_s2 + $0x100] sm:$0xff] }
 0x669   :  { %6008 = vmatpush.msra.mxu1 %v5858_v17  ;;  %v5838_v17 = vld [vmem:[%s12013_s2 + $0x38] sm:$0xff] }
 0x66a   :  { %v11113_v2 = vpop.f32.mrf.mxu1  ;;  %5983 = vmatpush.msra.mxu0 %v5838_v17  ;;  %v5835_v17 = vld [vmem:[%s12013_s2 + $0x20] sm:$0xff] }
 0x66b   :  { %v11108_v42 = vpop.f32.mrf.mxu3  ;;  %v11110_v62 = vpop.f32.mrf.mxu0  ;;  %7053 = vmatmul.msk.f32.gmra.mxu2 %vm3596_vm11, %v106_v0  ;;  %12408 = vst [vmem:[#allocation43_spill] sm:$0xff] %v11113_v2  ;;  %6009 = vmatpush.msra.mxu1 %v5857_v58  ;;  %v5837_v58 = vld [vmem:[%s12013_s2 + $0x30] sm:$0xff]  ;;  %v5903_v2 = vld [vmem:[%s12013_s2 + $0x240] sm:$0xff] }
 0x66c   :  { %12406 = vst [vmem:[#allocation27_spill] sm:$0xff] %v11108_v42  ;;  %5984 = vmatpush.msra.mxu0 %v5837_v58  ;;  %v5882_v58 = vld [vmem:[%s12013_s2 + $0x198] sm:$0xff] }
 0x66d   :  { %12407 = vst [vmem:[#allocation29_spill] sm:$0xff] %v11110_v62  ;;  %7048 = vmatmul.msk.f32.gmra.mxu1 %vm3596_vm11, %v105_v45  ;;  %v5918_v62 = vld [vmem:[%s12013_s2 + $0x2b8] sm:$0xff] }
 0x66e   :  { %v11115_v25 = vpop.f32.mrf.mxu2  ;;  %7044 = vmatmul.msk.f32.gmra.mxu0 %vm3596_vm11, %v105_v45  ;;  %v5872_v45 = vld [vmem:[%s12013_s2 + $0x148] sm:$0xff]  ;;  %6010 = vmatpush.msra.mxu1 %v5856_v10 }
 0x66f   :  { %12409 = vst [vmem:[#allocation31_spill] sm:$0xff] %v11115_v25  ;;  %6039 = vmatpush.msrb.mxu2 %v5872_v45  ;;  %v5868_v45 = vld [vmem:[%s12013_s2 + $0x128] sm:$0xff]  ;;  %v5922_v25 = vld [vmem:[%s12013_s2 + $0x2d8] sm:$0xff] }
 0x670   :  { %7057 = vmatmul.msk.f32.gmra.mxu3 %vm3596_vm11, %v106_v0  ;;  %6011 = vmatpush.msra.mxu1 %v5855_v28 }
 0x671   :  { %6040 = vmatpush.msrb.mxu2 %v5871_v56  ;;  %v5854_v56 = vld [vmem:[%s12013_s2 + $0xb8] sm:$0xff] }
 0x672   :  { %v11124_v23 = vpop.f32.mrf.mxu1  ;;  %6012 = vmatpush.msra.mxu1 %v5854_v56  ;;  %v5851_v56 = vld [vmem:[%s12013_s2 + $0xa0] sm:$0xff] }
 0x673   :  { %v11120_v39 = vpop.f32.mrf.mxu3  ;;  %v11122_v36 = vpop.f32.mrf.mxu0  ;;  %12412 = vst [vmem:[#allocation38_spill] sm:$0xff] %v11124_v23  ;;  %6041 = vmatpush.msrb.mxu2 %v5870_v61  ;;  %v5853_v61 = vld [vmem:[%s12013_s2 + $0xb0] sm:$0xff] }
 0x674   :  { %12410 = vst [vmem:[#allocation33_spill] sm:$0xff] %v11120_v39  ;;  %6013 = vmatpush.msra.mxu1 %v5853_v61  ;;  %v5834_v61 = vld [vmem:[%s12013_s2 + $0x18] sm:$0xff]  ;;  %v5923_v39 = vld [vmem:[%s12013_s2 + $0x2e0] sm:$0xff] }
 0x675   :  { %12411 = vst [vmem:[#allocation39_spill] sm:$0xff] %v11122_v36  ;;  %7049 = vmatmul.msk.f32.gmra.mxu1 %vm3596_vm11, %v106_v0  ;;  %6042 = vmatpush.msrb.mxu2 %v5869_v43  ;;  %v5836_v43 = vld [vmem:[%s12013_s2 + $0x28] sm:$0xff]  ;;  %v5907_v36 = vld [vmem:[%s12013_s2 + $0x260] sm:$0xff] }
 0x676   :  { %v11126_v15 = vpop.f32.mrf.mxu2  ;;  %7045 = vmatmul.msk.f32.gmra.mxu0 %vm3596_vm11, %v106_v0  ;;  %6014 = vmatpush.msra.mxu1 %v5852_v44  ;;  %v5833_v44 = vld [vmem:[%s12013_s2 + $0x10] sm:$0xff] }
 0x677   :  { %6043 = vmatpush.msrb.mxu2 %v5868_v45  ;;  %5985 = vmatpush.msra.mxu0 %v5836_v43  ;;  %v5883_v45 = vld [vmem:[%s12013_s2 + $0x1a0] sm:$0xff]  ;;  %v5881_v43 = vld [vmem:[%s12013_s2 + $0x190] sm:$0xff] }
 0x678   :  { %6073 = vmatpush.msrb.mxu3 %v5883_v45  ;;  %6015 = vmatpush.msra.mxu1 %v5851_v56  ;;  %v5880_v45 = vld [vmem:[%s12013_s2 + $0x188] sm:$0xff] }
 0x679   :  { %6044 = vmatpush.msrb.mxu2 %v5867_v31  ;;  %v5864_v31 = vld [vmem:[%s12013_s2 + $0x108] sm:$0xff]  ;;  %5986 = vmatpush.msra.mxu0 %v5835_v17  ;;  %v5942_v17 = vld [vmem:[%s12013_s2 + $0x378] sm:$0xff] }
 0x67a   :  { %v11134_v20 = vpop.f32.mrf.mxu1  ;;  %6074 = vmatpush.msrb.mxu3 %v5882_v58  ;;  %v5848_v58 = vld [vmem:[%s12013_s2 + $0x88] sm:$0xff] }
 0x67b   :  { %v11130_v27 = vpop.f32.mrf.mxu3  ;;  %v11132_v6 = vpop.f32.mrf.mxu0  ;;  %6045 = vmatpush.msrb.mxu2 %v5866_v13  ;;  %v5850_v13 = vld [vmem:[%s12013_s2 + $0x98] sm:$0xff]  ;;  %5987 = vmatpush.msra.mxu0 %v5834_v61  ;;  %v5879_v61 = vld [vmem:[%s12013_s2 + $0x180] sm:$0xff] }
 0x67c   :  { %6016 = vmatpush.msra.mxu1 %v5850_v13  ;;  %6075 = vmatpush.msrb.mxu3 %v5881_v43  ;;  %v5941_v13 = vld [vmem:[%s12013_s2 + $0x370] sm:$0xff] }
 0x67d   :  { %6046 = vmatpush.msrb.mxu2 %v5865_v48  ;;  %v5849_v48 = vld [vmem:[%s12013_s2 + $0x90] sm:$0xff]  ;;  %5988 = vmatpush.msra.mxu0 %v5833_v44  ;;  %v5831_v44 = vld [vmem:[%s12013_s2] sm:$0xff] }
 0x67e   :  { %v11136_v16 = vpop.f32.mrf.mxu2  ;;  %6017 = vmatpush.msra.mxu1 %v5849_v48  ;;  %6076 = vmatpush.msrb.mxu3 %v5880_v45  ;;  %v5847_v48 = vld [vmem:[%s12013_s2 + $0x80] sm:$0xff]  ;;  %v5940_v45 = vld [vmem:[%s12013_s2 + $0x368] sm:$0xff] }
 0x67f   :  { %6047 = vmatpush.msrb.mxu2 %v5864_v31  ;;  %v5832_v31 = vld [vmem:[%s12013_s2 + $0x8] sm:$0xff] }
 0x680   :  { %5989 = vmatpush.msra.mxu0 %v5832_v31  ;;  %6018 = vmatpush.msra.mxu1 %v5848_v58  ;;  %v5910_v31 = vld [vmem:[%s12013_s2 + $0x278] sm:$0xff] }
 0x681   :  { %6048 = vmatpush.msrb.mxu2 %v5863_v38  ;;  %6077 = vmatpush.msrb.mxu3 %v5879_v61  ;;  %v5926_v58 = vld [vmem:[%s12013_s2 + $0x2f8] sm:$0xff]  ;;  %v5939_v61 = vld [vmem:[%s12013_s2 + $0x360] sm:$0xff] }
 0x682   :  { %v11148_v3 = vpop.f32.mrf.mxu1  ;;  %5990 = vmatpush.msra.mxu0 %v5831_v44  ;;  %6019 = vmatpush.msra.mxu1 %v5847_v48  ;;  %v5909_v44 = vld [vmem:[%s12013_s2 + $0x270] sm:$0xff] }
 0x683   :  { %v11141_v9 = vpop.f32.mrf.mxu3  ;;  %v11146_v22 = vpop.f32.mrf.mxu0  ;;  %6149 = vmatpush.msra.mxu2 %v5942_v17  ;;  %v5925_v48 = vld [vmem:[%s12013_s2 + $0x2f0] sm:$0xff] }
 0x684   :  { %6091 = vmatpush.msrb.mxu0 %v5910_v31  ;;  %6120 = vmatpush.msrb.mxu1 %v5926_v58  ;;  %v5956_v31 = vld [vmem:[%s12013_s2 + $0x3e8] sm:$0xff] }
 0x685   :  { %6150 = vmatpush.msra.mxu2 %v5941_v13  ;;  %v5957_v13 = vld [vmem:[%s12013_s2 + $0x3f0] sm:$0x7]  ;;  %v5908_v58 = vld [vmem:[%s12013_s2 + $0x268] sm:$0xff] }
 0x686   :  { %v11156_v30 = vpop.f32.mrf.mxu2  ;;  %7058 = vmatpush.msk.msra.mxu3 %vm5971_vm12, %v5957_v13  ;;  %6092 = vmatpush.msrb.mxu0 %v5909_v44  ;;  %v5937_v13 = vld [vmem:[%s12013_s2 + $0x350] sm:$0xff]  ;;  %v11412_v44 = vpop.permute.xlu0 %5686 }
 0x687   :  { %6151 = vmatpush.msra.mxu2 %v5940_v45  ;;  %v5938_v45 = vld [vmem:[%s12013_s2 + $0x358] sm:$0xff]  ;;  %6121 = vmatpush.msrb.mxu1 %v5925_v48 }
 0x688   :  { %6180 = vmatpush.msra.mxu3 %v5956_v31  ;;  %6093 = vmatpush.msrb.mxu0 %v5908_v58  ;;  %v5936_v58 = vld [vmem:[%s12013_s2 + $0x348] sm:$0xff] }
 0x689   :  { %6152 = vmatpush.msra.mxu2 %v5939_v61  ;;  %v5924_v61 = vld [vmem:[%s12013_s2 + $0x2e8] sm:$0xff] }
 0x68a   :  { %v11195_v11 = vpop.f32.mrf.mxu1  ;;  %6122 = vmatpush.msrb.mxu1 %v5924_v61  ;;  %6094 = vmatpush.msrb.mxu0 %v5907_v36  ;;  %v5954_v61 = vld [vmem:[%s12013_s2 + $0x3d8] sm:$0xff]  ;;  %v5953_v36 = vld [vmem:[%s12013_s2 + $0x3d0] sm:$0xff] }
 0x68b   :  { %v11182_v26 = vpop.f32.mrf.mxu3  ;;  %v11193_v59 = vpop.f32.mrf.mxu0  ;;  %6153 = vmatpush.msra.mxu2 %v5938_v45  ;;  %v5955_v45 = vld [vmem:[%s12013_s2 + $0x3e0] sm:$0xff] }
 0x68c   :  { %6181 = vmatpush.msra.mxu3 %v5955_v45  ;;  %6123 = vmatpush.msrb.mxu1 %v5923_v39  ;;  %v5906_v45 = vld [vmem:[%s12013_s2 + $0x258] sm:$0xff]  ;;  %v5935_v39 = vld [vmem:[%s12013_s2 + $0x340] sm:$0xff] }
 0x68d   :  { %6154 = vmatpush.msra.mxu2 %v5937_v13  ;;  %6095 = vmatpush.msrb.mxu0 %v5906_v45  ;;  %v5904_v45 = vld [vmem:[%s12013_s2 + $0x248] sm:$0xff] }
 0x68e   :  { %v11209_v0 = vpop.f32.mrf.mxu2  ;;  %6182 = vmatpush.msra.mxu3 %v5954_v61  ;;  %6124 = vmatpush.msrb.mxu1 %v5922_v25  ;;  %v5921_v61 = vld [vmem:[%s12013_s2 + $0x2d0] sm:$0xff]  ;;  %v5952_v25 = vld [vmem:[%s12013_s2 + $0x3c8] sm:$0xff] }
 0x68f   :  { %6155 = vmatpush.msra.mxu2 %v5936_v58  ;;  %v5905_v58 = vld [vmem:[%s12013_s2 + $0x250] sm:$0xff] }
 0x690   :  { %6183 = vmatpush.msra.mxu3 %v5953_v36  ;;  %6096 = vmatpush.msrb.mxu0 %v5905_v58  ;;  %v5933_v36 = vld [vmem:[%s12013_s2 + $0x330] sm:$0xff]  ;;  %v11470_v58 = vpop.permute.xlu1 %5772 }
 0x691   :  { %6156 = vmatpush.msra.mxu2 %v5935_v39  ;;  %6125 = vmatpush.msrb.mxu1 %v5921_v61  ;;  %v5920_v39 = vld [vmem:[%s12013_s2 + $0x2c8] sm:$0xff] }
 0x692   :  { %v11251_v55 = vpop.f32.mrf.mxu1  ;;  %6184 = vmatpush.msra.mxu3 %v5952_v25  ;;  %6097 = vmatpush.msrb.mxu0 %v5904_v45  ;;  %v5932_v45 = vld [vmem:[%s12013_s2 + $0x328] sm:$0xff] }
 0x693   :  { %v11238_v34 = vpop.f32.mrf.mxu3  ;;  %v11249_v40 = vpop.f32.mrf.mxu0  ;;  %6126 = vmatpush.msrb.mxu1 %v5920_v39 }
 0x694   :  { %v11490_v39 = vpop.permute.xlu2 %5774  ;;  %6098 = vmatpush.msrb.mxu0 %v5903_v2 }
 0x696   :  { %v11265_v21 = vpop.f32.mrf.mxu2 }
 0x69a   :  { %v11310_v37 = vpop.f32.mrf.mxu1 }
 0x69b   :  { %v11294_v10 = vpop.f32.mrf.mxu3  ;;  %v11305_v28 = vpop.f32.mrf.mxu0 }
 0x69e   :  { %v11321_v57 = vpop.f32.mrf.mxu2 }
 0x6a2   :  { %v11366_v43 = vpop.f32.mrf.mxu1 }
 0x6a3   :  { %v11350_v56 = vpop.f32.mrf.mxu3  ;;  %v11364_v38 = vpop.f32.mrf.mxu0 }
 0x6a6   :  { %v11377_v17 = vpop.f32.mrf.mxu2 }
 0x6aa   :  { %v11421_v23 = vpop.f32.mrf.mxu1 }
 0x6ab   :  { %v11414_v48 = vpop.f32.mrf.mxu3  ;;  %v11419_v31 = vpop.f32.mrf.mxu0  ;;  %12415 = vst [vmem:[#allocation42_spill] sm:$0xff] %v11421_v23 }
 0x6ac   :  { %12413 = vst [vmem:[#allocation40_spill] sm:$0xff] %v11414_v48 }
 0x6ad   :  { %12414 = vst [vmem:[#allocation55_spill] sm:$0xff] %v11419_v31  ;;  %v5902_v31 = vld [vmem:[%s12013_s2 + $0x238] sm:$0xff] }
 0x6ae   :  { %v11435_v13 = vpop.f32.mrf.mxu2  ;;  %6099 = vmatpush.msrb.mxu0 %v5902_v31  ;;  %v5948_v31 = vld [vmem:[%s12013_s2 + $0x3a8] sm:$0xff] }
 0x6af   :  { %12416 = vst [vmem:[#allocation44_spill] sm:$0xff] %v11435_v13  ;;  %v5934_v13 = vld [vmem:[%s12013_s2 + $0x338] sm:$0xff] }
 0x6b0   :  { %6157 = vmatpush.msra.mxu2 %v5934_v13  ;;  %v5951_v13 = vld [vmem:[%s12013_s2 + $0x3c0] sm:$0xff] }
 0x6b1   :  { %6185 = vmatpush.msra.mxu3 %v5951_v13  ;;  %v11497_v13 = vpop.permute.xlu0 %5768 }
 0x6b2   :  { %v11479_v23 = vpop.f32.mrf.mxu1  ;;  %6158 = vmatpush.msra.mxu2 %v5933_v36  ;;  %v5950_v36 = vld [vmem:[%s12013_s2 + $0x3b8] sm:$0xff] }
 0x6b3   :  { %v11472_v61 = vpop.f32.mrf.mxu3  ;;  %v11477_v25 = vpop.f32.mrf.mxu0  ;;  %12419 = vst [vmem:[#allocation104_spill] sm:$0xff] %v11479_v23  ;;  %6186 = vmatpush.msra.mxu3 %v5950_v36  ;;  %v5900_v36 = vld [vmem:[%s12013_s2 + $0x228] sm:$0xff] }
 0x6b4   :  { %12417 = vst [vmem:[#allocation51_spill] sm:$0xff] %v11472_v61  ;;  %v5919_v61 = vld [vmem:[%s12013_s2 + $0x2c0] sm:$0xff]  ;;  %6159 = vmatpush.msra.mxu2 %v5932_v45  ;;  %v5917_v45 = vld [vmem:[%s12013_s2 + $0x2b0] sm:$0xff] }
 0x6b5   :  { %12418 = vst [vmem:[#allocation81_spill] sm:$0xff] %v11477_v25  ;;  %v5124_v25 = vadd.f32 %v11126_v15, %v11019_v24  ;;  %6127 = vmatpush.msrb.mxu1 %v5919_v61  ;;  %v5931_v24 = vld [vmem:[%s12013_s2 + $0x320] sm:$0xff]  ;;  %v5949_v15 = vld [vmem:[%s12013_s2 + $0x3b0] sm:$0xff] }
 0x6b6   :  { %v5491_v23 = vpop.f32.mrf.mxu2  ;;  %6160 = vmatpush.msra.mxu2 %v5931_v24  ;;  %6187 = vmatpush.msra.mxu3 %v5949_v15  ;;  %v5901_v61 = vld [vmem:[%s12013_s2 + $0x230] sm:$0xff]  ;;  %v5916_v24 = vld [vmem:[%s12013_s2 + $0x2a8] sm:$0xff]  ;;  %v5066_v15 = vadd.f32 %v11132_v6, %v11032_v35 }
 0x6b7   :  { %v5650_v2 = vadd.f32 %v5491_v23, %v5124_v25  ;;  %6128 = vmatpush.msrb.mxu1 %v5918_v62  ;;  %v5930_v23 = vld [vmem:[%s12013_s2 + $0x318] sm:$0xff]  ;;  %6100 = vmatpush.msrb.mxu0 %v5901_v61  ;;  %v5153_v25 = vadd.f32 %v11130_v27, %v11026_v60  ;;  %v5095_v60 = vadd.f32 %v11134_v20, %v11034_v54  ;;  %v5899_v54 = vld [vmem:[%s12013_s2 + $0x220] sm:$0xff] }
 0x6b8   :  { %6161 = vmatpush.msra.mxu2 %v5930_v23  ;;  %6188 = vmatpush.msra.mxu3 %v5948_v31  ;;  %v11545_v23 = vsel %vm718_vm3, %v11470_v58, %v11490_v39  ;;  %v5127_v31 = vadd.f32 %v11136_v16, %v11036_v51  ;;  %v5915_v20 = vld [vmem:[%s12013_s2 + $0x2a0] sm:$0xff] }
 0x6b9   :  { %v5706_v62 = vadd.f32 %v11412_v44, %v5650_v2  ;;  %6129 = vmatpush.msrb.mxu1 %v5917_v45  ;;  %v5929_v2 = vld [vmem:[%s12013_s2 + $0x310] sm:$0xff]  ;;  %6101 = vmatpush.msrb.mxu0 %v5900_v36  ;;  %v5947_v45 = vld [vmem:[%s12013_s2 + $0x3a0] sm:$0xff] }
 0x6ba   :  { %v5462_v48 = vpop.f32.mrf.mxu1  ;;  %6162 = vmatpush.msra.mxu2 %v5929_v2  ;;  %6189 = vmatpush.msra.mxu3 %v5947_v45  ;;  %v5898_v45 = vld [vmem:[%s12013_s2 + $0x218] sm:$0xff] }
 0x6bb   :  { %v5738_v27 = vmax.f32 %v5706_v62, 0.0  ;;  %v5520_v61 = vpop.f32.mrf.mxu3  ;;  %6130 = vmatpush.msrb.mxu1 %v5916_v24  ;;  %v5433_v6 = vpop.f32.mrf.mxu0  ;;  %v5928_v62 = vld [vmem:[%s12013_s2 + $0x308] sm:$0xff]  ;;  %v5649_v16 = vadd.f32 %v5462_v48, %v5095_v60  ;;  %6102 = vmatpush.msrb.mxu0 %v5899_v54  ;;  %v5914_v48 = vld [vmem:[%s12013_s2 + $0x298] sm:$0xff]  ;;  %v5945_v54 = vld [vmem:[%s12013_s2 + $0x390] sm:$0xff] }
 0x6bc   :  { %v5651_v35 = vadd.f32 %v5520_v61, %v5153_v25  ;;  %v5648_v51 = vadd.f32 %v5433_v6, %v5066_v15  ;;  %v5946_v25 = vld [vmem:[%s12013_s2 + $0x398] sm:$0xff]  ;;  %v5771_v24 = vpop.permute.xlu1 %5770  ;;  %6163 = vmatpush.msra.mxu2 %v5928_v62  ;;  %v5927_v15 = vld [vmem:[%s12013_s2 + $0x300] sm:$0xff]  ;;  %v11574_v60 = vpop.permute.xlu2 %5776 }
 0x6bd   :  { %v11559_v36 = vmul.f32 %v11545_v23, %v5738_v27  ;;  %6131 = vmatpush.msrb.mxu1 %v5915_v20  ;;  %6190 = vmatpush.msra.mxu3 %v5946_v25  ;;  %v11585_v20 = vsel %vm718_vm3, %v11490_v39, %v11574_v60  ;;  %v11587_v62 = vpop.permute.xlu0 %5691  ;;  %v11600_v39 = vsel %vm718_vm3, %v11497_v13, %v5771_v24  ;;  %v5896_v13 = vld [vmem:[%s12013_s2 + $0x208] sm:$0xff] }
 0x6be   :  { %v5707_v2 = vadd.f32 %v11412_v44, %v5651_v35  ;;  %v5494_v61 = vpop.f32.mrf.mxu2  ;;  %v5704_v27 = vadd.f32 %v11412_v44, %v5648_v51  ;;  %v5705_v35 = vadd.f32 %v11412_v44, %v5649_v16  ;;  %6103 = vmatpush.msrb.mxu0 %v5898_v45  ;;  %6164 = vmatpush.msra.mxu2 %v5927_v15  ;;  %v5913_v51 = vld [vmem:[%s12013_s2 + $0x290] sm:$0xff]  ;;  %v5944_v16 = vld [vmem:[%s12013_s2 + $0x388] sm:$0xff] }
 0x6bf   :  { %12420 = vst [vmem:[#allocation50_spill] sm:$0xff] %v11559_v36  ;;  %v5658_v6 = vadd.f32 %v5494_v61, %v5127_v31  ;;  %6049 = vmatmul.f32.vlgmr.msrb.gmra.mxu2 %v11559_v36  ;;  %6132 = vmatpush.msrb.mxu1 %v5914_v48  ;;  %v5897_v31 = vld [vmem:[%s12013_s2 + $0x210] sm:$0xff]  ;;  %v11605_v48 = vsel %vm718_vm3, %v5771_v24, %v11470_v58  ;;  %v5943_v24 = vld [vmem:[%s12013_s2 + $0x380] sm:$0xff] }
 0x6c0   :  { %v5739_v25 = vmax.f32 %v5707_v2, 0.0  ;;  %v5736_v61 = vmax.f32 %v5704_v27, 0.0  ;;  %v5737_v2 = vmax.f32 %v5705_v35, 0.0  ;;  %6191 = vmatpush.msra.mxu3 %v5945_v54  ;;  %6104 = vmatpush.msrb.mxu0 %v5897_v31  ;;  %v5156_v15 = vadd.f32 %v11141_v9, %v11041_v49  ;;  %v5912_v27 = vld [vmem:[%s12013_s2 + $0x288] sm:$0xff]  ;;  %v5895_v54 = vld [vmem:[%s12013_s2 + $0x200] sm:$0xff] }
 0x6c1   :  { %v5714_v45 = vadd.f32 %v11587_v62, %v5658_v6  ;;  %v5069_v36 = vadd.f32 %v11146_v22, %v11047_v63  ;;  %6133 = vmatpush.msrb.mxu1 %v5913_v51  ;;  %v5098_v58 = vadd.f32 %v11148_v3, %v11049_v19  ;;  %v5130_v35 = vadd.f32 %v11156_v30, %v11051_v14 }
 0x6c2   :  { %v11612_v42 = vmul.f32 %v11585_v20, %v5739_v25  ;;  %v11623_v49 = vmul.f32 %v11600_v39, %v5736_v61  ;;  %v11626_v63 = vmul.f32 %v11605_v48, %v5737_v2  ;;  %6192 = vmatpush.msra.mxu3 %v5944_v16  ;;  %6105 = vmatpush.msrb.mxu0 %v5896_v13  ;;  %v5465_v3 = vpop.f32.mrf.mxu1  ;;  %v5911_v25 = vld [vmem:[%s12013_s2 + $0x280] sm:$0xff] }
 0x6c3   :  { %v5746_v9 = vmax.f32 %v5714_v45, 0.0  ;;  %v5523_v22 = vpop.f32.mrf.mxu3  ;;  %v5436_v19 = vpop.f32.mrf.mxu0  ;;  %6134 = vmatpush.msrb.mxu1 %v5912_v27  ;;  %v5657_v51 = vadd.f32 %v5465_v3, %v5098_v58 }
 0x6c4   :  { %v5659_v6 = vadd.f32 %v5523_v22, %v5156_v15  ;;  %6078 = vmatmul.f32.vlgmr.msrb.gmra.mxu3 %v11612_v42  ;;  %v5656_v31 = vadd.f32 %v5436_v19, %v5069_v36  ;;  %5991 = vmatmul.f32.vlgmr.msra.gmra.mxu0 %v11623_v49  ;;  %v11649_v36 = vpop.permute.xlu1 %5696  ;;  %v5072_v22 = vadd.f32 %v11193_v59, %v11062_v4 }
 0x6c5   :  { %6020 = vmatmul.f32.vlgmr.msra.gmra.mxu1 %v11626_v63  ;;  %v11643_v14 = vmul.f32 %v11545_v23, %v5746_v9  ;;  %6193 = vmatpush.msra.mxu3 %v5943_v24  ;;  %v5713_v2 = vadd.f32 %v11587_v62, %v5657_v51  ;;  %v5159_v9 = vadd.f32 %v11182_v26, %v11056_v50 }
 0x6c6   :  { %v5715_v30 = vadd.f32 %v11587_v62, %v5659_v6  ;;  %v5497_v16 = vpop.f32.mrf.mxu2  ;;  %6106 = vmatpush.msrb.mxu0 %v5895_v54  ;;  %v5712_v61 = vadd.f32 %v11587_v62, %v5656_v31  ;;  %6135 = vmatpush.msrb.mxu1 %v5911_v25  ;;  %v5133_v50 = vadd.f32 %v11209_v0, %v11066_v29 }
 0x6c7   :  { %v5666_v45 = vadd.f32 %v5497_v16, %v5130_v35  ;;  %6052 = vmatmul.f32.gmra.mxu2 %v11643_v14  ;;  %v5745_v27 = vmax.f32 %v5713_v2, 0.0  ;;  %v5101_v35 = vadd.f32 %v11195_v11, %v11064_v18  ;;  %v11679_v16 = vpop.permute.xlu2 %5701 }
 0x6c8   :  { %v5747_v15 = vmax.f32 %v5715_v30, 0.0  ;;  %v5744_v13 = vmax.f32 %v5712_v61, 0.0 }
 0x6c9   :  { %v5722_v58 = vadd.f32 %v11649_v36, %v5666_v45  ;;  %v11665_v54 = vmul.f32 %v11605_v48, %v5745_v27  ;;  %v5075_v27 = vadd.f32 %v11249_v40, %v11074_v33 }
 0x6ca   :  { %v11657_v24 = vmul.f32 %v11585_v20, %v5747_v15  ;;  %v11662_v3 = vmul.f32 %v11600_v39, %v5744_v13  ;;  %v5468_v59 = vpop.f32.mrf.mxu1  ;;  %v5162_v13 = vadd.f32 %v11238_v34, %v11072_v12  ;;  %v5240_v12 = vadd.f32 %v11265_v21, %v11079_v32 }
 0x6cb   :  { %v5754_v6 = vmax.f32 %v5722_v58, 0.0  ;;  %v5526_v19 = vpop.f32.mrf.mxu3  ;;  %v5439_v4 = vpop.f32.mrf.mxu0  ;;  %v5665_v31 = vadd.f32 %v5468_v59, %v5101_v35 }
 0x6cc   :  { %v5667_v26 = vadd.f32 %v5526_v19, %v5159_v9  ;;  %6081 = vmatmul.f32.gmra.mxu3 %v11657_v24  ;;  %v5664_v25 = vadd.f32 %v5439_v4, %v5072_v22  ;;  %5994 = vmatmul.f32.gmra.mxu0 %v11662_v3  ;;  %v5104_v9 = vadd.f32 %v11251_v55, %v11076_v41 }
 0x6cd   :  { %6023 = vmatmul.f32.gmra.mxu1 %v11665_v54  ;;  %v11673_v18 = vmul.f32 %v11545_v23, %v5754_v6  ;;  %v5721_v29 = vadd.f32 %v11649_v36, %v5665_v31  ;;  %v11709_v31 = vpop.permute.xlu1 %5782 }
 0x6ce   :  { %v5723_v11 = vadd.f32 %v11649_v36, %v5667_v26  ;;  %v5500_v51 = vpop.f32.mrf.mxu2  ;;  %v5720_v30 = vadd.f32 %v11649_v36, %v5664_v25  ;;  %v5781_v25 = vpop.permute.xlu0 %5780 }
 0x6cf   :  { %v5674_v0 = vadd.f32 %v5500_v51, %v5133_v50  ;;  %6055 = vmatmul.f32.gmra.mxu2 %v11673_v18  ;;  %v5753_v45 = vmax.f32 %v5721_v29, 0.0 }
 0x6d0   :  { %v5755_v61 = vmax.f32 %v5723_v11, 0.0  ;;  %v5752_v2 = vmax.f32 %v5720_v30, 0.0 }
 0x6d1   :  { %v5730_v15 = vadd.f32 %v11679_v16, %v5674_v0  ;;  %v11695_v19 = vmul.f32 %v11605_v48, %v5753_v45  ;;  %v5182_v0 = vadd.f32 %v11305_v28, %v11086_v8  ;;  %v5211_v45 = vadd.f32 %v11310_v37, %v11088_v47 }
 0x6d2   :  { %v11687_v58 = vmul.f32 %v11585_v20, %v5755_v61  ;;  %v11692_v6 = vmul.f32 %v11600_v39, %v5752_v2  ;;  %v5471_v40 = vpop.f32.mrf.mxu1  ;;  %v11718_v61 = vsel %vm718_vm3, %v5781_v25, %v11709_v31  ;;  %v5243_v8 = vadd.f32 %v11321_v57, %v11091_v52 }
 0x6d3   :  { %v5762_v22 = vmax.f32 %v5730_v15, 0.0  ;;  %v5529_v35 = vpop.f32.mrf.mxu3  ;;  %v5442_v33 = vpop.f32.mrf.mxu0  ;;  %v5673_v26 = vadd.f32 %v5471_v40, %v5104_v9 }
 0x6d4   :  { %v5675_v34 = vadd.f32 %v5529_v35, %v5162_v13  ;;  %6084 = vmatmul.f32.gmra.mxu3 %v11687_v58  ;;  %v5672_v50 = vadd.f32 %v5442_v33, %v5075_v27  ;;  %5997 = vmatmul.f32.gmra.mxu0 %v11692_v6 }
 0x6d5   :  { %6026 = vmatmul.f32.gmra.mxu1 %v11695_v19  ;;  %v11703_v41 = vmul.f32 %v11545_v23, %v5762_v22  ;;  %v5729_v32 = vadd.f32 %v11679_v16, %v5673_v26  ;;  %v5269_v23 = vadd.f32 %v11294_v10, %v11084_v53  ;;  %v5185_v26 = vadd.f32 %v11364_v38, %v11098_v7 }
 0x6d6   :  { %v5731_v55 = vadd.f32 %v11679_v16, %v5675_v34  ;;  %v5607_v4 = vpop.f32.mrf.mxu2  ;;  %v5728_v59 = vadd.f32 %v11679_v16, %v5672_v50 }
 0x6d7   :  { %12421 = vst [vmem:[#allocation52_spill] sm:$0xff] %v11703_v41  ;;  %v5654_v21 = vadd.f32 %v5607_v4, %v5240_v12  ;;  %6058 = vmatmul.f32.gmra.mxu2 %v11703_v41  ;;  %v5761_v30 = vmax.f32 %v5729_v32, 0.0  ;;  %v5272_v12 = vadd.f32 %v11350_v56, %v11096_v5  ;;  %v5214_v5 = vadd.f32 %v11366_v43, %v11101_v46 }
 0x6d8   :  { %v5763_v11 = vmax.f32 %v5731_v55, 0.0  ;;  %v5760_v51 = vmax.f32 %v5728_v59, 0.0 }
 0x6d9   :  { %v5710_v29 = vadd.f32 %v11412_v44, %v5654_v21  ;;  %v11729_v53 = vmul.f32 %v11605_v48, %v5761_v30  ;;  %v5779_v48 = vpop.permute.xlu2 %5778 }
 0x6da   :  { %v11721_v2 = vmul.f32 %v11585_v20, %v5763_v11  ;;  %v11726_v27 = vmul.f32 %v11600_v39, %v5760_v51  ;;  %v5578_v20 = vpop.f32.mrf.mxu1  ;;  %v11750_v55 = vsel %vm718_vm3, %v11574_v60, %v5779_v48  ;;  %v5246_v60 = vadd.f32 %v11377_v17, %v11103_v1 }
 0x6db   :  { %v5742_v15 = vmax.f32 %v5710_v29, 0.0  ;;  %v5636_v13 = vpop.f32.mrf.mxu3  ;;  %12424 = vst [vmem:[#allocation100_spill] sm:$0xff] %v11729_v53  ;;  %v5549_v28 = vpop.f32.mrf.mxu0  ;;  %v5653_v22 = vadd.f32 %v5578_v20, %v5211_v45  ;;  %v12428_v20 = vld [vmem:[#allocation55_spill] sm:$0xff] }
 0x6dc   :  { %12422 = vst [vmem:[#allocation67_spill] sm:$0xff] %v11721_v2  ;;  %v5655_v10 = vadd.f32 %v5636_v13, %v5269_v23  ;;  %6087 = vmatmul.f32.gmra.mxu3 %v11721_v2  ;;  %v5652_v9 = vadd.f32 %v5549_v28, %v5182_v0  ;;  %6000 = vmatmul.f32.gmra.mxu0 %v11726_v27  ;;  %v12425_v13 = vld [vmem:[#allocation27_spill] sm:$0xff]  ;;  %v12427_v28 = vld [vmem:[#allocation29_spill] sm:$0xff] }
 0x6dd   :  { %12423 = vst [vmem:[#allocation77_spill] sm:$0xff] %v11726_v27  ;;  %6029 = vmatmul.f32.gmra.mxu1 %v11729_v53  ;;  %v11737_v47 = vmul.f32 %v11718_v61, %v5742_v15  ;;  %v5709_v57 = vadd.f32 %v11412_v44, %v5653_v22 }
 0x6de   :  { %v5711_v37 = vadd.f32 %v11412_v44, %v5655_v10  ;;  %v5610_v39 = vpop.f32.mrf.mxu2  ;;  %v5708_v52 = vadd.f32 %v11412_v44, %v5652_v9  ;;  %v11753_v44 = vsel %vm718_vm3, %v5779_v48, %v5781_v25  ;;  %v5188_v9 = vadd.f32 %v12428_v20, %v12427_v28 }
 0x6df   :  { %v5662_v35 = vadd.f32 %v5610_v39, %v5243_v8  ;;  %6165 = vmatmul.f32.vlgmr.msra.gmra.mxu2 %v11737_v47  ;;  %v5741_v40 = vmax.f32 %v5709_v57, 0.0  ;;  %v12426_v8 = vld [vmem:[#allocation40_spill] sm:$0xff]  ;;  %v12430_v39 = vld [vmem:[#allocation42_spill] sm:$0xff] }
 0x6e0   :  { %v5743_v34 = vmax.f32 %v5711_v37, 0.0  ;;  %v5740_v33 = vmax.f32 %v5708_v52, 0.0  ;;  %v5275_v10 = vadd.f32 %v12426_v8, %v12425_v13  ;;  %v12429_v37 = vld [vmem:[#allocation43_spill] sm:$0xff]  ;;  %v12439_v8 = vld [vmem:[#allocation38_spill] sm:$0xff] }
 0x6e1   :  { %v5718_v50 = vadd.f32 %v11587_v62, %v5662_v35  ;;  %v11764_v59 = vmul.f32 %v11753_v44, %v5741_v40 }
 0x6e2   :  { %v11756_v4 = vmul.f32 %v11709_v31, %v5743_v34  ;;  %v11761_v56 = vmul.f32 %v11750_v55, %v5740_v33  ;;  %v5581_v25 = vpop.f32.mrf.mxu1  ;;  %v12432_v34 = vld [vmem:[#allocation44_spill] sm:$0xff] }
 0x6e3   :  { %v5750_v7 = vmax.f32 %v5718_v50, 0.0  ;;  %v5639_v38 = vpop.f32.mrf.mxu3  ;;  %v5552_v21 = vpop.f32.mrf.mxu0  ;;  %v5661_v51 = vadd.f32 %v5581_v25, %v5214_v5 }
 0x6e4   :  { %v5663_v32 = vadd.f32 %v5639_v38, %v5272_v12  ;;  %7059 = vmatmul.msk.f32.vlgmr.msra.gmra.mxu3 %vm5958_vm13, %v11756_v4  ;;  %v5660_v11 = vadd.f32 %v5552_v21, %v5185_v26  ;;  %6107 = vmatmul.f32.vlgmr.msrb.gmra.mxu0 %v11761_v56  ;;  %v12431_v12 = vld [vmem:[#allocation31_spill] sm:$0xff] }
 0x6e5   :  { %6136 = vmatmul.f32.vlgmr.msrb.gmra.mxu1 %v11764_v59  ;;  %v11773_v46 = vmul.f32 %v11718_v61, %v5750_v7  ;;  %v5717_v17 = vadd.f32 %v11587_v62, %v5661_v51  ;;  %v5249_v33 = vadd.f32 %v12432_v34, %v12431_v12 }
 0x6e6   :  { %v5719_v43 = vadd.f32 %v11587_v62, %v5663_v32  ;;  %v5613_v30 = vpop.f32.mrf.mxu2  ;;  %v5716_v1 = vadd.f32 %v11587_v62, %v5660_v11  ;;  %v5217_v62 = vadd.f32 %v12430_v39, %v12429_v37 }
 0x6e7   :  { %v5670_v29 = vadd.f32 %v5613_v30, %v5246_v60  ;;  %6168 = vmatmul.f32.gmra.mxu2 %v11773_v46  ;;  %v5749_v45 = vmax.f32 %v5717_v17, 0.0  ;;  %v12434_v17 = vld [vmem:[#allocation33_spill] sm:$0xff] }
 0x6e8   :  { %v5751_v23 = vmax.f32 %v5719_v43, 0.0  ;;  %v5748_v0 = vmax.f32 %v5716_v1, 0.0 }
 0x6e9   :  { %v5726_v15 = vadd.f32 %v11649_v36, %v5670_v29  ;;  %v11793_v35 = vmul.f32 %v11753_v44, %v5749_v45  ;;  %v12435_v29 = vld [vmem:[#allocation51_spill] sm:$0xff]  ;;  %v12437_v45 = vld [vmem:[#allocation81_spill] sm:$0xff] }
 0x6ea   :  { %v11785_v22 = vmul.f32 %v11709_v31, %v5751_v23  ;;  %v11790_v57 = vmul.f32 %v11750_v55, %v5748_v0  ;;  %v5584_v26 = vpop.f32.mrf.mxu1  ;;  %v5278_v23 = vadd.f32 %v12435_v29, %v12434_v17  ;;  %v12436_v0 = vld [vmem:[#allocation39_spill] sm:$0xff] }
 0x6eb   :  { %v5758_v48 = vmax.f32 %v5726_v15, 0.0  ;;  %v5642_v52 = vpop.f32.mrf.mxu3  ;;  %v5555_v50 = vpop.f32.mrf.mxu0  ;;  %v5669_v7 = vadd.f32 %v5584_v26, %v5217_v62  ;;  %v5191_v15 = vadd.f32 %v12437_v45, %v12436_v0 }
 0x6ec   :  { %v5671_v40 = vadd.f32 %v5642_v52, %v5275_v10  ;;  %7060 = vmatmul.msk.f32.gmra.mxu3 %vm5958_vm13, %v11785_v22  ;;  %v5668_v5 = vadd.f32 %v5555_v50, %v5188_v9  ;;  %6110 = vmatmul.f32.gmra.mxu0 %v11790_v57  ;;  %v12440_v10 = vld [vmem:[#allocation104_spill] sm:$0xff] }
 0x6ed   :  { %6139 = vmatmul.f32.gmra.mxu1 %v11793_v35  ;;  %v11802_v38 = vmul.f32 %v11718_v61, %v5758_v48  ;;  %v5725_v25 = vadd.f32 %v11649_v36, %v5669_v7 }
 0x6ee   :  { %v5727_v60 = vadd.f32 %v11649_v36, %v5671_v40  ;;  %v5616_v32 = vpop.f32.mrf.mxu2  ;;  %v5724_v21 = vadd.f32 %v11649_v36, %v5668_v5  ;;  %v5220_v36 = vadd.f32 %v12440_v10, %v12439_v8 }
 0x6ef   :  { %12433 = vst [vmem:[#allocation54_spill] sm:$0xff] %v11802_v38  ;;  %v5678_v11 = vadd.f32 %v5616_v32, %v5249_v33  ;;  %6171 = vmatmul.f32.gmra.mxu2 %v11802_v38  ;;  %v5757_v30 = vmax.f32 %v5725_v25, 0.0 }
 0x6f0   :  { %v5759_v51 = vmax.f32 %v5727_v60, 0.0  ;;  %v5756_v43 = vmax.f32 %v5724_v21, 0.0 }
 0x6f1   :  { %v5734_v1 = vadd.f32 %v11679_v16, %v5678_v11  ;;  %v11822_v37 = vmul.f32 %v11753_v44, %v5757_v30 }
 0x6f2   :  { %v11814_v13 = vmul.f32 %v11709_v31, %v5759_v51  ;;  %v11819_v9 = vmul.f32 %v11750_v55, %v5756_v43  ;;  %v5587_v48 = vpop.f32.mrf.mxu1 }
 0x6f3   :  { %v5766_v28 = vmax.f32 %v5734_v1, 0.0  ;;  %v5645_v20 = vpop.f32.mrf.mxu3  ;;  %12442 = vst [vmem:[#allocation128_spill] sm:$0xff] %v11822_v37  ;;  %v5558_v62 = vpop.f32.mrf.mxu0  ;;  %v5677_v12 = vadd.f32 %v5587_v48, %v5220_v36 }
 0x6f4   :  { %12438 = vst [vmem:[#allocation56_spill] sm:$0xff] %v11814_v13  ;;  %v5679_v39 = vadd.f32 %v5645_v20, %v5278_v23  ;;  %7061 = vmatmul.msk.f32.gmra.mxu3 %vm5958_vm13, %v11814_v13  ;;  %v5676_v52 = vadd.f32 %v5558_v62, %v5191_v15  ;;  %6113 = vmatmul.f32.gmra.mxu0 %v11819_v9 }
 0x6f5   :  { %12441 = vst [vmem:[#allocation63_spill] sm:$0xff] %v11819_v9  ;;  %6142 = vmatmul.f32.gmra.mxu1 %v11822_v37  ;;  %v11829_v34 = vmul.f32 %v11718_v61, %v5766_v28  ;;  %v5733_v50 = vadd.f32 %v11679_v16, %v5677_v12 }
 0x6f6   :  { %v5735_v33 = vadd.f32 %v11679_v16, %v5679_v39  ;;  %v5732_v40 = vadd.f32 %v11679_v16, %v5676_v52 }
 0x6f7   :  { %6174 = vmatmul.f32.gmra.mxu2 %v11829_v34  ;;  %v5765_v7 = vmax.f32 %v5733_v50, 0.0 }
 0x6f8   :  { %v5767_v26 = vmax.f32 %v5735_v33, 0.0  ;;  %v5764_v5 = vmax.f32 %v5732_v40, 0.0 }
 0x6f9   :  { %v11842_v61 = vmul.f32 %v11753_v44, %v5765_v7 }
 0x6fa   :  { %v11836_v60 = vmul.f32 %v11709_v31, %v5767_v26  ;;  %v11839_v32 = vmul.f32 %v11750_v55, %v5764_v5 }
 0x6fc   :  { %12443 = vst [vmem:[#allocation62_spill] sm:$0xff] %v11836_v60  ;;  %7062 = vmatmul.msk.f32.gmra.mxu3 %vm5958_vm13, %v11836_v60  ;;  %6116 = vmatmul.f32.gmra.mxu0 %v11839_v32 }
 0x6fd   :  { %6145 = vmatmul.f32.gmra.mxu1 %v11842_v61 }
 0x741   :  { %v5992_v16 = vpop.f32.mrf.mxu0 }
 0x742   :  { %v6021_v21 = vpop.f32.mrf.mxu1  ;;  %v6050_v25 = vpop.f32.mrf.mxu2 }
 0x743   :  { %v6022_v52 = vadd.f32 %v6021_v21, %v5992_v16 }
 0x745   :  { %v6051_v7 = vadd.f32 %v6050_v25, %v6022_v52 }
 0x747   :  { %v6079_v11 = vpop.f32.mrf.mxu3 }
 0x748   :  { %v6080_v41 = vadd.f32 %v6079_v11, %v6051_v7 }
 0x749   :  { %v5995_v51 = vpop.f32.mrf.mxu0 }
 0x74a   :  { %v6024_v31 = vpop.f32.mrf.mxu1  ;;  %v6053_v43 = vpop.f32.mrf.mxu2 }
 0x74b   :  { %v6025_v48 = vadd.f32 %v6024_v31, %v5995_v51 }
 0x74d   :  { %v6054_v40 = vadd.f32 %v6053_v43, %v6025_v48 }
 0x74f   :  { %v6082_v30 = vpop.f32.mrf.mxu3 }
 0x750   :  { %v6083_v37 = vadd.f32 %v6082_v30, %v6054_v40 }
 0x751   :  { %v5998_v55 = vpop.f32.mrf.mxu0 }
 0x752   :  { %v6027_v1 = vpop.f32.mrf.mxu1  ;;  %v6056_v17 = vpop.f32.mrf.mxu2 }
 0x753   :  { %v6028_v39 = vadd.f32 %v6027_v1, %v5998_v55 }
 0x755   :  { %v6057_v12 = vadd.f32 %v6056_v17, %v6028_v39 }
 0x757   :  { %v6085_v44 = vpop.f32.mrf.mxu3 }
 0x758   :  { %v6086_v13 = vadd.f32 %v6085_v44, %v6057_v12 }
 0x759   :  { %v6001_v29 = vpop.f32.mrf.mxu0 }
 0x75a   :  { %v6030_v23 = vpop.f32.mrf.mxu1  ;;  %v6059_v0 = vpop.f32.mrf.mxu2 }
 0x75b   :  { %v6031_v50 = vadd.f32 %v6030_v23, %v6001_v29 }
 0x75d   :  { %v6060_v9 = vadd.f32 %v6059_v0, %v6031_v50 }
 0x75f   :  { %v6088_v45 = vpop.f32.mrf.mxu3 }
 0x760   :  { %v6089_v60 = vadd.f32 %v6088_v45, %v6060_v9  ;;  %v6237_v45 = vld [vmem:[%s12015_s10 + $0x8] sm:$0xff] }
 0x761   :  { %v6108_v15 = vpop.f32.mrf.mxu0 }
 0x762   :  { %v6137_v8 = vpop.f32.mrf.mxu1  ;;  %v6166_v10 = vpop.f32.mrf.mxu2  ;;  %v6109_v55 = vadd.f32 %v6108_v15, %v6080_v41  ;;  %v6238_v15 = vld [vmem:[%s12015_s10 + $0x10] sm:$0xff] }
 0x764   :  { %v6138_v43 = vadd.f32 %v6137_v8, %v6109_v55  ;;  %v6239_v8 = vld [vmem:[%s12015_s10 + $0x18] sm:$0xff] }
 0x766   :  { %v6167_v30 = vadd.f32 %v6166_v10, %v6138_v43  ;;  %v7440_v10 = vmov 1  }
 0x767   :  { %v6195_v36 = vpop.f32.mrf.mxu3  ;;  %7409 = vset.pattern.permute.xlu1 %v7440_v10 }
 0x769   :  { %v6111_v28 = vpop.f32.mrf.mxu0 }
 0x76a   :  { %v6140_v20 = vpop.f32.mrf.mxu1  ;;  %v6169_v62 = vpop.f32.mrf.mxu2  ;;  %v6112_v53 = vadd.f32 %v6111_v28, %v6083_v37  ;;  %v6196_v28 = vadd.f32 %v6195_v36, %v6167_v30 }
 0x76c   :  { %v6141_v16 = vadd.f32 %v6140_v20, %v6112_v53  ;;  %v6211_v53 = vld [vmem:[%s12014_s9] sm:$0x3] }
 0x76e   :  { %v6170_v25 = vadd.f32 %v6169_v62, %v6141_v16 }
 0x76f   :  { %v6198_v33 = vpop.f32.mrf.mxu3 }
 0x770   :  { %v6199_v11 = vadd.f32 %v6198_v33, %v6170_v25 }
 0x771   :  { %v6114_v26 = vpop.f32.mrf.mxu0 }
 0x772   :  { %v6143_v5 = vpop.f32.mrf.mxu1  ;;  %v6172_v38 = vpop.f32.mrf.mxu2  ;;  %v6115_v2 = vadd.f32 %v6114_v26, %v6086_v13  ;;  %v6208_v41 = vmul.f32 0.0036764706, %v6199_v11 }
 0x774   :  { %v6144_v1 = vadd.f32 %v6143_v5, %v6115_v2  ;;  %v6207_v2 = vmul.f32 0.0036764706, %v6196_v28 }
 0x776   :  { %v6173_v17 = vadd.f32 %v6172_v38, %v6144_v1 }
 0x777   :  { %v6201_v27 = vpop.f32.mrf.mxu3 }
 0x778   :  { %v6202_v0 = vadd.f32 %v6201_v27, %v6173_v17 }
 0x779   :  { %v6117_v51 = vpop.f32.mrf.mxu0 }
 0x77a   :  { %v6118_v21 = vadd.f32 %v6117_v51, %v6089_v60  ;;  %v6146_v31 = vpop.f32.mrf.mxu1  ;;  %v6175_v23 = vpop.f32.mrf.mxu2  ;;  %v6209_v9 = vmul.f32 0.0036764706, %v6202_v0  ;;  %v6236_v60 = vld [vmem:[%s12015_s10] sm:$0xff] }
 0x77c   :  { %v6147_v29 = vadd.f32 %v6146_v31, %v6118_v21 }
 0x77e   :  { %v6176_v44 = vadd.f32 %v6175_v23, %v6147_v29 }
 0x77f   :  { %v6204_v39 = vpop.f32.mrf.mxu3 }
 0x780   :  { %v6205_v13 = vadd.f32 %v6204_v39, %v6176_v44 }
 0x782   :  { %v6210_v37 = vmul.f32 0.0036764706, %v6205_v13 }
 0x784   :  { %6227 = vmatpush.msra.mxu0 %v6210_v37 }
 0x786   :  { %6228 = vmatpush.msra.mxu0 %v6209_v9 }
 0x788   :  { %6229 = vmatpush.msra.mxu0 %v6208_v41 }
 0x78a   :  { %6230 = vmatpush.msra.mxu0 %v6207_v2 }
 0x78b   :  { %7063 = vmatmul.msk.f32.vlgmr.msra.gmra.mxu0 %vm3596_vm11, %v6211_v53 }
 0x808   :  { %v6232_v38 = vpop.f32.mrf.mxu0 }
 0x809   :  { %v6235_v27 = vmax.f32 %v6232_v38, 0.0 }
 0x80b   :  { %7064 = vmatpush.msk.msra.mxu1 %vm6253_vm14, %v6235_v27 }
 0x80c   :  { %7065 = vmatmul.msk.f32.vlgmr.msra.gmra.mxu1 %vm6240_vm15, %v6236_v60 }
 0x814   :  { %7066 = vmatmul.msk.f32.gmra.mxu1 %vm6240_vm15, %v6237_v45  ;;  %v12444_v45 = vmov 0  }
 0x81c   :  { %7067 = vmatmul.msk.f32.gmra.mxu1 %vm6240_vm15, %v6238_v15 }
 0x824   :  { %7068 = vmatmul.msk.f32.gmra.mxu1 %vm6240_vm15, %v6239_v8 }
 0x889   :  { %v6274_v36 = vpop.f32.mrf.mxu1 }
 0x88a   :  { %v7069_v20 = vmul.f32 -1.442695, %v6274_v36 }
 0x88c   :  { %7414 = vpow2.f32 %v7069_v20 }
 0x891   :  { %v6277_v62 = vpop.f32.mrf.mxu1 }
 0x892   :  { %v7415_v48 = vpop.eup %7414  ;;  %v7070_v52 = vmul.f32 -1.442695, %v6277_v62 }
 0x893   :  { %v6298_v12 = vadd.f32 1.0, %v7415_v48 }
 0x894   :  { %7416 = vpow2.f32 %v7070_v52 }
 0x895   :  { %7418 = vrcp.f32 %v6298_v12  ;;  %v6313_v1 = vand.u32 2147483648, %v6298_v12  ;;  %v6311_v16 = vand.u32 2147483647, %v6298_v12  ;;  %vm6307_vm1 = vweird.f32 %v6298_v12 }
 0x897   :  { %v6314_v25 = vor.u32 1.1754944e-38, %v6313_v1  ;;  %vm6312_vm3 = vcmp.eq.f32.partialorder %v6311_v16, 8.507059e+37 }
 0x899   :  { %v6280_v33 = vpop.f32.mrf.mxu1 }
 0x89a   :  { %v7417_v40 = vpop.eup %7416  ;;  %v7071_v50 = vmul.f32 -1.442695, %v6280_v33 }
 0x89b   :  { %v7419_v26 = vpop.eup %7418  ;;  %v6299_v5 = vadd.f32 1.0, %v7417_v40 }
 0x89c   :  { %7420 = vpow2.f32 %v7071_v50  ;;  %v6303_v7 = vmul.f32 %v7419_v26, %v6298_v12  ;;  %vm6308_vm0 = vweird.f32 %v7419_v26 }
 0x89d   :  { %7422 = vrcp.f32 %v6299_v5  ;;  %vm6309_vm2 = vmor %vm6307_vm1, %vm6308_vm0  ;;  %v6328_v13 = vand.u32 2147483648, %v6299_v5  ;;  %v6326_v37 = vand.u32 2147483647, %v6299_v5  ;;  %vm6322_vm5 = vweird.f32 %v6299_v5 }
 0x89e   :  { %v6304_v55 = vsub.f32 1.0, %v6303_v7 }
 0x89f   :  { %v6329_v53 = vor.u32 1.1754944e-38, %v6328_v13  ;;  %vm6327_vm7 = vcmp.eq.f32.partialorder %v6326_v37, 8.507059e+37  ;;  %v12446_v13 = vld [vmem:[#allocation62_spill] sm:$0xff]  ;;  %v12447_v37 = vld [vmem:[#allocation77_spill] sm:$0xff] }
 0x8a0   :  { %v6305_v51 = vmul.f32 %v7419_v26, %v6304_v55 }
 0x8a1   :  { %v6283_v21 = vpop.f32.mrf.mxu1 }
 0x8a2   :  { %v7421_v31 = vpop.eup %7420  ;;  %v7072_v43 = vmul.f32 -1.442695, %v6283_v21  ;;  %v6306_v17 = vadd.f32 %v7419_v26, %v6305_v51 }
 0x8a3   :  { %v7423_v29 = vpop.eup %7422  ;;  %v6300_v23 = vadd.f32 1.0, %v7421_v31 }
 0x8a4   :  { %7424 = vpow2.f32 %v7072_v43  ;;  %v6310_v44 = vsel %vm6309_vm2, %v7419_v26, %v6306_v17  ;;  %v6318_v39 = vmul.f32 %v7423_v29, %v6299_v5  ;;  %vm6323_vm4 = vweird.f32 %v7423_v29 }
 0x8a5   :  { %7426 = vrcp.f32 %v6300_v23  ;;  %v6315_v30 = vsel %vm6312_vm3, %v6314_v25, %v6310_v44  ;;  %vm6324_vm6 = vmor %vm6322_vm5, %vm6323_vm4  ;;  %v6343_v8 = vand.u32 2147483648, %v6300_v23  ;;  %v6341_v20 = vand.u32 2147483647, %v6300_v23 }
 0x8a6   :  { %6415 = vperm.xlu1 %7409, %v6315_v30   ;;  %6364 = vperm.xlu0 %7086, %v6315_v30   ;;  %v6319_v0 = vsub.f32 1.0, %v6318_v39  ;;  %vm6337_vm9 = vweird.f32 %v6300_v23 }
 0x8a7   :  { %v6344_v52 = vor.u32 1.1754944e-38, %v6343_v8  ;;  %vm6342_vm12 = vcmp.eq.f32.partialorder %v6341_v20, 8.507059e+37 }
 0x8a8   :  { %v6320_v11 = vmul.f32 %v7423_v29, %v6319_v0 }
 0x8aa   :  { %v7425_v28 = vpop.eup %7424  ;;  %v6321_v9 = vadd.f32 %v7423_v29, %v6320_v11 }
 0x8ab   :  { %v7427_v41 = vpop.eup %7426  ;;  %v6301_v2 = vadd.f32 1.0, %v7425_v28 }
 0x8ac   :  { %v6325_v38 = vsel %vm6324_vm6, %v7423_v29, %v6321_v9  ;;  %v6333_v27 = vmul.f32 %v7427_v41, %v6300_v23  ;;  %vm6338_vm8 = vweird.f32 %v7427_v41  ;;  %v12448_v9 = vld [vmem:[#allocation100_spill] sm:$0xff] }
 0x8ad   :  { %7428 = vrcp.f32 %v6301_v2  ;;  %v6330_v60 = vsel %vm6327_vm7, %v6329_v53, %v6325_v38  ;;  %vm6339_vm10 = vmor %vm6337_vm9, %vm6338_vm8  ;;  %v6358_v26 = vand.u32 2147483648, %v6301_v2  ;;  %v6356_v7 = vand.u32 2147483647, %v6301_v2  ;;  %v12451_v38 = vld [vmem:[#allocation63_spill] sm:$0xff] }
 0x8ae   :  { %7410 = vset.pattern.permute.xlu1 %v12444_v45  ;;  %v6334_v15 = vsub.f32 1.0, %v6333_v27  ;;  %vm6352_vm14 = vweird.f32 %v6301_v2 }
 0x8af   :  { %6369 = vperm.xlu1 %7410, %v6330_v60   ;;  %v6359_v1 = vor.u32 1.1754944e-38, %v6358_v26  ;;  %vm6357_vm0 = vcmp.eq.f32.partialorder %v6356_v7, 8.507059e+37 }
 0x8b0   :  { %v6335_v36 = vmul.f32 %v7427_v41, %v6334_v15  ;;  %v12453_v15 = vld [vmem:[#allocation54_spill] sm:$0xff] }
 0x8b2   :  { %v6336_v62 = vadd.f32 %v7427_v41, %v6335_v36  ;;  %v12454_v36 = vld [vmem:[#allocation56_spill] sm:$0xff] }
 0x8b3   :  { %v7429_v48 = vpop.eup %7428 }
 0x8b4   :  { %v6348_v12 = vmul.f32 %v7429_v48, %v6301_v2  ;;  %v6340_v33 = vsel %vm6339_vm10, %v7427_v41, %v6336_v62  ;;  %vm6353_vm13 = vweird.f32 %v7429_v48 }
 0x8b5   :  { %v6345_v40 = vsel %vm6342_vm12, %v6344_v52, %v6340_v33  ;;  %vm6354_vm15 = vmor %vm6352_vm14, %vm6353_vm13 }
 0x8b6   :  { %6374 = vperm.xlu2 %7088, %v6345_v40   ;;  %v6349_v50 = vsub.f32 1.0, %v6348_v12 }
 0x8b7   :  { %7413 = vset.pattern.permute.xlu1 %v7440_v10 }
 0x8b8   :  { %v6350_v5 = vmul.f32 %v7429_v48, %v6349_v50 }
 0x8ba   :  { %v6351_v55 = vadd.f32 %v7429_v48, %v6350_v5 }
 0x8bc   :  { %v6355_v51 = vsel %vm6354_vm15, %v7429_v48, %v6351_v55 }
 0x8bd   :  { %v6360_v16 = vsel %vm6357_vm0, %v6359_v1, %v6355_v51 }
 0x8be   :  { %7411 = vset.pattern.permute.xlu2 %v7440_v10  ;;  %6427 = vperm.xlu1 %7413, %v6360_v16  }
 0x8bf   :  { %6379 = vperm.xlu0 %7086, %v6360_v16   ;;  %6419 = vperm.xlu2 %7411, %v6330_v60   ;;  %v12452_v60 = vld [vmem:[#allocation128_spill] sm:$0xff] }
 0x8c7   :  { %7412 = vset.pattern.permute.xlu0 %v7440_v10 }
 0x8c8   :  { %6423 = vperm.xlu0 %7412, %v6345_v40  }
 0x910   :  { %v6375_v21 = vpop.permute.xlu2 %6374 }
 0x911   :  { %v6390_v31 = vmul.f32 %v6375_v21, %v11692_v6  ;;  %v6391_v43 = vmul.f32 %v6375_v21, %v11695_v19  ;;  %v6392_v17 = vmul.f32 %v6375_v21, %v11673_v18  ;;  %v6393_v29 = vmul.f32 %v6375_v21, %v11687_v58 }
 0x913   :  { %6406 = vst [vmem:[%s12016_s11 + $0x80] sm:$0xff] %v6390_v31 }
 0x914   :  { %6407 = vst [vmem:[%s12016_s11 + $0x88] sm:$0xff] %v6391_v43 }
 0x915   :  { %6408 = vst [vmem:[%s12016_s11 + $0x90] sm:$0xff] %v6392_v17 }
 0x916   :  { %6409 = vst.msk [vmem:[%s12016_s11 + $0x98] sm:$0xff] %vm3596_vm11, %v6393_v29 }
 0x918   :  { %v6416_v18 = vpop.permute.xlu1 %6415  ;;  %v6365_v6 = vpop.permute.xlu0 %6364 }
 0x919   :  { %v6430_v58 = vmul.f32 %v6416_v18, %v11761_v56  ;;  %v6431_v19 = vmul.f32 %v6416_v18, %v11764_v59  ;;  %v6432_v10 = vmul.f32 %v6416_v18, %v11737_v47  ;;  %v6433_v23 = vmul.f32 %v6416_v18, %v11756_v4  ;;  %v6420_v39 = vpop.permute.xlu2 %6419  ;;  %v12445_v47 = vld [vmem:[#allocation50_spill] sm:$0xff] }
 0x91a   :  { %v6382_v25 = vmul.f32 %v6365_v6, %v11623_v49  ;;  %v6383_v44 = vmul.f32 %v6365_v6, %v11626_v63  ;;  %v6384_v56 = vmul.f32 %v6365_v6, %v12445_v47  ;;  %v6385_v49 = vmul.f32 %v6365_v6, %v11612_v42 }
 0x91b   :  { %6446 = vst [vmem:[%s12016_s11 + $0x20] sm:$0xff] %v6430_v58  ;;  %v6434_v63 = vmul.f32 %v6420_v39, %v11790_v57  ;;  %v6435_v4 = vmul.f32 %v6420_v39, %v11793_v35  ;;  %v6436_v59 = vmul.f32 %v6420_v39, %v11773_v46  ;;  %v6437_v42 = vmul.f32 %v6420_v39, %v11785_v22 }
 0x91c   :  { %6447 = vst [vmem:[%s12016_s11 + $0x28] sm:$0xff] %v6431_v19 }
 0x91d   :  { %6448 = vst [vmem:[%s12016_s11 + $0x30] sm:$0xff] %v6432_v10 }
 0x91e   :  { %6449 = vst.msk [vmem:[%s12016_s11 + $0x38] sm:$0xff] %vm3596_vm11, %v6433_v23 }
 0x91f   :  { %6398 = vst [vmem:[%s12016_s11] sm:$0xff] %v6382_v25 }
 0x920   :  { %6399 = vst [vmem:[%s12016_s11 + $0x8] sm:$0xff] %v6383_v44 }
 0x921   :  { %6400 = vst [vmem:[%s12016_s11 + $0x10] sm:$0xff] %v6384_v56  ;;  %v6370_v30 = vpop.permute.xlu1 %6369 }
 0x922   :  { %6401 = vst.msk [vmem:[%s12016_s11 + $0x18] sm:$0xff] %vm3596_vm11, %v6385_v49  ;;  %v6386_v57 = vmul.f32 %v6370_v30, %v11662_v3  ;;  %v6387_v46 = vmul.f32 %v6370_v30, %v11665_v54  ;;  %v6388_v35 = vmul.f32 %v6370_v30, %v11643_v14  ;;  %v6389_v22 = vmul.f32 %v6370_v30, %v11657_v24 }
 0x923   :  { %6450 = vst [vmem:[%s12016_s11 + $0x60] sm:$0xff] %v6434_v63 }
 0x924   :  { %6451 = vst [vmem:[%s12016_s11 + $0x68] sm:$0xff] %v6435_v4 }
 0x925   :  { %6452 = vst [vmem:[%s12016_s11 + $0x70] sm:$0xff] %v6436_v59 }
 0x926   :  { %6453 = vst.msk [vmem:[%s12016_s11 + $0x78] sm:$0xff] %vm3596_vm11, %v6437_v42 }
 0x927   :  { %6402 = vst [vmem:[%s12016_s11 + $0x40] sm:$0xff] %v6386_v57 }
 0x928   :  { %6403 = vst [vmem:[%s12016_s11 + $0x48] sm:$0xff] %v6387_v46 }
 0x929   :  { %6404 = vst [vmem:[%s12016_s11 + $0x50] sm:$0xff] %v6388_v35 }
 0x92a   :  { %6405 = vst.msk [vmem:[%s12016_s11 + $0x58] sm:$0xff] %vm3596_vm11, %v6389_v22 }
 0x930   :  { %v6428_v14 = vpop.permute.xlu1 %6427 }
 0x931   :  { %v6442_v24 = vmul.f32 %v6428_v14, %v11839_v32  ;;  %v6443_v3 = vmul.f32 %v6428_v14, %v11842_v61  ;;  %v6444_v54 = vmul.f32 %v6428_v14, %v11829_v34  ;;  %v6380_v0 = vpop.permute.xlu0 %6379  ;;  %v6445_v11 = vmul.f32 %v6428_v14, %v12446_v13  ;;  %v12449_v34 = vld [vmem:[#allocation52_spill] sm:$0xff]  ;;  %v12450_v61 = vld [vmem:[#allocation67_spill] sm:$0xff] }
 0x932   :  { %v6394_v28 = vmul.f32 %v6380_v0, %v12447_v37  ;;  %v6395_v41 = vmul.f32 %v6380_v0, %v12448_v9  ;;  %v6396_v32 = vmul.f32 %v6380_v0, %v12449_v34  ;;  %v6397_v2 = vmul.f32 %v6380_v0, %v12450_v61 }
 0x933   :  { %6458 = vst [vmem:[%s12016_s11 + $0xe0] sm:$0xff] %v6442_v24 }
 0x934   :  { %6459 = vst [vmem:[%s12016_s11 + $0xe8] sm:$0xff] %v6443_v3 }
 0x935   :  { %6460 = vst [vmem:[%s12016_s11 + $0xf0] sm:$0xff] %v6444_v54 }
 0x936   :  { %6461 = vst.msk [vmem:[%s12016_s11 + $0xf8] sm:$0xff] %vm3596_vm11, %v6445_v11 }
 0x937   :  { %6410 = vst [vmem:[%s12016_s11 + $0xc0] sm:$0xff] %v6394_v28 }
 0x938   :  { %6411 = vst [vmem:[%s12016_s11 + $0xc8] sm:$0xff] %v6395_v41 }
 0x939   :  { %6412 = vst [vmem:[%s12016_s11 + $0xd0] sm:$0xff] %v6396_v32 }
 0x93a   :  { %6413 = vst.msk [vmem:[%s12016_s11 + $0xd8] sm:$0xff] %vm3596_vm11, %v6397_v2  ;;  %v6424_v53 = vpop.permute.xlu0 %6423 }
 0x93b   :  { %v6438_v27 = vmul.f32 %v6424_v53, %v12451_v38  ;;  %v6439_v45 = vmul.f32 %v6424_v53, %v12452_v60  ;;  %v6440_v8 = vmul.f32 %v6424_v53, %v12453_v15  ;;  %v6441_v20 = vmul.f32 %v6424_v53, %v12454_v36 }
 0x93d   :  { %6454 = vst [vmem:[%s12016_s11 + $0xa0] sm:$0xff] %v6438_v27 }
 0x93e   :  { %6455 = vst [vmem:[%s12016_s11 + $0xa8] sm:$0xff] %v6439_v45 }
 0x93f   :  { %6456 = vst [vmem:[%s12016_s11 + $0xb0] sm:$0xff] %v6440_v8 }
 0x940   :  { %6457 = vst.msk [vmem:[%s12016_s11 + $0xb8] sm:$0xff] %vm3596_vm11, %v6441_v20 }

</bundles_post_ra>
